<compile_context>
chip_gen: v7x
topology: tpu7x:2x2x1
jax: 0.10.0
libtpu: 0.0.40
codegen_flags: <defaults>
</compile_context>

<pallas_src>
import functools

import jax
import jax.numpy as jnp
import numpy as np
from jax import lax
from jax.experimental import pallas as pl
from jax.experimental.pallas import tpu as pltpu

# Fixed QNetwork geometry (80x80 input is forced by fc1.in_features == 3200):
#   conv1: 4->16, k=8, s=4, p=2  (80x80 -> 20x20)
#   conv2: 16->32, k=4, s=2, p=1 (20x20 -> 10x10)
#   fc1: 3200 -> 256, fc2: 256 -> num_actions
C1_OUT, K1, S1, P1 = 16, 8, 4, 2
C2_OUT, K2, S2 = 32, 4, 2
H_IN = W_IN = 80
OH1 = OW1 = 20
OH2 = OW2 = 10
PHASE_ROW = 11   # 22x22 (padded) conv1 output -> 11x11 per stride-2 phase
PB = 128         # per-batch lane block inside a phase group (>= 121, aligned)


# ----------------------------------------------------------------------------
# Static index maps for the stride-2 phase ("space-to-batch") layout.
# ----------------------------------------------------------------------------
def _phase_layout_maps(batch):
    """conv1's matmul-output columns are laid out as
         col = t*(batch*PB) + b*PB + u*11 + v,  t = 2*r + s,  u,v in [0,11)
    holding A1pad[b, :, 2u+r, 2v+s] (A1pad = conv1 output zero-padded by 1,
    i.e. conv2's padded input).  With this layout every conv2 kernel offset
    (i, j) is a single contiguous lane-slice of the conv1 activation."""
    group = batch * PB
    total = 4 * group + 16               # +16 slack for the largest slice shift (12)

    col_src = np.full((total,), batch * OH1 * OW1, dtype=np.int32)  # -> zero column
    mask = np.zeros((total,), dtype=np.float32)
    for r in range(2):
        for s in range(2):
            t = 2 * r + s
            for b in range(batch):
                for u in range(PHASE_ROW):
                    for v in range(PHASE_ROW):
                        col = t * group + b * PB + u * PHASE_ROW + v
                        h = 2 * u + r          # padded conv1-output coords in [0,22)
                        w = 2 * v + s
                        if 1 <= h <= OH1 and 1 <= w <= OW1:
                            oh, ow = h - 1, w - 1
                            col_src[col] = b * OH1 * OW1 + oh * OW1 + ow
                            mask[col] = 1.0

    # fc1 weight rows, permuted + zero-padded so that the in-kernel flatten
    # xf[b, c2*PB + u*11 + v] == relu(conv2)[b, c2, u, v] contracts exactly like
    # torch's x.view(batch, -1) @ fc1.weight.T.
    fc1_src = np.full((C2_OUT * PB,), C2_OUT * OH2 * OW2, dtype=np.int32)  # -> zero row
    for c in range(C2_OUT):
        for u in range(OH2):
            for v in range(OW2):
                fc1_src[c * PB + u * PHASE_ROW + v] = c * OH2 * OW2 + u * OW2 + v
    return total, col_src, mask, fc1_src


# ----------------------------------------------------------------------------
# Parameters (PyTorch layout) + one-time repack into kernel layout.
# ----------------------------------------------------------------------------
def init_params(key, num_frames=4, num_actions=4):
    ks = jax.random.split(key, 8)

    def u(k, shape, fan_in):
        bound = 1.0 / jnp.sqrt(jnp.float32(fan_in))
        return jax.random.uniform(k, shape, jnp.float32, -bound, bound)

    return {
        "conv1_w": u(ks[0], (C1_OUT, num_frames, K1, K1), num_frames * K1 * K1),
        "conv1_b": u(ks[1], (C1_OUT,), num_frames * K1 * K1),
        "conv2_w": u(ks[2], (C2_OUT, C1_OUT, K2, K2), C1_OUT * K2 * K2),
        "conv2_b": u(ks[3], (C2_OUT,), C1_OUT * K2 * K2),
        "fc1_w":  u(ks[4], (C2_OUT * OH2 * OW2, 256), 3200),   # stored [in, out]
        "fc1_b":  u(ks[5], (256,), 3200),
        "fc2_w":  u(ks[6], (256, num_actions), 256),
        "fc2_b":  u(ks[7], (num_actions,), 256),
    }


def prepare_params(params, batch):
    """One-time repack (hoisted out of the forward pass)."""
    total, col_src, mask, fc1_src = _phase_layout_maps(batch)
    fc1_aug = jnp.concatenate(
        [params["fc1_w"], jnp.zeros((1, params["fc1_w"].shape[1]), jnp.float32)],
        axis=0)
    return {
        "w1": params["conv1_w"].reshape(C1_OUT, -1),                       # [16, 256]
        "b1": params["conv1_b"].reshape(C1_OUT, 1),
        "w2": params["conv2_w"].transpose(0, 2, 3, 1).reshape(C2_OUT, -1),  # [32, 256]
        "b2": params["conv2_b"].reshape(C2_OUT, 1),
        "fc1_w": jnp.take(fc1_aug, jnp.asarray(fc1_src), axis=0),          # [4096, 256]
        "fc1_b": params["fc1_b"].reshape(1, -1),
        "fc2_w": params["fc2_w"],                                          # [256, A]
        "fc2_b": params["fc2_b"].reshape(1, -1),
        "mask": jnp.asarray(mask).reshape(1, total),
        "col_src": jnp.asarray(col_src),
    }


# ----------------------------------------------------------------------------
# Per-forward wrapper glue: conv1 im2col emitted in the phase layout.
# ----------------------------------------------------------------------------
def _conv1_patches(x, col_src, total):
    batch = x.shape[0]
    xp = jnp.pad(x, ((0, 0), (0, 0), (P1, P1), (P1, P1)))            # [B, C, 84, 84]
    cols = [xp[:, :, i:i + S1 * OH1:S1, j:j + S1 * OW1:S1]
            for i in range(K1) for j in range(K1)]                    # [B, C, 20, 20] each
    col = jnp.stack(cols, axis=2)                                     # [B, C, 64, 20, 20]
    col = col.reshape(batch, -1, OH1 * OW1)                           # K order: c, kh, kw
    kdim = col.shape[1]
    col = col.transpose(1, 0, 2).reshape(kdim, batch * OH1 * OW1)     # cols: (b, oh, ow)
    col = jnp.concatenate([col, jnp.zeros((kdim, 1), col.dtype)], axis=1)
    return jnp.take(col, col_src, axis=1)                             # [kdim, total]


# ----------------------------------------------------------------------------
# The fused Pallas kernel.
# ----------------------------------------------------------------------------
def _qnet_kernel(col_ref, w1_ref, b1_ref, mask_ref, w2_ref, b2_ref,
                 fc1w_hbm, fc1b_ref, fc2w_ref, fc2b_ref,
                 out_ref, fc1w_vmem, fc1_sem, *, batch):
    group = batch * PB

    # Prefetch the (largest) fc1 weight HBM -> VMEM so it overlaps the convs.
    fc1_copy = pltpu.make_async_copy(fc1w_hbm, fc1w_vmem, fc1_sem)
    fc1_copy.start()

    # conv1: one MXU matmul over the pre-packed im2col operand (lane-dense out).
    a1 = jnp.dot(w1_ref[...], col_ref[...], preferred_element_type=jnp.float32)
    a1 = jnp.maximum(a1 + b1_ref[...], 0.0) * mask_ref[...]        # [16, total]
    # a1 column t*group + b*PB + u*11 + v == relu(conv1)[b, :, 2u+r-1, 2v+s-1]
    # (zero on conv2's padding ring) -> the padded conv1 output, phase-split.

    # conv2: its im2col is 16 static lane-slices of a1; single MXU matmul.
    pieces = []
    for i in range(K2):
        for j in range(K2):
            t = (i % S2) * 2 + (j % S2)                  # stride-2 phase of (i, j)
            off = (i // S2) * PHASE_ROW + (j // S2)      # shift inside the phase
            start = t * group + off
            pieces.append(a1[:, start:start + group])    # [16, batch*PB]
    x2 = jnp.concatenate(pieces, axis=0)                 # [256, batch*PB]
    a2 = jnp.dot(w2_ref[...], x2, preferred_element_type=jnp.float32)
    a2 = jnp.maximum(a2 + b2_ref[...], 0.0)              # [32, batch*PB]
    # a2[c2, b*PB + u*11 + v] == relu(conv2)[b, c2, u, v] for u, v < 10.

    # Flatten (NCHW order) into the fc1 operand [batch, 32*PB].
    rows = []
    for b in range(batch):
        rows.append(jnp.concatenate(
            [a2[c:c + 1, b * PB:(b + 1) * PB] for c in range(C2_OUT)], axis=1))
    xf = jnp.concatenate(rows, axis=0)                   # [batch, 32*PB]

    # fc1 / fc2 (fc1 weight rows already permuted/zero-padded to this layout).
    fc1_copy.wait()
    h = jnp.dot(xf, fc1w_vmem[...], preferred_element_type=jnp.float32)
    h = jnp.maximum(h + fc1b_ref[...], 0.0)              # [batch, 256]
    out = jnp.dot(h, fc2w_ref[...], preferred_element_type=jnp.float32) + fc2b_ref[...]
    out_ref[...] = out.astype(out_ref.dtype)


def qnetwork_forward(prep, x):
    """Full QNetwork forward as a single fused pallas_call."""
    batch = x.shape[0]
    total = prep["mask"].shape[1]
    hidden = prep["fc1_w"].shape[1]
    num_actions = prep["fc2_w"].shape[1]
    kdim = prep["w1"].shape[1]

    col1t = _conv1_patches(x, prep["col_src"], total)    # [kdim, total]
    kernel = functools.partial(_qnet_kernel, batch=batch)

    return pl.pallas_call(
        kernel,
        out_shape=jax.ShapeDtypeStruct((batch, num_actions), jnp.float32),
        grid=(1,),
        in_specs=[
            pl.BlockSpec((kdim, total), lambda i: (0, 0)),            # conv1 im2col
            pl.BlockSpec((C1_OUT, kdim), lambda i: (0, 0)),           # w1
            pl.BlockSpec((C1_OUT, 1), lambda i: (0, 0)),              # b1
            pl.BlockSpec((1, total), lambda i: (0, 0)),               # phase/pad mask
            pl.BlockSpec((C2_OUT, K2 * K2 * C1_OUT), lambda i: (0, 0)),  # w2
            pl.BlockSpec((C2_OUT, 1), lambda i: (0, 0)),              # b2
            pl.BlockSpec(memory_space=pl.ANY),                        # fc1_w (HBM, manual DMA)
            pl.BlockSpec((1, hidden), lambda i: (0, 0)),              # fc1_b
            pl.BlockSpec((hidden, num_actions), lambda i: (0, 0)),    # fc2_w
            pl.BlockSpec((1, num_actions), lambda i: (0, 0)),         # fc2_b
        ],
        out_specs=pl.BlockSpec((batch, num_actions), lambda i: (0, 0)),
        scratch_shapes=[
            pltpu.VMEM((C2_OUT * PB, hidden), jnp.float32),           # fc1_w landing buffer
            pltpu.SemaphoreType.DMA,                                  # its completion sem
        ],
        compiler_params=pltpu.CompilerParams(
            dimension_semantics=("arbitrary",),
            vmem_limit_bytes=32 * 1024 * 1024),
    )(col1t, prep["w1"], prep["b1"], prep["mask"], prep["w2"], prep["b2"],
      prep["fc1_w"], prep["fc1_b"], prep["fc2_w"], prep["fc2_b"])


# ----------------------------------------------------------------------------
# Pure-JAX reference (PyTorch semantics) for validation.
# ----------------------------------------------------------------------------
def reference_forward(params, x):
    hp = lax.Precision.HIGHEST
    y = lax.conv_general_dilated(
        x, params["conv1_w"], (S1, S1), ((P1, P1), (P1, P1)),
        dimension_numbers=("NCHW", "OIHW", "NCHW"), precision=hp)
    y = jnp.maximum(y + params["conv1_b"][None, :, None, None], 0.0)
    y = lax.conv_general_dilated(
        y, params["conv2_w"], (S2, S2), ((1, 1), (1, 1)),
        dimension_numbers=("NCHW", "OIHW", "NCHW"), precision=hp)
    y = jnp.maximum(y + params["conv2_b"][None, :, None, None], 0.0)
    y = y.reshape(x.shape[0], -1)                        # == torch .view(batch, -1)
    y = jnp.maximum(jnp.dot(y, params["fc1_w"], precision=hp) + params["fc1_b"], 0.0)
    return jnp.dot(y, params["fc2_w"], precision=hp) + params["fc2_b"]


if __name__ == "__main__":
    key = jax.random.PRNGKey(0)
    k_param, k_x = jax.random.split(key)

    batch, num_frames, num_actions = 2, 4, 4
    params = init_params(k_param, num_frames, num_actions)
    prep = prepare_params(params, batch)                 # one-time repack

    # Input spatial size must be 80x80 so conv2's output flattens to 3200.
    x = jax.random.normal(k_x, (batch, num_frames, H_IN, W_IN), jnp.float32)

    fwd = jax.jit(qnetwork_forward)
    out = jax.block_until_ready(fwd(prep, x))

    assert out.shape == (batch, num_actions), out.shape
    assert out.dtype == jnp.float32
    assert bool(jnp.all(jnp.isfinite(out)))

    ref = reference_forward(params, x)
    assert float(jnp.max(jnp.abs(out - ref))) < 5e-2, "kernel/reference mismatch"

    print("KERNEL_OK")
</pallas_src>

<mosaic_0001>
module attributes {stable_mosaic.version = 11 : i64} {
  func.func private @main(%arg0: i32) attributes {dimension_semantics = [#tpu.dimension_semantics<core_parallel>], iteration_bounds = array<i64: 2>, tpu.core_type = #tpu.core_type<sc_scalar_subcore>, window_params = []} {
    return
  }
}

module attributes {stable_mosaic.version = 11 : i64} {
  func.func private @main(%arg0: i32) attributes {dimension_semantics = [#tpu.dimension_semantics<core_parallel>], iteration_bounds = array<i64: 2>, tpu.core_type = #tpu.core_type<sc_scalar_subcore>, window_params = []} {
    return
  }
}

module attributes {stable_mosaic.version = 11 : i64} {
  func.func @_qnet_kernel(%arg0: i32, %arg1: memref<256x1040xf32, #tpu.memory_space<vmem>>, %arg2: memref<16x256xf32, #tpu.memory_space<vmem>>, %arg3: memref<16x1xf32, #tpu.memory_space<vmem>>, %arg4: memref<1x1040xf32, #tpu.memory_space<vmem>>, %arg5: memref<32x256xf32, #tpu.memory_space<vmem>>, %arg6: memref<32x1xf32, #tpu.memory_space<vmem>>, %arg7: memref<4096x256xf32, #tpu.memory_space<any>>, %arg8: memref<1x256xf32, #tpu.memory_space<vmem>>, %arg9: memref<256x4xf32, #tpu.memory_space<vmem>>, %arg10: memref<1x4xf32, #tpu.memory_space<vmem>>, %arg11: memref<2x4xf32, #tpu.memory_space<vmem>>, %arg12: memref<4096x256xf32, #tpu.memory_space<vmem>>, %arg13: memref<!tpu.dma_semaphore, #tpu.memory_space<semaphore_mem>>) attributes {dimension_semantics = [#tpu.dimension_semantics<arbitrary>], iteration_bounds = array<i64: 1>, scalar_prefetch = 0 : i64, scratch_operands = 2 : i64, tpu.core_type = #tpu.core_type<tc>, window_params = [{pipeline_mode = #tpu.pipeline_mode<synchronous>, transform_indices = @transform_0, window_bounds = array<i64: 256, 1040>}, {pipeline_mode = #tpu.pipeline_mode<synchronous>, transform_indices = @transform_1, window_bounds = array<i64: 16, 256>}, {pipeline_mode = #tpu.pipeline_mode<synchronous>, transform_indices = @transform_2, window_bounds = array<i64: 16, 1>}, {pipeline_mode = #tpu.pipeline_mode<synchronous>, transform_indices = @transform_3, window_bounds = array<i64: 1, 1040>}, {pipeline_mode = #tpu.pipeline_mode<synchronous>, transform_indices = @transform_4, window_bounds = array<i64: 32, 256>}, {pipeline_mode = #tpu.pipeline_mode<synchronous>, transform_indices = @transform_5, window_bounds = array<i64: 32, 1>}, {}, {pipeline_mode = #tpu.pipeline_mode<synchronous>, transform_indices = @transform_7, window_bounds = array<i64: 1, 256>}, {pipeline_mode = #tpu.pipeline_mode<synchronous>, transform_indices = @transform_8, window_bounds = array<i64: 256, 4>}, {pipeline_mode = #tpu.pipeline_mode<synchronous>, transform_indices = @transform_9, window_bounds = array<i64: 1, 4>}, {pipeline_mode = #tpu.pipeline_mode<synchronous>, transform_indices = @transform_10, window_bounds = array<i64: 2, 4>}]} {
    tpu.enqueue_dma source(%arg7 : memref<4096x256xf32, #tpu.memory_space<any>>) target(%arg12 : memref<4096x256xf32, #tpu.memory_space<vmem>>) target_semaphore(%arg13 : memref<!tpu.dma_semaphore, #tpu.memory_space<semaphore_mem>>)
    %c0 = arith.constant 0 : index
    %c0_0 = arith.constant 0 : index
    %0 = vector.load %arg2[%c0, %c0_0] : memref<16x256xf32, #tpu.memory_space<vmem>>, vector<16x256xf32>
    %c0_1 = arith.constant 0 : index
    %c0_2 = arith.constant 0 : index
    %1 = vector.load %arg1[%c0_1, %c0_2] : memref<256x1040xf32, #tpu.memory_space<vmem>>, vector<256x1040xf32>
    %cst = arith.constant dense<0.000000e+00> : vector<16x1040xf32>
    %2 = tpu.matmul %0, %1, %cst {dimension_numbers = #tpu.dot_dimension_numbers<[1], [0], [0], [1], [0, 0, 1, 1], [], []>} : vector<16x256xf32>, vector<256x1040xf32>, vector<16x1040xf32> -> vector<16x1040xf32>
    %c0_3 = arith.constant 0 : index
    %c0_4 = arith.constant 0 : index
    %3 = vector.load %arg3[%c0_3, %c0_4] : memref<16x1xf32, #tpu.memory_space<vmem>>, vector<16x1xf32>
    %4 = vector.broadcast %3 : vector<16x1xf32> to vector<16x1040xf32>
    %5 = arith.addf %2, %4 : vector<16x1040xf32>
    %cst_5 = arith.constant 0.000000e+00 : f32
    %6 = vector.broadcast %cst_5 : f32 to vector<16x1040xf32>
    %7 = arith.maximumf %5, %6 : vector<16x1040xf32>
    %c0_6 = arith.constant 0 : index
    %c0_7 = arith.constant 0 : index
    %8 = vector.load %arg4[%c0_6, %c0_7] : memref<1x1040xf32, #tpu.memory_space<vmem>>, vector<1x1040xf32>
    %9 = vector.broadcast %8 : vector<1x1040xf32> to vector<16x1040xf32>
    %10 = arith.mulf %7, %9 : vector<16x1040xf32>
    %11 = vector.extract_strided_slice %10 {offsets = [0, 0], sizes = [16, 256], strides = [1, 1]} : vector<16x1040xf32> to vector<16x256xf32>
    %12 = vector.extract_strided_slice %10 {offsets = [0, 256], sizes = [16, 256], strides = [1, 1]} : vector<16x1040xf32> to vector<16x256xf32>
    %13 = vector.extract_strided_slice %10 {offsets = [0, 1], sizes = [16, 256], strides = [1, 1]} : vector<16x1040xf32> to vector<16x256xf32>
    %14 = vector.extract_strided_slice %10 {offsets = [0, 257], sizes = [16, 256], strides = [1, 1]} : vector<16x1040xf32> to vector<16x256xf32>
    %15 = vector.extract_strided_slice %10 {offsets = [0, 512], sizes = [16, 256], strides = [1, 1]} : vector<16x1040xf32> to vector<16x256xf32>
    %16 = vector.extract_strided_slice %10 {offsets = [0, 768], sizes = [16, 256], strides = [1, 1]} : vector<16x1040xf32> to vector<16x256xf32>
    %17 = vector.extract_strided_slice %10 {offsets = [0, 513], sizes = [16, 256], strides = [1, 1]} : vector<16x1040xf32> to vector<16x256xf32>
    %18 = vector.extract_strided_slice %10 {offsets = [0, 769], sizes = [16, 256], strides = [1, 1]} : vector<16x1040xf32> to vector<16x256xf32>
    %19 = vector.extract_strided_slice %10 {offsets = [0, 11], sizes = [16, 256], strides = [1, 1]} : vector<16x1040xf32> to vector<16x256xf32>
    %20 = vector.extract_strided_slice %10 {offsets = [0, 267], sizes = [16, 256], strides = [1, 1]} : vector<16x1040xf32> to vector<16x256xf32>
    %21 = vector.extract_strided_slice %10 {offsets = [0, 12], sizes = [16, 256], strides = [1, 1]} : vector<16x1040xf32> to vector<16x256xf32>
    %22 = vector.extract_strided_slice %10 {offsets = [0, 268], sizes = [16, 256], strides = [1, 1]} : vector<16x1040xf32> to vector<16x256xf32>
    %23 = vector.extract_strided_slice %10 {offsets = [0, 523], sizes = [16, 256], strides = [1, 1]} : vector<16x1040xf32> to vector<16x256xf32>
    %24 = vector.extract_strided_slice %10 {offsets = [0, 779], sizes = [16, 256], strides = [1, 1]} : vector<16x1040xf32> to vector<16x256xf32>
    %25 = vector.extract_strided_slice %10 {offsets = [0, 524], sizes = [16, 256], strides = [1, 1]} : vector<16x1040xf32> to vector<16x256xf32>
    %26 = vector.extract_strided_slice %10 {offsets = [0, 780], sizes = [16, 256], strides = [1, 1]} : vector<16x1040xf32> to vector<16x256xf32>
    %27 = tpu.concatenate %11, %12, %13, %14, %15, %16, %17, %18, %19, %20, %21, %22, %23, %24, %25, %26 in 0 : vector<16x256xf32>, vector<16x256xf32>, vector<16x256xf32>, vector<16x256xf32>, vector<16x256xf32>, vector<16x256xf32>, vector<16x256xf32>, vector<16x256xf32>, vector<16x256xf32>, vector<16x256xf32>, vector<16x256xf32>, vector<16x256xf32>, vector<16x256xf32>, vector<16x256xf32>, vector<16x256xf32>, vector<16x256xf32> -> vector<256x256xf32>
    %c0_8 = arith.constant 0 : index
    %c0_9 = arith.constant 0 : index
    %28 = vector.load %arg5[%c0_8, %c0_9] : memref<32x256xf32, #tpu.memory_space<vmem>>, vector<32x256xf32>
    %cst_10 = arith.constant dense<0.000000e+00> : vector<32x256xf32>
    %29 = tpu.matmul %28, %27, %cst_10 {dimension_numbers = #tpu.dot_dimension_numbers<[1], [0], [0], [1], [0, 0, 1, 1], [], []>} : vector<32x256xf32>, vector<256x256xf32>, vector<32x256xf32> -> vector<32x256xf32>
    %c0_11 = arith.constant 0 : index
    %c0_12 = arith.constant 0 : index
    %30 = vector.load %arg6[%c0_11, %c0_12] : memref<32x1xf32, #tpu.memory_space<vmem>>, vector<32x1xf32>
    %31 = vector.broadcast %30 : vector<32x1xf32> to vector<32x256xf32>
    %32 = arith.addf %29, %31 : vector<32x256xf32>
    %cst_13 = arith.constant 0.000000e+00 : f32
    %33 = vector.broadcast %cst_13 : f32 to vector<32x256xf32>
    %34 = arith.maximumf %32, %33 : vector<32x256xf32>
    %35 = vector.extract_strided_slice %34 {offsets = [0, 0], sizes = [1, 128], strides = [1, 1]} : vector<32x256xf32> to vector<1x128xf32>
    %36 = vector.extract_strided_slice %34 {offsets = [1, 0], sizes = [1, 128], strides = [1, 1]} : vector<32x256xf32> to vector<1x128xf32>
    %37 = vector.extract_strided_slice %34 {offsets = [2, 0], sizes = [1, 128], strides = [1, 1]} : vector<32x256xf32> to vector<1x128xf32>
    %38 = vector.extract_strided_slice %34 {offsets = [3, 0], sizes = [1, 128], strides = [1, 1]} : vector<32x256xf32> to vector<1x128xf32>
    %39 = vector.extract_strided_slice %34 {offsets = [4, 0], sizes = [1, 128], strides = [1, 1]} : vector<32x256xf32> to vector<1x128xf32>
    %40 = vector.extract_strided_slice %34 {offsets = [5, 0], sizes = [1, 128], strides = [1, 1]} : vector<32x256xf32> to vector<1x128xf32>
    %41 = vector.extract_strided_slice %34 {offsets = [6, 0], sizes = [1, 128], strides = [1, 1]} : vector<32x256xf32> to vector<1x128xf32>
    %42 = vector.extract_strided_slice %34 {offsets = [7, 0], sizes = [1, 128], strides = [1, 1]} : vector<32x256xf32> to vector<1x128xf32>
    %43 = vector.extract_strided_slice %34 {offsets = [8, 0], sizes = [1, 128], strides = [1, 1]} : vector<32x256xf32> to vector<1x128xf32>
    %44 = vector.extract_strided_slice %34 {offsets = [9, 0], sizes = [1, 128], strides = [1, 1]} : vector<32x256xf32> to vector<1x128xf32>
    %45 = vector.extract_strided_slice %34 {offsets = [10, 0], sizes = [1, 128], strides = [1, 1]} : vector<32x256xf32> to vector<1x128xf32>
    %46 = vector.extract_strided_slice %34 {offsets = [11, 0], sizes = [1, 128], strides = [1, 1]} : vector<32x256xf32> to vector<1x128xf32>
    %47 = vector.extract_strided_slice %34 {offsets = [12, 0], sizes = [1, 128], strides = [1, 1]} : vector<32x256xf32> to vector<1x128xf32>
    %48 = vector.extract_strided_slice %34 {offsets = [13, 0], sizes = [1, 128], strides = [1, 1]} : vector<32x256xf32> to vector<1x128xf32>
    %49 = vector.extract_strided_slice %34 {offsets = [14, 0], sizes = [1, 128], strides = [1, 1]} : vector<32x256xf32> to vector<1x128xf32>
    %50 = vector.extract_strided_slice %34 {offsets = [15, 0], sizes = [1, 128], strides = [1, 1]} : vector<32x256xf32> to vector<1x128xf32>
    %51 = vector.extract_strided_slice %34 {offsets = [16, 0], sizes = [1, 128], strides = [1, 1]} : vector<32x256xf32> to vector<1x128xf32>
    %52 = vector.extract_strided_slice %34 {offsets = [17, 0], sizes = [1, 128], strides = [1, 1]} : vector<32x256xf32> to vector<1x128xf32>
    %53 = vector.extract_strided_slice %34 {offsets = [18, 0], sizes = [1, 128], strides = [1, 1]} : vector<32x256xf32> to vector<1x128xf32>
    %54 = vector.extract_strided_slice %34 {offsets = [19, 0], sizes = [1, 128], strides = [1, 1]} : vector<32x256xf32> to vector<1x128xf32>
    %55 = vector.extract_strided_slice %34 {offsets = [20, 0], sizes = [1, 128], strides = [1, 1]} : vector<32x256xf32> to vector<1x128xf32>
    %56 = vector.extract_strided_slice %34 {offsets = [21, 0], sizes = [1, 128], strides = [1, 1]} : vector<32x256xf32> to vector<1x128xf32>
    %57 = vector.extract_strided_slice %34 {offsets = [22, 0], sizes = [1, 128], strides = [1, 1]} : vector<32x256xf32> to vector<1x128xf32>
    %58 = vector.extract_strided_slice %34 {offsets = [23, 0], sizes = [1, 128], strides = [1, 1]} : vector<32x256xf32> to vector<1x128xf32>
    %59 = vector.extract_strided_slice %34 {offsets = [24, 0], sizes = [1, 128], strides = [1, 1]} : vector<32x256xf32> to vector<1x128xf32>
    %60 = vector.extract_strided_slice %34 {offsets = [25, 0], sizes = [1, 128], strides = [1, 1]} : vector<32x256xf32> to vector<1x128xf32>
    %61 = vector.extract_strided_slice %34 {offsets = [26, 0], sizes = [1, 128], strides = [1, 1]} : vector<32x256xf32> to vector<1x128xf32>
    %62 = vector.extract_strided_slice %34 {offsets = [27, 0], sizes = [1, 128], strides = [1, 1]} : vector<32x256xf32> to vector<1x128xf32>
    %63 = vector.extract_strided_slice %34 {offsets = [28, 0], sizes = [1, 128], strides = [1, 1]} : vector<32x256xf32> to vector<1x128xf32>
    %64 = vector.extract_strided_slice %34 {offsets = [29, 0], sizes = [1, 128], strides = [1, 1]} : vector<32x256xf32> to vector<1x128xf32>
    %65 = vector.extract_strided_slice %34 {offsets = [30, 0], sizes = [1, 128], strides = [1, 1]} : vector<32x256xf32> to vector<1x128xf32>
    %66 = vector.extract_strided_slice %34 {offsets = [31, 0], sizes = [1, 128], strides = [1, 1]} : vector<32x256xf32> to vector<1x128xf32>
    %67 = tpu.concatenate %35, %36, %37, %38, %39, %40, %41, %42, %43, %44, %45, %46, %47, %48, %49, %50 in 1 : vector<1x128xf32>, vector<1x128xf32>, vector<1x128xf32>, vector<1x128xf32>, vector<1x128xf32>, vector<1x128xf32>, vector<1x128xf32>, vector<1x128xf32>, vector<1x128xf32>, vector<1x128xf32>, vector<1x128xf32>, vector<1x128xf32>, vector<1x128xf32>, vector<1x128xf32>, vector<1x128xf32>, vector<1x128xf32> -> vector<1x2048xf32>
    %68 = tpu.concatenate %51, %52, %53, %54, %55, %56, %57, %58, %59, %60, %61, %62, %63, %64, %65, %66 in 1 : vector<1x128xf32>, vector<1x128xf32>, vector<1x128xf32>, vector<1x128xf32>, vector<1x128xf32>, vector<1x128xf32>, vector<1x128xf32>, vector<1x128xf32>, vector<1x128xf32>, vector<1x128xf32>, vector<1x128xf32>, vector<1x128xf32>, vector<1x128xf32>, vector<1x128xf32>, vector<1x128xf32>, vector<1x128xf32> -> vector<1x2048xf32>
    %69 = tpu.concatenate %67, %68 in 1 : vector<1x2048xf32>, vector<1x2048xf32> -> vector<1x4096xf32>
    %70 = vector.extract_strided_slice %34 {offsets = [0, 128], sizes = [1, 128], strides = [1, 1]} : vector<32x256xf32> to vector<1x128xf32>
    %71 = vector.extract_strided_slice %34 {offsets = [1, 128], sizes = [1, 128], strides = [1, 1]} : vector<32x256xf32> to vector<1x128xf32>
    %72 = vector.extract_strided_slice %34 {offsets = [2, 128], sizes = [1, 128], strides = [1, 1]} : vector<32x256xf32> to vector<1x128xf32>
    %73 = vector.extract_strided_slice %34 {offsets = [3, 128], sizes = [1, 128], strides = [1, 1]} : vector<32x256xf32> to vector<1x128xf32>
    %74 = vector.extract_strided_slice %34 {offsets = [4, 128], sizes = [1, 128], strides = [1, 1]} : vector<32x256xf32> to vector<1x128xf32>
    %75 = vector.extract_strided_slice %34 {offsets = [5, 128], sizes = [1, 128], strides = [1, 1]} : vector<32x256xf32> to vector<1x128xf32>
    %76 = vector.extract_strided_slice %34 {offsets = [6, 128], sizes = [1, 128], strides = [1, 1]} : vector<32x256xf32> to vector<1x128xf32>
    %77 = vector.extract_strided_slice %34 {offsets = [7, 128], sizes = [1, 128], strides = [1, 1]} : vector<32x256xf32> to vector<1x128xf32>
    %78 = vector.extract_strided_slice %34 {offsets = [8, 128], sizes = [1, 128], strides = [1, 1]} : vector<32x256xf32> to vector<1x128xf32>
    %79 = vector.extract_strided_slice %34 {offsets = [9, 128], sizes = [1, 128], strides = [1, 1]} : vector<32x256xf32> to vector<1x128xf32>
    %80 = vector.extract_strided_slice %34 {offsets = [10, 128], sizes = [1, 128], strides = [1, 1]} : vector<32x256xf32> to vector<1x128xf32>
    %81 = vector.extract_strided_slice %34 {offsets = [11, 128], sizes = [1, 128], strides = [1, 1]} : vector<32x256xf32> to vector<1x128xf32>
    %82 = vector.extract_strided_slice %34 {offsets = [12, 128], sizes = [1, 128], strides = [1, 1]} : vector<32x256xf32> to vector<1x128xf32>
    %83 = vector.extract_strided_slice %34 {offsets = [13, 128], sizes = [1, 128], strides = [1, 1]} : vector<32x256xf32> to vector<1x128xf32>
    %84 = vector.extract_strided_slice %34 {offsets = [14, 128], sizes = [1, 128], strides = [1, 1]} : vector<32x256xf32> to vector<1x128xf32>
    %85 = vector.extract_strided_slice %34 {offsets = [15, 128], sizes = [1, 128], strides = [1, 1]} : vector<32x256xf32> to vector<1x128xf32>
    %86 = vector.extract_strided_slice %34 {offsets = [16, 128], sizes = [1, 128], strides = [1, 1]} : vector<32x256xf32> to vector<1x128xf32>
    %87 = vector.extract_strided_slice %34 {offsets = [17, 128], sizes = [1, 128], strides = [1, 1]} : vector<32x256xf32> to vector<1x128xf32>
    %88 = vector.extract_strided_slice %34 {offsets = [18, 128], sizes = [1, 128], strides = [1, 1]} : vector<32x256xf32> to vector<1x128xf32>
    %89 = vector.extract_strided_slice %34 {offsets = [19, 128], sizes = [1, 128], strides = [1, 1]} : vector<32x256xf32> to vector<1x128xf32>
    %90 = vector.extract_strided_slice %34 {offsets = [20, 128], sizes = [1, 128], strides = [1, 1]} : vector<32x256xf32> to vector<1x128xf32>
    %91 = vector.extract_strided_slice %34 {offsets = [21, 128], sizes = [1, 128], strides = [1, 1]} : vector<32x256xf32> to vector<1x128xf32>
    %92 = vector.extract_strided_slice %34 {offsets = [22, 128], sizes = [1, 128], strides = [1, 1]} : vector<32x256xf32> to vector<1x128xf32>
    %93 = vector.extract_strided_slice %34 {offsets = [23, 128], sizes = [1, 128], strides = [1, 1]} : vector<32x256xf32> to vector<1x128xf32>
    %94 = vector.extract_strided_slice %34 {offsets = [24, 128], sizes = [1, 128], strides = [1, 1]} : vector<32x256xf32> to vector<1x128xf32>
    %95 = vector.extract_strided_slice %34 {offsets = [25, 128], sizes = [1, 128], strides = [1, 1]} : vector<32x256xf32> to vector<1x128xf32>
    %96 = vector.extract_strided_slice %34 {offsets = [26, 128], sizes = [1, 128], strides = [1, 1]} : vector<32x256xf32> to vector<1x128xf32>
    %97 = vector.extract_strided_slice %34 {offsets = [27, 128], sizes = [1, 128], strides = [1, 1]} : vector<32x256xf32> to vector<1x128xf32>
    %98 = vector.extract_strided_slice %34 {offsets = [28, 128], sizes = [1, 128], strides = [1, 1]} : vector<32x256xf32> to vector<1x128xf32>
    %99 = vector.extract_strided_slice %34 {offsets = [29, 128], sizes = [1, 128], strides = [1, 1]} : vector<32x256xf32> to vector<1x128xf32>
    %100 = vector.extract_strided_slice %34 {offsets = [30, 128], sizes = [1, 128], strides = [1, 1]} : vector<32x256xf32> to vector<1x128xf32>
    %101 = vector.extract_strided_slice %34 {offsets = [31, 128], sizes = [1, 128], strides = [1, 1]} : vector<32x256xf32> to vector<1x128xf32>
    %102 = tpu.concatenate %70, %71, %72, %73, %74, %75, %76, %77, %78, %79, %80, %81, %82, %83, %84, %85 in 1 : vector<1x128xf32>, vector<1x128xf32>, vector<1x128xf32>, vector<1x128xf32>, vector<1x128xf32>, vector<1x128xf32>, vector<1x128xf32>, vector<1x128xf32>, vector<1x128xf32>, vector<1x128xf32>, vector<1x128xf32>, vector<1x128xf32>, vector<1x128xf32>, vector<1x128xf32>, vector<1x128xf32>, vector<1x128xf32> -> vector<1x2048xf32>
    %103 = tpu.concatenate %86, %87, %88, %89, %90, %91, %92, %93, %94, %95, %96, %97, %98, %99, %100, %101 in 1 : vector<1x128xf32>, vector<1x128xf32>, vector<1x128xf32>, vector<1x128xf32>, vector<1x128xf32>, vector<1x128xf32>, vector<1x128xf32>, vector<1x128xf32>, vector<1x128xf32>, vector<1x128xf32>, vector<1x128xf32>, vector<1x128xf32>, vector<1x128xf32>, vector<1x128xf32>, vector<1x128xf32>, vector<1x128xf32> -> vector<1x2048xf32>
    %104 = tpu.concatenate %102, %103 in 1 : vector<1x2048xf32>, vector<1x2048xf32> -> vector<1x4096xf32>
    %105 = tpu.concatenate %69, %104 in 0 : vector<1x4096xf32>, vector<1x4096xf32> -> vector<2x4096xf32>
    tpu.wait_dma2 semaphore(%arg13 : memref<!tpu.dma_semaphore, #tpu.memory_space<semaphore_mem>>) src(%arg7 : memref<4096x256xf32, #tpu.memory_space<any>>) dst(%arg12 : memref<4096x256xf32, #tpu.memory_space<vmem>>)
    %c0_14 = arith.constant 0 : index
    %c0_15 = arith.constant 0 : index
    %106 = vector.load %arg12[%c0_14, %c0_15] : memref<4096x256xf32, #tpu.memory_space<vmem>>, vector<4096x256xf32>
    %cst_16 = arith.constant dense<0.000000e+00> : vector<2x256xf32>
    %107 = tpu.matmul %105, %106, %cst_16 {dimension_numbers = #tpu.dot_dimension_numbers<[1], [0], [0], [1], [0, 0, 1, 1], [], []>} : vector<2x4096xf32>, vector<4096x256xf32>, vector<2x256xf32> -> vector<2x256xf32>
    %c0_17 = arith.constant 0 : index
    %c0_18 = arith.constant 0 : index
    %108 = vector.load %arg8[%c0_17, %c0_18] : memref<1x256xf32, #tpu.memory_space<vmem>>, vector<1x256xf32>
    %109 = vector.broadcast %108 : vector<1x256xf32> to vector<2x256xf32>
    %110 = arith.addf %107, %109 : vector<2x256xf32>
    %cst_19 = arith.constant 0.000000e+00 : f32
    %111 = vector.broadcast %cst_19 : f32 to vector<2x256xf32>
    %112 = arith.maximumf %110, %111 : vector<2x256xf32>
    %c0_20 = arith.constant 0 : index
    %c0_21 = arith.constant 0 : index
    %113 = vector.load %arg9[%c0_20, %c0_21] : memref<256x4xf32, #tpu.memory_space<vmem>>, vector<256x4xf32>
    %cst_22 = arith.constant dense<0.000000e+00> : vector<2x4xf32>
    %114 = tpu.matmul %112, %113, %cst_22 {dimension_numbers = #tpu.dot_dimension_numbers<[1], [0], [0], [1], [0, 0, 1, 1], [], []>} : vector<2x256xf32>, vector<256x4xf32>, vector<2x4xf32> -> vector<2x4xf32>
    %c0_23 = arith.constant 0 : index
    %c0_24 = arith.constant 0 : index
    %115 = vector.load %arg10[%c0_23, %c0_24] : memref<1x4xf32, #tpu.memory_space<vmem>>, vector<1x4xf32>
    %116 = vector.broadcast %115 : vector<1x4xf32> to vector<2x4xf32>
    %117 = arith.addf %114, %116 : vector<2x4xf32>
    %c0_25 = arith.constant 0 : index
    %c0_26 = arith.constant 0 : index
    %118 = vector.load %arg11[%c0_25, %c0_26] : memref<2x4xf32, #tpu.memory_space<vmem>>, vector<2x4xf32>
    tpu.vector_store %arg11[%c0_25, %c0_26], %117 {strides = array<i32>} : memref<2x4xf32, #tpu.memory_space<vmem>>, vector<2x4xf32>,
    return
  }
  func.func @transform_0(%arg0: i32) -> (i32, i32) {
    %c0_i32 = arith.constant 0 : i32
    %c0_i32_0 = arith.constant 0 : i32
    %c0_i32_1 = arith.constant 0 : i32
    return %c0_i32, %c0_i32_0 : i32, i32
  }
  func.func @transform_1(%arg0: i32) -> (i32, i32) {
    %c0_i32 = arith.constant 0 : i32
    %c0_i32_0 = arith.constant 0 : i32
    %c0_i32_1 = arith.constant 0 : i32
    return %c0_i32, %c0_i32_0 : i32, i32
  }
  func.func @transform_2(%arg0: i32) -> (i32, i32) {
    %c0_i32 = arith.constant 0 : i32
    %c0_i32_0 = arith.constant 0 : i32
    %c0_i32_1 = arith.constant 0 : i32
    return %c0_i32, %c0_i32_0 : i32, i32
  }
  func.func @transform_3(%arg0: i32) -> (i32, i32) {
    %c0_i32 = arith.constant 0 : i32
    %c0_i32_0 = arith.constant 0 : i32
    %c0_i32_1 = arith.constant 0 : i32
    return %c0_i32, %c0_i32_0 : i32, i32
  }
  func.func @transform_4(%arg0: i32) -> (i32, i32) {
    %c0_i32 = arith.constant 0 : i32
    %c0_i32_0 = arith.constant 0 : i32
    %c0_i32_1 = arith.constant 0 : i32
    return %c0_i32, %c0_i32_0 : i32, i32
  }
  func.func @transform_5(%arg0: i32) -> (i32, i32) {
    %c0_i32 = arith.constant 0 : i32
    %c0_i32_0 = arith.constant 0 : i32
    %c0_i32_1 = arith.constant 0 : i32
    return %c0_i32, %c0_i32_0 : i32, i32
  }
  func.func @transform_7(%arg0: i32) -> (i32, i32) {
    %c0_i32 = arith.constant 0 : i32
    %c0_i32_0 = arith.constant 0 : i32
    %c0_i32_1 = arith.constant 0 : i32
    return %c0_i32, %c0_i32_0 : i32, i32
  }
  func.func @transform_8(%arg0: i32) -> (i32, i32) {
    %c0_i32 = arith.constant 0 : i32
    %c0_i32_0 = arith.constant 0 : i32
    %c0_i32_1 = arith.constant 0 : i32
    return %c0_i32, %c0_i32_0 : i32, i32
  }
  func.func @transform_9(%arg0: i32) -> (i32, i32) {
    %c0_i32 = arith.constant 0 : i32
    %c0_i32_0 = arith.constant 0 : i32
    %c0_i32_1 = arith.constant 0 : i32
    return %c0_i32, %c0_i32_0 : i32, i32
  }
  func.func @transform_10(%arg0: i32) -> (i32, i32) {
    %c0_i32 = arith.constant 0 : i32
    %c0_i32_0 = arith.constant 0 : i32
    %c0_i32_1 = arith.constant 0 : i32
    return %c0_i32, %c0_i32_0 : i32, i32
  }
}

</mosaic_0001>

<bundles_post_ra>
// kernel: qnetwork_forward.1
= control target key start
LH: loop header
LB: loop body
LE: loop exit
PB: predicated region body
PF: predicated region fallthrough
CT: control target
= control target key end

     0   :  { %15 = vsyncpa [#allocation5], 0  ;;  %s15059_s0 = inlined_call_operand.vmem [shape: f32[256,1040], index: 0, kind: input, shape index: {}]   ;;  %s15060_s1 = inlined_call_operand.vmem [shape: f32[16,256], index: 1, kind: input, shape index: {}]   ;;  %s15061_s2 = inlined_call_operand.vmem [shape: f32[16,1], index: 2, kind: input, shape index: {}]   ;;  %s15062_s3 = inlined_call_operand.vmem [shape: f32[1,1040], index: 3, kind: input, shape index: {}]   ;;  %s15063_s4 = inlined_call_operand.vmem [shape: f32[32,256], index: 4, kind: input, shape index: {}]   ;;  %s15064_s5 = inlined_call_operand.vmem [shape: f32[32,1], index: 5, kind: input, shape index: {}]   ;;  %s15065_s6 = inlined_call_operand.vmem [shape: f32[4096,256], index: 6, kind: input, shape index: {}]   ;;  %s15066_s7 = inlined_call_operand.vmem [shape: f32[1,256], index: 7, kind: input, shape index: {}]   ;;  %s15067_s8 = inlined_call_operand.vmem [shape: f32[256,4], index: 8, kind: input, shape index: {}]   ;;  %s15068_s9 = inlined_call_operand.vmem [shape: f32[1,4], index: 9, kind: input, shape index: {}]   ;;  %s15069_s10 = inlined_call_operand.hbm [shape: f32[2,4], index: 10, kind: output, shape index: {}]  }
   0x1   :  { %v7521_v0 = vld [vmem:[%s15065_s6] sm:$0xff]  ;;  %v7526_v1 = vld [vmem:[%s15065_s6 + $0x8] sm:$0xff]  ;;  %v7531_v2 = vld [vmem:[%s15065_s6 + $0x10] sm:$0xff] }
   0x2   :  { %v7536_v3 = vld [vmem:[%s15065_s6 + $0x18] sm:$0xff]  ;;  %v7541_v4 = vld [vmem:[%s15065_s6 + $0x20] sm:$0xff]  ;;  %v7546_v5 = vld [vmem:[%s15065_s6 + $0x28] sm:$0xff] }
   0x3   :  { %15072 = vst [vmem:[#allocation9_spill] sm:$0xff] %v7541_v4  ;;  %v7551_v6 = vld [vmem:[%s15065_s6 + $0x30] sm:$0xff]  ;;  %v7556_v7 = vld [vmem:[%s15065_s6 + $0x38] sm:$0xff]  ;;  %v7561_v8 = vld [vmem:[%s15065_s6 + $0x40] sm:$0xff] }
   0x4   :  { %15073 = vst [vmem:[#allocation10_spill] sm:$0xff] %v7551_v6  ;;  %15074 = vst [vmem:[#allocation11_spill] sm:$0xff] %v7561_v8  ;;  %v7566_v9 = vld [vmem:[%s15065_s6 + $0x48] sm:$0xff]  ;;  %v7571_v10 = vld [vmem:[%s15065_s6 + $0x50] sm:$0xff] }
   0x5   :  { %15075 = vst [vmem:[#allocation12_spill] sm:$0xff] %v7566_v9  ;;  %15076 = vst [vmem:[#allocation13_spill] sm:$0xff] %v7571_v10  ;;  %v7576_v11 = vld [vmem:[%s15065_s6 + $0x58] sm:$0xff]  ;;  %v7581_v12 = vld [vmem:[%s15065_s6 + $0x60] sm:$0xff] }
   0x6   :  { %15077 = vst [vmem:[#allocation14_spill] sm:$0xff] %v7576_v11  ;;  %15078 = vst [vmem:[#allocation15_spill] sm:$0xff] %v7581_v12  ;;  %v7586_v13 = vld [vmem:[%s15065_s6 + $0x68] sm:$0xff]  ;;  %v7591_v14 = vld [vmem:[%s15065_s6 + $0x70] sm:$0xff] }
   0x7   :  { %15079 = vst [vmem:[#allocation16_spill] sm:$0xff] %v7586_v13  ;;  %15080 = vst [vmem:[#allocation17_spill] sm:$0xff] %v7591_v14  ;;  %v7596_v15 = vld [vmem:[%s15065_s6 + $0x78] sm:$0xff]  ;;  %v7601_v16 = vld [vmem:[%s15065_s6 + $0x80] sm:$0xff] }
   0x8   :  { %15081 = vst [vmem:[#allocation18_spill] sm:$0xff] %v7596_v15  ;;  %15082 = vst [vmem:[#allocation19_spill] sm:$0xff] %v7601_v16  ;;  %v7606_v17 = vld [vmem:[%s15065_s6 + $0x88] sm:$0xff]  ;;  %v7611_v18 = vld [vmem:[%s15065_s6 + $0x90] sm:$0xff] }
   0x9   :  { %15083 = vst [vmem:[#allocation20_spill] sm:$0xff] %v7606_v17  ;;  %15084 = vst [vmem:[#allocation21_spill] sm:$0xff] %v7611_v18  ;;  %v7616_v19 = vld [vmem:[%s15065_s6 + $0x98] sm:$0xff]  ;;  %v7621_v20 = vld [vmem:[%s15065_s6 + $0xa0] sm:$0xff] }
   0xa   :  { %15085 = vst [vmem:[#allocation22_spill] sm:$0xff] %v7616_v19  ;;  %15086 = vst [vmem:[#allocation23_spill] sm:$0xff] %v7621_v20  ;;  %v7626_v21 = vld [vmem:[%s15065_s6 + $0xa8] sm:$0xff]  ;;  %v7631_v22 = vld [vmem:[%s15065_s6 + $0xb0] sm:$0xff] }
   0xb   :  { %15087 = vst [vmem:[#allocation24_spill] sm:$0xff] %v7626_v21  ;;  %15088 = vst [vmem:[#allocation25_spill] sm:$0xff] %v7631_v22  ;;  %v7636_v23 = vld [vmem:[%s15065_s6 + $0xb8] sm:$0xff]  ;;  %v7641_v24 = vld [vmem:[%s15065_s6 + $0xc0] sm:$0xff] }
   0xc   :  { %15089 = vst [vmem:[#allocation26_spill] sm:$0xff] %v7636_v23  ;;  %15090 = vst [vmem:[#allocation27_spill] sm:$0xff] %v7641_v24  ;;  %v7646_v25 = vld [vmem:[%s15065_s6 + $0xc8] sm:$0xff]  ;;  %v7651_v26 = vld [vmem:[%s15065_s6 + $0xd0] sm:$0xff] }
   0xd   :  { %15091 = vst [vmem:[#allocation28_spill] sm:$0xff] %v7646_v25  ;;  %15092 = vst [vmem:[#allocation29_spill] sm:$0xff] %v7651_v26  ;;  %v7656_v27 = vld [vmem:[%s15065_s6 + $0xd8] sm:$0xff]  ;;  %v7661_v28 = vld [vmem:[%s15065_s6 + $0xe0] sm:$0xff] }
   0xe   :  { %15093 = vst [vmem:[#allocation30_spill] sm:$0xff] %v7656_v27  ;;  %15094 = vst [vmem:[#allocation31_spill] sm:$0xff] %v7661_v28  ;;  %v7666_v29 = vld [vmem:[%s15065_s6 + $0xe8] sm:$0xff]  ;;  %v7671_v30 = vld [vmem:[%s15065_s6 + $0xf0] sm:$0xff] }
   0xf   :  { %15095 = vst [vmem:[#allocation32_spill] sm:$0xff] %v7666_v29  ;;  %15096 = vst [vmem:[#allocation33_spill] sm:$0xff] %v7671_v30  ;;  %v7676_v31 = vld [vmem:[%s15065_s6 + $0xf8] sm:$0xff]  ;;  %v7681_v32 = vld [vmem:[%s15065_s6 + $0x100] sm:$0xff] }
  0x10   :  { %15097 = vst [vmem:[#allocation34_spill] sm:$0xff] %v7676_v31  ;;  %15098 = vst [vmem:[#allocation35_spill] sm:$0xff] %v7681_v32  ;;  %v7686_v33 = vld [vmem:[%s15065_s6 + $0x108] sm:$0xff]  ;;  %v7691_v34 = vld [vmem:[%s15065_s6 + $0x110] sm:$0xff] }
  0x11   :  { %15099 = vst [vmem:[#allocation36_spill] sm:$0xff] %v7686_v33  ;;  %15100 = vst [vmem:[#allocation37_spill] sm:$0xff] %v7691_v34  ;;  %v7696_v35 = vld [vmem:[%s15065_s6 + $0x118] sm:$0xff]  ;;  %v7701_v36 = vld [vmem:[%s15065_s6 + $0x120] sm:$0xff] }
  0x12   :  { %15101 = vst [vmem:[#allocation38_spill] sm:$0xff] %v7696_v35  ;;  %15102 = vst [vmem:[#allocation39_spill] sm:$0xff] %v7701_v36  ;;  %v7706_v37 = vld [vmem:[%s15065_s6 + $0x128] sm:$0xff]  ;;  %v7711_v38 = vld [vmem:[%s15065_s6 + $0x130] sm:$0xff] }
  0x13   :  { %15103 = vst [vmem:[#allocation40_spill] sm:$0xff] %v7706_v37  ;;  %15104 = vst [vmem:[#allocation41_spill] sm:$0xff] %v7711_v38  ;;  %v7716_v39 = vld [vmem:[%s15065_s6 + $0x138] sm:$0xff]  ;;  %v7721_v40 = vld [vmem:[%s15065_s6 + $0x140] sm:$0xff] }
  0x14   :  { %15105 = vst [vmem:[#allocation42_spill] sm:$0xff] %v7716_v39  ;;  %15106 = vst [vmem:[#allocation43_spill] sm:$0xff] %v7721_v40  ;;  %v7726_v41 = vld [vmem:[%s15065_s6 + $0x148] sm:$0xff]  ;;  %v7731_v42 = vld [vmem:[%s15065_s6 + $0x150] sm:$0xff] }
  0x15   :  { %15107 = vst [vmem:[#allocation44_spill] sm:$0xff] %v7726_v41  ;;  %15108 = vst [vmem:[#allocation45_spill] sm:$0xff] %v7731_v42  ;;  %v7736_v43 = vld [vmem:[%s15065_s6 + $0x158] sm:$0xff]  ;;  %v7741_v44 = vld [vmem:[%s15065_s6 + $0x160] sm:$0xff] }
  0x16   :  { %15109 = vst [vmem:[#allocation46_spill] sm:$0xff] %v7736_v43  ;;  %15110 = vst [vmem:[#allocation47_spill] sm:$0xff] %v7741_v44  ;;  %v7746_v45 = vld [vmem:[%s15065_s6 + $0x168] sm:$0xff]  ;;  %v7751_v46 = vld [vmem:[%s15065_s6 + $0x170] sm:$0xff] }
  0x17   :  { %15111 = vst [vmem:[#allocation48_spill] sm:$0xff] %v7746_v45  ;;  %15112 = vst [vmem:[#allocation49_spill] sm:$0xff] %v7751_v46  ;;  %v7756_v47 = vld [vmem:[%s15065_s6 + $0x178] sm:$0xff]  ;;  %v7761_v48 = vld [vmem:[%s15065_s6 + $0x180] sm:$0xff] }
  0x18   :  { %15113 = vst [vmem:[#allocation50_spill] sm:$0xff] %v7756_v47  ;;  %15114 = vst [vmem:[#allocation51_spill] sm:$0xff] %v7761_v48  ;;  %v7766_v49 = vld [vmem:[%s15065_s6 + $0x188] sm:$0xff]  ;;  %v7771_v50 = vld [vmem:[%s15065_s6 + $0x190] sm:$0xff] }
  0x19   :  { %15115 = vst [vmem:[#allocation52_spill] sm:$0xff] %v7766_v49  ;;  %15116 = vst [vmem:[#allocation53_spill] sm:$0xff] %v7771_v50  ;;  %v7776_v51 = vld [vmem:[%s15065_s6 + $0x198] sm:$0xff]  ;;  %v7781_v52 = vld [vmem:[%s15065_s6 + $0x1a0] sm:$0xff] }
  0x1a   :  { %15117 = vst [vmem:[#allocation54_spill] sm:$0xff] %v7776_v51  ;;  %15118 = vst [vmem:[#allocation55_spill] sm:$0xff] %v7781_v52  ;;  %v7786_v53 = vld [vmem:[%s15065_s6 + $0x1a8] sm:$0xff]  ;;  %v7791_v54 = vld [vmem:[%s15065_s6 + $0x1b0] sm:$0xff] }
  0x1b   :  { %15119 = vst [vmem:[#allocation56_spill] sm:$0xff] %v7786_v53  ;;  %15120 = vst [vmem:[#allocation57_spill] sm:$0xff] %v7791_v54  ;;  %v7796_v55 = vld [vmem:[%s15065_s6 + $0x1b8] sm:$0xff]  ;;  %v7801_v56 = vld [vmem:[%s15065_s6 + $0x1c0] sm:$0xff] }
  0x1c   :  { %15121 = vst [vmem:[#allocation58_spill] sm:$0xff] %v7796_v55  ;;  %15122 = vst [vmem:[#allocation59_spill] sm:$0xff] %v7801_v56  ;;  %v7806_v57 = vld [vmem:[%s15065_s6 + $0x1c8] sm:$0xff]  ;;  %v7811_v58 = vld [vmem:[%s15065_s6 + $0x1d0] sm:$0xff] }
  0x1d   :  { %15123 = vst [vmem:[#allocation60_spill] sm:$0xff] %v7806_v57  ;;  %15124 = vst [vmem:[#allocation61_spill] sm:$0xff] %v7811_v58  ;;  %v7816_v59 = vld [vmem:[%s15065_s6 + $0x1d8] sm:$0xff]  ;;  %v7821_v60 = vld [vmem:[%s15065_s6 + $0x1e0] sm:$0xff] }
  0x1e   :  { %15125 = vst [vmem:[#allocation62_spill] sm:$0xff] %v7816_v59  ;;  %15126 = vst [vmem:[#allocation63_spill] sm:$0xff] %v7821_v60  ;;  %v7826_v61 = vld [vmem:[%s15065_s6 + $0x1e8] sm:$0xff]  ;;  %v7831_v62 = vld [vmem:[%s15065_s6 + $0x1f0] sm:$0xff] }
  0x1f   :  { %15127 = vst [vmem:[#allocation64_spill] sm:$0xff] %v7826_v61  ;;  %15128 = vst [vmem:[#allocation65_spill] sm:$0xff] %v7831_v62  ;;  %v7836_v63 = vld [vmem:[%s15065_s6 + $0x1f8] sm:$0xff]  ;;  %v7841_v58 = vld [vmem:[%s15065_s6 + $0x200] sm:$0xff] }
  0x20   :  { %15129 = vst [vmem:[#allocation66_spill] sm:$0xff] %v7836_v63  ;;  %15130 = vst [vmem:[#allocation67_spill] sm:$0xff] %v7841_v58  ;;  %v7846_v60 = vld [vmem:[%s15065_s6 + $0x208] sm:$0xff]  ;;  %v7851_v61 = vld [vmem:[%s15065_s6 + $0x210] sm:$0xff] }
  0x21   :  { %15131 = vst [vmem:[#allocation68_spill] sm:$0xff] %v7846_v60  ;;  %15132 = vst [vmem:[#allocation69_spill] sm:$0xff] %v7851_v61  ;;  %v7856_v62 = vld [vmem:[%s15065_s6 + $0x218] sm:$0xff]  ;;  %v7861_v63 = vld [vmem:[%s15065_s6 + $0x220] sm:$0xff] }
  0x22   :  { %15133 = vst [vmem:[#allocation70_spill] sm:$0xff] %v7856_v62  ;;  %15134 = vst [vmem:[#allocation71_spill] sm:$0xff] %v7861_v63  ;;  %v7866_v58 = vld [vmem:[%s15065_s6 + $0x228] sm:$0xff]  ;;  %v7871_v60 = vld [vmem:[%s15065_s6 + $0x230] sm:$0xff] }
  0x23   :  { %15135 = vst [vmem:[#allocation72_spill] sm:$0xff] %v7866_v58  ;;  %15136 = vst [vmem:[#allocation73_spill] sm:$0xff] %v7871_v60  ;;  %v7876_v61 = vld [vmem:[%s15065_s6 + $0x238] sm:$0xff]  ;;  %v7881_v62 = vld [vmem:[%s15065_s6 + $0x240] sm:$0xff] }
  0x24   :  { %15137 = vst [vmem:[#allocation74_spill] sm:$0xff] %v7876_v61  ;;  %15138 = vst [vmem:[#allocation75_spill] sm:$0xff] %v7881_v62  ;;  %v7886_v63 = vld [vmem:[%s15065_s6 + $0x248] sm:$0xff]  ;;  %v7891_v58 = vld [vmem:[%s15065_s6 + $0x250] sm:$0xff] }
  0x25   :  { %15139 = vst [vmem:[#allocation76_spill] sm:$0xff] %v7886_v63  ;;  %15140 = vst [vmem:[#allocation77_spill] sm:$0xff] %v7891_v58  ;;  %v7896_v60 = vld [vmem:[%s15065_s6 + $0x258] sm:$0xff]  ;;  %v7901_v61 = vld [vmem:[%s15065_s6 + $0x260] sm:$0xff] }
  0x26   :  { %15141 = vst [vmem:[#allocation78_spill] sm:$0xff] %v7896_v60  ;;  %15142 = vst [vmem:[#allocation79_spill] sm:$0xff] %v7901_v61  ;;  %v7906_v62 = vld [vmem:[%s15065_s6 + $0x268] sm:$0xff]  ;;  %v7911_v63 = vld [vmem:[%s15065_s6 + $0x270] sm:$0xff] }
  0x27   :  { %15143 = vst [vmem:[#allocation80_spill] sm:$0xff] %v7906_v62  ;;  %15144 = vst [vmem:[#allocation81_spill] sm:$0xff] %v7911_v63  ;;  %v7916_v58 = vld [vmem:[%s15065_s6 + $0x278] sm:$0xff]  ;;  %v7921_v60 = vld [vmem:[%s15065_s6 + $0x280] sm:$0xff] }
  0x28   :  { %15145 = vst [vmem:[#allocation82_spill] sm:$0xff] %v7916_v58  ;;  %15146 = vst [vmem:[#allocation83_spill] sm:$0xff] %v7921_v60  ;;  %v7926_v61 = vld [vmem:[%s15065_s6 + $0x288] sm:$0xff]  ;;  %v7931_v62 = vld [vmem:[%s15065_s6 + $0x290] sm:$0xff] }
  0x29   :  { %15147 = vst [vmem:[#allocation84_spill] sm:$0xff] %v7926_v61  ;;  %15148 = vst [vmem:[#allocation85_spill] sm:$0xff] %v7931_v62  ;;  %v7936_v63 = vld [vmem:[%s15065_s6 + $0x298] sm:$0xff]  ;;  %v7941_v58 = vld [vmem:[%s15065_s6 + $0x2a0] sm:$0xff] }
  0x2a   :  { %15149 = vst [vmem:[#allocation86_spill] sm:$0xff] %v7936_v63  ;;  %15150 = vst [vmem:[#allocation87_spill] sm:$0xff] %v7941_v58  ;;  %v7946_v60 = vld [vmem:[%s15065_s6 + $0x2a8] sm:$0xff]  ;;  %v7951_v61 = vld [vmem:[%s15065_s6 + $0x2b0] sm:$0xff] }
  0x2b   :  { %15151 = vst [vmem:[#allocation88_spill] sm:$0xff] %v7946_v60  ;;  %15152 = vst [vmem:[#allocation89_spill] sm:$0xff] %v7951_v61  ;;  %v7956_v62 = vld [vmem:[%s15065_s6 + $0x2b8] sm:$0xff]  ;;  %v7961_v63 = vld [vmem:[%s15065_s6 + $0x2c0] sm:$0xff] }
  0x2c   :  { %15153 = vst [vmem:[#allocation90_spill] sm:$0xff] %v7956_v62  ;;  %15154 = vst [vmem:[#allocation91_spill] sm:$0xff] %v7961_v63  ;;  %v7966_v58 = vld [vmem:[%s15065_s6 + $0x2c8] sm:$0xff]  ;;  %v7971_v60 = vld [vmem:[%s15065_s6 + $0x2d0] sm:$0xff] }
  0x2d   :  { %15155 = vst [vmem:[#allocation92_spill] sm:$0xff] %v7966_v58  ;;  %15156 = vst [vmem:[#allocation93_spill] sm:$0xff] %v7971_v60  ;;  %v7976_v61 = vld [vmem:[%s15065_s6 + $0x2d8] sm:$0xff]  ;;  %v7981_v62 = vld [vmem:[%s15065_s6 + $0x2e0] sm:$0xff] }
  0x2e   :  { %15157 = vst [vmem:[#allocation94_spill] sm:$0xff] %v7976_v61  ;;  %15158 = vst [vmem:[#allocation95_spill] sm:$0xff] %v7981_v62  ;;  %v7986_v63 = vld [vmem:[%s15065_s6 + $0x2e8] sm:$0xff]  ;;  %v7991_v58 = vld [vmem:[%s15065_s6 + $0x2f0] sm:$0xff] }
  0x2f   :  { %15159 = vst [vmem:[#allocation96_spill] sm:$0xff] %v7986_v63  ;;  %15160 = vst [vmem:[#allocation97_spill] sm:$0xff] %v7991_v58  ;;  %v7996_v60 = vld [vmem:[%s15065_s6 + $0x2f8] sm:$0xff]  ;;  %v8001_v61 = vld [vmem:[%s15065_s6 + $0x300] sm:$0xff] }
  0x30   :  { %15161 = vst [vmem:[#allocation98_spill] sm:$0xff] %v7996_v60  ;;  %15162 = vst [vmem:[#allocation99_spill] sm:$0xff] %v8001_v61  ;;  %v8006_v62 = vld [vmem:[%s15065_s6 + $0x308] sm:$0xff]  ;;  %v8011_v63 = vld [vmem:[%s15065_s6 + $0x310] sm:$0xff] }
  0x31   :  { %15163 = vst [vmem:[#allocation100_spill] sm:$0xff] %v8006_v62  ;;  %15164 = vst [vmem:[#allocation101_spill] sm:$0xff] %v8011_v63  ;;  %v8016_v58 = vld [vmem:[%s15065_s6 + $0x318] sm:$0xff]  ;;  %v8021_v60 = vld [vmem:[%s15065_s6 + $0x320] sm:$0xff] }
  0x32   :  { %15165 = vst [vmem:[#allocation102_spill] sm:$0xff] %v8016_v58  ;;  %15166 = vst [vmem:[#allocation103_spill] sm:$0xff] %v8021_v60  ;;  %v8026_v61 = vld [vmem:[%s15065_s6 + $0x328] sm:$0xff]  ;;  %v8031_v62 = vld [vmem:[%s15065_s6 + $0x330] sm:$0xff] }
  0x33   :  { %15167 = vst [vmem:[#allocation104_spill] sm:$0xff] %v8026_v61  ;;  %15168 = vst [vmem:[#allocation105_spill] sm:$0xff] %v8031_v62  ;;  %v8036_v63 = vld [vmem:[%s15065_s6 + $0x338] sm:$0xff]  ;;  %v8041_v58 = vld [vmem:[%s15065_s6 + $0x340] sm:$0xff] }
  0x34   :  { %15169 = vst [vmem:[#allocation106_spill] sm:$0xff] %v8036_v63  ;;  %15170 = vst [vmem:[#allocation107_spill] sm:$0xff] %v8041_v58  ;;  %v8046_v60 = vld [vmem:[%s15065_s6 + $0x348] sm:$0xff]  ;;  %v8051_v61 = vld [vmem:[%s15065_s6 + $0x350] sm:$0xff] }
  0x35   :  { %15171 = vst [vmem:[#allocation108_spill] sm:$0xff] %v8046_v60  ;;  %15172 = vst [vmem:[#allocation109_spill] sm:$0xff] %v8051_v61  ;;  %v8056_v62 = vld [vmem:[%s15065_s6 + $0x358] sm:$0xff]  ;;  %v8061_v63 = vld [vmem:[%s15065_s6 + $0x360] sm:$0xff] }
  0x36   :  { %15173 = vst [vmem:[#allocation110_spill] sm:$0xff] %v8056_v62  ;;  %15174 = vst [vmem:[#allocation111_spill] sm:$0xff] %v8061_v63  ;;  %v8066_v58 = vld [vmem:[%s15065_s6 + $0x368] sm:$0xff]  ;;  %v8071_v60 = vld [vmem:[%s15065_s6 + $0x370] sm:$0xff] }
  0x37   :  { %15175 = vst [vmem:[#allocation112_spill] sm:$0xff] %v8066_v58  ;;  %15176 = vst [vmem:[#allocation113_spill] sm:$0xff] %v8071_v60  ;;  %v8076_v61 = vld [vmem:[%s15065_s6 + $0x378] sm:$0xff]  ;;  %v8081_v62 = vld [vmem:[%s15065_s6 + $0x380] sm:$0xff] }
  0x38   :  { %15177 = vst [vmem:[#allocation114_spill] sm:$0xff] %v8076_v61  ;;  %15178 = vst [vmem:[#allocation115_spill] sm:$0xff] %v8081_v62  ;;  %v8086_v63 = vld [vmem:[%s15065_s6 + $0x388] sm:$0xff]  ;;  %v8091_v58 = vld [vmem:[%s15065_s6 + $0x390] sm:$0xff] }
  0x39   :  { %15179 = vst [vmem:[#allocation116_spill] sm:$0xff] %v8086_v63  ;;  %15180 = vst [vmem:[#allocation117_spill] sm:$0xff] %v8091_v58  ;;  %v8096_v60 = vld [vmem:[%s15065_s6 + $0x398] sm:$0xff]  ;;  %v8101_v61 = vld [vmem:[%s15065_s6 + $0x3a0] sm:$0xff] }
  0x3a   :  { %15181 = vst [vmem:[#allocation118_spill] sm:$0xff] %v8096_v60  ;;  %15182 = vst [vmem:[#allocation119_spill] sm:$0xff] %v8101_v61  ;;  %v8106_v62 = vld [vmem:[%s15065_s6 + $0x3a8] sm:$0xff]  ;;  %v8111_v63 = vld [vmem:[%s15065_s6 + $0x3b0] sm:$0xff] }
  0x3b   :  { %15183 = vst [vmem:[#allocation120_spill] sm:$0xff] %v8106_v62  ;;  %15184 = vst [vmem:[#allocation121_spill] sm:$0xff] %v8111_v63  ;;  %v8116_v58 = vld [vmem:[%s15065_s6 + $0x3b8] sm:$0xff]  ;;  %v8121_v60 = vld [vmem:[%s15065_s6 + $0x3c0] sm:$0xff] }
  0x3c   :  { %15185 = vst [vmem:[#allocation122_spill] sm:$0xff] %v8116_v58  ;;  %15186 = vst [vmem:[#allocation123_spill] sm:$0xff] %v8121_v60  ;;  %v8126_v61 = vld [vmem:[%s15065_s6 + $0x3c8] sm:$0xff]  ;;  %v8131_v62 = vld [vmem:[%s15065_s6 + $0x3d0] sm:$0xff] }
  0x3d   :  { %15187 = vst [vmem:[#allocation124_spill] sm:$0xff] %v8126_v61  ;;  %15188 = vst [vmem:[#allocation125_spill] sm:$0xff] %v8131_v62  ;;  %v8136_v63 = vld [vmem:[%s15065_s6 + $0x3d8] sm:$0xff]  ;;  %v8141_v58 = vld [vmem:[%s15065_s6 + $0x3e0] sm:$0xff] }
  0x3e   :  { %15189 = vst [vmem:[#allocation126_spill] sm:$0xff] %v8136_v63  ;;  %15190 = vst [vmem:[#allocation127_spill] sm:$0xff] %v8141_v58  ;;  %v8146_v60 = vld [vmem:[%s15065_s6 + $0x3e8] sm:$0xff]  ;;  %v8151_v61 = vld [vmem:[%s15065_s6 + $0x3f0] sm:$0xff] }
  0x3f   :  { %15191 = vst [vmem:[#allocation128_spill] sm:$0xff] %v8146_v60  ;;  %15192 = vst [vmem:[#allocation129_spill] sm:$0xff] %v8151_v61  ;;  %v8156_v62 = vld [vmem:[%s15065_s6 + $0x3f8] sm:$0xff]  ;;  %v8161_v63 = vld [vmem:[%s15065_s6 + $0x400] sm:$0xff] }
  0x40   :  { %15193 = vst [vmem:[#allocation130_spill] sm:$0xff] %v8156_v62  ;;  %15194 = vst [vmem:[#allocation131_spill] sm:$0xff] %v8161_v63  ;;  %v8166_v58 = vld [vmem:[%s15065_s6 + $0x408] sm:$0xff]  ;;  %v8171_v60 = vld [vmem:[%s15065_s6 + $0x410] sm:$0xff] }
  0x41   :  { %15195 = vst [vmem:[#allocation132_spill] sm:$0xff] %v8166_v58  ;;  %15196 = vst [vmem:[#allocation133_spill] sm:$0xff] %v8171_v60  ;;  %v8176_v61 = vld [vmem:[%s15065_s6 + $0x418] sm:$0xff]  ;;  %v8181_v62 = vld [vmem:[%s15065_s6 + $0x420] sm:$0xff] }
  0x42   :  { %15197 = vst [vmem:[#allocation134_spill] sm:$0xff] %v8176_v61  ;;  %15198 = vst [vmem:[#allocation135_spill] sm:$0xff] %v8181_v62  ;;  %v8186_v63 = vld [vmem:[%s15065_s6 + $0x428] sm:$0xff]  ;;  %v8191_v58 = vld [vmem:[%s15065_s6 + $0x430] sm:$0xff] }
  0x43   :  { %15199 = vst [vmem:[#allocation136_spill] sm:$0xff] %v8186_v63  ;;  %15200 = vst [vmem:[#allocation137_spill] sm:$0xff] %v8191_v58  ;;  %v8196_v60 = vld [vmem:[%s15065_s6 + $0x438] sm:$0xff]  ;;  %v8201_v61 = vld [vmem:[%s15065_s6 + $0x440] sm:$0xff] }
  0x44   :  { %15201 = vst [vmem:[#allocation138_spill] sm:$0xff] %v8196_v60  ;;  %15202 = vst [vmem:[#allocation139_spill] sm:$0xff] %v8201_v61  ;;  %v8206_v62 = vld [vmem:[%s15065_s6 + $0x448] sm:$0xff]  ;;  %v8211_v63 = vld [vmem:[%s15065_s6 + $0x450] sm:$0xff] }
  0x45   :  { %15203 = vst [vmem:[#allocation140_spill] sm:$0xff] %v8206_v62  ;;  %15204 = vst [vmem:[#allocation141_spill] sm:$0xff] %v8211_v63  ;;  %v8216_v58 = vld [vmem:[%s15065_s6 + $0x458] sm:$0xff]  ;;  %v8221_v60 = vld [vmem:[%s15065_s6 + $0x460] sm:$0xff] }
  0x46   :  { %15205 = vst [vmem:[#allocation142_spill] sm:$0xff] %v8216_v58  ;;  %15206 = vst [vmem:[#allocation143_spill] sm:$0xff] %v8221_v60  ;;  %v8226_v61 = vld [vmem:[%s15065_s6 + $0x468] sm:$0xff]  ;;  %v8231_v62 = vld [vmem:[%s15065_s6 + $0x470] sm:$0xff] }
  0x47   :  { %15207 = vst [vmem:[#allocation144_spill] sm:$0xff] %v8226_v61  ;;  %15208 = vst [vmem:[#allocation145_spill] sm:$0xff] %v8231_v62  ;;  %v8236_v63 = vld [vmem:[%s15065_s6 + $0x478] sm:$0xff]  ;;  %v8241_v58 = vld [vmem:[%s15065_s6 + $0x480] sm:$0xff] }
  0x48   :  { %15209 = vst [vmem:[#allocation146_spill] sm:$0xff] %v8236_v63  ;;  %15210 = vst [vmem:[#allocation147_spill] sm:$0xff] %v8241_v58  ;;  %v8246_v60 = vld [vmem:[%s15065_s6 + $0x488] sm:$0xff]  ;;  %v8251_v61 = vld [vmem:[%s15065_s6 + $0x490] sm:$0xff] }
  0x49   :  { %15211 = vst [vmem:[#allocation148_spill] sm:$0xff] %v8246_v60  ;;  %15212 = vst [vmem:[#allocation149_spill] sm:$0xff] %v8251_v61  ;;  %v8256_v62 = vld [vmem:[%s15065_s6 + $0x498] sm:$0xff]  ;;  %v8261_v63 = vld [vmem:[%s15065_s6 + $0x4a0] sm:$0xff] }
  0x4a   :  { %15213 = vst [vmem:[#allocation150_spill] sm:$0xff] %v8256_v62  ;;  %15214 = vst [vmem:[#allocation151_spill] sm:$0xff] %v8261_v63  ;;  %v8266_v58 = vld [vmem:[%s15065_s6 + $0x4a8] sm:$0xff]  ;;  %v8271_v60 = vld [vmem:[%s15065_s6 + $0x4b0] sm:$0xff] }
  0x4b   :  { %15215 = vst [vmem:[#allocation152_spill] sm:$0xff] %v8266_v58  ;;  %15216 = vst [vmem:[#allocation153_spill] sm:$0xff] %v8271_v60  ;;  %v8276_v61 = vld [vmem:[%s15065_s6 + $0x4b8] sm:$0xff]  ;;  %v8281_v62 = vld [vmem:[%s15065_s6 + $0x4c0] sm:$0xff] }
  0x4c   :  { %15217 = vst [vmem:[#allocation154_spill] sm:$0xff] %v8276_v61  ;;  %15218 = vst [vmem:[#allocation155_spill] sm:$0xff] %v8281_v62  ;;  %v8286_v63 = vld [vmem:[%s15065_s6 + $0x4c8] sm:$0xff]  ;;  %v8291_v58 = vld [vmem:[%s15065_s6 + $0x4d0] sm:$0xff] }
  0x4d   :  { %15219 = vst [vmem:[#allocation156_spill] sm:$0xff] %v8286_v63  ;;  %15220 = vst [vmem:[#allocation157_spill] sm:$0xff] %v8291_v58  ;;  %v8296_v60 = vld [vmem:[%s15065_s6 + $0x4d8] sm:$0xff]  ;;  %v8301_v61 = vld [vmem:[%s15065_s6 + $0x4e0] sm:$0xff] }
  0x4e   :  { %15221 = vst [vmem:[#allocation158_spill] sm:$0xff] %v8296_v60  ;;  %15222 = vst [vmem:[#allocation159_spill] sm:$0xff] %v8301_v61  ;;  %v8306_v62 = vld [vmem:[%s15065_s6 + $0x4e8] sm:$0xff]  ;;  %v8311_v63 = vld [vmem:[%s15065_s6 + $0x4f0] sm:$0xff] }
  0x4f   :  { %15223 = vst [vmem:[#allocation160_spill] sm:$0xff] %v8306_v62  ;;  %15224 = vst [vmem:[#allocation161_spill] sm:$0xff] %v8311_v63  ;;  %v8316_v58 = vld [vmem:[%s15065_s6 + $0x4f8] sm:$0xff]  ;;  %v8321_v60 = vld [vmem:[%s15065_s6 + $0x500] sm:$0xff] }
  0x50   :  { %15225 = vst [vmem:[#allocation162_spill] sm:$0xff] %v8316_v58  ;;  %15226 = vst [vmem:[#allocation163_spill] sm:$0xff] %v8321_v60  ;;  %v8326_v61 = vld [vmem:[%s15065_s6 + $0x508] sm:$0xff]  ;;  %v8331_v62 = vld [vmem:[%s15065_s6 + $0x510] sm:$0xff] }
  0x51   :  { %15227 = vst [vmem:[#allocation164_spill] sm:$0xff] %v8326_v61  ;;  %15228 = vst [vmem:[#allocation165_spill] sm:$0xff] %v8331_v62  ;;  %v8336_v63 = vld [vmem:[%s15065_s6 + $0x518] sm:$0xff]  ;;  %v8341_v58 = vld [vmem:[%s15065_s6 + $0x520] sm:$0xff] }
  0x52   :  { %15229 = vst [vmem:[#allocation166_spill] sm:$0xff] %v8336_v63  ;;  %15230 = vst [vmem:[#allocation167_spill] sm:$0xff] %v8341_v58  ;;  %v8346_v60 = vld [vmem:[%s15065_s6 + $0x528] sm:$0xff]  ;;  %v8351_v61 = vld [vmem:[%s15065_s6 + $0x530] sm:$0xff] }
  0x53   :  { %15231 = vst [vmem:[#allocation168_spill] sm:$0xff] %v8346_v60  ;;  %15232 = vst [vmem:[#allocation169_spill] sm:$0xff] %v8351_v61  ;;  %v8356_v62 = vld [vmem:[%s15065_s6 + $0x538] sm:$0xff]  ;;  %v8361_v63 = vld [vmem:[%s15065_s6 + $0x540] sm:$0xff] }
  0x54   :  { %15233 = vst [vmem:[#allocation170_spill] sm:$0xff] %v8356_v62  ;;  %15234 = vst [vmem:[#allocation171_spill] sm:$0xff] %v8361_v63  ;;  %v8366_v58 = vld [vmem:[%s15065_s6 + $0x548] sm:$0xff]  ;;  %v8371_v60 = vld [vmem:[%s15065_s6 + $0x550] sm:$0xff] }
  0x55   :  { %15235 = vst [vmem:[#allocation172_spill] sm:$0xff] %v8366_v58  ;;  %15236 = vst [vmem:[#allocation173_spill] sm:$0xff] %v8371_v60  ;;  %v8376_v61 = vld [vmem:[%s15065_s6 + $0x558] sm:$0xff]  ;;  %v8381_v62 = vld [vmem:[%s15065_s6 + $0x560] sm:$0xff] }
  0x56   :  { %15237 = vst [vmem:[#allocation174_spill] sm:$0xff] %v8376_v61  ;;  %15238 = vst [vmem:[#allocation175_spill] sm:$0xff] %v8381_v62  ;;  %v8386_v63 = vld [vmem:[%s15065_s6 + $0x568] sm:$0xff]  ;;  %v8391_v58 = vld [vmem:[%s15065_s6 + $0x570] sm:$0xff] }
  0x57   :  { %15239 = vst [vmem:[#allocation176_spill] sm:$0xff] %v8386_v63  ;;  %15240 = vst [vmem:[#allocation177_spill] sm:$0xff] %v8391_v58  ;;  %v8396_v60 = vld [vmem:[%s15065_s6 + $0x578] sm:$0xff]  ;;  %v8401_v61 = vld [vmem:[%s15065_s6 + $0x580] sm:$0xff] }
  0x58   :  { %15241 = vst [vmem:[#allocation178_spill] sm:$0xff] %v8396_v60  ;;  %15242 = vst [vmem:[#allocation179_spill] sm:$0xff] %v8401_v61  ;;  %v8406_v62 = vld [vmem:[%s15065_s6 + $0x588] sm:$0xff]  ;;  %v8411_v63 = vld [vmem:[%s15065_s6 + $0x590] sm:$0xff] }
  0x59   :  { %15243 = vst [vmem:[#allocation180_spill] sm:$0xff] %v8406_v62  ;;  %15244 = vst [vmem:[#allocation181_spill] sm:$0xff] %v8411_v63  ;;  %v8416_v58 = vld [vmem:[%s15065_s6 + $0x598] sm:$0xff]  ;;  %v8421_v60 = vld [vmem:[%s15065_s6 + $0x5a0] sm:$0xff] }
  0x5a   :  { %15245 = vst [vmem:[#allocation182_spill] sm:$0xff] %v8416_v58  ;;  %15246 = vst [vmem:[#allocation183_spill] sm:$0xff] %v8421_v60  ;;  %v8426_v61 = vld [vmem:[%s15065_s6 + $0x5a8] sm:$0xff]  ;;  %v8431_v62 = vld [vmem:[%s15065_s6 + $0x5b0] sm:$0xff] }
  0x5b   :  { %15247 = vst [vmem:[#allocation184_spill] sm:$0xff] %v8426_v61  ;;  %15248 = vst [vmem:[#allocation185_spill] sm:$0xff] %v8431_v62  ;;  %v8436_v63 = vld [vmem:[%s15065_s6 + $0x5b8] sm:$0xff]  ;;  %v8441_v58 = vld [vmem:[%s15065_s6 + $0x5c0] sm:$0xff] }
  0x5c   :  { %15249 = vst [vmem:[#allocation186_spill] sm:$0xff] %v8436_v63  ;;  %15250 = vst [vmem:[#allocation187_spill] sm:$0xff] %v8441_v58  ;;  %v8446_v60 = vld [vmem:[%s15065_s6 + $0x5c8] sm:$0xff]  ;;  %v8451_v61 = vld [vmem:[%s15065_s6 + $0x5d0] sm:$0xff] }
  0x5d   :  { %15251 = vst [vmem:[#allocation188_spill] sm:$0xff] %v8446_v60  ;;  %15252 = vst [vmem:[#allocation189_spill] sm:$0xff] %v8451_v61  ;;  %v8456_v62 = vld [vmem:[%s15065_s6 + $0x5d8] sm:$0xff]  ;;  %v8461_v63 = vld [vmem:[%s15065_s6 + $0x5e0] sm:$0xff] }
  0x5e   :  { %15253 = vst [vmem:[#allocation190_spill] sm:$0xff] %v8456_v62  ;;  %15254 = vst [vmem:[#allocation191_spill] sm:$0xff] %v8461_v63  ;;  %v8466_v58 = vld [vmem:[%s15065_s6 + $0x5e8] sm:$0xff]  ;;  %v8471_v60 = vld [vmem:[%s15065_s6 + $0x5f0] sm:$0xff] }
  0x5f   :  { %15255 = vst [vmem:[#allocation192_spill] sm:$0xff] %v8466_v58  ;;  %15256 = vst [vmem:[#allocation193_spill] sm:$0xff] %v8471_v60  ;;  %v8476_v61 = vld [vmem:[%s15065_s6 + $0x5f8] sm:$0xff]  ;;  %v8481_v62 = vld [vmem:[%s15065_s6 + $0x600] sm:$0xff] }
  0x60   :  { %15257 = vst [vmem:[#allocation194_spill] sm:$0xff] %v8476_v61  ;;  %15258 = vst [vmem:[#allocation195_spill] sm:$0xff] %v8481_v62  ;;  %v8486_v63 = vld [vmem:[%s15065_s6 + $0x608] sm:$0xff]  ;;  %v8491_v58 = vld [vmem:[%s15065_s6 + $0x610] sm:$0xff] }
  0x61   :  { %15259 = vst [vmem:[#allocation196_spill] sm:$0xff] %v8486_v63  ;;  %15260 = vst [vmem:[#allocation197_spill] sm:$0xff] %v8491_v58  ;;  %v8496_v60 = vld [vmem:[%s15065_s6 + $0x618] sm:$0xff]  ;;  %v8501_v61 = vld [vmem:[%s15065_s6 + $0x620] sm:$0xff] }
  0x62   :  { %15261 = vst [vmem:[#allocation198_spill] sm:$0xff] %v8496_v60  ;;  %15262 = vst [vmem:[#allocation199_spill] sm:$0xff] %v8501_v61  ;;  %v8506_v62 = vld [vmem:[%s15065_s6 + $0x628] sm:$0xff]  ;;  %v8511_v63 = vld [vmem:[%s15065_s6 + $0x630] sm:$0xff] }
  0x63   :  { %15263 = vst [vmem:[#allocation200_spill] sm:$0xff] %v8506_v62  ;;  %15264 = vst [vmem:[#allocation201_spill] sm:$0xff] %v8511_v63  ;;  %v8516_v58 = vld [vmem:[%s15065_s6 + $0x638] sm:$0xff]  ;;  %v8521_v60 = vld [vmem:[%s15065_s6 + $0x640] sm:$0xff] }
  0x64   :  { %15265 = vst [vmem:[#allocation202_spill] sm:$0xff] %v8516_v58  ;;  %15266 = vst [vmem:[#allocation203_spill] sm:$0xff] %v8521_v60  ;;  %v8526_v61 = vld [vmem:[%s15065_s6 + $0x648] sm:$0xff]  ;;  %v8531_v62 = vld [vmem:[%s15065_s6 + $0x650] sm:$0xff] }
  0x65   :  { %15267 = vst [vmem:[#allocation204_spill] sm:$0xff] %v8526_v61  ;;  %15268 = vst [vmem:[#allocation205_spill] sm:$0xff] %v8531_v62  ;;  %v8536_v63 = vld [vmem:[%s15065_s6 + $0x658] sm:$0xff]  ;;  %v8541_v58 = vld [vmem:[%s15065_s6 + $0x660] sm:$0xff] }
  0x66   :  { %15269 = vst [vmem:[#allocation206_spill] sm:$0xff] %v8536_v63  ;;  %15270 = vst [vmem:[#allocation207_spill] sm:$0xff] %v8541_v58  ;;  %v8546_v60 = vld [vmem:[%s15065_s6 + $0x668] sm:$0xff]  ;;  %v8551_v61 = vld [vmem:[%s15065_s6 + $0x670] sm:$0xff] }
  0x67   :  { %15271 = vst [vmem:[#allocation208_spill] sm:$0xff] %v8546_v60  ;;  %15272 = vst [vmem:[#allocation209_spill] sm:$0xff] %v8551_v61  ;;  %v8556_v62 = vld [vmem:[%s15065_s6 + $0x678] sm:$0xff]  ;;  %v8561_v63 = vld [vmem:[%s15065_s6 + $0x680] sm:$0xff] }
  0x68   :  { %15273 = vst [vmem:[#allocation210_spill] sm:$0xff] %v8556_v62  ;;  %15274 = vst [vmem:[#allocation211_spill] sm:$0xff] %v8561_v63  ;;  %v8566_v58 = vld [vmem:[%s15065_s6 + $0x688] sm:$0xff]  ;;  %v8571_v60 = vld [vmem:[%s15065_s6 + $0x690] sm:$0xff] }
  0x69   :  { %15275 = vst [vmem:[#allocation212_spill] sm:$0xff] %v8566_v58  ;;  %15276 = vst [vmem:[#allocation213_spill] sm:$0xff] %v8571_v60  ;;  %v8576_v61 = vld [vmem:[%s15065_s6 + $0x698] sm:$0xff]  ;;  %v8581_v62 = vld [vmem:[%s15065_s6 + $0x6a0] sm:$0xff] }
  0x6a   :  { %15277 = vst [vmem:[#allocation214_spill] sm:$0xff] %v8576_v61  ;;  %15278 = vst [vmem:[#allocation215_spill] sm:$0xff] %v8581_v62  ;;  %v8586_v63 = vld [vmem:[%s15065_s6 + $0x6a8] sm:$0xff]  ;;  %v8591_v58 = vld [vmem:[%s15065_s6 + $0x6b0] sm:$0xff] }
  0x6b   :  { %15279 = vst [vmem:[#allocation216_spill] sm:$0xff] %v8586_v63  ;;  %15280 = vst [vmem:[#allocation217_spill] sm:$0xff] %v8591_v58  ;;  %v8596_v60 = vld [vmem:[%s15065_s6 + $0x6b8] sm:$0xff]  ;;  %v8601_v61 = vld [vmem:[%s15065_s6 + $0x6c0] sm:$0xff] }
  0x6c   :  { %15281 = vst [vmem:[#allocation218_spill] sm:$0xff] %v8596_v60  ;;  %15282 = vst [vmem:[#allocation219_spill] sm:$0xff] %v8601_v61  ;;  %v8606_v62 = vld [vmem:[%s15065_s6 + $0x6c8] sm:$0xff]  ;;  %v8611_v63 = vld [vmem:[%s15065_s6 + $0x6d0] sm:$0xff] }
  0x6d   :  { %15283 = vst [vmem:[#allocation220_spill] sm:$0xff] %v8606_v62  ;;  %15284 = vst [vmem:[#allocation221_spill] sm:$0xff] %v8611_v63  ;;  %v8616_v58 = vld [vmem:[%s15065_s6 + $0x6d8] sm:$0xff]  ;;  %v8621_v60 = vld [vmem:[%s15065_s6 + $0x6e0] sm:$0xff] }
  0x6e   :  { %15285 = vst [vmem:[#allocation222_spill] sm:$0xff] %v8616_v58  ;;  %15286 = vst [vmem:[#allocation223_spill] sm:$0xff] %v8621_v60  ;;  %v8626_v61 = vld [vmem:[%s15065_s6 + $0x6e8] sm:$0xff]  ;;  %v8631_v62 = vld [vmem:[%s15065_s6 + $0x6f0] sm:$0xff] }
  0x6f   :  { %15287 = vst [vmem:[#allocation224_spill] sm:$0xff] %v8626_v61  ;;  %15288 = vst [vmem:[#allocation225_spill] sm:$0xff] %v8631_v62  ;;  %v8636_v63 = vld [vmem:[%s15065_s6 + $0x6f8] sm:$0xff]  ;;  %v8641_v58 = vld [vmem:[%s15065_s6 + $0x700] sm:$0xff] }
  0x70   :  { %15289 = vst [vmem:[#allocation226_spill] sm:$0xff] %v8636_v63  ;;  %15290 = vst [vmem:[#allocation227_spill] sm:$0xff] %v8641_v58  ;;  %v8646_v60 = vld [vmem:[%s15065_s6 + $0x708] sm:$0xff]  ;;  %v8651_v61 = vld [vmem:[%s15065_s6 + $0x710] sm:$0xff] }
  0x71   :  { %15291 = vst [vmem:[#allocation228_spill] sm:$0xff] %v8646_v60  ;;  %15292 = vst [vmem:[#allocation229_spill] sm:$0xff] %v8651_v61  ;;  %v8656_v62 = vld [vmem:[%s15065_s6 + $0x718] sm:$0xff]  ;;  %v8661_v63 = vld [vmem:[%s15065_s6 + $0x720] sm:$0xff] }
  0x72   :  { %15293 = vst [vmem:[#allocation230_spill] sm:$0xff] %v8656_v62  ;;  %15294 = vst [vmem:[#allocation231_spill] sm:$0xff] %v8661_v63  ;;  %v8666_v58 = vld [vmem:[%s15065_s6 + $0x728] sm:$0xff]  ;;  %v8671_v60 = vld [vmem:[%s15065_s6 + $0x730] sm:$0xff] }
  0x73   :  { %15295 = vst [vmem:[#allocation232_spill] sm:$0xff] %v8666_v58  ;;  %15296 = vst [vmem:[#allocation233_spill] sm:$0xff] %v8671_v60  ;;  %v8676_v61 = vld [vmem:[%s15065_s6 + $0x738] sm:$0xff]  ;;  %v8681_v62 = vld [vmem:[%s15065_s6 + $0x740] sm:$0xff] }
  0x74   :  { %15297 = vst [vmem:[#allocation234_spill] sm:$0xff] %v8676_v61  ;;  %15298 = vst [vmem:[#allocation235_spill] sm:$0xff] %v8681_v62  ;;  %v8686_v63 = vld [vmem:[%s15065_s6 + $0x748] sm:$0xff]  ;;  %v8691_v58 = vld [vmem:[%s15065_s6 + $0x750] sm:$0xff] }
  0x75   :  { %15299 = vst [vmem:[#allocation236_spill] sm:$0xff] %v8686_v63  ;;  %15300 = vst [vmem:[#allocation237_spill] sm:$0xff] %v8691_v58  ;;  %v8696_v60 = vld [vmem:[%s15065_s6 + $0x758] sm:$0xff]  ;;  %v8701_v61 = vld [vmem:[%s15065_s6 + $0x760] sm:$0xff] }
  0x76   :  { %15301 = vst [vmem:[#allocation238_spill] sm:$0xff] %v8696_v60  ;;  %15302 = vst [vmem:[#allocation239_spill] sm:$0xff] %v8701_v61  ;;  %v8706_v62 = vld [vmem:[%s15065_s6 + $0x768] sm:$0xff]  ;;  %v8711_v63 = vld [vmem:[%s15065_s6 + $0x770] sm:$0xff] }
  0x77   :  { %15303 = vst [vmem:[#allocation240_spill] sm:$0xff] %v8706_v62  ;;  %15304 = vst [vmem:[#allocation241_spill] sm:$0xff] %v8711_v63  ;;  %v8716_v58 = vld [vmem:[%s15065_s6 + $0x778] sm:$0xff]  ;;  %v8721_v60 = vld [vmem:[%s15065_s6 + $0x780] sm:$0xff] }
  0x78   :  { %15305 = vst [vmem:[#allocation242_spill] sm:$0xff] %v8716_v58  ;;  %15306 = vst [vmem:[#allocation243_spill] sm:$0xff] %v8721_v60  ;;  %v8726_v61 = vld [vmem:[%s15065_s6 + $0x788] sm:$0xff]  ;;  %v8731_v62 = vld [vmem:[%s15065_s6 + $0x790] sm:$0xff] }
  0x79   :  { %15307 = vst [vmem:[#allocation244_spill] sm:$0xff] %v8726_v61  ;;  %15308 = vst [vmem:[#allocation245_spill] sm:$0xff] %v8731_v62  ;;  %v8736_v63 = vld [vmem:[%s15065_s6 + $0x798] sm:$0xff]  ;;  %v8741_v58 = vld [vmem:[%s15065_s6 + $0x7a0] sm:$0xff] }
  0x7a   :  { %15309 = vst [vmem:[#allocation246_spill] sm:$0xff] %v8736_v63  ;;  %15310 = vst [vmem:[#allocation247_spill] sm:$0xff] %v8741_v58  ;;  %v8746_v60 = vld [vmem:[%s15065_s6 + $0x7a8] sm:$0xff]  ;;  %v8751_v61 = vld [vmem:[%s15065_s6 + $0x7b0] sm:$0xff] }
  0x7b   :  { %15311 = vst [vmem:[#allocation248_spill] sm:$0xff] %v8746_v60  ;;  %15312 = vst [vmem:[#allocation249_spill] sm:$0xff] %v8751_v61  ;;  %v8756_v62 = vld [vmem:[%s15065_s6 + $0x7b8] sm:$0xff]  ;;  %v8761_v63 = vld [vmem:[%s15065_s6 + $0x7c0] sm:$0xff] }
  0x7c   :  { %15313 = vst [vmem:[#allocation250_spill] sm:$0xff] %v8756_v62  ;;  %15314 = vst [vmem:[#allocation251_spill] sm:$0xff] %v8761_v63  ;;  %v8766_v58 = vld [vmem:[%s15065_s6 + $0x7c8] sm:$0xff]  ;;  %v8771_v60 = vld [vmem:[%s15065_s6 + $0x7d0] sm:$0xff] }
  0x7d   :  { %15315 = vst [vmem:[#allocation252_spill] sm:$0xff] %v8766_v58  ;;  %15316 = vst [vmem:[#allocation253_spill] sm:$0xff] %v8771_v60  ;;  %v8776_v61 = vld [vmem:[%s15065_s6 + $0x7d8] sm:$0xff]  ;;  %v8781_v62 = vld [vmem:[%s15065_s6 + $0x7e0] sm:$0xff] }
  0x7e   :  { %15317 = vst [vmem:[#allocation254_spill] sm:$0xff] %v8776_v61  ;;  %15318 = vst [vmem:[#allocation255_spill] sm:$0xff] %v8781_v62  ;;  %v8786_v63 = vld [vmem:[%s15065_s6 + $0x7e8] sm:$0xff]  ;;  %v8791_v58 = vld [vmem:[%s15065_s6 + $0x7f0] sm:$0xff] }
  0x7f   :  { %15319 = vst [vmem:[#allocation256_spill] sm:$0xff] %v8786_v63  ;;  %15320 = vst [vmem:[#allocation257_spill] sm:$0xff] %v8791_v58  ;;  %v8796_v60 = vld [vmem:[%s15065_s6 + $0x7f8] sm:$0xff]  ;;  %v8801_v61 = vld [vmem:[%s15065_s6 + $0x800] sm:$0xff] }
  0x80   :  { %15321 = vst [vmem:[#allocation258_spill] sm:$0xff] %v8796_v60  ;;  %15322 = vst [vmem:[#allocation259_spill] sm:$0xff] %v8801_v61  ;;  %v8806_v62 = vld [vmem:[%s15065_s6 + $0x808] sm:$0xff]  ;;  %v8811_v63 = vld [vmem:[%s15065_s6 + $0x810] sm:$0xff] }
  0x81   :  { %15323 = vst [vmem:[#allocation260_spill] sm:$0xff] %v8806_v62  ;;  %15324 = vst [vmem:[#allocation261_spill] sm:$0xff] %v8811_v63  ;;  %v8816_v58 = vld [vmem:[%s15065_s6 + $0x818] sm:$0xff]  ;;  %v8821_v60 = vld [vmem:[%s15065_s6 + $0x820] sm:$0xff] }
  0x82   :  { %15325 = vst [vmem:[#allocation262_spill] sm:$0xff] %v8816_v58  ;;  %15326 = vst [vmem:[#allocation263_spill] sm:$0xff] %v8821_v60  ;;  %v8826_v61 = vld [vmem:[%s15065_s6 + $0x828] sm:$0xff]  ;;  %v8831_v62 = vld [vmem:[%s15065_s6 + $0x830] sm:$0xff] }
  0x83   :  { %15327 = vst [vmem:[#allocation264_spill] sm:$0xff] %v8826_v61  ;;  %15328 = vst [vmem:[#allocation265_spill] sm:$0xff] %v8831_v62  ;;  %v8836_v63 = vld [vmem:[%s15065_s6 + $0x838] sm:$0xff]  ;;  %v8841_v58 = vld [vmem:[%s15065_s6 + $0x840] sm:$0xff] }
  0x84   :  { %15329 = vst [vmem:[#allocation266_spill] sm:$0xff] %v8836_v63  ;;  %15330 = vst [vmem:[#allocation267_spill] sm:$0xff] %v8841_v58  ;;  %v8846_v60 = vld [vmem:[%s15065_s6 + $0x848] sm:$0xff]  ;;  %v8851_v61 = vld [vmem:[%s15065_s6 + $0x850] sm:$0xff] }
  0x85   :  { %15331 = vst [vmem:[#allocation268_spill] sm:$0xff] %v8846_v60  ;;  %15332 = vst [vmem:[#allocation269_spill] sm:$0xff] %v8851_v61  ;;  %v8856_v62 = vld [vmem:[%s15065_s6 + $0x858] sm:$0xff]  ;;  %v8861_v63 = vld [vmem:[%s15065_s6 + $0x860] sm:$0xff] }
  0x86   :  { %15333 = vst [vmem:[#allocation270_spill] sm:$0xff] %v8856_v62  ;;  %15334 = vst [vmem:[#allocation271_spill] sm:$0xff] %v8861_v63  ;;  %v8866_v58 = vld [vmem:[%s15065_s6 + $0x868] sm:$0xff]  ;;  %v8871_v60 = vld [vmem:[%s15065_s6 + $0x870] sm:$0xff] }
  0x87   :  { %15335 = vst [vmem:[#allocation272_spill] sm:$0xff] %v8866_v58  ;;  %15336 = vst [vmem:[#allocation273_spill] sm:$0xff] %v8871_v60  ;;  %v8876_v61 = vld [vmem:[%s15065_s6 + $0x878] sm:$0xff]  ;;  %v8881_v62 = vld [vmem:[%s15065_s6 + $0x880] sm:$0xff] }
  0x88   :  { %15337 = vst [vmem:[#allocation274_spill] sm:$0xff] %v8876_v61  ;;  %15338 = vst [vmem:[#allocation275_spill] sm:$0xff] %v8881_v62  ;;  %v8886_v63 = vld [vmem:[%s15065_s6 + $0x888] sm:$0xff]  ;;  %v8891_v58 = vld [vmem:[%s15065_s6 + $0x890] sm:$0xff] }
  0x89   :  { %15339 = vst [vmem:[#allocation276_spill] sm:$0xff] %v8886_v63  ;;  %15340 = vst [vmem:[#allocation277_spill] sm:$0xff] %v8891_v58  ;;  %v8896_v60 = vld [vmem:[%s15065_s6 + $0x898] sm:$0xff]  ;;  %v8901_v61 = vld [vmem:[%s15065_s6 + $0x8a0] sm:$0xff] }
  0x8a   :  { %15341 = vst [vmem:[#allocation278_spill] sm:$0xff] %v8896_v60  ;;  %15342 = vst [vmem:[#allocation279_spill] sm:$0xff] %v8901_v61  ;;  %v8906_v62 = vld [vmem:[%s15065_s6 + $0x8a8] sm:$0xff]  ;;  %v8911_v63 = vld [vmem:[%s15065_s6 + $0x8b0] sm:$0xff] }
  0x8b   :  { %15343 = vst [vmem:[#allocation280_spill] sm:$0xff] %v8906_v62  ;;  %15344 = vst [vmem:[#allocation281_spill] sm:$0xff] %v8911_v63  ;;  %v8916_v58 = vld [vmem:[%s15065_s6 + $0x8b8] sm:$0xff]  ;;  %v8921_v60 = vld [vmem:[%s15065_s6 + $0x8c0] sm:$0xff] }
  0x8c   :  { %15345 = vst [vmem:[#allocation282_spill] sm:$0xff] %v8916_v58  ;;  %15346 = vst [vmem:[#allocation283_spill] sm:$0xff] %v8921_v60  ;;  %v8926_v61 = vld [vmem:[%s15065_s6 + $0x8c8] sm:$0xff]  ;;  %v8931_v62 = vld [vmem:[%s15065_s6 + $0x8d0] sm:$0xff] }
  0x8d   :  { %15347 = vst [vmem:[#allocation284_spill] sm:$0xff] %v8926_v61  ;;  %15348 = vst [vmem:[#allocation285_spill] sm:$0xff] %v8931_v62  ;;  %v8936_v63 = vld [vmem:[%s15065_s6 + $0x8d8] sm:$0xff]  ;;  %v8941_v58 = vld [vmem:[%s15065_s6 + $0x8e0] sm:$0xff] }
  0x8e   :  { %15349 = vst [vmem:[#allocation286_spill] sm:$0xff] %v8936_v63  ;;  %15350 = vst [vmem:[#allocation287_spill] sm:$0xff] %v8941_v58  ;;  %v8946_v60 = vld [vmem:[%s15065_s6 + $0x8e8] sm:$0xff]  ;;  %v8951_v61 = vld [vmem:[%s15065_s6 + $0x8f0] sm:$0xff] }
  0x8f   :  { %15351 = vst [vmem:[#allocation288_spill] sm:$0xff] %v8946_v60  ;;  %15352 = vst [vmem:[#allocation289_spill] sm:$0xff] %v8951_v61  ;;  %v8956_v62 = vld [vmem:[%s15065_s6 + $0x8f8] sm:$0xff]  ;;  %v8961_v63 = vld [vmem:[%s15065_s6 + $0x900] sm:$0xff] }
  0x90   :  { %15353 = vst [vmem:[#allocation290_spill] sm:$0xff] %v8956_v62  ;;  %15354 = vst [vmem:[#allocation291_spill] sm:$0xff] %v8961_v63  ;;  %v8966_v58 = vld [vmem:[%s15065_s6 + $0x908] sm:$0xff]  ;;  %v8971_v60 = vld [vmem:[%s15065_s6 + $0x910] sm:$0xff] }
  0x91   :  { %15355 = vst [vmem:[#allocation292_spill] sm:$0xff] %v8966_v58  ;;  %15356 = vst [vmem:[#allocation293_spill] sm:$0xff] %v8971_v60  ;;  %v8976_v61 = vld [vmem:[%s15065_s6 + $0x918] sm:$0xff]  ;;  %v8981_v62 = vld [vmem:[%s15065_s6 + $0x920] sm:$0xff] }
  0x92   :  { %15357 = vst [vmem:[#allocation294_spill] sm:$0xff] %v8976_v61  ;;  %15358 = vst [vmem:[#allocation295_spill] sm:$0xff] %v8981_v62  ;;  %v8986_v63 = vld [vmem:[%s15065_s6 + $0x928] sm:$0xff]  ;;  %v8991_v58 = vld [vmem:[%s15065_s6 + $0x930] sm:$0xff] }
  0x93   :  { %15359 = vst [vmem:[#allocation296_spill] sm:$0xff] %v8986_v63  ;;  %15360 = vst [vmem:[#allocation297_spill] sm:$0xff] %v8991_v58  ;;  %v8996_v60 = vld [vmem:[%s15065_s6 + $0x938] sm:$0xff]  ;;  %v9001_v61 = vld [vmem:[%s15065_s6 + $0x940] sm:$0xff] }
  0x94   :  { %15361 = vst [vmem:[#allocation298_spill] sm:$0xff] %v8996_v60  ;;  %15362 = vst [vmem:[#allocation299_spill] sm:$0xff] %v9001_v61  ;;  %v9006_v62 = vld [vmem:[%s15065_s6 + $0x948] sm:$0xff]  ;;  %v9011_v63 = vld [vmem:[%s15065_s6 + $0x950] sm:$0xff] }
  0x95   :  { %15363 = vst [vmem:[#allocation300_spill] sm:$0xff] %v9006_v62  ;;  %15364 = vst [vmem:[#allocation301_spill] sm:$0xff] %v9011_v63  ;;  %v9016_v58 = vld [vmem:[%s15065_s6 + $0x958] sm:$0xff]  ;;  %v9021_v60 = vld [vmem:[%s15065_s6 + $0x960] sm:$0xff] }
  0x96   :  { %15365 = vst [vmem:[#allocation302_spill] sm:$0xff] %v9016_v58  ;;  %15366 = vst [vmem:[#allocation303_spill] sm:$0xff] %v9021_v60  ;;  %v9026_v61 = vld [vmem:[%s15065_s6 + $0x968] sm:$0xff]  ;;  %v9031_v62 = vld [vmem:[%s15065_s6 + $0x970] sm:$0xff] }
  0x97   :  { %15367 = vst [vmem:[#allocation304_spill] sm:$0xff] %v9026_v61  ;;  %15368 = vst [vmem:[#allocation305_spill] sm:$0xff] %v9031_v62  ;;  %v9036_v63 = vld [vmem:[%s15065_s6 + $0x978] sm:$0xff]  ;;  %v9041_v58 = vld [vmem:[%s15065_s6 + $0x980] sm:$0xff] }
  0x98   :  { %15369 = vst [vmem:[#allocation306_spill] sm:$0xff] %v9036_v63  ;;  %15370 = vst [vmem:[#allocation307_spill] sm:$0xff] %v9041_v58  ;;  %v9046_v60 = vld [vmem:[%s15065_s6 + $0x988] sm:$0xff]  ;;  %v9051_v61 = vld [vmem:[%s15065_s6 + $0x990] sm:$0xff] }
  0x99   :  { %15371 = vst [vmem:[#allocation308_spill] sm:$0xff] %v9046_v60  ;;  %15372 = vst [vmem:[#allocation309_spill] sm:$0xff] %v9051_v61  ;;  %v9056_v62 = vld [vmem:[%s15065_s6 + $0x998] sm:$0xff]  ;;  %v9061_v63 = vld [vmem:[%s15065_s6 + $0x9a0] sm:$0xff] }
  0x9a   :  { %15373 = vst [vmem:[#allocation310_spill] sm:$0xff] %v9056_v62  ;;  %15374 = vst [vmem:[#allocation311_spill] sm:$0xff] %v9061_v63  ;;  %v9066_v58 = vld [vmem:[%s15065_s6 + $0x9a8] sm:$0xff]  ;;  %v9071_v60 = vld [vmem:[%s15065_s6 + $0x9b0] sm:$0xff] }
  0x9b   :  { %15375 = vst [vmem:[#allocation312_spill] sm:$0xff] %v9066_v58  ;;  %15376 = vst [vmem:[#allocation313_spill] sm:$0xff] %v9071_v60  ;;  %v9076_v61 = vld [vmem:[%s15065_s6 + $0x9b8] sm:$0xff]  ;;  %v9081_v62 = vld [vmem:[%s15065_s6 + $0x9c0] sm:$0xff] }
  0x9c   :  { %15377 = vst [vmem:[#allocation314_spill] sm:$0xff] %v9076_v61  ;;  %15378 = vst [vmem:[#allocation315_spill] sm:$0xff] %v9081_v62  ;;  %v9086_v63 = vld [vmem:[%s15065_s6 + $0x9c8] sm:$0xff]  ;;  %v9091_v58 = vld [vmem:[%s15065_s6 + $0x9d0] sm:$0xff] }
  0x9d   :  { %15379 = vst [vmem:[#allocation316_spill] sm:$0xff] %v9086_v63  ;;  %15380 = vst [vmem:[#allocation317_spill] sm:$0xff] %v9091_v58  ;;  %v9096_v60 = vld [vmem:[%s15065_s6 + $0x9d8] sm:$0xff]  ;;  %v9101_v61 = vld [vmem:[%s15065_s6 + $0x9e0] sm:$0xff] }
  0x9e   :  { %15381 = vst [vmem:[#allocation318_spill] sm:$0xff] %v9096_v60  ;;  %15382 = vst [vmem:[#allocation319_spill] sm:$0xff] %v9101_v61  ;;  %v9106_v62 = vld [vmem:[%s15065_s6 + $0x9e8] sm:$0xff]  ;;  %v9111_v63 = vld [vmem:[%s15065_s6 + $0x9f0] sm:$0xff] }
  0x9f   :  { %15383 = vst [vmem:[#allocation320_spill] sm:$0xff] %v9106_v62  ;;  %15384 = vst [vmem:[#allocation321_spill] sm:$0xff] %v9111_v63  ;;  %v9116_v58 = vld [vmem:[%s15065_s6 + $0x9f8] sm:$0xff]  ;;  %v9121_v60 = vld [vmem:[%s15065_s6 + $0xa00] sm:$0xff] }
  0xa0   :  { %15385 = vst [vmem:[#allocation322_spill] sm:$0xff] %v9116_v58  ;;  %v9126_v61 = vld [vmem:[%s15065_s6 + $0xa08] sm:$0xff]  ;;  %v9131_v62 = vld [vmem:[%s15065_s6 + $0xa10] sm:$0xff]  ;;  %v9136_v63 = vld [vmem:[%s15065_s6 + $0xa18] sm:$0xff] }
  0xa1   :  { %v9141_v58 = vld [vmem:[%s15065_s6 + $0xa20] sm:$0xff]  ;;  %v9146_v56 = vld [vmem:[%s15065_s6 + $0xa28] sm:$0xff]  ;;  %v9151_v59 = vld [vmem:[%s15065_s6 + $0xa30] sm:$0xff] }
  0xa2   :  { %v9156_v57 = vld [vmem:[%s15065_s6 + $0xa38] sm:$0xff]  ;;  %v9161_v54 = vld [vmem:[%s15065_s6 + $0xa40] sm:$0xff]  ;;  %v9166_v52 = vld [vmem:[%s15065_s6 + $0xa48] sm:$0xff] }
  0xa3   :  { %v9171_v55 = vld [vmem:[%s15065_s6 + $0xa50] sm:$0xff]  ;;  %v9176_v53 = vld [vmem:[%s15065_s6 + $0xa58] sm:$0xff]  ;;  %v9181_v50 = vld [vmem:[%s15065_s6 + $0xa60] sm:$0xff] }
  0xa4   :  { %v9186_v48 = vld [vmem:[%s15065_s6 + $0xa68] sm:$0xff]  ;;  %v9191_v51 = vld [vmem:[%s15065_s6 + $0xa70] sm:$0xff]  ;;  %v9196_v49 = vld [vmem:[%s15065_s6 + $0xa78] sm:$0xff] }
  0xa5   :  { %v9201_v46 = vld [vmem:[%s15065_s6 + $0xa80] sm:$0xff]  ;;  %v9206_v44 = vld [vmem:[%s15065_s6 + $0xa88] sm:$0xff]  ;;  %v9211_v47 = vld [vmem:[%s15065_s6 + $0xa90] sm:$0xff] }
  0xa6   :  { %v9216_v45 = vld [vmem:[%s15065_s6 + $0xa98] sm:$0xff]  ;;  %v9221_v42 = vld [vmem:[%s15065_s6 + $0xaa0] sm:$0xff]  ;;  %v9226_v40 = vld [vmem:[%s15065_s6 + $0xaa8] sm:$0xff] }
  0xa7   :  { %15386 = vst [vmem:[#allocation323_spill] sm:$0xff] %v9221_v42  ;;  %v9231_v43 = vld [vmem:[%s15065_s6 + $0xab0] sm:$0xff]  ;;  %v9236_v41 = vld [vmem:[%s15065_s6 + $0xab8] sm:$0xff]  ;;  %v9241_v38 = vld [vmem:[%s15065_s6 + $0xac0] sm:$0xff] }
  0xa8   :  { %15387 = vst [vmem:[#allocation324_spill] sm:$0xff] %v9231_v43  ;;  %15388 = vst [vmem:[#allocation325_spill] sm:$0xff] %v9241_v38  ;;  %v9246_v36 = vld [vmem:[%s15065_s6 + $0xac8] sm:$0xff]  ;;  %v9251_v39 = vld [vmem:[%s15065_s6 + $0xad0] sm:$0xff] }
  0xa9   :  { %15389 = vst [vmem:[#allocation326_spill] sm:$0xff] %v9246_v36  ;;  %15390 = vst [vmem:[#allocation327_spill] sm:$0xff] %v9251_v39  ;;  %v9256_v37 = vld [vmem:[%s15065_s6 + $0xad8] sm:$0xff]  ;;  %v9261_v34 = vld [vmem:[%s15065_s6 + $0xae0] sm:$0xff] }
  0xaa   :  { %15391 = vst [vmem:[#allocation328_spill] sm:$0xff] %v9256_v37  ;;  %15392 = vst [vmem:[#allocation329_spill] sm:$0xff] %v9261_v34  ;;  %v9266_v32 = vld [vmem:[%s15065_s6 + $0xae8] sm:$0xff]  ;;  %v9271_v35 = vld [vmem:[%s15065_s6 + $0xaf0] sm:$0xff] }
  0xab   :  { %15393 = vst [vmem:[#allocation330_spill] sm:$0xff] %v9266_v32  ;;  %15394 = vst [vmem:[#allocation331_spill] sm:$0xff] %v9271_v35  ;;  %v9276_v33 = vld [vmem:[%s15065_s6 + $0xaf8] sm:$0xff]  ;;  %v9281_v30 = vld [vmem:[%s15065_s6 + $0xb00] sm:$0xff] }
  0xac   :  { %15395 = vst [vmem:[#allocation332_spill] sm:$0xff] %v9276_v33  ;;  %15396 = vst [vmem:[#allocation333_spill] sm:$0xff] %v9281_v30  ;;  %v9286_v28 = vld [vmem:[%s15065_s6 + $0xb08] sm:$0xff]  ;;  %v9291_v31 = vld [vmem:[%s15065_s6 + $0xb10] sm:$0xff] }
  0xad   :  { %15397 = vst [vmem:[#allocation334_spill] sm:$0xff] %v9286_v28  ;;  %15398 = vst [vmem:[#allocation335_spill] sm:$0xff] %v9291_v31  ;;  %v9296_v29 = vld [vmem:[%s15065_s6 + $0xb18] sm:$0xff]  ;;  %v9301_v26 = vld [vmem:[%s15065_s6 + $0xb20] sm:$0xff] }
  0xae   :  { %15399 = vst [vmem:[#allocation336_spill] sm:$0xff] %v9296_v29  ;;  %15400 = vst [vmem:[#allocation337_spill] sm:$0xff] %v9301_v26  ;;  %v9306_v24 = vld [vmem:[%s15065_s6 + $0xb28] sm:$0xff]  ;;  %v9311_v27 = vld [vmem:[%s15065_s6 + $0xb30] sm:$0xff] }
  0xaf   :  { %15401 = vst [vmem:[#allocation338_spill] sm:$0xff] %v9306_v24  ;;  %15402 = vst [vmem:[#allocation339_spill] sm:$0xff] %v9311_v27  ;;  %v9316_v25 = vld [vmem:[%s15065_s6 + $0xb38] sm:$0xff]  ;;  %v9321_v22 = vld [vmem:[%s15065_s6 + $0xb40] sm:$0xff] }
  0xb0   :  { %15403 = vst [vmem:[#allocation340_spill] sm:$0xff] %v9316_v25  ;;  %15404 = vst [vmem:[#allocation341_spill] sm:$0xff] %v9321_v22  ;;  %v9326_v20 = vld [vmem:[%s15065_s6 + $0xb48] sm:$0xff]  ;;  %v9331_v26 = vld [vmem:[%s15065_s6 + $0xb50] sm:$0xff] }
  0xb1   :  { %15405 = vst [vmem:[#allocation342_spill] sm:$0xff] %v9326_v20  ;;  %15406 = vst [vmem:[#allocation343_spill] sm:$0xff] %v9331_v26  ;;  %v9336_v27 = vld [vmem:[%s15065_s6 + $0xb58] sm:$0xff]  ;;  %v9341_v23 = vld [vmem:[%s15065_s6 + $0xb60] sm:$0xff] }
  0xb2   :  { %15407 = vst [vmem:[#allocation344_spill] sm:$0xff] %v9336_v27  ;;  %15408 = vst [vmem:[#allocation345_spill] sm:$0xff] %v9341_v23  ;;  %v9346_v22 = vld [vmem:[%s15065_s6 + $0xb68] sm:$0xff]  ;;  %v9351_v20 = vld [vmem:[%s15065_s6 + $0xb70] sm:$0xff] }
  0xb3   :  { %15409 = vst [vmem:[#allocation346_spill] sm:$0xff] %v9346_v22  ;;  %15410 = vst [vmem:[#allocation347_spill] sm:$0xff] %v9351_v20  ;;  %v9356_v26 = vld [vmem:[%s15065_s6 + $0xb78] sm:$0xff]  ;;  %v9361_v27 = vld [vmem:[%s15065_s6 + $0xb80] sm:$0xff] }
  0xb4   :  { %15411 = vst [vmem:[#allocation348_spill] sm:$0xff] %v9356_v26  ;;  %15412 = vst [vmem:[#allocation349_spill] sm:$0xff] %v9361_v27  ;;  %v9366_v23 = vld [vmem:[%s15065_s6 + $0xb88] sm:$0xff]  ;;  %v9371_v22 = vld [vmem:[%s15065_s6 + $0xb90] sm:$0xff] }
  0xb5   :  { %15413 = vst [vmem:[#allocation350_spill] sm:$0xff] %v9366_v23  ;;  %15414 = vst [vmem:[#allocation351_spill] sm:$0xff] %v9371_v22  ;;  %v9376_v20 = vld [vmem:[%s15065_s6 + $0xb98] sm:$0xff]  ;;  %v9381_v26 = vld [vmem:[%s15065_s6 + $0xba0] sm:$0xff] }
  0xb6   :  { %15415 = vst [vmem:[#allocation352_spill] sm:$0xff] %v9376_v20  ;;  %15416 = vst [vmem:[#allocation353_spill] sm:$0xff] %v9381_v26  ;;  %v9386_v27 = vld [vmem:[%s15065_s6 + $0xba8] sm:$0xff]  ;;  %v9391_v23 = vld [vmem:[%s15065_s6 + $0xbb0] sm:$0xff] }
  0xb7   :  { %15417 = vst [vmem:[#allocation354_spill] sm:$0xff] %v9386_v27  ;;  %15418 = vst [vmem:[#allocation355_spill] sm:$0xff] %v9391_v23  ;;  %v9396_v22 = vld [vmem:[%s15065_s6 + $0xbb8] sm:$0xff]  ;;  %v9401_v20 = vld [vmem:[%s15065_s6 + $0xbc0] sm:$0xff] }
  0xb8   :  { %15419 = vst [vmem:[#allocation356_spill] sm:$0xff] %v9396_v22  ;;  %15420 = vst [vmem:[#allocation357_spill] sm:$0xff] %v9401_v20  ;;  %v9406_v26 = vld [vmem:[%s15065_s6 + $0xbc8] sm:$0xff]  ;;  %v9411_v27 = vld [vmem:[%s15065_s6 + $0xbd0] sm:$0xff] }
  0xb9   :  { %15421 = vst [vmem:[#allocation358_spill] sm:$0xff] %v9406_v26  ;;  %15422 = vst [vmem:[#allocation359_spill] sm:$0xff] %v9411_v27  ;;  %v9416_v23 = vld [vmem:[%s15065_s6 + $0xbd8] sm:$0xff]  ;;  %v9421_v22 = vld [vmem:[%s15065_s6 + $0xbe0] sm:$0xff] }
  0xba   :  { %15423 = vst [vmem:[#allocation360_spill] sm:$0xff] %v9416_v23  ;;  %15424 = vst [vmem:[#allocation361_spill] sm:$0xff] %v9421_v22  ;;  %v9426_v20 = vld [vmem:[%s15065_s6 + $0xbe8] sm:$0xff]  ;;  %v9431_v26 = vld [vmem:[%s15065_s6 + $0xbf0] sm:$0xff] }
  0xbb   :  { %15425 = vst [vmem:[#allocation362_spill] sm:$0xff] %v9426_v20  ;;  %15426 = vst [vmem:[#allocation363_spill] sm:$0xff] %v9431_v26  ;;  %v9436_v27 = vld [vmem:[%s15065_s6 + $0xbf8] sm:$0xff]  ;;  %v9441_v23 = vld [vmem:[%s15065_s6 + $0xc00] sm:$0xff] }
  0xbc   :  { %15427 = vst [vmem:[#allocation364_spill] sm:$0xff] %v9436_v27  ;;  %15428 = vst [vmem:[#allocation365_spill] sm:$0xff] %v9441_v23  ;;  %v9446_v22 = vld [vmem:[%s15065_s6 + $0xc08] sm:$0xff]  ;;  %v9451_v20 = vld [vmem:[%s15065_s6 + $0xc10] sm:$0xff] }
  0xbd   :  { %15429 = vst [vmem:[#allocation366_spill] sm:$0xff] %v9446_v22  ;;  %15430 = vst [vmem:[#allocation367_spill] sm:$0xff] %v9451_v20  ;;  %v9456_v26 = vld [vmem:[%s15065_s6 + $0xc18] sm:$0xff]  ;;  %v9461_v27 = vld [vmem:[%s15065_s6 + $0xc20] sm:$0xff] }
  0xbe   :  { %15431 = vst [vmem:[#allocation368_spill] sm:$0xff] %v9456_v26  ;;  %15432 = vst [vmem:[#allocation369_spill] sm:$0xff] %v9461_v27  ;;  %v9466_v23 = vld [vmem:[%s15065_s6 + $0xc28] sm:$0xff]  ;;  %v9471_v22 = vld [vmem:[%s15065_s6 + $0xc30] sm:$0xff] }
  0xbf   :  { %15433 = vst [vmem:[#allocation370_spill] sm:$0xff] %v9466_v23  ;;  %15434 = vst [vmem:[#allocation371_spill] sm:$0xff] %v9471_v22  ;;  %v9476_v20 = vld [vmem:[%s15065_s6 + $0xc38] sm:$0xff]  ;;  %v9481_v26 = vld [vmem:[%s15065_s6 + $0xc40] sm:$0xff] }
  0xc0   :  { %15435 = vst [vmem:[#allocation372_spill] sm:$0xff] %v9476_v20  ;;  %15436 = vst [vmem:[#allocation373_spill] sm:$0xff] %v9481_v26  ;;  %v9486_v27 = vld [vmem:[%s15065_s6 + $0xc48] sm:$0xff]  ;;  %v9491_v23 = vld [vmem:[%s15065_s6 + $0xc50] sm:$0xff] }
  0xc1   :  { %15437 = vst [vmem:[#allocation374_spill] sm:$0xff] %v9486_v27  ;;  %15438 = vst [vmem:[#allocation375_spill] sm:$0xff] %v9491_v23  ;;  %v9496_v22 = vld [vmem:[%s15065_s6 + $0xc58] sm:$0xff]  ;;  %v9501_v20 = vld [vmem:[%s15065_s6 + $0xc60] sm:$0xff] }
  0xc2   :  { %15439 = vst [vmem:[#allocation376_spill] sm:$0xff] %v9496_v22  ;;  %15440 = vst [vmem:[#allocation377_spill] sm:$0xff] %v9501_v20  ;;  %v9506_v26 = vld [vmem:[%s15065_s6 + $0xc68] sm:$0xff]  ;;  %v9511_v27 = vld [vmem:[%s15065_s6 + $0xc70] sm:$0xff] }
  0xc3   :  { %15441 = vst [vmem:[#allocation378_spill] sm:$0xff] %v9506_v26  ;;  %15442 = vst [vmem:[#allocation379_spill] sm:$0xff] %v9511_v27  ;;  %v9516_v23 = vld [vmem:[%s15065_s6 + $0xc78] sm:$0xff]  ;;  %v9521_v22 = vld [vmem:[%s15065_s6 + $0xc80] sm:$0xff] }
  0xc4   :  { %15443 = vst [vmem:[#allocation380_spill] sm:$0xff] %v9516_v23  ;;  %15444 = vst [vmem:[#allocation381_spill] sm:$0xff] %v9521_v22  ;;  %v9526_v20 = vld [vmem:[%s15065_s6 + $0xc88] sm:$0xff]  ;;  %v9531_v26 = vld [vmem:[%s15065_s6 + $0xc90] sm:$0xff] }
  0xc5   :  { %15445 = vst [vmem:[#allocation382_spill] sm:$0xff] %v9526_v20  ;;  %15446 = vst [vmem:[#allocation383_spill] sm:$0xff] %v9531_v26  ;;  %v9536_v27 = vld [vmem:[%s15065_s6 + $0xc98] sm:$0xff]  ;;  %v9541_v23 = vld [vmem:[%s15065_s6 + $0xca0] sm:$0xff] }
  0xc6   :  { %15447 = vst [vmem:[#allocation384_spill] sm:$0xff] %v9536_v27  ;;  %15448 = vst [vmem:[#allocation385_spill] sm:$0xff] %v9541_v23  ;;  %v9546_v22 = vld [vmem:[%s15065_s6 + $0xca8] sm:$0xff]  ;;  %v9551_v20 = vld [vmem:[%s15065_s6 + $0xcb0] sm:$0xff] }
  0xc7   :  { %15449 = vst [vmem:[#allocation386_spill] sm:$0xff] %v9546_v22  ;;  %15450 = vst [vmem:[#allocation387_spill] sm:$0xff] %v9551_v20  ;;  %v9556_v26 = vld [vmem:[%s15065_s6 + $0xcb8] sm:$0xff]  ;;  %v9561_v27 = vld [vmem:[%s15065_s6 + $0xcc0] sm:$0xff] }
  0xc8   :  { %15451 = vst [vmem:[#allocation388_spill] sm:$0xff] %v9556_v26  ;;  %15452 = vst [vmem:[#allocation389_spill] sm:$0xff] %v9561_v27  ;;  %v9566_v23 = vld [vmem:[%s15065_s6 + $0xcc8] sm:$0xff]  ;;  %v9571_v22 = vld [vmem:[%s15065_s6 + $0xcd0] sm:$0xff] }
  0xc9   :  { %15453 = vst [vmem:[#allocation390_spill] sm:$0xff] %v9566_v23  ;;  %15454 = vst [vmem:[#allocation391_spill] sm:$0xff] %v9571_v22  ;;  %v9576_v20 = vld [vmem:[%s15065_s6 + $0xcd8] sm:$0xff]  ;;  %v9581_v26 = vld [vmem:[%s15065_s6 + $0xce0] sm:$0xff] }
  0xca   :  { %15455 = vst [vmem:[#allocation392_spill] sm:$0xff] %v9576_v20  ;;  %15456 = vst [vmem:[#allocation393_spill] sm:$0xff] %v9581_v26  ;;  %v9586_v27 = vld [vmem:[%s15065_s6 + $0xce8] sm:$0xff]  ;;  %v9591_v23 = vld [vmem:[%s15065_s6 + $0xcf0] sm:$0xff] }
  0xcb   :  { %15457 = vst [vmem:[#allocation394_spill] sm:$0xff] %v9586_v27  ;;  %15458 = vst [vmem:[#allocation395_spill] sm:$0xff] %v9591_v23  ;;  %v9596_v22 = vld [vmem:[%s15065_s6 + $0xcf8] sm:$0xff]  ;;  %v9601_v20 = vld [vmem:[%s15065_s6 + $0xd00] sm:$0xff] }
  0xcc   :  { %15459 = vst [vmem:[#allocation396_spill] sm:$0xff] %v9596_v22  ;;  %15460 = vst [vmem:[#allocation397_spill] sm:$0xff] %v9601_v20  ;;  %v9606_v26 = vld [vmem:[%s15065_s6 + $0xd08] sm:$0xff]  ;;  %v9611_v27 = vld [vmem:[%s15065_s6 + $0xd10] sm:$0xff] }
  0xcd   :  { %15461 = vst [vmem:[#allocation398_spill] sm:$0xff] %v9606_v26  ;;  %15462 = vst [vmem:[#allocation399_spill] sm:$0xff] %v9611_v27  ;;  %v9616_v23 = vld [vmem:[%s15065_s6 + $0xd18] sm:$0xff]  ;;  %v9621_v22 = vld [vmem:[%s15065_s6 + $0xd20] sm:$0xff] }
  0xce   :  { %15463 = vst [vmem:[#allocation400_spill] sm:$0xff] %v9616_v23  ;;  %15464 = vst [vmem:[#allocation401_spill] sm:$0xff] %v9621_v22  ;;  %v9626_v20 = vld [vmem:[%s15065_s6 + $0xd28] sm:$0xff]  ;;  %v9631_v26 = vld [vmem:[%s15065_s6 + $0xd30] sm:$0xff] }
  0xcf   :  { %15465 = vst [vmem:[#allocation402_spill] sm:$0xff] %v9626_v20  ;;  %15466 = vst [vmem:[#allocation403_spill] sm:$0xff] %v9631_v26  ;;  %v9636_v27 = vld [vmem:[%s15065_s6 + $0xd38] sm:$0xff]  ;;  %v9641_v23 = vld [vmem:[%s15065_s6 + $0xd40] sm:$0xff] }
  0xd0   :  { %15467 = vst [vmem:[#allocation404_spill] sm:$0xff] %v9636_v27  ;;  %15468 = vst [vmem:[#allocation405_spill] sm:$0xff] %v9641_v23  ;;  %v9646_v22 = vld [vmem:[%s15065_s6 + $0xd48] sm:$0xff]  ;;  %v9651_v20 = vld [vmem:[%s15065_s6 + $0xd50] sm:$0xff] }
  0xd1   :  { %15469 = vst [vmem:[#allocation406_spill] sm:$0xff] %v9646_v22  ;;  %15470 = vst [vmem:[#allocation407_spill] sm:$0xff] %v9651_v20  ;;  %v9656_v26 = vld [vmem:[%s15065_s6 + $0xd58] sm:$0xff]  ;;  %v9661_v27 = vld [vmem:[%s15065_s6 + $0xd60] sm:$0xff] }
  0xd2   :  { %15471 = vst [vmem:[#allocation408_spill] sm:$0xff] %v9656_v26  ;;  %15472 = vst [vmem:[#allocation409_spill] sm:$0xff] %v9661_v27  ;;  %v9666_v23 = vld [vmem:[%s15065_s6 + $0xd68] sm:$0xff]  ;;  %v9671_v22 = vld [vmem:[%s15065_s6 + $0xd70] sm:$0xff] }
  0xd3   :  { %15473 = vst [vmem:[#allocation410_spill] sm:$0xff] %v9666_v23  ;;  %15474 = vst [vmem:[#allocation411_spill] sm:$0xff] %v9671_v22  ;;  %v9676_v20 = vld [vmem:[%s15065_s6 + $0xd78] sm:$0xff]  ;;  %v9681_v26 = vld [vmem:[%s15065_s6 + $0xd80] sm:$0xff] }
  0xd4   :  { %15475 = vst [vmem:[#allocation412_spill] sm:$0xff] %v9676_v20  ;;  %15476 = vst [vmem:[#allocation413_spill] sm:$0xff] %v9681_v26  ;;  %v9686_v27 = vld [vmem:[%s15065_s6 + $0xd88] sm:$0xff]  ;;  %v9691_v23 = vld [vmem:[%s15065_s6 + $0xd90] sm:$0xff] }
  0xd5   :  { %15477 = vst [vmem:[#allocation414_spill] sm:$0xff] %v9686_v27  ;;  %15478 = vst [vmem:[#allocation415_spill] sm:$0xff] %v9691_v23  ;;  %v9696_v22 = vld [vmem:[%s15065_s6 + $0xd98] sm:$0xff]  ;;  %v9701_v20 = vld [vmem:[%s15065_s6 + $0xda0] sm:$0xff] }
  0xd6   :  { %15479 = vst [vmem:[#allocation416_spill] sm:$0xff] %v9696_v22  ;;  %15480 = vst [vmem:[#allocation417_spill] sm:$0xff] %v9701_v20  ;;  %v9706_v26 = vld [vmem:[%s15065_s6 + $0xda8] sm:$0xff]  ;;  %v9711_v27 = vld [vmem:[%s15065_s6 + $0xdb0] sm:$0xff] }
  0xd7   :  { %15481 = vst [vmem:[#allocation418_spill] sm:$0xff] %v9706_v26  ;;  %15482 = vst [vmem:[#allocation419_spill] sm:$0xff] %v9711_v27  ;;  %v9716_v23 = vld [vmem:[%s15065_s6 + $0xdb8] sm:$0xff]  ;;  %v9721_v22 = vld [vmem:[%s15065_s6 + $0xdc0] sm:$0xff] }
  0xd8   :  { %15483 = vst [vmem:[#allocation420_spill] sm:$0xff] %v9716_v23  ;;  %15484 = vst [vmem:[#allocation421_spill] sm:$0xff] %v9721_v22  ;;  %v9726_v20 = vld [vmem:[%s15065_s6 + $0xdc8] sm:$0xff]  ;;  %v9731_v26 = vld [vmem:[%s15065_s6 + $0xdd0] sm:$0xff] }
  0xd9   :  { %15485 = vst [vmem:[#allocation422_spill] sm:$0xff] %v9726_v20  ;;  %15486 = vst [vmem:[#allocation423_spill] sm:$0xff] %v9731_v26  ;;  %v9736_v27 = vld [vmem:[%s15065_s6 + $0xdd8] sm:$0xff]  ;;  %v9741_v23 = vld [vmem:[%s15065_s6 + $0xde0] sm:$0xff] }
  0xda   :  { %15487 = vst [vmem:[#allocation424_spill] sm:$0xff] %v9736_v27  ;;  %15488 = vst [vmem:[#allocation425_spill] sm:$0xff] %v9741_v23  ;;  %v9746_v22 = vld [vmem:[%s15065_s6 + $0xde8] sm:$0xff]  ;;  %v9751_v20 = vld [vmem:[%s15065_s6 + $0xdf0] sm:$0xff] }
  0xdb   :  { %15489 = vst [vmem:[#allocation426_spill] sm:$0xff] %v9746_v22  ;;  %15490 = vst [vmem:[#allocation427_spill] sm:$0xff] %v9751_v20  ;;  %v9756_v26 = vld [vmem:[%s15065_s6 + $0xdf8] sm:$0xff]  ;;  %v9761_v27 = vld [vmem:[%s15065_s6 + $0xe00] sm:$0xff] }
  0xdc   :  { %15491 = vst [vmem:[#allocation428_spill] sm:$0xff] %v9756_v26  ;;  %15492 = vst [vmem:[#allocation429_spill] sm:$0xff] %v9761_v27  ;;  %v9766_v23 = vld [vmem:[%s15065_s6 + $0xe08] sm:$0xff]  ;;  %v9771_v22 = vld [vmem:[%s15065_s6 + $0xe10] sm:$0xff] }
  0xdd   :  { %15493 = vst [vmem:[#allocation430_spill] sm:$0xff] %v9766_v23  ;;  %15494 = vst [vmem:[#allocation431_spill] sm:$0xff] %v9771_v22  ;;  %v9776_v20 = vld [vmem:[%s15065_s6 + $0xe18] sm:$0xff]  ;;  %v9781_v26 = vld [vmem:[%s15065_s6 + $0xe20] sm:$0xff] }
  0xde   :  { %15495 = vst [vmem:[#allocation432_spill] sm:$0xff] %v9776_v20  ;;  %15496 = vst [vmem:[#allocation433_spill] sm:$0xff] %v9781_v26  ;;  %v9786_v27 = vld [vmem:[%s15065_s6 + $0xe28] sm:$0xff]  ;;  %v9791_v23 = vld [vmem:[%s15065_s6 + $0xe30] sm:$0xff] }
  0xdf   :  { %15497 = vst [vmem:[#allocation434_spill] sm:$0xff] %v9786_v27  ;;  %15498 = vst [vmem:[#allocation435_spill] sm:$0xff] %v9791_v23  ;;  %v9796_v22 = vld [vmem:[%s15065_s6 + $0xe38] sm:$0xff]  ;;  %v9801_v20 = vld [vmem:[%s15065_s6 + $0xe40] sm:$0xff] }
  0xe0   :  { %15499 = vst [vmem:[#allocation436_spill] sm:$0xff] %v9796_v22  ;;  %15500 = vst [vmem:[#allocation437_spill] sm:$0xff] %v9801_v20  ;;  %v9806_v26 = vld [vmem:[%s15065_s6 + $0xe48] sm:$0xff]  ;;  %v9811_v27 = vld [vmem:[%s15065_s6 + $0xe50] sm:$0xff] }
  0xe1   :  { %15501 = vst [vmem:[#allocation438_spill] sm:$0xff] %v9806_v26  ;;  %15502 = vst [vmem:[#allocation439_spill] sm:$0xff] %v9811_v27  ;;  %v9816_v23 = vld [vmem:[%s15065_s6 + $0xe58] sm:$0xff]  ;;  %v9821_v22 = vld [vmem:[%s15065_s6 + $0xe60] sm:$0xff] }
  0xe2   :  { %15503 = vst [vmem:[#allocation440_spill] sm:$0xff] %v9816_v23  ;;  %15504 = vst [vmem:[#allocation441_spill] sm:$0xff] %v9821_v22  ;;  %v9826_v20 = vld [vmem:[%s15065_s6 + $0xe68] sm:$0xff]  ;;  %v9831_v26 = vld [vmem:[%s15065_s6 + $0xe70] sm:$0xff] }
  0xe3   :  { %15505 = vst [vmem:[#allocation442_spill] sm:$0xff] %v9826_v20  ;;  %15506 = vst [vmem:[#allocation443_spill] sm:$0xff] %v9831_v26  ;;  %v9836_v27 = vld [vmem:[%s15065_s6 + $0xe78] sm:$0xff]  ;;  %v9841_v23 = vld [vmem:[%s15065_s6 + $0xe80] sm:$0xff] }
  0xe4   :  { %15507 = vst [vmem:[#allocation444_spill] sm:$0xff] %v9836_v27  ;;  %15508 = vst [vmem:[#allocation445_spill] sm:$0xff] %v9841_v23  ;;  %v9846_v22 = vld [vmem:[%s15065_s6 + $0xe88] sm:$0xff]  ;;  %v9851_v20 = vld [vmem:[%s15065_s6 + $0xe90] sm:$0xff] }
  0xe5   :  { %15509 = vst [vmem:[#allocation446_spill] sm:$0xff] %v9846_v22  ;;  %15510 = vst [vmem:[#allocation447_spill] sm:$0xff] %v9851_v20  ;;  %v9856_v26 = vld [vmem:[%s15065_s6 + $0xe98] sm:$0xff]  ;;  %v9861_v27 = vld [vmem:[%s15065_s6 + $0xea0] sm:$0xff] }
  0xe6   :  { %15511 = vst [vmem:[#allocation448_spill] sm:$0xff] %v9856_v26  ;;  %15512 = vst [vmem:[#allocation449_spill] sm:$0xff] %v9861_v27  ;;  %v9866_v23 = vld [vmem:[%s15065_s6 + $0xea8] sm:$0xff]  ;;  %v9871_v22 = vld [vmem:[%s15065_s6 + $0xeb0] sm:$0xff] }
  0xe7   :  { %15513 = vst [vmem:[#allocation450_spill] sm:$0xff] %v9866_v23  ;;  %15514 = vst [vmem:[#allocation451_spill] sm:$0xff] %v9871_v22  ;;  %v9876_v20 = vld [vmem:[%s15065_s6 + $0xeb8] sm:$0xff]  ;;  %v9881_v26 = vld [vmem:[%s15065_s6 + $0xec0] sm:$0xff] }
  0xe8   :  { %15515 = vst [vmem:[#allocation452_spill] sm:$0xff] %v9876_v20  ;;  %15516 = vst [vmem:[#allocation453_spill] sm:$0xff] %v9881_v26  ;;  %v9886_v27 = vld [vmem:[%s15065_s6 + $0xec8] sm:$0xff]  ;;  %v9891_v23 = vld [vmem:[%s15065_s6 + $0xed0] sm:$0xff] }
  0xe9   :  { %15517 = vst [vmem:[#allocation454_spill] sm:$0xff] %v9886_v27  ;;  %15518 = vst [vmem:[#allocation455_spill] sm:$0xff] %v9891_v23  ;;  %v9896_v22 = vld [vmem:[%s15065_s6 + $0xed8] sm:$0xff]  ;;  %v9901_v20 = vld [vmem:[%s15065_s6 + $0xee0] sm:$0xff] }
  0xea   :  { %15519 = vst [vmem:[#allocation456_spill] sm:$0xff] %v9896_v22  ;;  %15520 = vst [vmem:[#allocation457_spill] sm:$0xff] %v9901_v20  ;;  %v9906_v26 = vld [vmem:[%s15065_s6 + $0xee8] sm:$0xff]  ;;  %v9911_v27 = vld [vmem:[%s15065_s6 + $0xef0] sm:$0xff] }
  0xeb   :  { %15521 = vst [vmem:[#allocation458_spill] sm:$0xff] %v9906_v26  ;;  %15522 = vst [vmem:[#allocation459_spill] sm:$0xff] %v9911_v27  ;;  %v9916_v23 = vld [vmem:[%s15065_s6 + $0xef8] sm:$0xff]  ;;  %v9921_v22 = vld [vmem:[%s15065_s6 + $0xf00] sm:$0xff] }
  0xec   :  { %15523 = vst [vmem:[#allocation460_spill] sm:$0xff] %v9916_v23  ;;  %15524 = vst [vmem:[#allocation461_spill] sm:$0xff] %v9921_v22  ;;  %v9926_v20 = vld [vmem:[%s15065_s6 + $0xf08] sm:$0xff]  ;;  %v9931_v26 = vld [vmem:[%s15065_s6 + $0xf10] sm:$0xff] }
  0xed   :  { %15525 = vst [vmem:[#allocation462_spill] sm:$0xff] %v9926_v20  ;;  %15526 = vst [vmem:[#allocation463_spill] sm:$0xff] %v9931_v26  ;;  %v9936_v27 = vld [vmem:[%s15065_s6 + $0xf18] sm:$0xff]  ;;  %v9941_v23 = vld [vmem:[%s15065_s6 + $0xf20] sm:$0xff] }
  0xee   :  { %15527 = vst [vmem:[#allocation464_spill] sm:$0xff] %v9936_v27  ;;  %15528 = vst [vmem:[#allocation465_spill] sm:$0xff] %v9941_v23  ;;  %v9946_v22 = vld [vmem:[%s15065_s6 + $0xf28] sm:$0xff]  ;;  %v9951_v20 = vld [vmem:[%s15065_s6 + $0xf30] sm:$0xff] }
  0xef   :  { %15529 = vst [vmem:[#allocation466_spill] sm:$0xff] %v9946_v22  ;;  %15530 = vst [vmem:[#allocation467_spill] sm:$0xff] %v9951_v20  ;;  %v9956_v26 = vld [vmem:[%s15065_s6 + $0xf38] sm:$0xff]  ;;  %v9961_v27 = vld [vmem:[%s15065_s6 + $0xf40] sm:$0xff] }
  0xf0   :  { %15531 = vst [vmem:[#allocation468_spill] sm:$0xff] %v9956_v26  ;;  %15532 = vst [vmem:[#allocation469_spill] sm:$0xff] %v9961_v27  ;;  %v9966_v23 = vld [vmem:[%s15065_s6 + $0xf48] sm:$0xff]  ;;  %v9971_v22 = vld [vmem:[%s15065_s6 + $0xf50] sm:$0xff] }
  0xf1   :  { %15533 = vst [vmem:[#allocation470_spill] sm:$0xff] %v9966_v23  ;;  %15534 = vst [vmem:[#allocation471_spill] sm:$0xff] %v9971_v22  ;;  %v9976_v20 = vld [vmem:[%s15065_s6 + $0xf58] sm:$0xff]  ;;  %v9981_v26 = vld [vmem:[%s15065_s6 + $0xf60] sm:$0xff] }
  0xf2   :  { %15535 = vst [vmem:[#allocation472_spill] sm:$0xff] %v9976_v20  ;;  %15536 = vst [vmem:[#allocation473_spill] sm:$0xff] %v9981_v26  ;;  %v9986_v27 = vld [vmem:[%s15065_s6 + $0xf68] sm:$0xff]  ;;  %v9991_v23 = vld [vmem:[%s15065_s6 + $0xf70] sm:$0xff] }
  0xf3   :  { %15537 = vst [vmem:[#allocation474_spill] sm:$0xff] %v9986_v27  ;;  %15538 = vst [vmem:[#allocation475_spill] sm:$0xff] %v9991_v23  ;;  %v9996_v22 = vld [vmem:[%s15065_s6 + $0xf78] sm:$0xff]  ;;  %v10001_v20 = vld [vmem:[%s15065_s6 + $0xf80] sm:$0xff] }
  0xf4   :  { %15539 = vst [vmem:[#allocation476_spill] sm:$0xff] %v9996_v22  ;;  %15540 = vst [vmem:[#allocation477_spill] sm:$0xff] %v10001_v20  ;;  %v10006_v26 = vld [vmem:[%s15065_s6 + $0xf88] sm:$0xff]  ;;  %v10011_v27 = vld [vmem:[%s15065_s6 + $0xf90] sm:$0xff] }
  0xf5   :  { %15541 = vst [vmem:[#allocation478_spill] sm:$0xff] %v10006_v26  ;;  %15542 = vst [vmem:[#allocation479_spill] sm:$0xff] %v10011_v27  ;;  %v10016_v23 = vld [vmem:[%s15065_s6 + $0xf98] sm:$0xff]  ;;  %v10021_v22 = vld [vmem:[%s15065_s6 + $0xfa0] sm:$0xff] }
  0xf6   :  { %15543 = vst [vmem:[#allocation480_spill] sm:$0xff] %v10016_v23  ;;  %15544 = vst [vmem:[#allocation481_spill] sm:$0xff] %v10021_v22  ;;  %v10026_v20 = vld [vmem:[%s15065_s6 + $0xfa8] sm:$0xff]  ;;  %v10031_v26 = vld [vmem:[%s15065_s6 + $0xfb0] sm:$0xff] }
  0xf7   :  { %15545 = vst [vmem:[#allocation482_spill] sm:$0xff] %v10026_v20  ;;  %15546 = vst [vmem:[#allocation483_spill] sm:$0xff] %v10031_v26  ;;  %v10036_v27 = vld [vmem:[%s15065_s6 + $0xfb8] sm:$0xff]  ;;  %v10041_v23 = vld [vmem:[%s15065_s6 + $0xfc0] sm:$0xff] }
  0xf8   :  { %15547 = vst [vmem:[#allocation484_spill] sm:$0xff] %v10036_v27  ;;  %15548 = vst [vmem:[#allocation485_spill] sm:$0xff] %v10041_v23  ;;  %v10046_v22 = vld [vmem:[%s15065_s6 + $0xfc8] sm:$0xff]  ;;  %v10051_v20 = vld [vmem:[%s15065_s6 + $0xfd0] sm:$0xff] }
  0xf9   :  { %15549 = vst [vmem:[#allocation486_spill] sm:$0xff] %v10046_v22  ;;  %15550 = vst [vmem:[#allocation487_spill] sm:$0xff] %v10051_v20  ;;  %v10056_v26 = vld [vmem:[%s15065_s6 + $0xfd8] sm:$0xff]  ;;  %v10061_v27 = vld [vmem:[%s15065_s6 + $0xfe0] sm:$0xff] }
  0xfa   :  { %15551 = vst [vmem:[#allocation488_spill] sm:$0xff] %v10056_v26  ;;  %15552 = vst [vmem:[#allocation489_spill] sm:$0xff] %v10061_v27  ;;  %v10066_v23 = vld [vmem:[%s15065_s6 + $0xfe8] sm:$0xff]  ;;  %v10071_v22 = vld [vmem:[%s15065_s6 + $0xff0] sm:$0xff] }
  0xfb   :  { %15553 = vst [vmem:[#allocation490_spill] sm:$0xff] %v10066_v23  ;;  %15554 = vst [vmem:[#allocation491_spill] sm:$0xff] %v10071_v22  ;;  %v10076_v20 = vld [vmem:[%s15065_s6 + $0xff8] sm:$0xff]  ;;  %v10081_v26 = vld [vmem:[%s15065_s6 + $0x1000] sm:$0xff] }
  0xfc   :  { %15555 = vst [vmem:[#allocation492_spill] sm:$0xff] %v10076_v20  ;;  %15556 = vst [vmem:[#allocation493_spill] sm:$0xff] %v10081_v26  ;;  %v10086_v27 = vld [vmem:[%s15065_s6 + $0x1008] sm:$0xff]  ;;  %v10091_v23 = vld [vmem:[%s15065_s6 + $0x1010] sm:$0xff] }
  0xfd   :  { %15557 = vst [vmem:[#allocation494_spill] sm:$0xff] %v10086_v27  ;;  %15558 = vst [vmem:[#allocation495_spill] sm:$0xff] %v10091_v23  ;;  %v10096_v22 = vld [vmem:[%s15065_s6 + $0x1018] sm:$0xff]  ;;  %v10101_v20 = vld [vmem:[%s15065_s6 + $0x1020] sm:$0xff] }
  0xfe   :  { %15559 = vst [vmem:[#allocation496_spill] sm:$0xff] %v10096_v22  ;;  %15560 = vst [vmem:[#allocation497_spill] sm:$0xff] %v10101_v20  ;;  %v10106_v26 = vld [vmem:[%s15065_s6 + $0x1028] sm:$0xff]  ;;  %v10111_v27 = vld [vmem:[%s15065_s6 + $0x1030] sm:$0xff] }
  0xff   :  { %15561 = vst [vmem:[#allocation498_spill] sm:$0xff] %v10106_v26  ;;  %15562 = vst [vmem:[#allocation499_spill] sm:$0xff] %v10111_v27  ;;  %v10116_v23 = vld [vmem:[%s15065_s6 + $0x1038] sm:$0xff]  ;;  %v10121_v22 = vld [vmem:[%s15065_s6 + $0x1040] sm:$0xff] }
 0x100   :  { %15563 = vst [vmem:[#allocation500_spill] sm:$0xff] %v10116_v23  ;;  %15564 = vst [vmem:[#allocation501_spill] sm:$0xff] %v10121_v22  ;;  %v10126_v20 = vld [vmem:[%s15065_s6 + $0x1048] sm:$0xff]  ;;  %v10131_v26 = vld [vmem:[%s15065_s6 + $0x1050] sm:$0xff] }
 0x101   :  { %15565 = vst [vmem:[#allocation502_spill] sm:$0xff] %v10126_v20  ;;  %15566 = vst [vmem:[#allocation503_spill] sm:$0xff] %v10131_v26  ;;  %v10136_v27 = vld [vmem:[%s15065_s6 + $0x1058] sm:$0xff]  ;;  %v10141_v23 = vld [vmem:[%s15065_s6 + $0x1060] sm:$0xff] }
 0x102   :  { %15567 = vst [vmem:[#allocation504_spill] sm:$0xff] %v10136_v27  ;;  %15568 = vst [vmem:[#allocation505_spill] sm:$0xff] %v10141_v23  ;;  %v10146_v22 = vld [vmem:[%s15065_s6 + $0x1068] sm:$0xff]  ;;  %v10151_v20 = vld [vmem:[%s15065_s6 + $0x1070] sm:$0xff] }
 0x103   :  { %15569 = vst [vmem:[#allocation506_spill] sm:$0xff] %v10146_v22  ;;  %15570 = vst [vmem:[#allocation507_spill] sm:$0xff] %v10151_v20  ;;  %v10156_v26 = vld [vmem:[%s15065_s6 + $0x1078] sm:$0xff]  ;;  %v10161_v27 = vld [vmem:[%s15065_s6 + $0x1080] sm:$0xff] }
 0x104   :  { %15571 = vst [vmem:[#allocation508_spill] sm:$0xff] %v10156_v26  ;;  %15572 = vst [vmem:[#allocation509_spill] sm:$0xff] %v10161_v27  ;;  %v10166_v23 = vld [vmem:[%s15065_s6 + $0x1088] sm:$0xff]  ;;  %v10171_v22 = vld [vmem:[%s15065_s6 + $0x1090] sm:$0xff] }
 0x105   :  { %15573 = vst [vmem:[#allocation510_spill] sm:$0xff] %v10166_v23  ;;  %15574 = vst [vmem:[#allocation511_spill] sm:$0xff] %v10171_v22  ;;  %v10176_v20 = vld [vmem:[%s15065_s6 + $0x1098] sm:$0xff]  ;;  %v10181_v26 = vld [vmem:[%s15065_s6 + $0x10a0] sm:$0xff] }
 0x106   :  { %15575 = vst [vmem:[#allocation512_spill] sm:$0xff] %v10176_v20  ;;  %15576 = vst [vmem:[#allocation513_spill] sm:$0xff] %v10181_v26  ;;  %v10186_v27 = vld [vmem:[%s15065_s6 + $0x10a8] sm:$0xff]  ;;  %v10191_v23 = vld [vmem:[%s15065_s6 + $0x10b0] sm:$0xff] }
 0x107   :  { %15577 = vst [vmem:[#allocation514_spill] sm:$0xff] %v10186_v27  ;;  %15578 = vst [vmem:[#allocation515_spill] sm:$0xff] %v10191_v23  ;;  %v10196_v22 = vld [vmem:[%s15065_s6 + $0x10b8] sm:$0xff]  ;;  %v10201_v20 = vld [vmem:[%s15065_s6 + $0x10c0] sm:$0xff] }
 0x108   :  { %15579 = vst [vmem:[#allocation516_spill] sm:$0xff] %v10196_v22  ;;  %15580 = vst [vmem:[#allocation517_spill] sm:$0xff] %v10201_v20  ;;  %v10206_v26 = vld [vmem:[%s15065_s6 + $0x10c8] sm:$0xff]  ;;  %v10211_v27 = vld [vmem:[%s15065_s6 + $0x10d0] sm:$0xff] }
 0x109   :  { %15581 = vst [vmem:[#allocation518_spill] sm:$0xff] %v10206_v26  ;;  %15582 = vst [vmem:[#allocation519_spill] sm:$0xff] %v10211_v27  ;;  %v10216_v23 = vld [vmem:[%s15065_s6 + $0x10d8] sm:$0xff]  ;;  %v10221_v22 = vld [vmem:[%s15065_s6 + $0x10e0] sm:$0xff] }
 0x10a   :  { %15583 = vst [vmem:[#allocation520_spill] sm:$0xff] %v10216_v23  ;;  %15584 = vst [vmem:[#allocation521_spill] sm:$0xff] %v10221_v22  ;;  %v10226_v20 = vld [vmem:[%s15065_s6 + $0x10e8] sm:$0xff]  ;;  %v10231_v26 = vld [vmem:[%s15065_s6 + $0x10f0] sm:$0xff] }
 0x10b   :  { %15585 = vst [vmem:[#allocation522_spill] sm:$0xff] %v10226_v20  ;;  %15586 = vst [vmem:[#allocation523_spill] sm:$0xff] %v10231_v26  ;;  %v10236_v27 = vld [vmem:[%s15065_s6 + $0x10f8] sm:$0xff]  ;;  %v10241_v23 = vld [vmem:[%s15065_s6 + $0x1100] sm:$0xff] }
 0x10c   :  { %15587 = vst [vmem:[#allocation524_spill] sm:$0xff] %v10236_v27  ;;  %15588 = vst [vmem:[#allocation525_spill] sm:$0xff] %v10241_v23  ;;  %v10246_v22 = vld [vmem:[%s15065_s6 + $0x1108] sm:$0xff]  ;;  %v10251_v20 = vld [vmem:[%s15065_s6 + $0x1110] sm:$0xff] }
 0x10d   :  { %15589 = vst [vmem:[#allocation526_spill] sm:$0xff] %v10246_v22  ;;  %15590 = vst [vmem:[#allocation527_spill] sm:$0xff] %v10251_v20  ;;  %v10256_v26 = vld [vmem:[%s15065_s6 + $0x1118] sm:$0xff]  ;;  %v10261_v27 = vld [vmem:[%s15065_s6 + $0x1120] sm:$0xff] }
 0x10e   :  { %15591 = vst [vmem:[#allocation528_spill] sm:$0xff] %v10256_v26  ;;  %15592 = vst [vmem:[#allocation529_spill] sm:$0xff] %v10261_v27  ;;  %v10266_v23 = vld [vmem:[%s15065_s6 + $0x1128] sm:$0xff]  ;;  %v10271_v22 = vld [vmem:[%s15065_s6 + $0x1130] sm:$0xff] }
 0x10f   :  { %15593 = vst [vmem:[#allocation530_spill] sm:$0xff] %v10266_v23  ;;  %15594 = vst [vmem:[#allocation531_spill] sm:$0xff] %v10271_v22  ;;  %v10276_v20 = vld [vmem:[%s15065_s6 + $0x1138] sm:$0xff]  ;;  %v10281_v26 = vld [vmem:[%s15065_s6 + $0x1140] sm:$0xff] }
 0x110   :  { %15595 = vst [vmem:[#allocation532_spill] sm:$0xff] %v10276_v20  ;;  %15596 = vst [vmem:[#allocation533_spill] sm:$0xff] %v10281_v26  ;;  %v10286_v27 = vld [vmem:[%s15065_s6 + $0x1148] sm:$0xff]  ;;  %v10291_v23 = vld [vmem:[%s15065_s6 + $0x1150] sm:$0xff] }
 0x111   :  { %15597 = vst [vmem:[#allocation534_spill] sm:$0xff] %v10286_v27  ;;  %15598 = vst [vmem:[#allocation535_spill] sm:$0xff] %v10291_v23  ;;  %v10296_v22 = vld [vmem:[%s15065_s6 + $0x1158] sm:$0xff]  ;;  %v10301_v20 = vld [vmem:[%s15065_s6 + $0x1160] sm:$0xff] }
 0x112   :  { %15599 = vst [vmem:[#allocation536_spill] sm:$0xff] %v10296_v22  ;;  %15600 = vst [vmem:[#allocation537_spill] sm:$0xff] %v10301_v20  ;;  %v10306_v26 = vld [vmem:[%s15065_s6 + $0x1168] sm:$0xff]  ;;  %v10311_v27 = vld [vmem:[%s15065_s6 + $0x1170] sm:$0xff] }
 0x113   :  { %15601 = vst [vmem:[#allocation538_spill] sm:$0xff] %v10306_v26  ;;  %15602 = vst [vmem:[#allocation539_spill] sm:$0xff] %v10311_v27  ;;  %v10316_v23 = vld [vmem:[%s15065_s6 + $0x1178] sm:$0xff]  ;;  %v10321_v22 = vld [vmem:[%s15065_s6 + $0x1180] sm:$0xff] }
 0x114   :  { %15603 = vst [vmem:[#allocation540_spill] sm:$0xff] %v10316_v23  ;;  %15604 = vst [vmem:[#allocation541_spill] sm:$0xff] %v10321_v22  ;;  %v10326_v20 = vld [vmem:[%s15065_s6 + $0x1188] sm:$0xff]  ;;  %v10331_v26 = vld [vmem:[%s15065_s6 + $0x1190] sm:$0xff] }
 0x115   :  { %15605 = vst [vmem:[#allocation542_spill] sm:$0xff] %v10326_v20  ;;  %15606 = vst [vmem:[#allocation543_spill] sm:$0xff] %v10331_v26  ;;  %v10336_v27 = vld [vmem:[%s15065_s6 + $0x1198] sm:$0xff]  ;;  %v10341_v23 = vld [vmem:[%s15065_s6 + $0x11a0] sm:$0xff] }
 0x116   :  { %15607 = vst [vmem:[#allocation544_spill] sm:$0xff] %v10336_v27  ;;  %15608 = vst [vmem:[#allocation545_spill] sm:$0xff] %v10341_v23  ;;  %v10346_v22 = vld [vmem:[%s15065_s6 + $0x11a8] sm:$0xff]  ;;  %v10351_v20 = vld [vmem:[%s15065_s6 + $0x11b0] sm:$0xff] }
 0x117   :  { %15609 = vst [vmem:[#allocation546_spill] sm:$0xff] %v10346_v22  ;;  %15610 = vst [vmem:[#allocation547_spill] sm:$0xff] %v10351_v20  ;;  %v10356_v26 = vld [vmem:[%s15065_s6 + $0x11b8] sm:$0xff]  ;;  %v10361_v27 = vld [vmem:[%s15065_s6 + $0x11c0] sm:$0xff] }
 0x118   :  { %15611 = vst [vmem:[#allocation548_spill] sm:$0xff] %v10356_v26  ;;  %15612 = vst [vmem:[#allocation549_spill] sm:$0xff] %v10361_v27  ;;  %v10366_v23 = vld [vmem:[%s15065_s6 + $0x11c8] sm:$0xff]  ;;  %v10371_v22 = vld [vmem:[%s15065_s6 + $0x11d0] sm:$0xff] }
 0x119   :  { %15613 = vst [vmem:[#allocation550_spill] sm:$0xff] %v10366_v23  ;;  %15614 = vst [vmem:[#allocation551_spill] sm:$0xff] %v10371_v22  ;;  %v10376_v20 = vld [vmem:[%s15065_s6 + $0x11d8] sm:$0xff]  ;;  %v10381_v26 = vld [vmem:[%s15065_s6 + $0x11e0] sm:$0xff] }
 0x11a   :  { %15615 = vst [vmem:[#allocation552_spill] sm:$0xff] %v10376_v20  ;;  %15616 = vst [vmem:[#allocation553_spill] sm:$0xff] %v10381_v26  ;;  %v10386_v27 = vld [vmem:[%s15065_s6 + $0x11e8] sm:$0xff]  ;;  %v10391_v23 = vld [vmem:[%s15065_s6 + $0x11f0] sm:$0xff] }
 0x11b   :  { %15617 = vst [vmem:[#allocation554_spill] sm:$0xff] %v10386_v27  ;;  %15618 = vst [vmem:[#allocation555_spill] sm:$0xff] %v10391_v23  ;;  %v10396_v22 = vld [vmem:[%s15065_s6 + $0x11f8] sm:$0xff]  ;;  %v10401_v20 = vld [vmem:[%s15065_s6 + $0x1200] sm:$0xff] }
 0x11c   :  { %15619 = vst [vmem:[#allocation556_spill] sm:$0xff] %v10396_v22  ;;  %15620 = vst [vmem:[#allocation557_spill] sm:$0xff] %v10401_v20  ;;  %v10406_v26 = vld [vmem:[%s15065_s6 + $0x1208] sm:$0xff]  ;;  %v10411_v27 = vld [vmem:[%s15065_s6 + $0x1210] sm:$0xff] }
 0x11d   :  { %15621 = vst [vmem:[#allocation558_spill] sm:$0xff] %v10406_v26  ;;  %15622 = vst [vmem:[#allocation559_spill] sm:$0xff] %v10411_v27  ;;  %v10416_v23 = vld [vmem:[%s15065_s6 + $0x1218] sm:$0xff]  ;;  %v10421_v22 = vld [vmem:[%s15065_s6 + $0x1220] sm:$0xff] }
 0x11e   :  { %15623 = vst [vmem:[#allocation560_spill] sm:$0xff] %v10416_v23  ;;  %15624 = vst [vmem:[#allocation561_spill] sm:$0xff] %v10421_v22  ;;  %v10426_v20 = vld [vmem:[%s15065_s6 + $0x1228] sm:$0xff]  ;;  %v10431_v26 = vld [vmem:[%s15065_s6 + $0x1230] sm:$0xff] }
 0x11f   :  { %15625 = vst [vmem:[#allocation562_spill] sm:$0xff] %v10426_v20  ;;  %15626 = vst [vmem:[#allocation563_spill] sm:$0xff] %v10431_v26  ;;  %v10436_v27 = vld [vmem:[%s15065_s6 + $0x1238] sm:$0xff]  ;;  %v10441_v23 = vld [vmem:[%s15065_s6 + $0x1240] sm:$0xff] }
 0x120   :  { %15627 = vst [vmem:[#allocation564_spill] sm:$0xff] %v10436_v27  ;;  %15628 = vst [vmem:[#allocation565_spill] sm:$0xff] %v10441_v23  ;;  %v10446_v22 = vld [vmem:[%s15065_s6 + $0x1248] sm:$0xff]  ;;  %v10451_v20 = vld [vmem:[%s15065_s6 + $0x1250] sm:$0xff] }
 0x121   :  { %15629 = vst [vmem:[#allocation566_spill] sm:$0xff] %v10446_v22  ;;  %15630 = vst [vmem:[#allocation567_spill] sm:$0xff] %v10451_v20  ;;  %v10456_v26 = vld [vmem:[%s15065_s6 + $0x1258] sm:$0xff]  ;;  %v10461_v27 = vld [vmem:[%s15065_s6 + $0x1260] sm:$0xff] }
 0x122   :  { %15631 = vst [vmem:[#allocation568_spill] sm:$0xff] %v10456_v26  ;;  %15632 = vst [vmem:[#allocation569_spill] sm:$0xff] %v10461_v27  ;;  %v10466_v23 = vld [vmem:[%s15065_s6 + $0x1268] sm:$0xff]  ;;  %v10471_v22 = vld [vmem:[%s15065_s6 + $0x1270] sm:$0xff] }
 0x123   :  { %15633 = vst [vmem:[#allocation570_spill] sm:$0xff] %v10466_v23  ;;  %15634 = vst [vmem:[#allocation571_spill] sm:$0xff] %v10471_v22  ;;  %v10476_v20 = vld [vmem:[%s15065_s6 + $0x1278] sm:$0xff]  ;;  %v10481_v26 = vld [vmem:[%s15065_s6 + $0x1280] sm:$0xff] }
 0x124   :  { %15635 = vst [vmem:[#allocation572_spill] sm:$0xff] %v10476_v20  ;;  %15636 = vst [vmem:[#allocation573_spill] sm:$0xff] %v10481_v26  ;;  %v10486_v27 = vld [vmem:[%s15065_s6 + $0x1288] sm:$0xff]  ;;  %v10491_v23 = vld [vmem:[%s15065_s6 + $0x1290] sm:$0xff] }
 0x125   :  { %15637 = vst [vmem:[#allocation574_spill] sm:$0xff] %v10486_v27  ;;  %15638 = vst [vmem:[#allocation575_spill] sm:$0xff] %v10491_v23  ;;  %v10496_v22 = vld [vmem:[%s15065_s6 + $0x1298] sm:$0xff]  ;;  %v10501_v20 = vld [vmem:[%s15065_s6 + $0x12a0] sm:$0xff] }
 0x126   :  { %15639 = vst [vmem:[#allocation576_spill] sm:$0xff] %v10496_v22  ;;  %15640 = vst [vmem:[#allocation577_spill] sm:$0xff] %v10501_v20  ;;  %v10506_v26 = vld [vmem:[%s15065_s6 + $0x12a8] sm:$0xff]  ;;  %v10511_v27 = vld [vmem:[%s15065_s6 + $0x12b0] sm:$0xff] }
 0x127   :  { %15641 = vst [vmem:[#allocation578_spill] sm:$0xff] %v10506_v26  ;;  %15642 = vst [vmem:[#allocation579_spill] sm:$0xff] %v10511_v27  ;;  %v10516_v23 = vld [vmem:[%s15065_s6 + $0x12b8] sm:$0xff]  ;;  %v10521_v22 = vld [vmem:[%s15065_s6 + $0x12c0] sm:$0xff] }
 0x128   :  { %15643 = vst [vmem:[#allocation580_spill] sm:$0xff] %v10516_v23  ;;  %15644 = vst [vmem:[#allocation581_spill] sm:$0xff] %v10521_v22  ;;  %v10526_v20 = vld [vmem:[%s15065_s6 + $0x12c8] sm:$0xff]  ;;  %v10531_v26 = vld [vmem:[%s15065_s6 + $0x12d0] sm:$0xff] }
 0x129   :  { %15645 = vst [vmem:[#allocation582_spill] sm:$0xff] %v10526_v20  ;;  %15646 = vst [vmem:[#allocation583_spill] sm:$0xff] %v10531_v26  ;;  %v10536_v27 = vld [vmem:[%s15065_s6 + $0x12d8] sm:$0xff]  ;;  %v10541_v23 = vld [vmem:[%s15065_s6 + $0x12e0] sm:$0xff] }
 0x12a   :  { %15647 = vst [vmem:[#allocation584_spill] sm:$0xff] %v10536_v27  ;;  %15648 = vst [vmem:[#allocation585_spill] sm:$0xff] %v10541_v23  ;;  %v10546_v22 = vld [vmem:[%s15065_s6 + $0x12e8] sm:$0xff]  ;;  %v10551_v20 = vld [vmem:[%s15065_s6 + $0x12f0] sm:$0xff] }
 0x12b   :  { %15649 = vst [vmem:[#allocation586_spill] sm:$0xff] %v10546_v22  ;;  %15650 = vst [vmem:[#allocation587_spill] sm:$0xff] %v10551_v20  ;;  %v10556_v26 = vld [vmem:[%s15065_s6 + $0x12f8] sm:$0xff]  ;;  %v10561_v27 = vld [vmem:[%s15065_s6 + $0x1300] sm:$0xff] }
 0x12c   :  { %15651 = vst [vmem:[#allocation588_spill] sm:$0xff] %v10556_v26  ;;  %15652 = vst [vmem:[#allocation589_spill] sm:$0xff] %v10561_v27  ;;  %v10566_v23 = vld [vmem:[%s15065_s6 + $0x1308] sm:$0xff]  ;;  %v10571_v22 = vld [vmem:[%s15065_s6 + $0x1310] sm:$0xff] }
 0x12d   :  { %15653 = vst [vmem:[#allocation590_spill] sm:$0xff] %v10566_v23  ;;  %15654 = vst [vmem:[#allocation591_spill] sm:$0xff] %v10571_v22  ;;  %v10576_v20 = vld [vmem:[%s15065_s6 + $0x1318] sm:$0xff]  ;;  %v10581_v26 = vld [vmem:[%s15065_s6 + $0x1320] sm:$0xff] }
 0x12e   :  { %15655 = vst [vmem:[#allocation592_spill] sm:$0xff] %v10576_v20  ;;  %15656 = vst [vmem:[#allocation593_spill] sm:$0xff] %v10581_v26  ;;  %v10586_v27 = vld [vmem:[%s15065_s6 + $0x1328] sm:$0xff]  ;;  %v10591_v23 = vld [vmem:[%s15065_s6 + $0x1330] sm:$0xff] }
 0x12f   :  { %15657 = vst [vmem:[#allocation594_spill] sm:$0xff] %v10586_v27  ;;  %15658 = vst [vmem:[#allocation595_spill] sm:$0xff] %v10591_v23  ;;  %v10596_v22 = vld [vmem:[%s15065_s6 + $0x1338] sm:$0xff]  ;;  %v10601_v20 = vld [vmem:[%s15065_s6 + $0x1340] sm:$0xff] }
 0x130   :  { %15659 = vst [vmem:[#allocation596_spill] sm:$0xff] %v10596_v22  ;;  %15660 = vst [vmem:[#allocation597_spill] sm:$0xff] %v10601_v20  ;;  %v10606_v26 = vld [vmem:[%s15065_s6 + $0x1348] sm:$0xff]  ;;  %v10611_v27 = vld [vmem:[%s15065_s6 + $0x1350] sm:$0xff] }
 0x131   :  { %15661 = vst [vmem:[#allocation598_spill] sm:$0xff] %v10606_v26  ;;  %15662 = vst [vmem:[#allocation599_spill] sm:$0xff] %v10611_v27  ;;  %v10616_v23 = vld [vmem:[%s15065_s6 + $0x1358] sm:$0xff]  ;;  %v10621_v22 = vld [vmem:[%s15065_s6 + $0x1360] sm:$0xff] }
 0x132   :  { %15663 = vst [vmem:[#allocation600_spill] sm:$0xff] %v10616_v23  ;;  %15664 = vst [vmem:[#allocation601_spill] sm:$0xff] %v10621_v22  ;;  %v10626_v20 = vld [vmem:[%s15065_s6 + $0x1368] sm:$0xff]  ;;  %v10631_v26 = vld [vmem:[%s15065_s6 + $0x1370] sm:$0xff] }
 0x133   :  { %15665 = vst [vmem:[#allocation602_spill] sm:$0xff] %v10626_v20  ;;  %15666 = vst [vmem:[#allocation603_spill] sm:$0xff] %v10631_v26  ;;  %v10636_v27 = vld [vmem:[%s15065_s6 + $0x1378] sm:$0xff]  ;;  %v10641_v23 = vld [vmem:[%s15065_s6 + $0x1380] sm:$0xff] }
 0x134   :  { %15667 = vst [vmem:[#allocation604_spill] sm:$0xff] %v10636_v27  ;;  %15668 = vst [vmem:[#allocation605_spill] sm:$0xff] %v10641_v23  ;;  %v10646_v22 = vld [vmem:[%s15065_s6 + $0x1388] sm:$0xff]  ;;  %v10651_v20 = vld [vmem:[%s15065_s6 + $0x1390] sm:$0xff] }
 0x135   :  { %15669 = vst [vmem:[#allocation606_spill] sm:$0xff] %v10646_v22  ;;  %15670 = vst [vmem:[#allocation607_spill] sm:$0xff] %v10651_v20  ;;  %v10656_v26 = vld [vmem:[%s15065_s6 + $0x1398] sm:$0xff]  ;;  %v10661_v27 = vld [vmem:[%s15065_s6 + $0x13a0] sm:$0xff] }
 0x136   :  { %15671 = vst [vmem:[#allocation608_spill] sm:$0xff] %v10656_v26  ;;  %15672 = vst [vmem:[#allocation609_spill] sm:$0xff] %v10661_v27  ;;  %v10666_v23 = vld [vmem:[%s15065_s6 + $0x13a8] sm:$0xff]  ;;  %v10671_v22 = vld [vmem:[%s15065_s6 + $0x13b0] sm:$0xff] }
 0x137   :  { %15673 = vst [vmem:[#allocation610_spill] sm:$0xff] %v10666_v23  ;;  %15674 = vst [vmem:[#allocation611_spill] sm:$0xff] %v10671_v22  ;;  %v10676_v20 = vld [vmem:[%s15065_s6 + $0x13b8] sm:$0xff]  ;;  %v10681_v26 = vld [vmem:[%s15065_s6 + $0x13c0] sm:$0xff] }
 0x138   :  { %15675 = vst [vmem:[#allocation612_spill] sm:$0xff] %v10676_v20  ;;  %15676 = vst [vmem:[#allocation613_spill] sm:$0xff] %v10681_v26  ;;  %v10686_v27 = vld [vmem:[%s15065_s6 + $0x13c8] sm:$0xff]  ;;  %v10691_v23 = vld [vmem:[%s15065_s6 + $0x13d0] sm:$0xff] }
 0x139   :  { %15677 = vst [vmem:[#allocation614_spill] sm:$0xff] %v10686_v27  ;;  %15678 = vst [vmem:[#allocation615_spill] sm:$0xff] %v10691_v23  ;;  %v10696_v22 = vld [vmem:[%s15065_s6 + $0x13d8] sm:$0xff]  ;;  %v10701_v20 = vld [vmem:[%s15065_s6 + $0x13e0] sm:$0xff] }
 0x13a   :  { %15679 = vst [vmem:[#allocation616_spill] sm:$0xff] %v10696_v22  ;;  %15680 = vst [vmem:[#allocation617_spill] sm:$0xff] %v10701_v20  ;;  %v10706_v26 = vld [vmem:[%s15065_s6 + $0x13e8] sm:$0xff]  ;;  %v10711_v27 = vld [vmem:[%s15065_s6 + $0x13f0] sm:$0xff] }
 0x13b   :  { %15681 = vst [vmem:[#allocation618_spill] sm:$0xff] %v10706_v26  ;;  %15682 = vst [vmem:[#allocation619_spill] sm:$0xff] %v10711_v27  ;;  %v10716_v23 = vld [vmem:[%s15065_s6 + $0x13f8] sm:$0xff]  ;;  %v10721_v22 = vld [vmem:[%s15065_s6 + $0x1400] sm:$0xff] }
 0x13c   :  { %15683 = vst [vmem:[#allocation620_spill] sm:$0xff] %v10716_v23  ;;  %15684 = vst [vmem:[#allocation621_spill] sm:$0xff] %v10721_v22  ;;  %v10726_v20 = vld [vmem:[%s15065_s6 + $0x1408] sm:$0xff]  ;;  %v10731_v26 = vld [vmem:[%s15065_s6 + $0x1410] sm:$0xff] }
 0x13d   :  { %15685 = vst [vmem:[#allocation622_spill] sm:$0xff] %v10726_v20  ;;  %15686 = vst [vmem:[#allocation623_spill] sm:$0xff] %v10731_v26  ;;  %v10736_v27 = vld [vmem:[%s15065_s6 + $0x1418] sm:$0xff]  ;;  %v10741_v23 = vld [vmem:[%s15065_s6 + $0x1420] sm:$0xff] }
 0x13e   :  { %15687 = vst [vmem:[#allocation624_spill] sm:$0xff] %v10736_v27  ;;  %15688 = vst [vmem:[#allocation625_spill] sm:$0xff] %v10741_v23  ;;  %v10746_v22 = vld [vmem:[%s15065_s6 + $0x1428] sm:$0xff]  ;;  %v10751_v20 = vld [vmem:[%s15065_s6 + $0x1430] sm:$0xff] }
 0x13f   :  { %15689 = vst [vmem:[#allocation626_spill] sm:$0xff] %v10746_v22  ;;  %15690 = vst [vmem:[#allocation627_spill] sm:$0xff] %v10751_v20  ;;  %v10756_v26 = vld [vmem:[%s15065_s6 + $0x1438] sm:$0xff]  ;;  %v10761_v27 = vld [vmem:[%s15065_s6 + $0x1440] sm:$0xff] }
 0x140   :  { %15691 = vst [vmem:[#allocation628_spill] sm:$0xff] %v10756_v26  ;;  %15692 = vst [vmem:[#allocation629_spill] sm:$0xff] %v10761_v27  ;;  %v10766_v23 = vld [vmem:[%s15065_s6 + $0x1448] sm:$0xff]  ;;  %v10771_v22 = vld [vmem:[%s15065_s6 + $0x1450] sm:$0xff] }
 0x141   :  { %15693 = vst [vmem:[#allocation630_spill] sm:$0xff] %v10766_v23  ;;  %15694 = vst [vmem:[#allocation631_spill] sm:$0xff] %v10771_v22  ;;  %v10776_v20 = vld [vmem:[%s15065_s6 + $0x1458] sm:$0xff]  ;;  %v10781_v26 = vld [vmem:[%s15065_s6 + $0x1460] sm:$0xff] }
 0x142   :  { %15695 = vst [vmem:[#allocation632_spill] sm:$0xff] %v10776_v20  ;;  %15696 = vst [vmem:[#allocation633_spill] sm:$0xff] %v10781_v26  ;;  %v10786_v27 = vld [vmem:[%s15065_s6 + $0x1468] sm:$0xff]  ;;  %v10791_v23 = vld [vmem:[%s15065_s6 + $0x1470] sm:$0xff] }
 0x143   :  { %15697 = vst [vmem:[#allocation634_spill] sm:$0xff] %v10786_v27  ;;  %15698 = vst [vmem:[#allocation635_spill] sm:$0xff] %v10791_v23  ;;  %v10796_v22 = vld [vmem:[%s15065_s6 + $0x1478] sm:$0xff]  ;;  %v10801_v20 = vld [vmem:[%s15065_s6 + $0x1480] sm:$0xff] }
 0x144   :  { %15699 = vst [vmem:[#allocation636_spill] sm:$0xff] %v10796_v22  ;;  %15700 = vst [vmem:[#allocation637_spill] sm:$0xff] %v10801_v20  ;;  %v10806_v26 = vld [vmem:[%s15065_s6 + $0x1488] sm:$0xff]  ;;  %v10811_v27 = vld [vmem:[%s15065_s6 + $0x1490] sm:$0xff] }
 0x145   :  { %15701 = vst [vmem:[#allocation638_spill] sm:$0xff] %v10806_v26  ;;  %15702 = vst [vmem:[#allocation639_spill] sm:$0xff] %v10811_v27  ;;  %v10816_v23 = vld [vmem:[%s15065_s6 + $0x1498] sm:$0xff]  ;;  %v10821_v22 = vld [vmem:[%s15065_s6 + $0x14a0] sm:$0xff] }
 0x146   :  { %15703 = vst [vmem:[#allocation640_spill] sm:$0xff] %v10816_v23  ;;  %15704 = vst [vmem:[#allocation641_spill] sm:$0xff] %v10821_v22  ;;  %v10826_v20 = vld [vmem:[%s15065_s6 + $0x14a8] sm:$0xff]  ;;  %v10831_v26 = vld [vmem:[%s15065_s6 + $0x14b0] sm:$0xff] }
 0x147   :  { %15705 = vst [vmem:[#allocation642_spill] sm:$0xff] %v10826_v20  ;;  %15706 = vst [vmem:[#allocation643_spill] sm:$0xff] %v10831_v26  ;;  %v10836_v27 = vld [vmem:[%s15065_s6 + $0x14b8] sm:$0xff]  ;;  %v10841_v23 = vld [vmem:[%s15065_s6 + $0x14c0] sm:$0xff] }
 0x148   :  { %15707 = vst [vmem:[#allocation644_spill] sm:$0xff] %v10836_v27  ;;  %15708 = vst [vmem:[#allocation645_spill] sm:$0xff] %v10841_v23  ;;  %v10846_v22 = vld [vmem:[%s15065_s6 + $0x14c8] sm:$0xff]  ;;  %v10851_v20 = vld [vmem:[%s15065_s6 + $0x14d0] sm:$0xff] }
 0x149   :  { %15709 = vst [vmem:[#allocation646_spill] sm:$0xff] %v10846_v22  ;;  %15710 = vst [vmem:[#allocation647_spill] sm:$0xff] %v10851_v20  ;;  %v10856_v26 = vld [vmem:[%s15065_s6 + $0x14d8] sm:$0xff]  ;;  %v10861_v27 = vld [vmem:[%s15065_s6 + $0x14e0] sm:$0xff] }
 0x14a   :  { %15711 = vst [vmem:[#allocation648_spill] sm:$0xff] %v10856_v26  ;;  %15712 = vst [vmem:[#allocation649_spill] sm:$0xff] %v10861_v27  ;;  %v10866_v23 = vld [vmem:[%s15065_s6 + $0x14e8] sm:$0xff]  ;;  %v10871_v22 = vld [vmem:[%s15065_s6 + $0x14f0] sm:$0xff] }
 0x14b   :  { %15713 = vst [vmem:[#allocation650_spill] sm:$0xff] %v10866_v23  ;;  %15714 = vst [vmem:[#allocation651_spill] sm:$0xff] %v10871_v22  ;;  %v10876_v20 = vld [vmem:[%s15065_s6 + $0x14f8] sm:$0xff]  ;;  %v10881_v26 = vld [vmem:[%s15065_s6 + $0x1500] sm:$0xff] }
 0x14c   :  { %15715 = vst [vmem:[#allocation652_spill] sm:$0xff] %v10876_v20  ;;  %15716 = vst [vmem:[#allocation653_spill] sm:$0xff] %v10881_v26  ;;  %v10886_v27 = vld [vmem:[%s15065_s6 + $0x1508] sm:$0xff]  ;;  %v10891_v23 = vld [vmem:[%s15065_s6 + $0x1510] sm:$0xff] }
 0x14d   :  { %15717 = vst [vmem:[#allocation654_spill] sm:$0xff] %v10886_v27  ;;  %15718 = vst [vmem:[#allocation655_spill] sm:$0xff] %v10891_v23  ;;  %v10896_v22 = vld [vmem:[%s15065_s6 + $0x1518] sm:$0xff]  ;;  %v10901_v20 = vld [vmem:[%s15065_s6 + $0x1520] sm:$0xff] }
 0x14e   :  { %15719 = vst [vmem:[#allocation656_spill] sm:$0xff] %v10896_v22  ;;  %15720 = vst [vmem:[#allocation657_spill] sm:$0xff] %v10901_v20  ;;  %v10906_v26 = vld [vmem:[%s15065_s6 + $0x1528] sm:$0xff]  ;;  %v10911_v27 = vld [vmem:[%s15065_s6 + $0x1530] sm:$0xff] }
 0x14f   :  { %15721 = vst [vmem:[#allocation658_spill] sm:$0xff] %v10906_v26  ;;  %15722 = vst [vmem:[#allocation659_spill] sm:$0xff] %v10911_v27  ;;  %v10916_v23 = vld [vmem:[%s15065_s6 + $0x1538] sm:$0xff]  ;;  %v10921_v22 = vld [vmem:[%s15065_s6 + $0x1540] sm:$0xff] }
 0x150   :  { %15723 = vst [vmem:[#allocation660_spill] sm:$0xff] %v10916_v23  ;;  %15724 = vst [vmem:[#allocation661_spill] sm:$0xff] %v10921_v22  ;;  %v10926_v20 = vld [vmem:[%s15065_s6 + $0x1548] sm:$0xff]  ;;  %v10931_v26 = vld [vmem:[%s15065_s6 + $0x1550] sm:$0xff] }
 0x151   :  { %15725 = vst [vmem:[#allocation662_spill] sm:$0xff] %v10926_v20  ;;  %15726 = vst [vmem:[#allocation663_spill] sm:$0xff] %v10931_v26  ;;  %v10936_v27 = vld [vmem:[%s15065_s6 + $0x1558] sm:$0xff]  ;;  %v10941_v23 = vld [vmem:[%s15065_s6 + $0x1560] sm:$0xff] }
 0x152   :  { %15727 = vst [vmem:[#allocation664_spill] sm:$0xff] %v10936_v27  ;;  %15728 = vst [vmem:[#allocation665_spill] sm:$0xff] %v10941_v23  ;;  %v10946_v22 = vld [vmem:[%s15065_s6 + $0x1568] sm:$0xff]  ;;  %v10951_v20 = vld [vmem:[%s15065_s6 + $0x1570] sm:$0xff] }
 0x153   :  { %15729 = vst [vmem:[#allocation666_spill] sm:$0xff] %v10946_v22  ;;  %15730 = vst [vmem:[#allocation667_spill] sm:$0xff] %v10951_v20  ;;  %v10956_v26 = vld [vmem:[%s15065_s6 + $0x1578] sm:$0xff]  ;;  %v10961_v27 = vld [vmem:[%s15065_s6 + $0x1580] sm:$0xff] }
 0x154   :  { %15731 = vst [vmem:[#allocation668_spill] sm:$0xff] %v10956_v26  ;;  %15732 = vst [vmem:[#allocation669_spill] sm:$0xff] %v10961_v27  ;;  %v10966_v23 = vld [vmem:[%s15065_s6 + $0x1588] sm:$0xff]  ;;  %v10971_v22 = vld [vmem:[%s15065_s6 + $0x1590] sm:$0xff] }
 0x155   :  { %15733 = vst [vmem:[#allocation670_spill] sm:$0xff] %v10966_v23  ;;  %15734 = vst [vmem:[#allocation671_spill] sm:$0xff] %v10971_v22  ;;  %v10976_v20 = vld [vmem:[%s15065_s6 + $0x1598] sm:$0xff]  ;;  %v10981_v26 = vld [vmem:[%s15065_s6 + $0x15a0] sm:$0xff] }
 0x156   :  { %15735 = vst [vmem:[#allocation672_spill] sm:$0xff] %v10976_v20  ;;  %15736 = vst [vmem:[#allocation673_spill] sm:$0xff] %v10981_v26  ;;  %v10986_v27 = vld [vmem:[%s15065_s6 + $0x15a8] sm:$0xff]  ;;  %v10991_v23 = vld [vmem:[%s15065_s6 + $0x15b0] sm:$0xff] }
 0x157   :  { %15737 = vst [vmem:[#allocation674_spill] sm:$0xff] %v10986_v27  ;;  %15738 = vst [vmem:[#allocation675_spill] sm:$0xff] %v10991_v23  ;;  %v10996_v22 = vld [vmem:[%s15065_s6 + $0x15b8] sm:$0xff]  ;;  %v11001_v20 = vld [vmem:[%s15065_s6 + $0x15c0] sm:$0xff] }
 0x158   :  { %15739 = vst [vmem:[#allocation676_spill] sm:$0xff] %v10996_v22  ;;  %15740 = vst [vmem:[#allocation677_spill] sm:$0xff] %v11001_v20  ;;  %v11006_v26 = vld [vmem:[%s15065_s6 + $0x15c8] sm:$0xff]  ;;  %v11011_v27 = vld [vmem:[%s15065_s6 + $0x15d0] sm:$0xff] }
 0x159   :  { %15741 = vst [vmem:[#allocation678_spill] sm:$0xff] %v11006_v26  ;;  %15742 = vst [vmem:[#allocation679_spill] sm:$0xff] %v11011_v27  ;;  %v11016_v23 = vld [vmem:[%s15065_s6 + $0x15d8] sm:$0xff]  ;;  %v11021_v22 = vld [vmem:[%s15065_s6 + $0x15e0] sm:$0xff] }
 0x15a   :  { %15743 = vst [vmem:[#allocation680_spill] sm:$0xff] %v11016_v23  ;;  %15744 = vst [vmem:[#allocation681_spill] sm:$0xff] %v11021_v22  ;;  %v11026_v20 = vld [vmem:[%s15065_s6 + $0x15e8] sm:$0xff]  ;;  %v11031_v26 = vld [vmem:[%s15065_s6 + $0x15f0] sm:$0xff] }
 0x15b   :  { %15745 = vst [vmem:[#allocation682_spill] sm:$0xff] %v11026_v20  ;;  %15746 = vst [vmem:[#allocation683_spill] sm:$0xff] %v11031_v26  ;;  %v11036_v27 = vld [vmem:[%s15065_s6 + $0x15f8] sm:$0xff]  ;;  %v11041_v23 = vld [vmem:[%s15065_s6 + $0x1600] sm:$0xff] }
 0x15c   :  { %15747 = vst [vmem:[#allocation684_spill] sm:$0xff] %v11036_v27  ;;  %15748 = vst [vmem:[#allocation685_spill] sm:$0xff] %v11041_v23  ;;  %v11046_v22 = vld [vmem:[%s15065_s6 + $0x1608] sm:$0xff]  ;;  %v11051_v20 = vld [vmem:[%s15065_s6 + $0x1610] sm:$0xff] }
 0x15d   :  { %15749 = vst [vmem:[#allocation686_spill] sm:$0xff] %v11046_v22  ;;  %15750 = vst [vmem:[#allocation687_spill] sm:$0xff] %v11051_v20  ;;  %v11056_v26 = vld [vmem:[%s15065_s6 + $0x1618] sm:$0xff]  ;;  %v11061_v27 = vld [vmem:[%s15065_s6 + $0x1620] sm:$0xff] }
 0x15e   :  { %15751 = vst [vmem:[#allocation688_spill] sm:$0xff] %v11056_v26  ;;  %15752 = vst [vmem:[#allocation689_spill] sm:$0xff] %v11061_v27  ;;  %v11066_v23 = vld [vmem:[%s15065_s6 + $0x1628] sm:$0xff]  ;;  %v11071_v22 = vld [vmem:[%s15065_s6 + $0x1630] sm:$0xff] }
 0x15f   :  { %15753 = vst [vmem:[#allocation690_spill] sm:$0xff] %v11066_v23  ;;  %15754 = vst [vmem:[#allocation691_spill] sm:$0xff] %v11071_v22  ;;  %v11076_v20 = vld [vmem:[%s15065_s6 + $0x1638] sm:$0xff]  ;;  %v11081_v26 = vld [vmem:[%s15065_s6 + $0x1640] sm:$0xff] }
 0x160   :  { %15755 = vst [vmem:[#allocation692_spill] sm:$0xff] %v11076_v20  ;;  %15756 = vst [vmem:[#allocation693_spill] sm:$0xff] %v11081_v26  ;;  %v11086_v27 = vld [vmem:[%s15065_s6 + $0x1648] sm:$0xff]  ;;  %v11091_v23 = vld [vmem:[%s15065_s6 + $0x1650] sm:$0xff] }
 0x161   :  { %15757 = vst [vmem:[#allocation694_spill] sm:$0xff] %v11086_v27  ;;  %15758 = vst [vmem:[#allocation695_spill] sm:$0xff] %v11091_v23  ;;  %v11096_v22 = vld [vmem:[%s15065_s6 + $0x1658] sm:$0xff]  ;;  %v11101_v20 = vld [vmem:[%s15065_s6 + $0x1660] sm:$0xff] }
 0x162   :  { %15759 = vst [vmem:[#allocation696_spill] sm:$0xff] %v11096_v22  ;;  %15760 = vst [vmem:[#allocation697_spill] sm:$0xff] %v11101_v20  ;;  %v11106_v26 = vld [vmem:[%s15065_s6 + $0x1668] sm:$0xff]  ;;  %v11111_v27 = vld [vmem:[%s15065_s6 + $0x1670] sm:$0xff] }
 0x163   :  { %15761 = vst [vmem:[#allocation698_spill] sm:$0xff] %v11106_v26  ;;  %15762 = vst [vmem:[#allocation699_spill] sm:$0xff] %v11111_v27  ;;  %v11116_v23 = vld [vmem:[%s15065_s6 + $0x1678] sm:$0xff]  ;;  %v11121_v22 = vld [vmem:[%s15065_s6 + $0x1680] sm:$0xff] }
 0x164   :  { %15763 = vst [vmem:[#allocation700_spill] sm:$0xff] %v11116_v23  ;;  %15764 = vst [vmem:[#allocation701_spill] sm:$0xff] %v11121_v22  ;;  %v11126_v20 = vld [vmem:[%s15065_s6 + $0x1688] sm:$0xff]  ;;  %v11131_v26 = vld [vmem:[%s15065_s6 + $0x1690] sm:$0xff] }
 0x165   :  { %15765 = vst [vmem:[#allocation702_spill] sm:$0xff] %v11126_v20  ;;  %15766 = vst [vmem:[#allocation703_spill] sm:$0xff] %v11131_v26  ;;  %v11136_v27 = vld [vmem:[%s15065_s6 + $0x1698] sm:$0xff]  ;;  %v11141_v23 = vld [vmem:[%s15065_s6 + $0x16a0] sm:$0xff] }
 0x166   :  { %15767 = vst [vmem:[#allocation704_spill] sm:$0xff] %v11136_v27  ;;  %15768 = vst [vmem:[#allocation705_spill] sm:$0xff] %v11141_v23  ;;  %v11146_v22 = vld [vmem:[%s15065_s6 + $0x16a8] sm:$0xff]  ;;  %v11151_v20 = vld [vmem:[%s15065_s6 + $0x16b0] sm:$0xff] }
 0x167   :  { %15769 = vst [vmem:[#allocation706_spill] sm:$0xff] %v11146_v22  ;;  %15770 = vst [vmem:[#allocation707_spill] sm:$0xff] %v11151_v20  ;;  %v11156_v26 = vld [vmem:[%s15065_s6 + $0x16b8] sm:$0xff]  ;;  %v11161_v27 = vld [vmem:[%s15065_s6 + $0x16c0] sm:$0xff] }
 0x168   :  { %15771 = vst [vmem:[#allocation708_spill] sm:$0xff] %v11156_v26  ;;  %15772 = vst [vmem:[#allocation709_spill] sm:$0xff] %v11161_v27  ;;  %v11166_v23 = vld [vmem:[%s15065_s6 + $0x16c8] sm:$0xff]  ;;  %v11171_v22 = vld [vmem:[%s15065_s6 + $0x16d0] sm:$0xff] }
 0x169   :  { %15773 = vst [vmem:[#allocation710_spill] sm:$0xff] %v11166_v23  ;;  %15774 = vst [vmem:[#allocation711_spill] sm:$0xff] %v11171_v22  ;;  %v11176_v20 = vld [vmem:[%s15065_s6 + $0x16d8] sm:$0xff]  ;;  %v11181_v26 = vld [vmem:[%s15065_s6 + $0x16e0] sm:$0xff] }
 0x16a   :  { %15775 = vst [vmem:[#allocation712_spill] sm:$0xff] %v11176_v20  ;;  %15776 = vst [vmem:[#allocation713_spill] sm:$0xff] %v11181_v26  ;;  %v11186_v27 = vld [vmem:[%s15065_s6 + $0x16e8] sm:$0xff]  ;;  %v11191_v23 = vld [vmem:[%s15065_s6 + $0x16f0] sm:$0xff] }
 0x16b   :  { %15777 = vst [vmem:[#allocation714_spill] sm:$0xff] %v11186_v27  ;;  %15778 = vst [vmem:[#allocation715_spill] sm:$0xff] %v11191_v23  ;;  %v11196_v22 = vld [vmem:[%s15065_s6 + $0x16f8] sm:$0xff]  ;;  %v11201_v20 = vld [vmem:[%s15065_s6 + $0x1700] sm:$0xff] }
 0x16c   :  { %15779 = vst [vmem:[#allocation716_spill] sm:$0xff] %v11196_v22  ;;  %15780 = vst [vmem:[#allocation717_spill] sm:$0xff] %v11201_v20  ;;  %v11206_v26 = vld [vmem:[%s15065_s6 + $0x1708] sm:$0xff]  ;;  %v11211_v27 = vld [vmem:[%s15065_s6 + $0x1710] sm:$0xff] }
 0x16d   :  { %15781 = vst [vmem:[#allocation718_spill] sm:$0xff] %v11206_v26  ;;  %15782 = vst [vmem:[#allocation719_spill] sm:$0xff] %v11211_v27  ;;  %v11216_v23 = vld [vmem:[%s15065_s6 + $0x1718] sm:$0xff]  ;;  %v11221_v22 = vld [vmem:[%s15065_s6 + $0x1720] sm:$0xff] }
 0x16e   :  { %15783 = vst [vmem:[#allocation720_spill] sm:$0xff] %v11216_v23  ;;  %15784 = vst [vmem:[#allocation721_spill] sm:$0xff] %v11221_v22  ;;  %v11226_v20 = vld [vmem:[%s15065_s6 + $0x1728] sm:$0xff]  ;;  %v11231_v26 = vld [vmem:[%s15065_s6 + $0x1730] sm:$0xff] }
 0x16f   :  { %15785 = vst [vmem:[#allocation722_spill] sm:$0xff] %v11226_v20  ;;  %15786 = vst [vmem:[#allocation723_spill] sm:$0xff] %v11231_v26  ;;  %v11236_v27 = vld [vmem:[%s15065_s6 + $0x1738] sm:$0xff]  ;;  %v11241_v23 = vld [vmem:[%s15065_s6 + $0x1740] sm:$0xff] }
 0x170   :  { %15787 = vst [vmem:[#allocation724_spill] sm:$0xff] %v11236_v27  ;;  %15788 = vst [vmem:[#allocation725_spill] sm:$0xff] %v11241_v23  ;;  %v11246_v22 = vld [vmem:[%s15065_s6 + $0x1748] sm:$0xff]  ;;  %v11251_v20 = vld [vmem:[%s15065_s6 + $0x1750] sm:$0xff] }
 0x171   :  { %15789 = vst [vmem:[#allocation726_spill] sm:$0xff] %v11246_v22  ;;  %15790 = vst [vmem:[#allocation727_spill] sm:$0xff] %v11251_v20  ;;  %v11256_v26 = vld [vmem:[%s15065_s6 + $0x1758] sm:$0xff]  ;;  %v11261_v27 = vld [vmem:[%s15065_s6 + $0x1760] sm:$0xff] }
 0x172   :  { %15791 = vst [vmem:[#allocation728_spill] sm:$0xff] %v11256_v26  ;;  %15792 = vst [vmem:[#allocation729_spill] sm:$0xff] %v11261_v27  ;;  %v11266_v23 = vld [vmem:[%s15065_s6 + $0x1768] sm:$0xff]  ;;  %v11271_v22 = vld [vmem:[%s15065_s6 + $0x1770] sm:$0xff] }
 0x173   :  { %15793 = vst [vmem:[#allocation730_spill] sm:$0xff] %v11266_v23  ;;  %15794 = vst [vmem:[#allocation731_spill] sm:$0xff] %v11271_v22  ;;  %v11276_v20 = vld [vmem:[%s15065_s6 + $0x1778] sm:$0xff]  ;;  %v11281_v26 = vld [vmem:[%s15065_s6 + $0x1780] sm:$0xff] }
 0x174   :  { %15795 = vst [vmem:[#allocation732_spill] sm:$0xff] %v11276_v20  ;;  %15796 = vst [vmem:[#allocation733_spill] sm:$0xff] %v11281_v26  ;;  %v11286_v27 = vld [vmem:[%s15065_s6 + $0x1788] sm:$0xff]  ;;  %v11291_v23 = vld [vmem:[%s15065_s6 + $0x1790] sm:$0xff] }
 0x175   :  { %15797 = vst [vmem:[#allocation734_spill] sm:$0xff] %v11286_v27  ;;  %15798 = vst [vmem:[#allocation735_spill] sm:$0xff] %v11291_v23  ;;  %v11296_v22 = vld [vmem:[%s15065_s6 + $0x1798] sm:$0xff]  ;;  %v11301_v20 = vld [vmem:[%s15065_s6 + $0x17a0] sm:$0xff] }
 0x176   :  { %15799 = vst [vmem:[#allocation736_spill] sm:$0xff] %v11296_v22  ;;  %15800 = vst [vmem:[#allocation737_spill] sm:$0xff] %v11301_v20  ;;  %v11306_v26 = vld [vmem:[%s15065_s6 + $0x17a8] sm:$0xff]  ;;  %v11311_v27 = vld [vmem:[%s15065_s6 + $0x17b0] sm:$0xff] }
 0x177   :  { %15801 = vst [vmem:[#allocation738_spill] sm:$0xff] %v11306_v26  ;;  %15802 = vst [vmem:[#allocation739_spill] sm:$0xff] %v11311_v27  ;;  %v11316_v23 = vld [vmem:[%s15065_s6 + $0x17b8] sm:$0xff]  ;;  %v11321_v22 = vld [vmem:[%s15065_s6 + $0x17c0] sm:$0xff] }
 0x178   :  { %15803 = vst [vmem:[#allocation740_spill] sm:$0xff] %v11316_v23  ;;  %15804 = vst [vmem:[#allocation741_spill] sm:$0xff] %v11321_v22  ;;  %v11326_v20 = vld [vmem:[%s15065_s6 + $0x17c8] sm:$0xff]  ;;  %v11331_v26 = vld [vmem:[%s15065_s6 + $0x17d0] sm:$0xff] }
 0x179   :  { %15805 = vst [vmem:[#allocation742_spill] sm:$0xff] %v11326_v20  ;;  %15806 = vst [vmem:[#allocation743_spill] sm:$0xff] %v11331_v26  ;;  %v11336_v27 = vld [vmem:[%s15065_s6 + $0x17d8] sm:$0xff]  ;;  %v11341_v23 = vld [vmem:[%s15065_s6 + $0x17e0] sm:$0xff] }
 0x17a   :  { %15807 = vst [vmem:[#allocation744_spill] sm:$0xff] %v11336_v27  ;;  %15808 = vst [vmem:[#allocation745_spill] sm:$0xff] %v11341_v23  ;;  %v11346_v22 = vld [vmem:[%s15065_s6 + $0x17e8] sm:$0xff]  ;;  %v11351_v20 = vld [vmem:[%s15065_s6 + $0x17f0] sm:$0xff] }
 0x17b   :  { %15809 = vst [vmem:[#allocation746_spill] sm:$0xff] %v11346_v22  ;;  %15810 = vst [vmem:[#allocation747_spill] sm:$0xff] %v11351_v20  ;;  %v11356_v26 = vld [vmem:[%s15065_s6 + $0x17f8] sm:$0xff]  ;;  %v11361_v27 = vld [vmem:[%s15065_s6 + $0x1800] sm:$0xff] }
 0x17c   :  { %15811 = vst [vmem:[#allocation748_spill] sm:$0xff] %v11356_v26  ;;  %15812 = vst [vmem:[#allocation749_spill] sm:$0xff] %v11361_v27  ;;  %v11366_v23 = vld [vmem:[%s15065_s6 + $0x1808] sm:$0xff]  ;;  %v11371_v22 = vld [vmem:[%s15065_s6 + $0x1810] sm:$0xff] }
 0x17d   :  { %15813 = vst [vmem:[#allocation750_spill] sm:$0xff] %v11366_v23  ;;  %15814 = vst [vmem:[#allocation751_spill] sm:$0xff] %v11371_v22  ;;  %v11376_v20 = vld [vmem:[%s15065_s6 + $0x1818] sm:$0xff]  ;;  %v11381_v26 = vld [vmem:[%s15065_s6 + $0x1820] sm:$0xff] }
 0x17e   :  { %15815 = vst [vmem:[#allocation752_spill] sm:$0xff] %v11376_v20  ;;  %15816 = vst [vmem:[#allocation753_spill] sm:$0xff] %v11381_v26  ;;  %v11386_v27 = vld [vmem:[%s15065_s6 + $0x1828] sm:$0xff]  ;;  %v11391_v23 = vld [vmem:[%s15065_s6 + $0x1830] sm:$0xff] }
 0x17f   :  { %15817 = vst [vmem:[#allocation754_spill] sm:$0xff] %v11386_v27  ;;  %15818 = vst [vmem:[#allocation755_spill] sm:$0xff] %v11391_v23  ;;  %v11396_v22 = vld [vmem:[%s15065_s6 + $0x1838] sm:$0xff]  ;;  %v11401_v20 = vld [vmem:[%s15065_s6 + $0x1840] sm:$0xff] }
 0x180   :  { %15819 = vst [vmem:[#allocation756_spill] sm:$0xff] %v11396_v22  ;;  %15820 = vst [vmem:[#allocation757_spill] sm:$0xff] %v11401_v20  ;;  %v11406_v26 = vld [vmem:[%s15065_s6 + $0x1848] sm:$0xff]  ;;  %v11411_v27 = vld [vmem:[%s15065_s6 + $0x1850] sm:$0xff] }
 0x181   :  { %15821 = vst [vmem:[#allocation758_spill] sm:$0xff] %v11406_v26  ;;  %15822 = vst [vmem:[#allocation759_spill] sm:$0xff] %v11411_v27  ;;  %v11416_v23 = vld [vmem:[%s15065_s6 + $0x1858] sm:$0xff]  ;;  %v11421_v22 = vld [vmem:[%s15065_s6 + $0x1860] sm:$0xff] }
 0x182   :  { %15823 = vst [vmem:[#allocation760_spill] sm:$0xff] %v11416_v23  ;;  %15824 = vst [vmem:[#allocation761_spill] sm:$0xff] %v11421_v22  ;;  %v11426_v20 = vld [vmem:[%s15065_s6 + $0x1868] sm:$0xff]  ;;  %v11431_v26 = vld [vmem:[%s15065_s6 + $0x1870] sm:$0xff] }
 0x183   :  { %15825 = vst [vmem:[#allocation762_spill] sm:$0xff] %v11426_v20  ;;  %15826 = vst [vmem:[#allocation763_spill] sm:$0xff] %v11431_v26  ;;  %v11436_v27 = vld [vmem:[%s15065_s6 + $0x1878] sm:$0xff]  ;;  %v11441_v23 = vld [vmem:[%s15065_s6 + $0x1880] sm:$0xff] }
 0x184   :  { %15827 = vst [vmem:[#allocation764_spill] sm:$0xff] %v11436_v27  ;;  %15828 = vst [vmem:[#allocation765_spill] sm:$0xff] %v11441_v23  ;;  %v11446_v22 = vld [vmem:[%s15065_s6 + $0x1888] sm:$0xff]  ;;  %v11451_v20 = vld [vmem:[%s15065_s6 + $0x1890] sm:$0xff] }
 0x185   :  { %15829 = vst [vmem:[#allocation766_spill] sm:$0xff] %v11446_v22  ;;  %15830 = vst [vmem:[#allocation767_spill] sm:$0xff] %v11451_v20  ;;  %v11456_v26 = vld [vmem:[%s15065_s6 + $0x1898] sm:$0xff]  ;;  %v11461_v27 = vld [vmem:[%s15065_s6 + $0x18a0] sm:$0xff] }
 0x186   :  { %15831 = vst [vmem:[#allocation768_spill] sm:$0xff] %v11456_v26  ;;  %15832 = vst [vmem:[#allocation769_spill] sm:$0xff] %v11461_v27  ;;  %v11466_v23 = vld [vmem:[%s15065_s6 + $0x18a8] sm:$0xff]  ;;  %v11471_v22 = vld [vmem:[%s15065_s6 + $0x18b0] sm:$0xff] }
 0x187   :  { %15833 = vst [vmem:[#allocation770_spill] sm:$0xff] %v11466_v23  ;;  %15834 = vst [vmem:[#allocation771_spill] sm:$0xff] %v11471_v22  ;;  %v11476_v20 = vld [vmem:[%s15065_s6 + $0x18b8] sm:$0xff]  ;;  %v11481_v26 = vld [vmem:[%s15065_s6 + $0x18c0] sm:$0xff] }
 0x188   :  { %15835 = vst [vmem:[#allocation772_spill] sm:$0xff] %v11476_v20  ;;  %15836 = vst [vmem:[#allocation773_spill] sm:$0xff] %v11481_v26  ;;  %v11486_v27 = vld [vmem:[%s15065_s6 + $0x18c8] sm:$0xff]  ;;  %v11491_v23 = vld [vmem:[%s15065_s6 + $0x18d0] sm:$0xff] }
 0x189   :  { %15837 = vst [vmem:[#allocation774_spill] sm:$0xff] %v11486_v27  ;;  %15838 = vst [vmem:[#allocation775_spill] sm:$0xff] %v11491_v23  ;;  %v11496_v22 = vld [vmem:[%s15065_s6 + $0x18d8] sm:$0xff]  ;;  %v11501_v20 = vld [vmem:[%s15065_s6 + $0x18e0] sm:$0xff] }
 0x18a   :  { %15839 = vst [vmem:[#allocation776_spill] sm:$0xff] %v11496_v22  ;;  %15840 = vst [vmem:[#allocation777_spill] sm:$0xff] %v11501_v20  ;;  %v11506_v26 = vld [vmem:[%s15065_s6 + $0x18e8] sm:$0xff]  ;;  %v11511_v27 = vld [vmem:[%s15065_s6 + $0x18f0] sm:$0xff] }
 0x18b   :  { %15841 = vst [vmem:[#allocation778_spill] sm:$0xff] %v11506_v26  ;;  %15842 = vst [vmem:[#allocation779_spill] sm:$0xff] %v11511_v27  ;;  %v11516_v23 = vld [vmem:[%s15065_s6 + $0x18f8] sm:$0xff]  ;;  %v11521_v22 = vld [vmem:[%s15065_s6 + $0x1900] sm:$0xff] }
 0x18c   :  { %15843 = vst [vmem:[#allocation780_spill] sm:$0xff] %v11516_v23  ;;  %15844 = vst [vmem:[#allocation781_spill] sm:$0xff] %v11521_v22  ;;  %v11526_v20 = vld [vmem:[%s15065_s6 + $0x1908] sm:$0xff]  ;;  %v11531_v26 = vld [vmem:[%s15065_s6 + $0x1910] sm:$0xff] }
 0x18d   :  { %15845 = vst [vmem:[#allocation782_spill] sm:$0xff] %v11526_v20  ;;  %15846 = vst [vmem:[#allocation783_spill] sm:$0xff] %v11531_v26  ;;  %v11536_v27 = vld [vmem:[%s15065_s6 + $0x1918] sm:$0xff]  ;;  %v11541_v23 = vld [vmem:[%s15065_s6 + $0x1920] sm:$0xff] }
 0x18e   :  { %15847 = vst [vmem:[#allocation784_spill] sm:$0xff] %v11536_v27  ;;  %15848 = vst [vmem:[#allocation785_spill] sm:$0xff] %v11541_v23  ;;  %v11546_v22 = vld [vmem:[%s15065_s6 + $0x1928] sm:$0xff]  ;;  %v11551_v20 = vld [vmem:[%s15065_s6 + $0x1930] sm:$0xff] }
 0x18f   :  { %15849 = vst [vmem:[#allocation786_spill] sm:$0xff] %v11546_v22  ;;  %15850 = vst [vmem:[#allocation787_spill] sm:$0xff] %v11551_v20  ;;  %v11556_v26 = vld [vmem:[%s15065_s6 + $0x1938] sm:$0xff]  ;;  %v11561_v27 = vld [vmem:[%s15065_s6 + $0x1940] sm:$0xff] }
 0x190   :  { %15851 = vst [vmem:[#allocation788_spill] sm:$0xff] %v11556_v26  ;;  %15852 = vst [vmem:[#allocation789_spill] sm:$0xff] %v11561_v27  ;;  %v11566_v23 = vld [vmem:[%s15065_s6 + $0x1948] sm:$0xff]  ;;  %v11571_v22 = vld [vmem:[%s15065_s6 + $0x1950] sm:$0xff] }
 0x191   :  { %15853 = vst [vmem:[#allocation790_spill] sm:$0xff] %v11566_v23  ;;  %15854 = vst [vmem:[#allocation791_spill] sm:$0xff] %v11571_v22  ;;  %v11576_v20 = vld [vmem:[%s15065_s6 + $0x1958] sm:$0xff]  ;;  %v11581_v26 = vld [vmem:[%s15065_s6 + $0x1960] sm:$0xff] }
 0x192   :  { %15855 = vst [vmem:[#allocation792_spill] sm:$0xff] %v11576_v20  ;;  %15856 = vst [vmem:[#allocation793_spill] sm:$0xff] %v11581_v26  ;;  %v11586_v27 = vld [vmem:[%s15065_s6 + $0x1968] sm:$0xff]  ;;  %v11591_v23 = vld [vmem:[%s15065_s6 + $0x1970] sm:$0xff] }
 0x193   :  { %15857 = vst [vmem:[#allocation794_spill] sm:$0xff] %v11586_v27  ;;  %15858 = vst [vmem:[#allocation795_spill] sm:$0xff] %v11591_v23  ;;  %v11596_v22 = vld [vmem:[%s15065_s6 + $0x1978] sm:$0xff]  ;;  %v11601_v20 = vld [vmem:[%s15065_s6 + $0x1980] sm:$0xff] }
 0x194   :  { %15859 = vst [vmem:[#allocation796_spill] sm:$0xff] %v11596_v22  ;;  %15860 = vst [vmem:[#allocation797_spill] sm:$0xff] %v11601_v20  ;;  %v11606_v26 = vld [vmem:[%s15065_s6 + $0x1988] sm:$0xff]  ;;  %v11611_v27 = vld [vmem:[%s15065_s6 + $0x1990] sm:$0xff] }
 0x195   :  { %15861 = vst [vmem:[#allocation798_spill] sm:$0xff] %v11606_v26  ;;  %15862 = vst [vmem:[#allocation799_spill] sm:$0xff] %v11611_v27  ;;  %v11616_v23 = vld [vmem:[%s15065_s6 + $0x1998] sm:$0xff]  ;;  %v11621_v22 = vld [vmem:[%s15065_s6 + $0x19a0] sm:$0xff] }
 0x196   :  { %15863 = vst [vmem:[#allocation800_spill] sm:$0xff] %v11616_v23  ;;  %15864 = vst [vmem:[#allocation801_spill] sm:$0xff] %v11621_v22  ;;  %v11626_v20 = vld [vmem:[%s15065_s6 + $0x19a8] sm:$0xff]  ;;  %v11631_v26 = vld [vmem:[%s15065_s6 + $0x19b0] sm:$0xff] }
 0x197   :  { %15865 = vst [vmem:[#allocation802_spill] sm:$0xff] %v11626_v20  ;;  %15866 = vst [vmem:[#allocation803_spill] sm:$0xff] %v11631_v26  ;;  %v11636_v27 = vld [vmem:[%s15065_s6 + $0x19b8] sm:$0xff]  ;;  %v11641_v23 = vld [vmem:[%s15065_s6 + $0x19c0] sm:$0xff] }
 0x198   :  { %15867 = vst [vmem:[#allocation804_spill] sm:$0xff] %v11636_v27  ;;  %15868 = vst [vmem:[#allocation805_spill] sm:$0xff] %v11641_v23  ;;  %v11646_v22 = vld [vmem:[%s15065_s6 + $0x19c8] sm:$0xff]  ;;  %v11651_v20 = vld [vmem:[%s15065_s6 + $0x19d0] sm:$0xff] }
 0x199   :  { %15869 = vst [vmem:[#allocation806_spill] sm:$0xff] %v11646_v22  ;;  %15870 = vst [vmem:[#allocation807_spill] sm:$0xff] %v11651_v20  ;;  %v11656_v26 = vld [vmem:[%s15065_s6 + $0x19d8] sm:$0xff]  ;;  %v11661_v27 = vld [vmem:[%s15065_s6 + $0x19e0] sm:$0xff] }
 0x19a   :  { %15871 = vst [vmem:[#allocation808_spill] sm:$0xff] %v11656_v26  ;;  %15872 = vst [vmem:[#allocation809_spill] sm:$0xff] %v11661_v27  ;;  %v11666_v23 = vld [vmem:[%s15065_s6 + $0x19e8] sm:$0xff]  ;;  %v11671_v22 = vld [vmem:[%s15065_s6 + $0x19f0] sm:$0xff] }
 0x19b   :  { %15873 = vst [vmem:[#allocation810_spill] sm:$0xff] %v11666_v23  ;;  %15874 = vst [vmem:[#allocation811_spill] sm:$0xff] %v11671_v22  ;;  %v11676_v20 = vld [vmem:[%s15065_s6 + $0x19f8] sm:$0xff]  ;;  %v11681_v26 = vld [vmem:[%s15065_s6 + $0x1a00] sm:$0xff] }
 0x19c   :  { %15875 = vst [vmem:[#allocation812_spill] sm:$0xff] %v11676_v20  ;;  %15876 = vst [vmem:[#allocation813_spill] sm:$0xff] %v11681_v26  ;;  %v11686_v27 = vld [vmem:[%s15065_s6 + $0x1a08] sm:$0xff]  ;;  %v11691_v23 = vld [vmem:[%s15065_s6 + $0x1a10] sm:$0xff] }
 0x19d   :  { %15877 = vst [vmem:[#allocation814_spill] sm:$0xff] %v11686_v27  ;;  %15878 = vst [vmem:[#allocation815_spill] sm:$0xff] %v11691_v23  ;;  %v11696_v22 = vld [vmem:[%s15065_s6 + $0x1a18] sm:$0xff]  ;;  %v11701_v20 = vld [vmem:[%s15065_s6 + $0x1a20] sm:$0xff] }
 0x19e   :  { %15879 = vst [vmem:[#allocation816_spill] sm:$0xff] %v11696_v22  ;;  %15880 = vst [vmem:[#allocation817_spill] sm:$0xff] %v11701_v20  ;;  %v11706_v26 = vld [vmem:[%s15065_s6 + $0x1a28] sm:$0xff]  ;;  %v11711_v27 = vld [vmem:[%s15065_s6 + $0x1a30] sm:$0xff] }
 0x19f   :  { %15881 = vst [vmem:[#allocation818_spill] sm:$0xff] %v11706_v26  ;;  %15882 = vst [vmem:[#allocation819_spill] sm:$0xff] %v11711_v27  ;;  %v11716_v23 = vld [vmem:[%s15065_s6 + $0x1a38] sm:$0xff]  ;;  %v11721_v22 = vld [vmem:[%s15065_s6 + $0x1a40] sm:$0xff] }
 0x1a0   :  { %15883 = vst [vmem:[#allocation820_spill] sm:$0xff] %v11716_v23  ;;  %15884 = vst [vmem:[#allocation821_spill] sm:$0xff] %v11721_v22  ;;  %v11726_v20 = vld [vmem:[%s15065_s6 + $0x1a48] sm:$0xff]  ;;  %v11731_v26 = vld [vmem:[%s15065_s6 + $0x1a50] sm:$0xff] }
 0x1a1   :  { %15885 = vst [vmem:[#allocation822_spill] sm:$0xff] %v11726_v20  ;;  %15886 = vst [vmem:[#allocation823_spill] sm:$0xff] %v11731_v26  ;;  %v11736_v27 = vld [vmem:[%s15065_s6 + $0x1a58] sm:$0xff]  ;;  %v11741_v23 = vld [vmem:[%s15065_s6 + $0x1a60] sm:$0xff] }
 0x1a2   :  { %15887 = vst [vmem:[#allocation824_spill] sm:$0xff] %v11736_v27  ;;  %15888 = vst [vmem:[#allocation825_spill] sm:$0xff] %v11741_v23  ;;  %v11746_v22 = vld [vmem:[%s15065_s6 + $0x1a68] sm:$0xff]  ;;  %v11751_v20 = vld [vmem:[%s15065_s6 + $0x1a70] sm:$0xff] }
 0x1a3   :  { %15889 = vst [vmem:[#allocation826_spill] sm:$0xff] %v11746_v22  ;;  %15890 = vst [vmem:[#allocation827_spill] sm:$0xff] %v11751_v20  ;;  %v11756_v26 = vld [vmem:[%s15065_s6 + $0x1a78] sm:$0xff]  ;;  %v11761_v27 = vld [vmem:[%s15065_s6 + $0x1a80] sm:$0xff] }
 0x1a4   :  { %15891 = vst [vmem:[#allocation828_spill] sm:$0xff] %v11756_v26  ;;  %15892 = vst [vmem:[#allocation829_spill] sm:$0xff] %v11761_v27  ;;  %v11766_v23 = vld [vmem:[%s15065_s6 + $0x1a88] sm:$0xff]  ;;  %v11771_v22 = vld [vmem:[%s15065_s6 + $0x1a90] sm:$0xff] }
 0x1a5   :  { %15893 = vst [vmem:[#allocation830_spill] sm:$0xff] %v11766_v23  ;;  %15894 = vst [vmem:[#allocation831_spill] sm:$0xff] %v11771_v22  ;;  %v11776_v20 = vld [vmem:[%s15065_s6 + $0x1a98] sm:$0xff]  ;;  %v11781_v26 = vld [vmem:[%s15065_s6 + $0x1aa0] sm:$0xff] }
 0x1a6   :  { %15895 = vst [vmem:[#allocation832_spill] sm:$0xff] %v11776_v20  ;;  %15896 = vst [vmem:[#allocation833_spill] sm:$0xff] %v11781_v26  ;;  %v11786_v27 = vld [vmem:[%s15065_s6 + $0x1aa8] sm:$0xff]  ;;  %v11791_v23 = vld [vmem:[%s15065_s6 + $0x1ab0] sm:$0xff] }
 0x1a7   :  { %15897 = vst [vmem:[#allocation834_spill] sm:$0xff] %v11786_v27  ;;  %15898 = vst [vmem:[#allocation835_spill] sm:$0xff] %v11791_v23  ;;  %v11796_v22 = vld [vmem:[%s15065_s6 + $0x1ab8] sm:$0xff]  ;;  %v11801_v20 = vld [vmem:[%s15065_s6 + $0x1ac0] sm:$0xff] }
 0x1a8   :  { %15899 = vst [vmem:[#allocation836_spill] sm:$0xff] %v11796_v22  ;;  %15900 = vst [vmem:[#allocation837_spill] sm:$0xff] %v11801_v20  ;;  %v11806_v26 = vld [vmem:[%s15065_s6 + $0x1ac8] sm:$0xff]  ;;  %v11811_v27 = vld [vmem:[%s15065_s6 + $0x1ad0] sm:$0xff] }
 0x1a9   :  { %15901 = vst [vmem:[#allocation838_spill] sm:$0xff] %v11806_v26  ;;  %15902 = vst [vmem:[#allocation839_spill] sm:$0xff] %v11811_v27  ;;  %v11816_v23 = vld [vmem:[%s15065_s6 + $0x1ad8] sm:$0xff]  ;;  %v11821_v22 = vld [vmem:[%s15065_s6 + $0x1ae0] sm:$0xff] }
 0x1aa   :  { %15903 = vst [vmem:[#allocation840_spill] sm:$0xff] %v11816_v23  ;;  %15904 = vst [vmem:[#allocation841_spill] sm:$0xff] %v11821_v22  ;;  %v11826_v20 = vld [vmem:[%s15065_s6 + $0x1ae8] sm:$0xff]  ;;  %v11831_v26 = vld [vmem:[%s15065_s6 + $0x1af0] sm:$0xff] }
 0x1ab   :  { %15905 = vst [vmem:[#allocation842_spill] sm:$0xff] %v11826_v20  ;;  %15906 = vst [vmem:[#allocation843_spill] sm:$0xff] %v11831_v26  ;;  %v11836_v27 = vld [vmem:[%s15065_s6 + $0x1af8] sm:$0xff]  ;;  %v11841_v23 = vld [vmem:[%s15065_s6 + $0x1b00] sm:$0xff] }
 0x1ac   :  { %15907 = vst [vmem:[#allocation844_spill] sm:$0xff] %v11836_v27  ;;  %15908 = vst [vmem:[#allocation845_spill] sm:$0xff] %v11841_v23  ;;  %v11846_v22 = vld [vmem:[%s15065_s6 + $0x1b08] sm:$0xff]  ;;  %v11851_v20 = vld [vmem:[%s15065_s6 + $0x1b10] sm:$0xff] }
 0x1ad   :  { %15909 = vst [vmem:[#allocation846_spill] sm:$0xff] %v11846_v22  ;;  %15910 = vst [vmem:[#allocation847_spill] sm:$0xff] %v11851_v20  ;;  %v11856_v26 = vld [vmem:[%s15065_s6 + $0x1b18] sm:$0xff]  ;;  %v11861_v27 = vld [vmem:[%s15065_s6 + $0x1b20] sm:$0xff] }
 0x1ae   :  { %15911 = vst [vmem:[#allocation848_spill] sm:$0xff] %v11856_v26  ;;  %15912 = vst [vmem:[#allocation849_spill] sm:$0xff] %v11861_v27  ;;  %v11866_v23 = vld [vmem:[%s15065_s6 + $0x1b28] sm:$0xff]  ;;  %v11871_v22 = vld [vmem:[%s15065_s6 + $0x1b30] sm:$0xff] }
 0x1af   :  { %15913 = vst [vmem:[#allocation850_spill] sm:$0xff] %v11866_v23  ;;  %15914 = vst [vmem:[#allocation851_spill] sm:$0xff] %v11871_v22  ;;  %v11876_v20 = vld [vmem:[%s15065_s6 + $0x1b38] sm:$0xff]  ;;  %v11881_v26 = vld [vmem:[%s15065_s6 + $0x1b40] sm:$0xff] }
 0x1b0   :  { %15915 = vst [vmem:[#allocation852_spill] sm:$0xff] %v11876_v20  ;;  %15916 = vst [vmem:[#allocation853_spill] sm:$0xff] %v11881_v26  ;;  %v11886_v27 = vld [vmem:[%s15065_s6 + $0x1b48] sm:$0xff]  ;;  %v11891_v23 = vld [vmem:[%s15065_s6 + $0x1b50] sm:$0xff] }
 0x1b1   :  { %15917 = vst [vmem:[#allocation854_spill] sm:$0xff] %v11886_v27  ;;  %15918 = vst [vmem:[#allocation855_spill] sm:$0xff] %v11891_v23  ;;  %v11896_v22 = vld [vmem:[%s15065_s6 + $0x1b58] sm:$0xff]  ;;  %v11901_v20 = vld [vmem:[%s15065_s6 + $0x1b60] sm:$0xff] }
 0x1b2   :  { %15919 = vst [vmem:[#allocation856_spill] sm:$0xff] %v11896_v22  ;;  %15920 = vst [vmem:[#allocation857_spill] sm:$0xff] %v11901_v20  ;;  %v11906_v26 = vld [vmem:[%s15065_s6 + $0x1b68] sm:$0xff]  ;;  %v11911_v27 = vld [vmem:[%s15065_s6 + $0x1b70] sm:$0xff] }
 0x1b3   :  { %15921 = vst [vmem:[#allocation858_spill] sm:$0xff] %v11906_v26  ;;  %15922 = vst [vmem:[#allocation859_spill] sm:$0xff] %v11911_v27  ;;  %v11916_v23 = vld [vmem:[%s15065_s6 + $0x1b78] sm:$0xff]  ;;  %v11921_v22 = vld [vmem:[%s15065_s6 + $0x1b80] sm:$0xff] }
 0x1b4   :  { %15923 = vst [vmem:[#allocation860_spill] sm:$0xff] %v11916_v23  ;;  %15924 = vst [vmem:[#allocation861_spill] sm:$0xff] %v11921_v22  ;;  %v11926_v20 = vld [vmem:[%s15065_s6 + $0x1b88] sm:$0xff]  ;;  %v11931_v26 = vld [vmem:[%s15065_s6 + $0x1b90] sm:$0xff] }
 0x1b5   :  { %15925 = vst [vmem:[#allocation862_spill] sm:$0xff] %v11926_v20  ;;  %15926 = vst [vmem:[#allocation863_spill] sm:$0xff] %v11931_v26  ;;  %v11936_v27 = vld [vmem:[%s15065_s6 + $0x1b98] sm:$0xff]  ;;  %v11941_v23 = vld [vmem:[%s15065_s6 + $0x1ba0] sm:$0xff] }
 0x1b6   :  { %15927 = vst [vmem:[#allocation864_spill] sm:$0xff] %v11936_v27  ;;  %15928 = vst [vmem:[#allocation865_spill] sm:$0xff] %v11941_v23  ;;  %v11946_v22 = vld [vmem:[%s15065_s6 + $0x1ba8] sm:$0xff]  ;;  %v11951_v20 = vld [vmem:[%s15065_s6 + $0x1bb0] sm:$0xff] }
 0x1b7   :  { %15929 = vst [vmem:[#allocation866_spill] sm:$0xff] %v11946_v22  ;;  %15930 = vst [vmem:[#allocation867_spill] sm:$0xff] %v11951_v20  ;;  %v11956_v26 = vld [vmem:[%s15065_s6 + $0x1bb8] sm:$0xff]  ;;  %v11961_v27 = vld [vmem:[%s15065_s6 + $0x1bc0] sm:$0xff] }
 0x1b8   :  { %15931 = vst [vmem:[#allocation868_spill] sm:$0xff] %v11956_v26  ;;  %15932 = vst [vmem:[#allocation869_spill] sm:$0xff] %v11961_v27  ;;  %v11966_v23 = vld [vmem:[%s15065_s6 + $0x1bc8] sm:$0xff]  ;;  %v11971_v22 = vld [vmem:[%s15065_s6 + $0x1bd0] sm:$0xff] }
 0x1b9   :  { %15933 = vst [vmem:[#allocation870_spill] sm:$0xff] %v11966_v23  ;;  %15934 = vst [vmem:[#allocation871_spill] sm:$0xff] %v11971_v22  ;;  %v11976_v20 = vld [vmem:[%s15065_s6 + $0x1bd8] sm:$0xff]  ;;  %v11981_v26 = vld [vmem:[%s15065_s6 + $0x1be0] sm:$0xff] }
 0x1ba   :  { %15935 = vst [vmem:[#allocation872_spill] sm:$0xff] %v11976_v20  ;;  %15936 = vst [vmem:[#allocation873_spill] sm:$0xff] %v11981_v26  ;;  %v11986_v27 = vld [vmem:[%s15065_s6 + $0x1be8] sm:$0xff]  ;;  %v11991_v23 = vld [vmem:[%s15065_s6 + $0x1bf0] sm:$0xff] }
 0x1bb   :  { %15937 = vst [vmem:[#allocation874_spill] sm:$0xff] %v11986_v27  ;;  %15938 = vst [vmem:[#allocation875_spill] sm:$0xff] %v11991_v23  ;;  %v11996_v22 = vld [vmem:[%s15065_s6 + $0x1bf8] sm:$0xff]  ;;  %v12001_v20 = vld [vmem:[%s15065_s6 + $0x1c00] sm:$0xff] }
 0x1bc   :  { %15939 = vst [vmem:[#allocation876_spill] sm:$0xff] %v11996_v22  ;;  %15940 = vst [vmem:[#allocation877_spill] sm:$0xff] %v12001_v20  ;;  %v12006_v26 = vld [vmem:[%s15065_s6 + $0x1c08] sm:$0xff]  ;;  %v12011_v27 = vld [vmem:[%s15065_s6 + $0x1c10] sm:$0xff] }
 0x1bd   :  { %15941 = vst [vmem:[#allocation878_spill] sm:$0xff] %v12006_v26  ;;  %15942 = vst [vmem:[#allocation879_spill] sm:$0xff] %v12011_v27  ;;  %v12016_v23 = vld [vmem:[%s15065_s6 + $0x1c18] sm:$0xff]  ;;  %v12021_v22 = vld [vmem:[%s15065_s6 + $0x1c20] sm:$0xff] }
 0x1be   :  { %15943 = vst [vmem:[#allocation880_spill] sm:$0xff] %v12016_v23  ;;  %15944 = vst [vmem:[#allocation881_spill] sm:$0xff] %v12021_v22  ;;  %v12026_v20 = vld [vmem:[%s15065_s6 + $0x1c28] sm:$0xff]  ;;  %v12031_v26 = vld [vmem:[%s15065_s6 + $0x1c30] sm:$0xff] }
 0x1bf   :  { %15945 = vst [vmem:[#allocation882_spill] sm:$0xff] %v12026_v20  ;;  %15946 = vst [vmem:[#allocation883_spill] sm:$0xff] %v12031_v26  ;;  %v12036_v27 = vld [vmem:[%s15065_s6 + $0x1c38] sm:$0xff]  ;;  %v12041_v23 = vld [vmem:[%s15065_s6 + $0x1c40] sm:$0xff] }
 0x1c0   :  { %15947 = vst [vmem:[#allocation884_spill] sm:$0xff] %v12036_v27  ;;  %15948 = vst [vmem:[#allocation885_spill] sm:$0xff] %v12041_v23  ;;  %v12046_v22 = vld [vmem:[%s15065_s6 + $0x1c48] sm:$0xff]  ;;  %v12051_v20 = vld [vmem:[%s15065_s6 + $0x1c50] sm:$0xff] }
 0x1c1   :  { %15949 = vst [vmem:[#allocation886_spill] sm:$0xff] %v12046_v22  ;;  %15950 = vst [vmem:[#allocation887_spill] sm:$0xff] %v12051_v20  ;;  %v12056_v26 = vld [vmem:[%s15065_s6 + $0x1c58] sm:$0xff]  ;;  %v12061_v27 = vld [vmem:[%s15065_s6 + $0x1c60] sm:$0xff] }
 0x1c2   :  { %15951 = vst [vmem:[#allocation888_spill] sm:$0xff] %v12056_v26  ;;  %15952 = vst [vmem:[#allocation889_spill] sm:$0xff] %v12061_v27  ;;  %v12066_v23 = vld [vmem:[%s15065_s6 + $0x1c68] sm:$0xff]  ;;  %v12071_v22 = vld [vmem:[%s15065_s6 + $0x1c70] sm:$0xff] }
 0x1c3   :  { %15953 = vst [vmem:[#allocation890_spill] sm:$0xff] %v12066_v23  ;;  %15954 = vst [vmem:[#allocation891_spill] sm:$0xff] %v12071_v22  ;;  %v12076_v20 = vld [vmem:[%s15065_s6 + $0x1c78] sm:$0xff]  ;;  %v12081_v26 = vld [vmem:[%s15065_s6 + $0x1c80] sm:$0xff] }
 0x1c4   :  { %15955 = vst [vmem:[#allocation892_spill] sm:$0xff] %v12076_v20  ;;  %15956 = vst [vmem:[#allocation893_spill] sm:$0xff] %v12081_v26  ;;  %v12086_v27 = vld [vmem:[%s15065_s6 + $0x1c88] sm:$0xff]  ;;  %v12091_v23 = vld [vmem:[%s15065_s6 + $0x1c90] sm:$0xff] }
 0x1c5   :  { %15957 = vst [vmem:[#allocation894_spill] sm:$0xff] %v12086_v27  ;;  %15958 = vst [vmem:[#allocation895_spill] sm:$0xff] %v12091_v23  ;;  %v12096_v22 = vld [vmem:[%s15065_s6 + $0x1c98] sm:$0xff]  ;;  %v12101_v20 = vld [vmem:[%s15065_s6 + $0x1ca0] sm:$0xff] }
 0x1c6   :  { %15959 = vst [vmem:[#allocation896_spill] sm:$0xff] %v12096_v22  ;;  %15960 = vst [vmem:[#allocation897_spill] sm:$0xff] %v12101_v20  ;;  %v12106_v26 = vld [vmem:[%s15065_s6 + $0x1ca8] sm:$0xff]  ;;  %v12111_v27 = vld [vmem:[%s15065_s6 + $0x1cb0] sm:$0xff] }
 0x1c7   :  { %15961 = vst [vmem:[#allocation898_spill] sm:$0xff] %v12106_v26  ;;  %15962 = vst [vmem:[#allocation899_spill] sm:$0xff] %v12111_v27  ;;  %v12116_v23 = vld [vmem:[%s15065_s6 + $0x1cb8] sm:$0xff]  ;;  %v12121_v22 = vld [vmem:[%s15065_s6 + $0x1cc0] sm:$0xff] }
 0x1c8   :  { %15963 = vst [vmem:[#allocation900_spill] sm:$0xff] %v12116_v23  ;;  %15964 = vst [vmem:[#allocation901_spill] sm:$0xff] %v12121_v22  ;;  %v12126_v20 = vld [vmem:[%s15065_s6 + $0x1cc8] sm:$0xff]  ;;  %v12131_v26 = vld [vmem:[%s15065_s6 + $0x1cd0] sm:$0xff] }
 0x1c9   :  { %15965 = vst [vmem:[#allocation902_spill] sm:$0xff] %v12126_v20  ;;  %15966 = vst [vmem:[#allocation903_spill] sm:$0xff] %v12131_v26  ;;  %v12136_v27 = vld [vmem:[%s15065_s6 + $0x1cd8] sm:$0xff]  ;;  %v12141_v23 = vld [vmem:[%s15065_s6 + $0x1ce0] sm:$0xff] }
 0x1ca   :  { %15967 = vst [vmem:[#allocation904_spill] sm:$0xff] %v12136_v27  ;;  %15968 = vst [vmem:[#allocation905_spill] sm:$0xff] %v12141_v23  ;;  %v12146_v22 = vld [vmem:[%s15065_s6 + $0x1ce8] sm:$0xff]  ;;  %v12151_v20 = vld [vmem:[%s15065_s6 + $0x1cf0] sm:$0xff] }
 0x1cb   :  { %15969 = vst [vmem:[#allocation906_spill] sm:$0xff] %v12146_v22  ;;  %15970 = vst [vmem:[#allocation907_spill] sm:$0xff] %v12151_v20  ;;  %v12156_v26 = vld [vmem:[%s15065_s6 + $0x1cf8] sm:$0xff]  ;;  %v12161_v27 = vld [vmem:[%s15065_s6 + $0x1d00] sm:$0xff] }
 0x1cc   :  { %15971 = vst [vmem:[#allocation908_spill] sm:$0xff] %v12156_v26  ;;  %15972 = vst [vmem:[#allocation909_spill] sm:$0xff] %v12161_v27  ;;  %v12166_v23 = vld [vmem:[%s15065_s6 + $0x1d08] sm:$0xff]  ;;  %v12171_v22 = vld [vmem:[%s15065_s6 + $0x1d10] sm:$0xff] }
 0x1cd   :  { %15973 = vst [vmem:[#allocation910_spill] sm:$0xff] %v12166_v23  ;;  %15974 = vst [vmem:[#allocation911_spill] sm:$0xff] %v12171_v22  ;;  %v12176_v20 = vld [vmem:[%s15065_s6 + $0x1d18] sm:$0xff]  ;;  %v12181_v26 = vld [vmem:[%s15065_s6 + $0x1d20] sm:$0xff] }
 0x1ce   :  { %15975 = vst [vmem:[#allocation912_spill] sm:$0xff] %v12176_v20  ;;  %15976 = vst [vmem:[#allocation913_spill] sm:$0xff] %v12181_v26  ;;  %v12186_v27 = vld [vmem:[%s15065_s6 + $0x1d28] sm:$0xff]  ;;  %v12191_v23 = vld [vmem:[%s15065_s6 + $0x1d30] sm:$0xff] }
 0x1cf   :  { %15977 = vst [vmem:[#allocation914_spill] sm:$0xff] %v12186_v27  ;;  %15978 = vst [vmem:[#allocation915_spill] sm:$0xff] %v12191_v23  ;;  %v12196_v22 = vld [vmem:[%s15065_s6 + $0x1d38] sm:$0xff]  ;;  %v12201_v20 = vld [vmem:[%s15065_s6 + $0x1d40] sm:$0xff] }
 0x1d0   :  { %15979 = vst [vmem:[#allocation916_spill] sm:$0xff] %v12196_v22  ;;  %15980 = vst [vmem:[#allocation917_spill] sm:$0xff] %v12201_v20  ;;  %v12206_v26 = vld [vmem:[%s15065_s6 + $0x1d48] sm:$0xff]  ;;  %v12211_v27 = vld [vmem:[%s15065_s6 + $0x1d50] sm:$0xff] }
 0x1d1   :  { %15981 = vst [vmem:[#allocation918_spill] sm:$0xff] %v12206_v26  ;;  %15982 = vst [vmem:[#allocation919_spill] sm:$0xff] %v12211_v27  ;;  %v12216_v23 = vld [vmem:[%s15065_s6 + $0x1d58] sm:$0xff]  ;;  %v12221_v22 = vld [vmem:[%s15065_s6 + $0x1d60] sm:$0xff] }
 0x1d2   :  { %15983 = vst [vmem:[#allocation920_spill] sm:$0xff] %v12216_v23  ;;  %15984 = vst [vmem:[#allocation921_spill] sm:$0xff] %v12221_v22  ;;  %v12226_v20 = vld [vmem:[%s15065_s6 + $0x1d68] sm:$0xff]  ;;  %v12231_v26 = vld [vmem:[%s15065_s6 + $0x1d70] sm:$0xff] }
 0x1d3   :  { %15985 = vst [vmem:[#allocation922_spill] sm:$0xff] %v12226_v20  ;;  %15986 = vst [vmem:[#allocation923_spill] sm:$0xff] %v12231_v26  ;;  %v12236_v27 = vld [vmem:[%s15065_s6 + $0x1d78] sm:$0xff]  ;;  %v12241_v23 = vld [vmem:[%s15065_s6 + $0x1d80] sm:$0xff] }
 0x1d4   :  { %15987 = vst [vmem:[#allocation924_spill] sm:$0xff] %v12236_v27  ;;  %15988 = vst [vmem:[#allocation925_spill] sm:$0xff] %v12241_v23  ;;  %v12246_v22 = vld [vmem:[%s15065_s6 + $0x1d88] sm:$0xff]  ;;  %v12251_v20 = vld [vmem:[%s15065_s6 + $0x1d90] sm:$0xff] }
 0x1d5   :  { %15989 = vst [vmem:[#allocation926_spill] sm:$0xff] %v12246_v22  ;;  %15990 = vst [vmem:[#allocation927_spill] sm:$0xff] %v12251_v20  ;;  %v12256_v26 = vld [vmem:[%s15065_s6 + $0x1d98] sm:$0xff]  ;;  %v12261_v27 = vld [vmem:[%s15065_s6 + $0x1da0] sm:$0xff] }
 0x1d6   :  { %15991 = vst [vmem:[#allocation928_spill] sm:$0xff] %v12256_v26  ;;  %15992 = vst [vmem:[#allocation929_spill] sm:$0xff] %v12261_v27  ;;  %v12266_v23 = vld [vmem:[%s15065_s6 + $0x1da8] sm:$0xff]  ;;  %v12271_v22 = vld [vmem:[%s15065_s6 + $0x1db0] sm:$0xff] }
 0x1d7   :  { %15993 = vst [vmem:[#allocation930_spill] sm:$0xff] %v12266_v23  ;;  %15994 = vst [vmem:[#allocation931_spill] sm:$0xff] %v12271_v22  ;;  %v12276_v20 = vld [vmem:[%s15065_s6 + $0x1db8] sm:$0xff]  ;;  %v12281_v26 = vld [vmem:[%s15065_s6 + $0x1dc0] sm:$0xff] }
 0x1d8   :  { %15995 = vst [vmem:[#allocation932_spill] sm:$0xff] %v12276_v20  ;;  %15996 = vst [vmem:[#allocation933_spill] sm:$0xff] %v12281_v26  ;;  %v12286_v27 = vld [vmem:[%s15065_s6 + $0x1dc8] sm:$0xff]  ;;  %v12291_v23 = vld [vmem:[%s15065_s6 + $0x1dd0] sm:$0xff] }
 0x1d9   :  { %15997 = vst [vmem:[#allocation934_spill] sm:$0xff] %v12286_v27  ;;  %15998 = vst [vmem:[#allocation935_spill] sm:$0xff] %v12291_v23  ;;  %v12296_v22 = vld [vmem:[%s15065_s6 + $0x1dd8] sm:$0xff]  ;;  %v12301_v20 = vld [vmem:[%s15065_s6 + $0x1de0] sm:$0xff] }
 0x1da   :  { %15999 = vst [vmem:[#allocation936_spill] sm:$0xff] %v12296_v22  ;;  %16000 = vst [vmem:[#allocation937_spill] sm:$0xff] %v12301_v20  ;;  %v12306_v26 = vld [vmem:[%s15065_s6 + $0x1de8] sm:$0xff]  ;;  %v12311_v27 = vld [vmem:[%s15065_s6 + $0x1df0] sm:$0xff] }
 0x1db   :  { %16001 = vst [vmem:[#allocation938_spill] sm:$0xff] %v12306_v26  ;;  %16002 = vst [vmem:[#allocation939_spill] sm:$0xff] %v12311_v27  ;;  %v12316_v23 = vld [vmem:[%s15065_s6 + $0x1df8] sm:$0xff]  ;;  %v12321_v22 = vld [vmem:[%s15065_s6 + $0x1e00] sm:$0xff] }
 0x1dc   :  { %16003 = vst [vmem:[#allocation940_spill] sm:$0xff] %v12316_v23  ;;  %16004 = vst [vmem:[#allocation941_spill] sm:$0xff] %v12321_v22  ;;  %v12326_v20 = vld [vmem:[%s15065_s6 + $0x1e08] sm:$0xff]  ;;  %v12331_v26 = vld [vmem:[%s15065_s6 + $0x1e10] sm:$0xff] }
 0x1dd   :  { %16005 = vst [vmem:[#allocation942_spill] sm:$0xff] %v12326_v20  ;;  %16006 = vst [vmem:[#allocation943_spill] sm:$0xff] %v12331_v26  ;;  %v12336_v27 = vld [vmem:[%s15065_s6 + $0x1e18] sm:$0xff]  ;;  %v12341_v23 = vld [vmem:[%s15065_s6 + $0x1e20] sm:$0xff] }
 0x1de   :  { %16007 = vst [vmem:[#allocation944_spill] sm:$0xff] %v12336_v27  ;;  %16008 = vst [vmem:[#allocation945_spill] sm:$0xff] %v12341_v23  ;;  %v12346_v22 = vld [vmem:[%s15065_s6 + $0x1e28] sm:$0xff]  ;;  %v12351_v20 = vld [vmem:[%s15065_s6 + $0x1e30] sm:$0xff] }
 0x1df   :  { %16009 = vst [vmem:[#allocation946_spill] sm:$0xff] %v12346_v22  ;;  %16010 = vst [vmem:[#allocation947_spill] sm:$0xff] %v12351_v20  ;;  %v12356_v26 = vld [vmem:[%s15065_s6 + $0x1e38] sm:$0xff]  ;;  %v12361_v27 = vld [vmem:[%s15065_s6 + $0x1e40] sm:$0xff] }
 0x1e0   :  { %16011 = vst [vmem:[#allocation948_spill] sm:$0xff] %v12356_v26  ;;  %16012 = vst [vmem:[#allocation949_spill] sm:$0xff] %v12361_v27  ;;  %v12366_v23 = vld [vmem:[%s15065_s6 + $0x1e48] sm:$0xff]  ;;  %v12371_v22 = vld [vmem:[%s15065_s6 + $0x1e50] sm:$0xff] }
 0x1e1   :  { %16013 = vst [vmem:[#allocation950_spill] sm:$0xff] %v12366_v23  ;;  %16014 = vst [vmem:[#allocation951_spill] sm:$0xff] %v12371_v22  ;;  %v12376_v20 = vld [vmem:[%s15065_s6 + $0x1e58] sm:$0xff]  ;;  %v12381_v26 = vld [vmem:[%s15065_s6 + $0x1e60] sm:$0xff] }
 0x1e2   :  { %16015 = vst [vmem:[#allocation952_spill] sm:$0xff] %v12376_v20  ;;  %16016 = vst [vmem:[#allocation953_spill] sm:$0xff] %v12381_v26  ;;  %v12386_v27 = vld [vmem:[%s15065_s6 + $0x1e68] sm:$0xff]  ;;  %v12391_v23 = vld [vmem:[%s15065_s6 + $0x1e70] sm:$0xff] }
 0x1e3   :  { %16017 = vst [vmem:[#allocation954_spill] sm:$0xff] %v12386_v27  ;;  %16018 = vst [vmem:[#allocation955_spill] sm:$0xff] %v12391_v23  ;;  %v12396_v22 = vld [vmem:[%s15065_s6 + $0x1e78] sm:$0xff]  ;;  %v12401_v20 = vld [vmem:[%s15065_s6 + $0x1e80] sm:$0xff] }
 0x1e4   :  { %16019 = vst [vmem:[#allocation956_spill] sm:$0xff] %v12396_v22  ;;  %16020 = vst [vmem:[#allocation957_spill] sm:$0xff] %v12401_v20  ;;  %v12406_v26 = vld [vmem:[%s15065_s6 + $0x1e88] sm:$0xff]  ;;  %v12411_v27 = vld [vmem:[%s15065_s6 + $0x1e90] sm:$0xff] }
 0x1e5   :  { %16021 = vst [vmem:[#allocation958_spill] sm:$0xff] %v12406_v26  ;;  %16022 = vst [vmem:[#allocation959_spill] sm:$0xff] %v12411_v27  ;;  %v12416_v23 = vld [vmem:[%s15065_s6 + $0x1e98] sm:$0xff]  ;;  %v12421_v22 = vld [vmem:[%s15065_s6 + $0x1ea0] sm:$0xff] }
 0x1e6   :  { %16023 = vst [vmem:[#allocation960_spill] sm:$0xff] %v12416_v23  ;;  %16024 = vst [vmem:[#allocation961_spill] sm:$0xff] %v12421_v22  ;;  %v12426_v20 = vld [vmem:[%s15065_s6 + $0x1ea8] sm:$0xff]  ;;  %v12431_v26 = vld [vmem:[%s15065_s6 + $0x1eb0] sm:$0xff] }
 0x1e7   :  { %16025 = vst [vmem:[#allocation962_spill] sm:$0xff] %v12426_v20  ;;  %16026 = vst [vmem:[#allocation963_spill] sm:$0xff] %v12431_v26  ;;  %v12436_v27 = vld [vmem:[%s15065_s6 + $0x1eb8] sm:$0xff]  ;;  %v12441_v23 = vld [vmem:[%s15065_s6 + $0x1ec0] sm:$0xff] }
 0x1e8   :  { %16027 = vst [vmem:[#allocation964_spill] sm:$0xff] %v12436_v27  ;;  %16028 = vst [vmem:[#allocation965_spill] sm:$0xff] %v12441_v23  ;;  %v12446_v22 = vld [vmem:[%s15065_s6 + $0x1ec8] sm:$0xff]  ;;  %v12451_v20 = vld [vmem:[%s15065_s6 + $0x1ed0] sm:$0xff] }
 0x1e9   :  { %16029 = vst [vmem:[#allocation966_spill] sm:$0xff] %v12446_v22  ;;  %16030 = vst [vmem:[#allocation967_spill] sm:$0xff] %v12451_v20  ;;  %v12456_v26 = vld [vmem:[%s15065_s6 + $0x1ed8] sm:$0xff]  ;;  %v12461_v27 = vld [vmem:[%s15065_s6 + $0x1ee0] sm:$0xff] }
 0x1ea   :  { %16031 = vst [vmem:[#allocation968_spill] sm:$0xff] %v12456_v26  ;;  %16032 = vst [vmem:[#allocation969_spill] sm:$0xff] %v12461_v27  ;;  %v12466_v23 = vld [vmem:[%s15065_s6 + $0x1ee8] sm:$0xff]  ;;  %v12471_v22 = vld [vmem:[%s15065_s6 + $0x1ef0] sm:$0xff] }
 0x1eb   :  { %16033 = vst [vmem:[#allocation970_spill] sm:$0xff] %v12466_v23  ;;  %16034 = vst [vmem:[#allocation971_spill] sm:$0xff] %v12471_v22  ;;  %v12476_v20 = vld [vmem:[%s15065_s6 + $0x1ef8] sm:$0xff]  ;;  %v12481_v26 = vld [vmem:[%s15065_s6 + $0x1f00] sm:$0xff] }
 0x1ec   :  { %16035 = vst [vmem:[#allocation972_spill] sm:$0xff] %v12476_v20  ;;  %16036 = vst [vmem:[#allocation973_spill] sm:$0xff] %v12481_v26  ;;  %v12486_v27 = vld [vmem:[%s15065_s6 + $0x1f08] sm:$0xff]  ;;  %v12491_v23 = vld [vmem:[%s15065_s6 + $0x1f10] sm:$0xff] }
 0x1ed   :  { %16037 = vst [vmem:[#allocation974_spill] sm:$0xff] %v12486_v27  ;;  %16038 = vst [vmem:[#allocation975_spill] sm:$0xff] %v12491_v23  ;;  %v12496_v22 = vld [vmem:[%s15065_s6 + $0x1f18] sm:$0xff]  ;;  %v12501_v20 = vld [vmem:[%s15065_s6 + $0x1f20] sm:$0xff] }
 0x1ee   :  { %16039 = vst [vmem:[#allocation976_spill] sm:$0xff] %v12496_v22  ;;  %16040 = vst [vmem:[#allocation977_spill] sm:$0xff] %v12501_v20  ;;  %v12506_v26 = vld [vmem:[%s15065_s6 + $0x1f28] sm:$0xff]  ;;  %v12511_v27 = vld [vmem:[%s15065_s6 + $0x1f30] sm:$0xff] }
 0x1ef   :  { %16041 = vst [vmem:[#allocation978_spill] sm:$0xff] %v12506_v26  ;;  %16042 = vst [vmem:[#allocation979_spill] sm:$0xff] %v12511_v27  ;;  %v12516_v23 = vld [vmem:[%s15065_s6 + $0x1f38] sm:$0xff]  ;;  %v12521_v22 = vld [vmem:[%s15065_s6 + $0x1f40] sm:$0xff] }
 0x1f0   :  { %16043 = vst [vmem:[#allocation980_spill] sm:$0xff] %v12516_v23  ;;  %16044 = vst [vmem:[#allocation981_spill] sm:$0xff] %v12521_v22  ;;  %v12526_v20 = vld [vmem:[%s15065_s6 + $0x1f48] sm:$0xff]  ;;  %v12531_v26 = vld [vmem:[%s15065_s6 + $0x1f50] sm:$0xff] }
 0x1f1   :  { %16045 = vst [vmem:[#allocation982_spill] sm:$0xff] %v12526_v20  ;;  %16046 = vst [vmem:[#allocation983_spill] sm:$0xff] %v12531_v26  ;;  %v12536_v27 = vld [vmem:[%s15065_s6 + $0x1f58] sm:$0xff]  ;;  %v12541_v23 = vld [vmem:[%s15065_s6 + $0x1f60] sm:$0xff] }
 0x1f2   :  { %16047 = vst [vmem:[#allocation984_spill] sm:$0xff] %v12536_v27  ;;  %16048 = vst [vmem:[#allocation985_spill] sm:$0xff] %v12541_v23  ;;  %v12546_v22 = vld [vmem:[%s15065_s6 + $0x1f68] sm:$0xff]  ;;  %v12551_v20 = vld [vmem:[%s15065_s6 + $0x1f70] sm:$0xff] }
 0x1f3   :  { %16049 = vst [vmem:[#allocation986_spill] sm:$0xff] %v12546_v22  ;;  %16050 = vst [vmem:[#allocation987_spill] sm:$0xff] %v12551_v20  ;;  %v12556_v26 = vld [vmem:[%s15065_s6 + $0x1f78] sm:$0xff]  ;;  %v12561_v27 = vld [vmem:[%s15065_s6 + $0x1f80] sm:$0xff] }
 0x1f4   :  { %16051 = vst [vmem:[#allocation988_spill] sm:$0xff] %v12556_v26  ;;  %16052 = vst [vmem:[#allocation989_spill] sm:$0xff] %v12561_v27  ;;  %v12566_v23 = vld [vmem:[%s15065_s6 + $0x1f88] sm:$0xff]  ;;  %v12571_v22 = vld [vmem:[%s15065_s6 + $0x1f90] sm:$0xff] }
 0x1f5   :  { %16053 = vst [vmem:[#allocation990_spill] sm:$0xff] %v12566_v23  ;;  %16054 = vst [vmem:[#allocation991_spill] sm:$0xff] %v12571_v22  ;;  %v12576_v20 = vld [vmem:[%s15065_s6 + $0x1f98] sm:$0xff]  ;;  %v12581_v26 = vld [vmem:[%s15065_s6 + $0x1fa0] sm:$0xff] }
 0x1f6   :  { %16055 = vst [vmem:[#allocation992_spill] sm:$0xff] %v12576_v20  ;;  %16056 = vst [vmem:[#allocation993_spill] sm:$0xff] %v12581_v26  ;;  %v12586_v27 = vld [vmem:[%s15065_s6 + $0x1fa8] sm:$0xff]  ;;  %v12591_v23 = vld [vmem:[%s15065_s6 + $0x1fb0] sm:$0xff] }
 0x1f7   :  { %16057 = vst [vmem:[#allocation994_spill] sm:$0xff] %v12586_v27  ;;  %16058 = vst [vmem:[#allocation995_spill] sm:$0xff] %v12591_v23  ;;  %v12596_v22 = vld [vmem:[%s15065_s6 + $0x1fb8] sm:$0xff]  ;;  %v12601_v20 = vld [vmem:[%s15065_s6 + $0x1fc0] sm:$0xff] }
 0x1f8   :  { %16059 = vst [vmem:[#allocation996_spill] sm:$0xff] %v12596_v22  ;;  %16060 = vst [vmem:[#allocation997_spill] sm:$0xff] %v12601_v20  ;;  %v12606_v26 = vld [vmem:[%s15065_s6 + $0x1fc8] sm:$0xff]  ;;  %v12611_v27 = vld [vmem:[%s15065_s6 + $0x1fd0] sm:$0xff] }
 0x1f9   :  { %16061 = vst [vmem:[#allocation998_spill] sm:$0xff] %v12606_v26  ;;  %16062 = vst [vmem:[#allocation999_spill] sm:$0xff] %v12611_v27  ;;  %v12616_v23 = vld [vmem:[%s15065_s6 + $0x1fd8] sm:$0xff]  ;;  %v12621_v22 = vld [vmem:[%s15065_s6 + $0x1fe0] sm:$0xff] }
 0x1fa   :  { %16063 = vst [vmem:[#allocation1000_spill] sm:$0xff] %v12616_v23  ;;  %16064 = vst [vmem:[#allocation1001_spill] sm:$0xff] %v12621_v22  ;;  %v12626_v20 = vld [vmem:[%s15065_s6 + $0x1fe8] sm:$0xff]  ;;  %v12631_v26 = vld [vmem:[%s15065_s6 + $0x1ff0] sm:$0xff] }
 0x1fb   :  { %16065 = vst [vmem:[#allocation1002_spill] sm:$0xff] %v12626_v20  ;;  %16066 = vst [vmem:[#allocation1003_spill] sm:$0xff] %v12631_v26  ;;  %v12636_v27 = vld [vmem:[%s15065_s6 + $0x1ff8] sm:$0xff] }
 0x1fc   :  { %16067 = vst [vmem:[#allocation1004_spill] sm:$0xff] %v12636_v27 }
 0x1fd   :  { %2121 = vsyncadd [#allocation3], 131072  ;;  %v2127_v22 = vld [vmem:[%s15059_s0 + $0x8] sm:$0xff]  ;;  %v2136_v23 = vld [vmem:[%s15059_s0 + $0x50] sm:$0xff]  ;;  %s7460_s26 = smov 117   ;;  %vm2912_vm0 = vcmask 1039360  }
 0x1fe   :  { %v5850_v20 = vpack.c.bf16 %v2136_v23, %v2127_v22  ;;  %v2126_v21 = vld [vmem:[%s15059_s0] sm:$0xff]  ;;  %v2135_v26 = vld [vmem:[%s15059_s0 + $0x48] sm:$0xff]  ;;  %v2145_v27 = vld [vmem:[%s15059_s0 + $0x98] sm:$0xff]  ;;  %vm2993_vm1 = vcmask 957440   ;;  %vm3030_vm2 = vcmask 949248   ;;  %vm3400_vm3 = vcmask 1040384  }
 0x1ff   :  { %v5852_v25 = vpack.c.bf16 %v2135_v26, %v2126_v21  ;;  %v2154_v24 = vld [vmem:[%s15059_s0 + $0xe0] sm:$0xff]  ;;  %v2144_v22 = vld [vmem:[%s15059_s0 + $0x90] sm:$0xff]  ;;  %v2153_v23 = vld [vmem:[%s15059_s0 + $0xd8] sm:$0xff] }
 0x200   :  { %5851 = vmatprep.subr.bf16.mxu1 %v5850_v20  ;;  %v5854_v18 = vpack.c.bf16 %v2154_v24, %v2145_v27  ;;  %v2163_v16 = vld [vmem:[%s15059_s0 + $0x128] sm:$0xff]  ;;  %v2172_v21 = vld [vmem:[%s15059_s0 + $0x170] sm:$0xff]  ;;  %v5856_v26 = vpack.c.bf16 %v2153_v23, %v2144_v22  ;;  %v2162_v30 = vld [vmem:[%s15059_s0 + $0x120] sm:$0xff] }
 0x201   :  { %5853 = vmatpush1.bf16.msra.mxu1 %v5852_v25  ;;  %v5858_v31 = vpack.c.bf16 %v2172_v21, %v2163_v16  ;;  %v2171_v20 = vld [vmem:[%s15059_s0 + $0x168] sm:$0xff]  ;;  %v2181_v24 = vld [vmem:[%s15059_s0 + $0x1b8] sm:$0xff]  ;;  %v2190_v27 = vld [vmem:[%s15059_s0 + $0x200] sm:$0xff] }
 0x202   :  { %5855 = vmatprep.subr.bf16.mxu1 %v5854_v18  ;;  %v5860_v25 = vpack.c.bf16 %v2171_v20, %v2162_v30  ;;  %v5862_v16 = vpack.c.bf16 %v2190_v27, %v2181_v24  ;;  %v2180_v18 = vld [vmem:[%s15059_s0 + $0x1b0] sm:$0xff]  ;;  %v2189_v22 = vld [vmem:[%s15059_s0 + $0x1f8] sm:$0xff]  ;;  %v2199_v23 = vld [vmem:[%s15059_s0 + $0x248] sm:$0xff] }
 0x203   :  { %v2208_v21 = vld [vmem:[%s15059_s0 + $0x290] sm:$0xff]  ;;  %v5864_v30 = vpack.c.bf16 %v2189_v22, %v2180_v18  ;;  %v2207_v20 = vld [vmem:[%s15059_s0 + $0x288] sm:$0xff]  ;;  %v2217_v24 = vld [vmem:[%s15059_s0 + $0x2d8] sm:$0xff] }
 0x204   :  { %v2226_v27 = vld [vmem:[%s15059_s0 + $0x320] sm:$0xff]  ;;  %v2216_v18 = vld [vmem:[%s15059_s0 + $0x2d0] sm:$0xff]  ;;  %v2225_v22 = vld [vmem:[%s15059_s0 + $0x318] sm:$0xff] }
 0x205   :  { %5857 = vmatpush1.bf16.msra.mxu1 %v5856_v26  ;;  %v2198_v26 = vld [vmem:[%s15059_s0 + $0x240] sm:$0xff]  ;;  %v2271_v19 = vld [vmem:[%s15059_s0 + $0x488] sm:$0xff]  ;;  %v2173_v17 = vld [vmem:[%s15059_s0 + $0x178] sm:$0xff] }
 0x206   :  { %5859 = vmatprep.subr.bf16.mxu1 %v5858_v31  ;;  %v5866_v31 = vpack.c.bf16 %v2208_v21, %v2199_v23  ;;  %v2235_v23 = vld [vmem:[%s15059_s0 + $0x368] sm:$0xff]  ;;  %v2244_v21 = vld [vmem:[%s15059_s0 + $0x3b0] sm:$0xff] }
 0x207   :  { %v2192_v29 = vld [vmem:[%s15059_s0 + $0x210] sm:$0xff] }
 0x208   :  { %v2228_v28 = vld [vmem:[%s15059_s0 + $0x330] sm:$0xff] }
 0x209   :  { %5861 = vmatpush1.bf16.msra.mxu1 %v5860_v25  ;;  %v5868_v25 = vpack.c.bf16 %v2207_v20, %v2198_v26  ;;  %v2234_v26 = vld [vmem:[%s15059_s0 + $0x360] sm:$0xff]  ;;  %v2243_v20 = vld [vmem:[%s15059_s0 + $0x3a8] sm:$0xff]  ;;  %v2404_v12 = vld [vmem:[%s15059_s0 + $0x8b0] sm:$0xff] }
 0x20a   :  { %5863 = vmatprep.subr.bf16.mxu1 %v5862_v16  ;;  %v5870_v16 = vpack.c.bf16 %v2226_v27, %v2217_v24  ;;  %v12725_v24 = vld [vmem:[%s15060_s1 + $0x8] sm:$0xff]  ;;  %v7458_v27 = vmov 0  }
 0x20b   :  { %7295 = vset.pattern.permute.xlu0 %v7458_v27  ;;  %2490 = vmatprep.mubr.f32.mxu1 %v12725_v24 }
 0x20c   :  { %7431 = vset.pattern.permute.xlu1 %v7458_v27  ;;  %v2280_v27 = vld [vmem:[%s15059_s0 + $0x4d0] sm:$0xff] }
 0x20d   :  { %5865 = vmatpush1.bf16.msra.mxu1 %v5864_v30  ;;  %v5872_v30 = vpack.c.bf16 %v2225_v22, %v2216_v18  ;;  %v5876_v18 = vpack.c.bf16 %v2243_v20, %v2234_v26  ;;  %v2270_v26 = vld [vmem:[%s15059_s0 + $0x480] sm:$0xff]  ;;  %v2279_v20 = vld [vmem:[%s15059_s0 + $0x4c8] sm:$0xff] }
 0x20e   :  { %5867 = vmatprep.subr.bf16.mxu1 %v5866_v31  ;;  %v5874_v31 = vpack.c.bf16 %v2244_v21, %v2235_v23  ;;  %v2252_v23 = vld [vmem:[%s15059_s0 + $0x3f0] sm:$0xff]  ;;  %v2261_v21 = vld [vmem:[%s15059_s0 + $0x438] sm:$0xff] }
 0x211   :  { %5869 = vmatpush1.bf16.msra.mxu1 %v5868_v25  ;;  %v2253_v25 = vld [vmem:[%s15059_s0 + $0x3f8] sm:$0xff] }
 0x212   :  { %5871 = vmatprep.subr.bf16.mxu1 %v5870_v16  ;;  %v2262_v16 = vld [vmem:[%s15059_s0 + $0x440] sm:$0xff] }
 0x213   :  { %v5878_v22 = vpack.c.bf16 %v2262_v16, %v2253_v25  ;;  %v2289_v25 = vld [vmem:[%s15059_s0 + $0x518] sm:$0xff]  ;;  %v2298_v16 = vld [vmem:[%s15059_s0 + $0x560] sm:$0xff] }
 0x215   :  { %5873 = vmatpush1.bf16.msra.mxu1 %v5872_v30  ;;  %v5880_v30 = vpack.c.bf16 %v2261_v21, %v2252_v23  ;;  %v2297_v23 = vld [vmem:[%s15059_s0 + $0x558] sm:$0xff]  ;;  %v2307_v21 = vld [vmem:[%s15059_s0 + $0x5a8] sm:$0xff] }
 0x216   :  { %5875 = vmatprep.subr.bf16.mxu1 %v5874_v31  ;;  %v5882_v31 = vpack.c.bf16 %v2280_v27, %v2271_v19  ;;  %v5886_v19 = vpack.c.bf16 %v2298_v16, %v2289_v25  ;;  %v2316_v27 = vld [vmem:[%s15059_s0 + $0x5f0] sm:$0xff]  ;;  %v2325_v25 = vld [vmem:[%s15059_s0 + $0x638] sm:$0xff]  ;;  %v2334_v16 = vld [vmem:[%s15059_s0 + $0x680] sm:$0xff] }
 0x219   :  { %5877 = vmatpush1.bf16.msra.mxu1 %v5876_v18  ;;  %v5884_v18 = vpack.c.bf16 %v2279_v20, %v2270_v26  ;;  %v2306_v26 = vld [vmem:[%s15059_s0 + $0x5a0] sm:$0xff]  ;;  %v2315_v20 = vld [vmem:[%s15059_s0 + $0x5e8] sm:$0xff] }
 0x21a   :  { %5879 = vmatprep.subr.bf16.mxu1 %v5878_v22  ;;  %v2288_v22 = vld [vmem:[%s15059_s0 + $0x510] sm:$0xff] }
 0x21d   :  { %5881 = vmatpush1.bf16.msra.mxu1 %v5880_v30  ;;  %v5888_v30 = vpack.c.bf16 %v2297_v23, %v2288_v22  ;;  %v2324_v22 = vld [vmem:[%s15059_s0 + $0x630] sm:$0xff]  ;;  %v2333_v23 = vld [vmem:[%s15059_s0 + $0x678] sm:$0xff] }
 0x21e   :  { %5883 = vmatprep.subr.bf16.mxu1 %v5882_v31  ;;  %v5890_v31 = vpack.c.bf16 %v2316_v27, %v2307_v21  ;;  %v2343_v21 = vld [vmem:[%s15059_s0 + $0x6c8] sm:$0xff]  ;;  %v2352_v27 = vld [vmem:[%s15059_s0 + $0x710] sm:$0xff] }
 0x221   :  { %5885 = vmatpush1.bf16.msra.mxu1 %v5884_v18  ;;  %v5892_v18 = vpack.c.bf16 %v2315_v20, %v2306_v26  ;;  %v2342_v26 = vld [vmem:[%s15059_s0 + $0x6c0] sm:$0xff]  ;;  %v2351_v20 = vld [vmem:[%s15059_s0 + $0x708] sm:$0xff] }
 0x222   :  { %5887 = vmatprep.subr.bf16.mxu1 %v5886_v19  ;;  %v5894_v19 = vpack.c.bf16 %v2334_v16, %v2325_v25  ;;  %v2361_v25 = vld [vmem:[%s15059_s0 + $0x758] sm:$0xff]  ;;  %v2370_v16 = vld [vmem:[%s15059_s0 + $0x7a0] sm:$0xff] }
 0x225   :  { %5889 = vmatpush1.bf16.msra.mxu1 %v5888_v30  ;;  %v5896_v30 = vpack.c.bf16 %v2333_v23, %v2324_v22  ;;  %v2360_v22 = vld [vmem:[%s15059_s0 + $0x750] sm:$0xff]  ;;  %v2369_v23 = vld [vmem:[%s15059_s0 + $0x798] sm:$0xff] }
 0x226   :  { %5891 = vmatprep.subr.bf16.mxu1 %v5890_v31  ;;  %v5898_v31 = vpack.c.bf16 %v2352_v27, %v2343_v21  ;;  %v2379_v21 = vld [vmem:[%s15059_s0 + $0x7e8] sm:$0xff]  ;;  %v2388_v27 = vld [vmem:[%s15059_s0 + $0x830] sm:$0xff] }
 0x229   :  { %5893 = vmatpush1.bf16.msra.mxu1 %v5892_v18  ;;  %v5900_v18 = vpack.c.bf16 %v2351_v20, %v2342_v26  ;;  %v5906_v26 = vpack.c.bf16 %v2388_v27, %v2379_v21  ;;  %v2378_v20 = vld [vmem:[%s15059_s0 + $0x7e0] sm:$0xff]  ;;  %v2396_v21 = vld [vmem:[%s15059_s0 + $0x870] sm:$0xff]  ;;  %v2405_v27 = vld [vmem:[%s15059_s0 + $0x8b8] sm:$0xff] }
 0x22a   :  { %5895 = vmatprep.subr.bf16.mxu1 %v5894_v19  ;;  %v5902_v19 = vpack.c.bf16 %v2370_v16, %v2361_v25  ;;  %v2387_v25 = vld [vmem:[%s15059_s0 + $0x828] sm:$0xff] }
 0x22b   :  { %v2415_v16 = vld [vmem:[%s15061_s2 + $0x8] sm:$0xff] }
 0x22d   :  { %5897 = vmatpush1.bf16.msra.mxu1 %v5896_v30  ;;  %v2414_v30 = vld [vmem:[%s15061_s2] sm:$0xff] }
 0x22e   :  { %5899 = vmatprep.subr.bf16.mxu1 %v5898_v31  ;;  %v5904_v31 = vpack.c.bf16 %v2369_v23, %v2360_v22  ;;  %2418 = vperm.xlu0 %7295, %v2414_v30   ;;  %v5908_v22 = vpack.c.bf16 %v2387_v25, %v2378_v20  ;;  %v2129_v30 = vld [vmem:[%s15059_s0 + $0x18] sm:$0xff]  ;;  %v5912_v20 = vpack.c.bf16 %v2405_v27, %v2396_v21  ;;  %v2128_v25 = vld [vmem:[%s15059_s0 + $0x10] sm:$0xff] }
 0x22f   :  { %v12868_v21 = vld [vmem:[%s15060_s1 + $0x18] sm:$0xff] }
 0x231   :  { %5901 = vmatpush1.bf16.msra.mxu1 %v5900_v18  ;;  %v2397_v18 = vld [vmem:[%s15059_s0 + $0x878] sm:$0xff] }
 0x232   :  { %5903 = vmatprep.subr.bf16.mxu1 %v5902_v19  ;;  %v2406_v19 = vld [vmem:[%s15059_s0 + $0x8c0] sm:$0xff]  ;;  %2423 = vperm.xlu0 %7295, %v2415_v16   ;;  %v2137_v16 = vld [vmem:[%s15059_s0 + $0x58] sm:$0xff] }
 0x233   :  { %v5910_v23 = vpack.c.bf16 %v2406_v19, %v2397_v18  ;;  %v2147_v18 = vld [vmem:[%s15059_s0 + $0xa8] sm:$0xff]  ;;  %v2156_v19 = vld [vmem:[%s15059_s0 + $0xf0] sm:$0xff] }
 0x234   :  { %v5918_v27 = vpack.c.bf16 %v2156_v19, %v2147_v18  ;;  %v2164_v19 = vld [vmem:[%s15059_s0 + $0x130] sm:$0xff] }
 0x235   :  { %5905 = vmatpush1.bf16.msra.mxu1 %v5904_v31  ;;  %v2138_v31 = vld [vmem:[%s15059_s0 + $0x60] sm:$0xff] }
 0x236   :  { %5907 = vmatprep.subr.bf16.mxu1 %v5906_v26  ;;  %v5914_v26 = vpack.c.bf16 %v2138_v31, %v2129_v30  ;;  %v2146_v30 = vld [vmem:[%s15059_s0 + $0xa0] sm:$0xff]  ;;  %v2155_v31 = vld [vmem:[%s15059_s0 + $0xe8] sm:$0xff] }
 0x239   :  { %5909 = vmatpush1.bf16.msra.mxu1 %v5908_v22  ;;  %v12863_v22 = vld [vmem:[%s15060_s1] sm:$0xff] }
 0x23a   :  { %5911 = vmatprep.subr.bf16.mxu1 %v5910_v23  ;;  %v5916_v23 = vpack.c.bf16 %v2137_v16, %v2128_v25  ;;  %v12887_v25 = vld [vmem:[%s15060_s1 + $0x10] sm:$0xff]  ;;  %v5920_v16 = vpack.c.bf16 %v2155_v31, %v2146_v30  ;;  %v2182_v31 = vld [vmem:[%s15059_s0 + $0x1c0] sm:$0xff] }
 0x23d   :  { %5913 = vmatpush1.bf16.msra.mxu1 %v5912_v20  ;;  %v2165_v20 = vld [vmem:[%s15059_s0 + $0x138] sm:$0xff] }
 0x23e   :  { %5915 = vmatprep.subr.bf16.mxu1 %v5914_v26  ;;  %v2174_v26 = vld [vmem:[%s15059_s0 + $0x180] sm:$0xff] }
 0x23f   :  { %v5922_v18 = vpack.c.bf16 %v2174_v26, %v2165_v20  ;;  %v2191_v20 = vld [vmem:[%s15059_s0 + $0x208] sm:$0xff]  ;;  %v2201_v26 = vld [vmem:[%s15059_s0 + $0x258] sm:$0xff] }
 0x240   :  { %2491 = vmatmul.mubr.f32.vlgmr.msra.gmra.mrb[0].mxu1 %v12863_v22 }
 0x241   :  { %5917 = vmatpush1.bf16.msra.mxu1 %v5916_v23  ;;  %2496 = vmatprep.mubr.f32.mxu1 %v12868_v21  ;;  %v2183_v23 = vld [vmem:[%s15059_s0 + $0x1c8] sm:$0xff] }
 0x242   :  { %5919 = vmatprep.subr.bf16.mxu1 %v5918_v27  ;;  %v5924_v27 = vpack.c.bf16 %v2173_v17, %v2164_v19  ;;  %v5926_v30 = vpack.c.bf16 %v2192_v29, %v2183_v23  ;;  %v2210_v17 = vld [vmem:[%s15059_s0 + $0x2a0] sm:$0xff]  ;;  %v2209_v19 = vld [vmem:[%s15059_s0 + $0x298] sm:$0xff]  ;;  %v2219_v23 = vld [vmem:[%s15059_s0 + $0x2e8] sm:$0xff] }
 0x243   :  { %v5930_v29 = vpack.c.bf16 %v2210_v17, %v2201_v26  ;;  %v2237_v26 = vld [vmem:[%s15059_s0 + $0x378] sm:$0xff]  ;;  %v2246_v17 = vld [vmem:[%s15059_s0 + $0x3c0] sm:$0xff] }
 0x244   :  { %2497 = vmatmul.mubr.f32.gmra.mrb[2].mxu1 %v12887_v25 }
 0x245   :  { %5921 = vmatpush1.bf16.msra.mxu1 %v5920_v16  ;;  %2567 = vmatprep.mubr.f32.mxu1 %v12725_v24  ;;  %v5928_v16 = vpack.c.bf16 %v2191_v20, %v2182_v31  ;;  %v2218_v31 = vld [vmem:[%s15059_s0 + $0x2e0] sm:$0xff]  ;;  %v2227_v20 = vld [vmem:[%s15059_s0 + $0x328] sm:$0xff] }
 0x246   :  { %5923 = vmatprep.subr.bf16.mxu1 %v5922_v18  ;;  %v2200_v18 = vld [vmem:[%s15059_s0 + $0x250] sm:$0xff] }
 0x249   :  { %5925 = vmatpush1.bf16.msra.mxu1 %v5924_v27  ;;  %v5932_v27 = vpack.c.bf16 %v2209_v19, %v2200_v18  ;;  %v2245_v18 = vld [vmem:[%s15059_s0 + $0x3b8] sm:$0xff]  ;;  %v2255_v19 = vld [vmem:[%s15059_s0 + $0x408] sm:$0xff] }
 0x24a   :  { %5927 = vmatprep.subr.bf16.mxu1 %v5926_v30  ;;  %v5934_v30 = vpack.c.bf16 %v2228_v28, %v2219_v23  ;;  %v5938_v28 = vpack.c.bf16 %v2246_v17, %v2237_v26  ;;  %v2264_v23 = vld [vmem:[%s15059_s0 + $0x450] sm:$0xff]  ;;  %v2273_v26 = vld [vmem:[%s15059_s0 + $0x498] sm:$0xff]  ;;  %v2282_v17 = vld [vmem:[%s15059_s0 + $0x4e0] sm:$0xff] }
 0x24d   :  { %5929 = vmatpush1.bf16.msra.mxu1 %v5928_v16  ;;  %v5936_v16 = vpack.c.bf16 %v2227_v20, %v2218_v31  ;;  %v2254_v31 = vld [vmem:[%s15059_s0 + $0x400] sm:$0xff]  ;;  %v2263_v20 = vld [vmem:[%s15059_s0 + $0x448] sm:$0xff] }
 0x24e   :  { %5931 = vmatprep.subr.bf16.mxu1 %v5930_v29  ;;  %v2236_v29 = vld [vmem:[%s15059_s0 + $0x370] sm:$0xff] }
 0x251   :  { %5933 = vmatpush1.bf16.msra.mxu1 %v5932_v27  ;;  %v5940_v27 = vpack.c.bf16 %v2245_v18, %v2236_v29  ;;  %v2272_v29 = vld [vmem:[%s15059_s0 + $0x490] sm:$0xff]  ;;  %v2281_v18 = vld [vmem:[%s15059_s0 + $0x4d8] sm:$0xff] }
 0x252   :  { %5935 = vmatprep.subr.bf16.mxu1 %v5934_v30  ;;  %v5942_v30 = vpack.c.bf16 %v2264_v23, %v2255_v19  ;;  %v2291_v19 = vld [vmem:[%s15059_s0 + $0x528] sm:$0xff]  ;;  %v2300_v23 = vld [vmem:[%s15059_s0 + $0x570] sm:$0xff] }
 0x255   :  { %5937 = vmatpush1.bf16.msra.mxu1 %v5936_v16  ;;  %v5944_v16 = vpack.c.bf16 %v2263_v20, %v2254_v31  ;;  %v2290_v31 = vld [vmem:[%s15059_s0 + $0x520] sm:$0xff]  ;;  %v2299_v20 = vld [vmem:[%s15059_s0 + $0x568] sm:$0xff] }
 0x256   :  { %5939 = vmatprep.subr.bf16.mxu1 %v5938_v28  ;;  %v5946_v28 = vpack.c.bf16 %v2282_v17, %v2273_v26  ;;  %v2309_v26 = vld [vmem:[%s15059_s0 + $0x5b8] sm:$0xff]  ;;  %v2318_v17 = vld [vmem:[%s15059_s0 + $0x600] sm:$0xff] }
 0x259   :  { %5941 = vmatpush1.bf16.msra.mxu1 %v5940_v27  ;;  %v5948_v27 = vpack.c.bf16 %v2281_v18, %v2272_v29  ;;  %v2308_v29 = vld [vmem:[%s15059_s0 + $0x5b0] sm:$0xff]  ;;  %v2317_v18 = vld [vmem:[%s15059_s0 + $0x5f8] sm:$0xff] }
 0x25a   :  { %5943 = vmatprep.subr.bf16.mxu1 %v5942_v30  ;;  %v5950_v30 = vpack.c.bf16 %v2300_v23, %v2291_v19  ;;  %v2327_v19 = vld [vmem:[%s15059_s0 + $0x648] sm:$0xff]  ;;  %v2336_v23 = vld [vmem:[%s15059_s0 + $0x690] sm:$0xff] }
 0x25d   :  { %5945 = vmatpush1.bf16.msra.mxu1 %v5944_v16  ;;  %v5952_v16 = vpack.c.bf16 %v2299_v20, %v2290_v31  ;;  %v2326_v31 = vld [vmem:[%s15059_s0 + $0x640] sm:$0xff]  ;;  %v2335_v20 = vld [vmem:[%s15059_s0 + $0x688] sm:$0xff] }
 0x25e   :  { %5947 = vmatprep.subr.bf16.mxu1 %v5946_v28  ;;  %v5954_v28 = vpack.c.bf16 %v2318_v17, %v2309_v26  ;;  %v2345_v26 = vld [vmem:[%s15059_s0 + $0x6d8] sm:$0xff]  ;;  %v2354_v17 = vld [vmem:[%s15059_s0 + $0x720] sm:$0xff] }
 0x261   :  { %5949 = vmatpush1.bf16.msra.mxu1 %v5948_v27  ;;  %v5956_v27 = vpack.c.bf16 %v2317_v18, %v2308_v29  ;;  %v2344_v29 = vld [vmem:[%s15059_s0 + $0x6d0] sm:$0xff]  ;;  %v2353_v18 = vld [vmem:[%s15059_s0 + $0x718] sm:$0xff] }
 0x262   :  { %5951 = vmatprep.subr.bf16.mxu1 %v5950_v30  ;;  %v5958_v30 = vpack.c.bf16 %v2336_v23, %v2327_v19  ;;  %v2363_v19 = vld [vmem:[%s15059_s0 + $0x768] sm:$0xff]  ;;  %v2372_v23 = vld [vmem:[%s15059_s0 + $0x7b0] sm:$0xff] }
 0x265   :  { %5953 = vmatpush1.bf16.msra.mxu1 %v5952_v16  ;;  %v5960_v16 = vpack.c.bf16 %v2335_v20, %v2326_v31  ;;  %v2362_v31 = vld [vmem:[%s15059_s0 + $0x760] sm:$0xff]  ;;  %v2371_v20 = vld [vmem:[%s15059_s0 + $0x7a8] sm:$0xff] }
 0x266   :  { %5955 = vmatprep.subr.bf16.mxu1 %v5954_v28  ;;  %v5962_v28 = vpack.c.bf16 %v2354_v17, %v2345_v26  ;;  %v2381_v26 = vld [vmem:[%s15059_s0 + $0x7f8] sm:$0xff]  ;;  %v2390_v17 = vld [vmem:[%s15059_s0 + $0x840] sm:$0xff] }
 0x269   :  { %5957 = vmatpush1.bf16.msra.mxu1 %v5956_v27  ;;  %v5964_v27 = vpack.c.bf16 %v2353_v18, %v2344_v29  ;;  %v2380_v29 = vld [vmem:[%s15059_s0 + $0x7f0] sm:$0xff]  ;;  %v2389_v18 = vld [vmem:[%s15059_s0 + $0x838] sm:$0xff] }
 0x26a   :  { %5959 = vmatprep.subr.bf16.mxu1 %v5958_v30  ;;  %v5966_v30 = vpack.c.bf16 %v2372_v23, %v2363_v19  ;;  %v2399_v19 = vld [vmem:[%s15059_s0 + $0x888] sm:$0xff]  ;;  %v2408_v23 = vld [vmem:[%s15059_s0 + $0x8d0] sm:$0xff] }
 0x26d   :  { %5961 = vmatpush1.bf16.msra.mxu1 %v5960_v16  ;;  %v5968_v16 = vpack.c.bf16 %v2371_v20, %v2362_v31  ;;  %v2398_v31 = vld [vmem:[%s15059_s0 + $0x880] sm:$0xff]  ;;  %v2407_v20 = vld [vmem:[%s15059_s0 + $0x8c8] sm:$0xff] }
 0x26e   :  { %5963 = vmatprep.subr.bf16.mxu1 %v5962_v28  ;;  %v5970_v28 = vpack.c.bf16 %v2390_v17, %v2381_v26  ;;  %v2131_v26 = vld [vmem:[%s15059_s0 + $0x28] sm:$0xff]  ;;  %v2140_v17 = vld [vmem:[%s15059_s0 + $0x70] sm:$0xff] }
 0x271   :  { %5965 = vmatpush1.bf16.msra.mxu1 %v5964_v27  ;;  %v5972_v27 = vpack.c.bf16 %v2389_v18, %v2380_v29  ;;  %v2130_v29 = vld [vmem:[%s15059_s0 + $0x20] sm:$0xff]  ;;  %v2139_v18 = vld [vmem:[%s15059_s0 + $0x68] sm:$0xff] }
 0x272   :  { %5967 = vmatprep.subr.bf16.mxu1 %v5966_v30  ;;  %v5974_v30 = vpack.c.bf16 %v2408_v23, %v2399_v19  ;;  %v2149_v19 = vld [vmem:[%s15059_s0 + $0xb8] sm:$0xff]  ;;  %v2158_v23 = vld [vmem:[%s15059_s0 + $0x100] sm:$0xff] }
 0x275   :  { %5969 = vmatpush1.bf16.msra.mxu1 %v5968_v16  ;;  %v5976_v16 = vpack.c.bf16 %v2407_v20, %v2398_v31  ;;  %v2148_v31 = vld [vmem:[%s15059_s0 + $0xb0] sm:$0xff]  ;;  %v2157_v20 = vld [vmem:[%s15059_s0 + $0xf8] sm:$0xff] }
 0x276   :  { %5971 = vmatprep.subr.bf16.mxu1 %v5970_v28  ;;  %v5978_v28 = vpack.c.bf16 %v2140_v17, %v2131_v26  ;;  %v2167_v26 = vld [vmem:[%s15059_s0 + $0x148] sm:$0xff]  ;;  %v2176_v17 = vld [vmem:[%s15059_s0 + $0x190] sm:$0xff] }
 0x279   :  { %5973 = vmatpush1.bf16.msra.mxu1 %v5972_v27  ;;  %v5980_v27 = vpack.c.bf16 %v2139_v18, %v2130_v29  ;;  %v2166_v29 = vld [vmem:[%s15059_s0 + $0x140] sm:$0xff]  ;;  %v2175_v18 = vld [vmem:[%s15059_s0 + $0x188] sm:$0xff] }
 0x27a   :  { %5975 = vmatprep.subr.bf16.mxu1 %v5974_v30  ;;  %v5982_v30 = vpack.c.bf16 %v2158_v23, %v2149_v19  ;;  %v2185_v19 = vld [vmem:[%s15059_s0 + $0x1d8] sm:$0xff]  ;;  %v2194_v23 = vld [vmem:[%s15059_s0 + $0x220] sm:$0xff] }
 0x27d   :  { %5977 = vmatpush1.bf16.msra.mxu1 %v5976_v16  ;;  %v5984_v16 = vpack.c.bf16 %v2157_v20, %v2148_v31  ;;  %v2184_v31 = vld [vmem:[%s15059_s0 + $0x1d0] sm:$0xff]  ;;  %v2193_v20 = vld [vmem:[%s15059_s0 + $0x218] sm:$0xff] }
 0x27e   :  { %5979 = vmatprep.subr.bf16.mxu1 %v5978_v28  ;;  %v5986_v28 = vpack.c.bf16 %v2176_v17, %v2167_v26  ;;  %v2203_v26 = vld [vmem:[%s15059_s0 + $0x268] sm:$0xff]  ;;  %v2212_v17 = vld [vmem:[%s15059_s0 + $0x2b0] sm:$0xff] }
 0x280   :  { %2568 = vmatmul.mubr.f32.vlgmr.msra.gmra.mrb[4].mxu1 %v12863_v22 }
 0x281   :  { %5981 = vmatpush1.bf16.msra.mxu1 %v5980_v27  ;;  %2573 = vmatprep.mubr.f32.mxu1 %v12868_v21  ;;  %v5988_v27 = vpack.c.bf16 %v2175_v18, %v2166_v29  ;;  %v2202_v29 = vld [vmem:[%s15059_s0 + $0x260] sm:$0xff]  ;;  %v2211_v18 = vld [vmem:[%s15059_s0 + $0x2a8] sm:$0xff] }
 0x282   :  { %5983 = vmatprep.subr.bf16.mxu1 %v5982_v30  ;;  %v5990_v30 = vpack.c.bf16 %v2194_v23, %v2185_v19  ;;  %v2221_v19 = vld [vmem:[%s15059_s0 + $0x2f8] sm:$0xff]  ;;  %v2230_v23 = vld [vmem:[%s15059_s0 + $0x340] sm:$0xff] }
 0x284   :  { %2574 = vmatmul.mubr.f32.gmra.mrb[6].mxu1 %v12887_v25 }
 0x285   :  { %5985 = vmatpush1.bf16.msra.mxu1 %v5984_v16  ;;  %2644 = vmatprep.mubr.f32.mxu1 %v12725_v24  ;;  %v5992_v16 = vpack.c.bf16 %v2193_v20, %v2184_v31  ;;  %v2220_v31 = vld [vmem:[%s15059_s0 + $0x2f0] sm:$0xff]  ;;  %v2229_v20 = vld [vmem:[%s15059_s0 + $0x338] sm:$0xff] }
 0x286   :  { %5987 = vmatprep.subr.bf16.mxu1 %v5986_v28  ;;  %v5994_v28 = vpack.c.bf16 %v2212_v17, %v2203_v26  ;;  %v2239_v26 = vld [vmem:[%s15059_s0 + $0x388] sm:$0xff]  ;;  %v2248_v17 = vld [vmem:[%s15059_s0 + $0x3d0] sm:$0xff] }
 0x289   :  { %5989 = vmatpush1.bf16.msra.mxu1 %v5988_v27  ;;  %v5996_v27 = vpack.c.bf16 %v2211_v18, %v2202_v29  ;;  %v2238_v29 = vld [vmem:[%s15059_s0 + $0x380] sm:$0xff]  ;;  %v2247_v18 = vld [vmem:[%s15059_s0 + $0x3c8] sm:$0xff] }
 0x28a   :  { %5991 = vmatprep.subr.bf16.mxu1 %v5990_v30  ;;  %v5998_v30 = vpack.c.bf16 %v2230_v23, %v2221_v19  ;;  %v2257_v19 = vld [vmem:[%s15059_s0 + $0x418] sm:$0xff]  ;;  %v2266_v23 = vld [vmem:[%s15059_s0 + $0x460] sm:$0xff] }
 0x28d   :  { %5993 = vmatpush1.bf16.msra.mxu1 %v5992_v16  ;;  %v6000_v16 = vpack.c.bf16 %v2229_v20, %v2220_v31  ;;  %v2256_v31 = vld [vmem:[%s15059_s0 + $0x410] sm:$0xff]  ;;  %v2265_v20 = vld [vmem:[%s15059_s0 + $0x458] sm:$0xff] }
 0x28e   :  { %5995 = vmatprep.subr.bf16.mxu1 %v5994_v28  ;;  %v6002_v28 = vpack.c.bf16 %v2248_v17, %v2239_v26  ;;  %v2275_v26 = vld [vmem:[%s15059_s0 + $0x4a8] sm:$0xff]  ;;  %v2284_v17 = vld [vmem:[%s15059_s0 + $0x4f0] sm:$0xff] }
 0x291   :  { %5997 = vmatpush1.bf16.msra.mxu1 %v5996_v27  ;;  %v6004_v27 = vpack.c.bf16 %v2247_v18, %v2238_v29  ;;  %v2274_v29 = vld [vmem:[%s15059_s0 + $0x4a0] sm:$0xff]  ;;  %v2283_v18 = vld [vmem:[%s15059_s0 + $0x4e8] sm:$0xff] }
 0x292   :  { %5999 = vmatprep.subr.bf16.mxu1 %v5998_v30  ;;  %v6006_v30 = vpack.c.bf16 %v2266_v23, %v2257_v19  ;;  %v2293_v19 = vld [vmem:[%s15059_s0 + $0x538] sm:$0xff]  ;;  %v2302_v23 = vld [vmem:[%s15059_s0 + $0x580] sm:$0xff] }
 0x295   :  { %6001 = vmatpush1.bf16.msra.mxu1 %v6000_v16  ;;  %v6008_v16 = vpack.c.bf16 %v2265_v20, %v2256_v31  ;;  %v2292_v31 = vld [vmem:[%s15059_s0 + $0x530] sm:$0xff]  ;;  %v2301_v20 = vld [vmem:[%s15059_s0 + $0x578] sm:$0xff] }
 0x296   :  { %6003 = vmatprep.subr.bf16.mxu1 %v6002_v28  ;;  %v6010_v28 = vpack.c.bf16 %v2284_v17, %v2275_v26  ;;  %v2311_v26 = vld [vmem:[%s15059_s0 + $0x5c8] sm:$0xff]  ;;  %v2320_v17 = vld [vmem:[%s15059_s0 + $0x610] sm:$0xff] }
 0x299   :  { %6005 = vmatpush1.bf16.msra.mxu1 %v6004_v27  ;;  %v6012_v27 = vpack.c.bf16 %v2283_v18, %v2274_v29  ;;  %v2310_v29 = vld [vmem:[%s15059_s0 + $0x5c0] sm:$0xff]  ;;  %v2319_v18 = vld [vmem:[%s15059_s0 + $0x608] sm:$0xff] }
 0x29a   :  { %6007 = vmatprep.subr.bf16.mxu1 %v6006_v30  ;;  %v6014_v30 = vpack.c.bf16 %v2302_v23, %v2293_v19  ;;  %v2329_v19 = vld [vmem:[%s15059_s0 + $0x658] sm:$0xff]  ;;  %v2338_v23 = vld [vmem:[%s15059_s0 + $0x6a0] sm:$0xff] }
 0x29d   :  { %6009 = vmatpush1.bf16.msra.mxu1 %v6008_v16  ;;  %v6016_v16 = vpack.c.bf16 %v2301_v20, %v2292_v31  ;;  %v2328_v31 = vld [vmem:[%s15059_s0 + $0x650] sm:$0xff]  ;;  %v2337_v20 = vld [vmem:[%s15059_s0 + $0x698] sm:$0xff] }
 0x29e   :  { %6011 = vmatprep.subr.bf16.mxu1 %v6010_v28  ;;  %v6018_v28 = vpack.c.bf16 %v2320_v17, %v2311_v26  ;;  %v2347_v26 = vld [vmem:[%s15059_s0 + $0x6e8] sm:$0xff]  ;;  %v2356_v17 = vld [vmem:[%s15059_s0 + $0x730] sm:$0xff] }
 0x2a1   :  { %6013 = vmatpush1.bf16.msra.mxu1 %v6012_v27  ;;  %v6020_v27 = vpack.c.bf16 %v2319_v18, %v2310_v29  ;;  %v2346_v29 = vld [vmem:[%s15059_s0 + $0x6e0] sm:$0xff]  ;;  %v2355_v18 = vld [vmem:[%s15059_s0 + $0x728] sm:$0xff] }
 0x2a2   :  { %6015 = vmatprep.subr.bf16.mxu1 %v6014_v30  ;;  %v6022_v30 = vpack.c.bf16 %v2338_v23, %v2329_v19  ;;  %v2365_v19 = vld [vmem:[%s15059_s0 + $0x778] sm:$0xff]  ;;  %v2374_v23 = vld [vmem:[%s15059_s0 + $0x7c0] sm:$0xff] }
 0x2a5   :  { %6017 = vmatpush1.bf16.msra.mxu1 %v6016_v16  ;;  %v6024_v16 = vpack.c.bf16 %v2337_v20, %v2328_v31  ;;  %v2364_v31 = vld [vmem:[%s15059_s0 + $0x770] sm:$0xff]  ;;  %v2373_v20 = vld [vmem:[%s15059_s0 + $0x7b8] sm:$0xff] }
 0x2a6   :  { %6019 = vmatprep.subr.bf16.mxu1 %v6018_v28  ;;  %v6026_v28 = vpack.c.bf16 %v2356_v17, %v2347_v26  ;;  %v2383_v26 = vld [vmem:[%s15059_s0 + $0x808] sm:$0xff]  ;;  %v2392_v17 = vld [vmem:[%s15059_s0 + $0x850] sm:$0xff] }
 0x2a9   :  { %6021 = vmatpush1.bf16.msra.mxu1 %v6020_v27  ;;  %v6028_v27 = vpack.c.bf16 %v2355_v18, %v2346_v29  ;;  %v2382_v29 = vld [vmem:[%s15059_s0 + $0x800] sm:$0xff]  ;;  %v2391_v18 = vld [vmem:[%s15059_s0 + $0x848] sm:$0xff] }
 0x2aa   :  { %6023 = vmatprep.subr.bf16.mxu1 %v6022_v30  ;;  %v6030_v30 = vpack.c.bf16 %v2374_v23, %v2365_v19  ;;  %v2401_v19 = vld [vmem:[%s15059_s0 + $0x898] sm:$0xff]  ;;  %v2410_v23 = vld [vmem:[%s15059_s0 + $0x8e0] sm:$0xff] }
 0x2ad   :  { %6025 = vmatpush1.bf16.msra.mxu1 %v6024_v16  ;;  %v6032_v16 = vpack.c.bf16 %v2373_v20, %v2364_v31  ;;  %v2400_v31 = vld [vmem:[%s15059_s0 + $0x890] sm:$0xff]  ;;  %v2409_v20 = vld [vmem:[%s15059_s0 + $0x8d8] sm:$0xff] }
 0x2ae   :  { %6027 = vmatprep.subr.bf16.mxu1 %v6026_v28  ;;  %v6034_v28 = vpack.c.bf16 %v2392_v17, %v2383_v26  ;;  %v2133_v26 = vld [vmem:[%s15059_s0 + $0x38] sm:$0xff]  ;;  %v2142_v17 = vld [vmem:[%s15059_s0 + $0x80] sm:$0xff] }
 0x2b1   :  { %6029 = vmatpush1.bf16.msra.mxu1 %v6028_v27  ;;  %v6036_v27 = vpack.c.bf16 %v2391_v18, %v2382_v29  ;;  %v2132_v29 = vld [vmem:[%s15059_s0 + $0x30] sm:$0xff]  ;;  %v2141_v18 = vld [vmem:[%s15059_s0 + $0x78] sm:$0xff] }
 0x2b2   :  { %6031 = vmatprep.subr.bf16.mxu1 %v6030_v30  ;;  %v6038_v30 = vpack.c.bf16 %v2410_v23, %v2401_v19  ;;  %v2151_v19 = vld [vmem:[%s15059_s0 + $0xc8] sm:$0xff]  ;;  %v2160_v23 = vld [vmem:[%s15059_s0 + $0x110] sm:$0xff] }
 0x2b5   :  { %6033 = vmatpush1.bf16.msra.mxu1 %v6032_v16  ;;  %v6040_v16 = vpack.c.bf16 %v2409_v20, %v2400_v31  ;;  %v2150_v31 = vld [vmem:[%s15059_s0 + $0xc0] sm:$0xff]  ;;  %v2159_v20 = vld [vmem:[%s15059_s0 + $0x108] sm:$0xff] }
 0x2b6   :  { %6035 = vmatprep.subr.bf16.mxu1 %v6034_v28  ;;  %v6042_v28 = vpack.c.bf16 %v2142_v17, %v2133_v26  ;;  %v2169_v26 = vld [vmem:[%s15059_s0 + $0x158] sm:$0xff]  ;;  %v2178_v17 = vld [vmem:[%s15059_s0 + $0x1a0] sm:$0xff] }
 0x2b9   :  { %6037 = vmatpush1.bf16.msra.mxu1 %v6036_v27  ;;  %v6044_v27 = vpack.c.bf16 %v2141_v18, %v2132_v29  ;;  %v2168_v29 = vld [vmem:[%s15059_s0 + $0x150] sm:$0xff]  ;;  %v2177_v18 = vld [vmem:[%s15059_s0 + $0x198] sm:$0xff] }
 0x2ba   :  { %6039 = vmatprep.subr.bf16.mxu1 %v6038_v30  ;;  %v6046_v30 = vpack.c.bf16 %v2160_v23, %v2151_v19  ;;  %v2187_v19 = vld [vmem:[%s15059_s0 + $0x1e8] sm:$0xff]  ;;  %v2196_v23 = vld [vmem:[%s15059_s0 + $0x230] sm:$0xff] }
 0x2bd   :  { %6041 = vmatpush1.bf16.msra.mxu1 %v6040_v16  ;;  %v6048_v16 = vpack.c.bf16 %v2159_v20, %v2150_v31  ;;  %v2186_v31 = vld [vmem:[%s15059_s0 + $0x1e0] sm:$0xff]  ;;  %v2195_v20 = vld [vmem:[%s15059_s0 + $0x228] sm:$0xff] }
 0x2be   :  { %6043 = vmatprep.subr.bf16.mxu1 %v6042_v28  ;;  %v6050_v28 = vpack.c.bf16 %v2178_v17, %v2169_v26  ;;  %v2205_v26 = vld [vmem:[%s15059_s0 + $0x278] sm:$0xff]  ;;  %v2214_v17 = vld [vmem:[%s15059_s0 + $0x2c0] sm:$0xff] }
 0x2c0   :  { %2645 = vmatmul.mubr.f32.vlgmr.msra.gmra.mrb[8].mxu1 %v12863_v22 }
 0x2c1   :  { %6045 = vmatpush1.bf16.msra.mxu1 %v6044_v27  ;;  %2650 = vmatprep.mubr.f32.mxu1 %v12868_v21  ;;  %v6052_v27 = vpack.c.bf16 %v2177_v18, %v2168_v29  ;;  %v2204_v29 = vld [vmem:[%s15059_s0 + $0x270] sm:$0xff]  ;;  %v2213_v18 = vld [vmem:[%s15059_s0 + $0x2b8] sm:$0xff] }
 0x2c2   :  { %6047 = vmatprep.subr.bf16.mxu1 %v6046_v30  ;;  %v6054_v30 = vpack.c.bf16 %v2196_v23, %v2187_v19  ;;  %v2223_v19 = vld [vmem:[%s15059_s0 + $0x308] sm:$0xff]  ;;  %v2232_v23 = vld [vmem:[%s15059_s0 + $0x350] sm:$0xff] }
 0x2c4   :  { %2651 = vmatmul.mubr.f32.gmra.mrb[10].mxu1 %v12887_v25 }
 0x2c5   :  { %6049 = vmatpush1.bf16.msra.mxu1 %v6048_v16  ;;  %2721 = vmatprep.mubr.f32.mxu1 %v12725_v24  ;;  %v6056_v16 = vpack.c.bf16 %v2195_v20, %v2186_v31  ;;  %v2222_v31 = vld [vmem:[%s15059_s0 + $0x300] sm:$0xff]  ;;  %v2231_v20 = vld [vmem:[%s15059_s0 + $0x348] sm:$0xff] }
 0x2c6   :  { %6051 = vmatprep.subr.bf16.mxu1 %v6050_v28  ;;  %v6058_v28 = vpack.c.bf16 %v2214_v17, %v2205_v26  ;;  %v2241_v26 = vld [vmem:[%s15059_s0 + $0x398] sm:$0xff]  ;;  %v2250_v17 = vld [vmem:[%s15059_s0 + $0x3e0] sm:$0xff] }
 0x2c9   :  { %6053 = vmatpush1.bf16.msra.mxu1 %v6052_v27  ;;  %v6060_v27 = vpack.c.bf16 %v2213_v18, %v2204_v29  ;;  %v2240_v29 = vld [vmem:[%s15059_s0 + $0x390] sm:$0xff]  ;;  %v2249_v18 = vld [vmem:[%s15059_s0 + $0x3d8] sm:$0xff] }
 0x2ca   :  { %6055 = vmatprep.subr.bf16.mxu1 %v6054_v30  ;;  %v6062_v30 = vpack.c.bf16 %v2232_v23, %v2223_v19  ;;  %v2259_v19 = vld [vmem:[%s15059_s0 + $0x428] sm:$0xff]  ;;  %v2268_v23 = vld [vmem:[%s15059_s0 + $0x470] sm:$0xff] }
 0x2cd   :  { %6057 = vmatpush1.bf16.msra.mxu1 %v6056_v16  ;;  %v6064_v16 = vpack.c.bf16 %v2231_v20, %v2222_v31  ;;  %v2258_v31 = vld [vmem:[%s15059_s0 + $0x420] sm:$0xff]  ;;  %v2267_v20 = vld [vmem:[%s15059_s0 + $0x468] sm:$0xff] }
 0x2ce   :  { %6059 = vmatprep.subr.bf16.mxu1 %v6058_v28  ;;  %v6066_v28 = vpack.c.bf16 %v2250_v17, %v2241_v26  ;;  %v2277_v26 = vld [vmem:[%s15059_s0 + $0x4b8] sm:$0xff]  ;;  %v2286_v17 = vld [vmem:[%s15059_s0 + $0x500] sm:$0xff] }
 0x2d1   :  { %6061 = vmatpush1.bf16.msra.mxu1 %v6060_v27  ;;  %v6068_v27 = vpack.c.bf16 %v2249_v18, %v2240_v29  ;;  %v2276_v29 = vld [vmem:[%s15059_s0 + $0x4b0] sm:$0xff]  ;;  %v2285_v18 = vld [vmem:[%s15059_s0 + $0x4f8] sm:$0xff] }
 0x2d2   :  { %6063 = vmatprep.subr.bf16.mxu1 %v6062_v30  ;;  %v6070_v30 = vpack.c.bf16 %v2268_v23, %v2259_v19  ;;  %v2295_v19 = vld [vmem:[%s15059_s0 + $0x548] sm:$0xff]  ;;  %v2304_v23 = vld [vmem:[%s15059_s0 + $0x590] sm:$0xff] }
 0x2d5   :  { %6065 = vmatpush1.bf16.msra.mxu1 %v6064_v16  ;;  %v6072_v16 = vpack.c.bf16 %v2267_v20, %v2258_v31  ;;  %v2294_v31 = vld [vmem:[%s15059_s0 + $0x540] sm:$0xff]  ;;  %v2303_v20 = vld [vmem:[%s15059_s0 + $0x588] sm:$0xff] }
 0x2d6   :  { %6067 = vmatprep.subr.bf16.mxu1 %v6066_v28  ;;  %v6074_v28 = vpack.c.bf16 %v2286_v17, %v2277_v26  ;;  %v2313_v26 = vld [vmem:[%s15059_s0 + $0x5d8] sm:$0xff]  ;;  %v2322_v17 = vld [vmem:[%s15059_s0 + $0x620] sm:$0xff] }
 0x2d9   :  { %6069 = vmatpush1.bf16.msra.mxu1 %v6068_v27  ;;  %v6076_v27 = vpack.c.bf16 %v2285_v18, %v2276_v29  ;;  %v2312_v29 = vld [vmem:[%s15059_s0 + $0x5d0] sm:$0xff]  ;;  %v2321_v18 = vld [vmem:[%s15059_s0 + $0x618] sm:$0xff] }
 0x2da   :  { %6071 = vmatprep.subr.bf16.mxu1 %v6070_v30  ;;  %v6078_v30 = vpack.c.bf16 %v2304_v23, %v2295_v19  ;;  %v2331_v19 = vld [vmem:[%s15059_s0 + $0x668] sm:$0xff]  ;;  %v2340_v23 = vld [vmem:[%s15059_s0 + $0x6b0] sm:$0xff] }
 0x2dd   :  { %6073 = vmatpush1.bf16.msra.mxu1 %v6072_v16  ;;  %v6080_v16 = vpack.c.bf16 %v2303_v20, %v2294_v31  ;;  %v2330_v31 = vld [vmem:[%s15059_s0 + $0x660] sm:$0xff]  ;;  %v2339_v20 = vld [vmem:[%s15059_s0 + $0x6a8] sm:$0xff] }
 0x2de   :  { %6075 = vmatprep.subr.bf16.mxu1 %v6074_v28  ;;  %v6082_v28 = vpack.c.bf16 %v2322_v17, %v2313_v26  ;;  %v2349_v26 = vld [vmem:[%s15059_s0 + $0x6f8] sm:$0xff]  ;;  %v2358_v17 = vld [vmem:[%s15059_s0 + $0x740] sm:$0xff] }
 0x2e1   :  { %6077 = vmatpush1.bf16.msra.mxu1 %v6076_v27  ;;  %v6084_v27 = vpack.c.bf16 %v2321_v18, %v2312_v29  ;;  %v2348_v29 = vld [vmem:[%s15059_s0 + $0x6f0] sm:$0xff]  ;;  %v2357_v18 = vld [vmem:[%s15059_s0 + $0x738] sm:$0xff] }
 0x2e2   :  { %6079 = vmatprep.subr.bf16.mxu1 %v6078_v30  ;;  %v6086_v30 = vpack.c.bf16 %v2340_v23, %v2331_v19  ;;  %v2367_v19 = vld [vmem:[%s15059_s0 + $0x788] sm:$0xff]  ;;  %v2376_v23 = vld [vmem:[%s15059_s0 + $0x7d0] sm:$0xff] }
 0x2e5   :  { %6081 = vmatpush1.bf16.msra.mxu1 %v6080_v16  ;;  %v6088_v16 = vpack.c.bf16 %v2339_v20, %v2330_v31  ;;  %v2366_v31 = vld [vmem:[%s15059_s0 + $0x780] sm:$0xff]  ;;  %v2375_v20 = vld [vmem:[%s15059_s0 + $0x7c8] sm:$0xff] }
 0x2e6   :  { %6083 = vmatprep.subr.bf16.mxu1 %v6082_v28  ;;  %v6090_v28 = vpack.c.bf16 %v2358_v17, %v2349_v26  ;;  %v2385_v26 = vld [vmem:[%s15059_s0 + $0x818] sm:$0xff]  ;;  %v2394_v17 = vld [vmem:[%s15059_s0 + $0x860] sm:$0xff] }
 0x2e9   :  { %6085 = vmatpush1.bf16.msra.mxu1 %v6084_v27  ;;  %v6092_v27 = vpack.c.bf16 %v2357_v18, %v2348_v29  ;;  %v2384_v29 = vld [vmem:[%s15059_s0 + $0x810] sm:$0xff]  ;;  %v2393_v18 = vld [vmem:[%s15059_s0 + $0x858] sm:$0xff] }
 0x2ea   :  { %6087 = vmatprep.subr.bf16.mxu1 %v6086_v30  ;;  %v6094_v30 = vpack.c.bf16 %v2376_v23, %v2367_v19  ;;  %v2403_v19 = vld [vmem:[%s15059_s0 + $0x8a8] sm:$0xff]  ;;  %v2412_v23 = vld [vmem:[%s15059_s0 + $0x8f0] sm:$0xff] }
 0x2ed   :  { %6089 = vmatpush1.bf16.msra.mxu1 %v6088_v16  ;;  %v6096_v16 = vpack.c.bf16 %v2375_v20, %v2366_v31  ;;  %v2402_v31 = vld [vmem:[%s15059_s0 + $0x8a0] sm:$0xff]  ;;  %v2411_v20 = vld [vmem:[%s15059_s0 + $0x8e8] sm:$0xff] }
 0x2ee   :  { %6091 = vmatprep.subr.bf16.mxu1 %v6090_v28  ;;  %v6098_v28 = vpack.c.bf16 %v2394_v17, %v2385_v26  ;;  %v2278_v26 = vld [vmem:[%s15059_s0 + $0x4c0] sm:$0xff]  ;;  %v2287_v17 = vld [vmem:[%s15059_s0 + $0x508] sm:$0xff] }
 0x2f1   :  { %6093 = vmatpush1.bf16.msra.mxu1 %v6092_v27  ;;  %v6100_v27 = vpack.c.bf16 %v2393_v18, %v2384_v29  ;;  %v2134_v29 = vld [vmem:[%s15059_s0 + $0x40] sm:$0xff]  ;;  %v2143_v18 = vld [vmem:[%s15059_s0 + $0x88] sm:$0xff] }
 0x2f2   :  { %6095 = vmatprep.subr.bf16.mxu1 %v6094_v30  ;;  %v6102_v30 = vpack.c.bf16 %v2412_v23, %v2403_v19  ;;  %v2296_v19 = vld [vmem:[%s15059_s0 + $0x550] sm:$0xff]  ;;  %v2305_v23 = vld [vmem:[%s15059_s0 + $0x598] sm:$0xff] }
 0x2f5   :  { %6097 = vmatpush1.bf16.msra.mxu1 %v6096_v16  ;;  %v6104_v16 = vpack.c.bf16 %v2411_v20, %v2402_v31  ;;  %v2152_v31 = vld [vmem:[%s15059_s0 + $0xd0] sm:$0xff]  ;;  %v2161_v20 = vld [vmem:[%s15059_s0 + $0x118] sm:$0xff] }
 0x2f6   :  { %6099 = vmatprep.subr.bf16.mxu1 %v6098_v28  ;;  %v6106_v28 = vpack.c.bf16 %v2287_v17, %v2278_v26  ;;  %v2314_v26 = vld [vmem:[%s15059_s0 + $0x5e0] sm:$0xff]  ;;  %v2323_v17 = vld [vmem:[%s15059_s0 + $0x628] sm:$0xff] }
 0x2f9   :  { %6101 = vmatpush1.bf16.msra.mxu1 %v6100_v27  ;;  %v6108_v27 = vpack.c.bf16 %v2143_v18, %v2134_v29  ;;  %v2170_v29 = vld [vmem:[%s15059_s0 + $0x160] sm:$0xff]  ;;  %v2179_v18 = vld [vmem:[%s15059_s0 + $0x1a8] sm:$0xff] }
 0x2fa   :  { %6103 = vmatprep.subr.bf16.mxu1 %v6102_v30  ;;  %v6110_v30 = vpack.c.bf16 %v2305_v23, %v2296_v19  ;;  %v2332_v19 = vld [vmem:[%s15059_s0 + $0x670] sm:$0xff]  ;;  %v2341_v23 = vld [vmem:[%s15059_s0 + $0x6b8] sm:$0xff] }
 0x2fd   :  { %6105 = vmatpush1.bf16.msra.mxu1 %v6104_v16  ;;  %v6112_v16 = vpack.c.bf16 %v2161_v20, %v2152_v31  ;;  %v2188_v31 = vld [vmem:[%s15059_s0 + $0x1f0] sm:$0xff]  ;;  %v2197_v20 = vld [vmem:[%s15059_s0 + $0x238] sm:$0xff] }
 0x2fe   :  { %6107 = vmatprep.subr.bf16.mxu1 %v6106_v28  ;;  %v6114_v28 = vpack.c.bf16 %v2323_v17, %v2314_v26  ;;  %v2350_v26 = vld [vmem:[%s15059_s0 + $0x700] sm:$0xff]  ;;  %v2359_v17 = vld [vmem:[%s15059_s0 + $0x748] sm:$0xff] }
 0x300   :  { %2722 = vmatmul.mubr.f32.vlgmr.msra.gmra.mrb[12].mxu1 %v12863_v22 }
 0x301   :  { %6109 = vmatpush3.bf16.msra.mxu1 %v6108_v27  ;;  %2727 = vmatprep.mubr.f32.mxu1 %v12868_v21  ;;  %v6116_v27 = vpack.c.bf16 %v2179_v18, %v2170_v29  ;;  %v2215_v29 = vld [vmem:[%s15059_s0 + $0x2c8] sm:$0xff]  ;;  %v2368_v18 = vld [vmem:[%s15059_s0 + $0x790] sm:$0xff] }
 0x302   :  { %6111 = vmatprep.subr.bf16.mxu1 %v6110_v30  ;;  %v6118_v30 = vpack.c.bf16 %v2341_v23, %v2332_v19  ;;  %v2377_v19 = vld [vmem:[%s15059_s0 + $0x7d8] sm:$0xff]  ;;  %v2831_v23 = vlaneseq }
 0x304   :  { %2728 = vmatmul.mubr.f32.gmra.mrb[14].mxu1 %v12887_v25 }
 0x305   :  { %6113 = vmatpush3.bf16.msra.mxu1 %v6112_v16  ;;  %2798 = vmatprep.mubr.f32.mxu1 %v12725_v24  ;;  %v6120_v24 = vpack.c.bf16 %v2197_v20, %v2188_v31  ;;  %v6122_v16 = vpack.c.bf16 %v2359_v17, %v2350_v26  ;;  %v2224_v31 = vld [vmem:[%s15059_s0 + $0x310] sm:$0xff]  ;;  %v2233_v20 = vld [vmem:[%s15059_s0 + $0x358] sm:$0xff]  ;;  %v13521_v26 = vpop.permute.xlu0 %2418  ;;  %v2386_v17 = vld [vmem:[%s15059_s0 + $0x820] sm:$0xff] }
 0x306   :  { %6115 = vmatprep.subr.bf16.mxu1 %v6114_v28  ;;  %v2206_v28 = vld [vmem:[%s15059_s0 + $0x280] sm:$0xff] }
 0x309   :  { %6117 = vmatpush3.bf16.msra.mxu1 %v6116_v27  ;;  %v6124_v27 = vpack.c.bf16 %v2215_v29, %v2206_v28  ;;  %v6128_v28 = vpack.c.bf16 %v2233_v20, %v2224_v31  ;;  %v13548_v20 = vld [vmem:[%s15062_s3] sm:$0xff]  ;;  %v13552_v35 = vpop.permute.xlu0 %2423 }
 0x30a   :  { %6119 = vmatprep.subr.bf16.mxu1 %v6118_v30  ;;  %v6126_v30 = vpack.c.bf16 %v2377_v19, %v2368_v18  ;;  %v2242_v18 = vld [vmem:[%s15059_s0 + $0x3a0] sm:$0xff]  ;;  %v2251_v19 = vld [vmem:[%s15059_s0 + $0x3e8] sm:$0xff] }
 0x30b   :  { %v6132_v34 = vpack.c.bf16 %v2251_v19, %v2242_v18 }
 0x30d   :  { %6121 = vmatpush3.bf16.msra.mxu1 %v6120_v24  ;;  %v2395_v24 = vld [vmem:[%s15059_s0 + $0x868] sm:$0xff] }
 0x30e   :  { %6123 = vmatprep.subr.bf16.mxu1 %v6122_v16  ;;  %v13529_v16 = vshrl.u32 %v2831_v23, 7  ;;  %v6130_v29 = vpack.c.bf16 %v2395_v24, %v2386_v17  ;;  %v2413_v23 = vld [vmem:[%s15059_s0 + $0x8f8] sm:$0xff] }
 0x30f   :  { %v6134_v15 = vpack.c.bf16 %v2413_v23, %v2404_v12 }
 0x310   :  { %16068 = vst [vmem:[#allocation1005_spill] sm:$0xff] %v13529_v16  ;;  %v16070_v12 = vsub.s32 1, %v13529_v16 }
 0x311   :  { %6125 = vmatpush3.bf16.msra.mxu1 %v6124_v27 }
 0x312   :  { %6127 = vmatprep.subr.bf16.mxu1 %v6126_v30  ;;  %v2269_v30 = vld [vmem:[%s15059_s0 + $0x478] sm:$0xff] }
 0x313   :  { %v2492_v14 = vpop.f32.mrb[0].mxu1 }
 0x314   :  { %v2493_v27 = vadd.f32 %v2492_v14, %v13521_v26  ;;  %v2494_v31 = vpop.f32.mrb[1].mxu1  ;;  %v2260_v14 = vld [vmem:[%s15059_s0 + $0x430] sm:$0xff]  ;;  %s7459_s0 = smov 127  }
 0x315   :  { %v2495_v17 = vadd.f32 %v2494_v31, %v13521_v26  ;;  %6129 = vmatpush3.bf16.msra.mxu1 %v6128_v28  ;;  %v16069_v31 = vsub.s32 0, %v13529_v16  ;;  %v6136_v23 = vpack.c.bf16 %v2269_v30, %v2260_v14 }
 0x316   :  { %6131 = vmatprep.subr.bf16.mxu1 %v6130_v29  ;;  %v2809_v33 = vmax.f32 %v2493_v27, 0.0  ;;  %v2838_v29 = vrot.slane %v13548_v20, %v16070_v12 }
 0x317   :  { %v2498_v13 = vpop.f32.mrb[2].mxu1  ;;  %v2834_v24 = vrot.slane %v13548_v20, %v16069_v31  ;;  %v2810_v18 = vmax.f32 %v2495_v17, 0.0 }
 0x318   :  { %v2499_v28 = vadd.f32 %v2498_v13, %v13552_v35  ;;  %v2500_v32 = vpop.f32.mrb[3].mxu1 }
 0x319   :  { %v2501_v19 = vadd.f32 %v2500_v32, %v13552_v35  ;;  %6133 = vmatpush3.bf16.msra.mxu1 %v6132_v34  ;;  %v2876_v27 = vmul.f32 %v2834_v24, %v2809_v33  ;;  %v2877_v38 = vmul.f32 %v2838_v29, %v2810_v18 }
 0x31a   :  { %v2818_v10 = vmax.f32 %v2499_v28, 0.0  ;;  %6135 = vmatprep.subr.bf16.mxu1 %v6134_v15 }
 0x31b   :  { %v2819_v8 = vmax.f32 %v2501_v19, 0.0 }
 0x31c   :  { %v2885_v39 = vmul.f32 %v2834_v24, %v2818_v10  ;;  %v2841_v10 = vsub.s32 2, %v13529_v16 }
 0x31d   :  { %v2886_v11 = vmul.f32 %v2838_v29, %v2819_v8  ;;  %6137 = vmatpush3.bf16.msra.mxu1 %v6136_v23 }
 0x31e   :  { %v13568_v31 = vpack.i.bf16 %v2885_v39, %v2876_v27  ;;  %v6140_v13 = vpack.c.bf16 %v2885_v39, %v2876_v27  ;;  %v2842_v32 = vrot.slane %v13548_v20, %v2841_v10  ;;  %v2845_v39 = vsub.s32 3, %v13529_v16 }
 0x31f   :  { %v6138_v17 = vpack.c.bf16 %v2886_v11, %v2877_v38 }
 0x320   :  { %2799 = vmatmul.mubr.f32.vlgmr.msra.gmra.mrb[16].mxu1 %v12863_v22  ;;  %7297 = vrot.lane.b32.xlu0 %v13568_v31, %s7459_s0 }
 0x321   :  { %6139 = vmatprep.subr.bf16.mxu1 %v6138_v17  ;;  %2803 = vmatprep.mubr.f32.mxu1 %v12868_v21 }
 0x322   :  { %6141 = vmatpush1.bf16.msra.mxu1 %v6140_v13 }
 0x324   :  { %2804 = vmatmul.mubr.f32.gmra.mrb[18].mxu1 %v12887_v25  ;;  %v2846_v25 = vrot.slane %v13548_v20, %v2845_v39 }
 0x353   :  { %v2569_v8 = vpop.f32.mrb[4].mxu1 }
 0x354   :  { %v2570_v15 = vadd.f32 %v2569_v8, %v13521_v26  ;;  %v2571_v33 = vpop.f32.mrb[5].mxu1 }
 0x355   :  { %v2572_v34 = vadd.f32 %v2571_v33, %v13521_v26 }
 0x356   :  { %v2811_v22 = vmax.f32 %v2570_v15, 0.0  ;;  %v2849_v15 = vsub.s32 4, %v13529_v16 }
 0x357   :  { %v2575_v30 = vpop.f32.mrb[6].mxu1  ;;  %v2812_v28 = vmax.f32 %v2572_v34, 0.0 }
 0x358   :  { %v2878_v24 = vmul.f32 %v2842_v32, %v2811_v22  ;;  %v2576_v21 = vadd.f32 %v2575_v30, %v13552_v35  ;;  %v2577_v14 = vpop.f32.mrb[7].mxu1 }
 0x359   :  { %v2578_v18 = vadd.f32 %v2577_v14, %v13552_v35  ;;  %v2879_v27 = vmul.f32 %v2846_v25, %v2812_v28 }
 0x35a   :  { %v2820_v12 = vmax.f32 %v2576_v21, 0.0  ;;  %v13583_v29 = vpack.i.bf16 %v2878_v24, %v2877_v38 }
 0x35b   :  { %v2821_v19 = vmax.f32 %v2578_v18, 0.0 }
 0x35c   :  { %v2887_v23 = vmul.f32 %v2842_v32, %v2820_v12  ;;  %7302 = vrot.lane.b32.xlu1 %v13583_v29, %s7459_s0  ;;  %v2850_v32 = vrot.slane %v13548_v20, %v2849_v15 }
 0x35d   :  { %v2888_v13 = vmul.f32 %v2846_v25, %v2821_v19 }
 0x35e   :  { %v13587_v17 = vpack.i.bf16 %v2887_v23, %v2886_v11  ;;  %v6144_v10 = vpack.c.bf16 %v2887_v23, %v2878_v24  ;;  %v2853_v11 = vsub.s32 5, %v13529_v16 }
 0x35f   :  { %v6142_v8 = vpack.c.bf16 %v2888_v13, %v2879_v27 }
 0x360   :  { %7307 = vrot.lane.b32.xlu1 %v13587_v17, %s7459_s0  ;;  %v2854_v25 = vrot.slane %v13548_v20, %v2853_v11 }
 0x361   :  { %6143 = vmatprep.subr.bf16.mxu1 %v6142_v8 }
 0x362   :  { %6145 = vmatpush1.bf16.msra.mxu1 %v6144_v10 }
 0x393   :  { %v2646_v38 = vpop.f32.mrb[8].mxu1 }
 0x394   :  { %v2647_v33 = vadd.f32 %v2646_v38, %v13521_v26  ;;  %v2648_v34 = vpop.f32.mrb[9].mxu1 }
 0x395   :  { %v2649_v39 = vadd.f32 %v2648_v34, %v13521_v26 }
 0x396   :  { %v2813_v22 = vmax.f32 %v2647_v33, 0.0 }
 0x397   :  { %v2652_v30 = vpop.f32.mrb[10].mxu1  ;;  %v2814_v28 = vmax.f32 %v2649_v39, 0.0  ;;  %v2857_v39 = vsub.s32 6, %v13529_v16 }
 0x398   :  { %v13596_v24 = vmul.f32 %v2850_v32, %v2813_v22  ;;  %v2653_v21 = vadd.f32 %v2652_v30, %v13552_v35  ;;  %v2654_v14 = vpop.f32.mrb[11].mxu1 }
 0x399   :  { %v2655_v18 = vadd.f32 %v2654_v14, %v13552_v35  ;;  %v13608_v8 = vmul.f32 %v2854_v25, %v2814_v28 }
 0x39a   :  { %v2822_v12 = vmax.f32 %v2653_v21, 0.0  ;;  %v13602_v19 = vpack.i.bf16 %v13596_v24, %v2879_v27  ;;  %v2861_v27 = vsub.s32 7, %v13529_v16 }
 0x39b   :  { %v2823_v23 = vmax.f32 %v2655_v18, 0.0 }
 0x39c   :  { %v13604_v10 = vmul.f32 %v2850_v32, %v2822_v12  ;;  %7312 = vrot.lane.b32.xlu1 %v13602_v19, %s7459_s0 }
 0x39d   :  { %v13610_v15 = vmul.f32 %v2854_v25, %v2823_v23  ;;  %v2858_v23 = vrot.slane %v13548_v20, %v2857_v39 }
 0x39e   :  { %v13613_v38 = vpack.i.bf16 %v13604_v10, %v2888_v13  ;;  %v7298_v13 = vpop.permute.xlu0 %7297 }
 0x39f   :  { %v7299_v22 = vunpack.i.l.bf16 %v7298_v13  ;;  %v7300_v21 = vunpack.i.h.bf16 %v7298_v13 }
 0x3a0   :  { %7322 = vrot.lane.b32.xlu1 %v13583_v29, %s7460_s26  ;;  %7317 = vrot.lane.b32.xlu0 %v13613_v38, %s7459_s0 }
 0x3a4   :  { %7327 = vrot.lane.b32.xlu0 %v13587_v17, %s7460_s26 }
 0x3ce   :  { %v13625_v32 = vpop.permute.xlu1 %7302 }
 0x3cf   :  { %v7304_v34 = vunpack.i.l.bf16 %v13625_v32  ;;  %v16071_v13 = vunpack.i.h.bf16 %v13625_v32 }
 0x3d1   :  { %v2913_v18 = vsel %vm2912_vm0, %v7299_v22, %v7304_v34  ;;  %v2914_v14 = vsel %vm2912_vm0, %v7304_v34, %v16071_v13 }
 0x3d2   :  { %v13630_v30 = vpop.permute.xlu1 %7307 }
 0x3d3   :  { %v7309_v28 = vunpack.i.l.bf16 %v13630_v30  ;;  %v2723_v25 = vpop.f32.mrb[12].mxu1  ;;  %v16072_v37 = vunpack.i.h.bf16 %v13630_v30 }
 0x3d4   :  { %v2724_v12 = vadd.f32 %v2723_v25, %v13521_v26  ;;  %v2725_v33 = vpop.f32.mrb[13].mxu1 }
 0x3d5   :  { %v2915_v11 = vsel %vm2912_vm0, %v7300_v21, %v7309_v28  ;;  %v2726_v9 = vadd.f32 %v2725_v33, %v13521_v26  ;;  %v2916_v36 = vsel %vm2912_vm0, %v7309_v28, %v16072_v37  ;;  %v2862_v33 = vrot.slane %v13548_v20, %v2861_v27 }
 0x3d6   :  { %v6148_v22 = vpack.c.bf16 %v2915_v11, %v2913_v18  ;;  %v2815_v6 = vmax.f32 %v2724_v12, 0.0  ;;  %v6146_v25 = vpack.c.bf16 %v2916_v36, %v2914_v14 }
 0x3d7   :  { %v2729_v4 = vpop.f32.mrb[14].mxu1  ;;  %v2816_v21 = vmax.f32 %v2726_v9, 0.0 }
 0x3d8   :  { %v13646_v39 = vmul.f32 %v2858_v23, %v2815_v6  ;;  %v2730_v16 = vadd.f32 %v2729_v4, %v13552_v35  ;;  %v2731_v43 = vpop.f32.mrb[15].mxu1  ;;  %6147 = vmatprep.subr.bf16.mxu1 %v6146_v25 }
 0x3d9   :  { %v2732_v42 = vadd.f32 %v2731_v43, %v13552_v35  ;;  %6149 = vmatpush1.bf16.msra.mxu1 %v6148_v22  ;;  %v2883_v6 = vmul.f32 %v2862_v33, %v2816_v21 }
 0x3da   :  { %v2824_v34 = vmax.f32 %v2730_v16, 0.0  ;;  %v7331_v37 = vpack.i.bf16 %v13646_v39, %v13608_v8 }
 0x3db   :  { %v2825_v11 = vmax.f32 %v2732_v42, 0.0  ;;  %v5750_v42 = vld [vmem:[%s15062_s3 + $0x8] ss:$0 sm:$0xff]  ;;  %s7461_s3 = smov 116  }
 0x3dc   :  { %v2891_v28 = vmul.f32 %v2858_v23, %v2824_v34  ;;  %7332 = vrot.lane.b32.xlu1 %v7331_v37, %s7459_s0 }
 0x3dd   :  { %v2892_v36 = vmul.f32 %v2862_v33, %v2825_v11 }
 0x3de   :  { %v7336_v4 = vpack.i.bf16 %v2891_v28, %v13610_v15  ;;  %v6160_v14 = vpack.c.bf16 %v2891_v28, %v13646_v39 }
 0x3df   :  { %v6158_v9 = vpack.c.bf16 %v2892_v36, %v2883_v6 }
 0x3e0   :  { %7337 = vrot.lane.b32.xlu0 %v7336_v4, %s7459_s0 }
 0x3f3   :  { %v5809_v20 = vpop.f32.mrb[16].mxu1 }
 0x3f4   :  { %v5810_v43 = vpop.f32.mrb[17].mxu1 }
 0x3f5   :  { %v5811_v27 = vadd.f32 %v5810_v43, %v5809_v20  ;;  %v16074_v20 = vunpack.i.h.bf16 %v13630_v30  ;;  %v16076_v30 = vpack.c.bf16 %v13604_v10, %v13596_v24  ;;  %v3127_v24 = vld [vmem:[%s15064_s5] sm:$0xff]  ;;  %v3129_v10 = vld [vmem:[%s15064_s5 + $0x10] sm:$0xff] }
 0x3f7   :  { %v2801_v16 = vadd.f32 %v5811_v27, %v13521_v26  ;;  %v5812_v18 = vpop.f32.mrb[18].mxu1 }
 0x3f8   :  { %v5813_v12 = vpop.f32.mrb[19].mxu1 }
 0x3f9   :  { %v2817_v23 = vmax.f32 %v2801_v16, 0.0  ;;  %v5814_v13 = vadd.f32 %v5813_v12, %v5812_v18 }
 0x3fb   :  { %v2884_v22 = vmul.f32 %v5750_v42, %v2817_v23  ;;  %v2806_v25 = vadd.f32 %v5814_v13, %v13552_v35 }
 0x3fd   :  { %v2826_v39 = vmax.f32 %v2806_v25, 0.0  ;;  %v7341_v21 = vpack.i.bf16 %v2884_v22, %v2883_v6 }
 0x3ff   :  { %v2893_v33 = vmul.f32 %v5750_v42, %v2826_v39  ;;  %7342 = vrot.lane.b32.xlu1 %v7341_v21, %s7459_s0 }
 0x401   :  { %v7351_v34 = vpack.i.bf16 %v2893_v33, %v2892_v36 }
 0x403   :  { %7347 = vrot.lane.b32.xlu1 %v13568_v31, %s7460_s26  ;;  %7352 = vrot.lane.b32.xlu0 %v7351_v34, %s7459_s0 }
 0x407   :  { %7362 = vrot.lane.b32.xlu1 %v13613_v38, %s7460_s26  ;;  %7357 = vrot.lane.b32.xlu0 %v13602_v19, %s7460_s26 }
 0x40b   :  { %7372 = vrot.lane.b32.xlu1 %v13587_v17, %s7461_s3  ;;  %7367 = vrot.lane.b32.xlu0 %v13583_v29, %s7461_s3  ;;  %v16073_v17 = vunpack.i.h.bf16 %v13625_v32  ;;  %v3120_v32 = vld [vmem:[%s15063_s4 + $0x8] sm:$0xff] }
 0x40c   :  { %3215 = vmatprep.mubr.f32.mxu1 %v3120_v32 }
 0x40e   :  { %v7313_v35 = vpop.permute.xlu1 %7312 }
 0x40f   :  { %7382 = vrot.lane.b32.xlu1 %v13602_v19, %s7461_s3  ;;  %7377 = vrot.lane.b32.xlu0 %v13568_v31, %s7461_s3  ;;  %v7315_v26 = vunpack.i.h.bf16 %v7313_v35  ;;  %v7314_v11 = vunpack.i.l.bf16 %v7313_v35 }
 0x411   :  { %v2933_v29 = vsel %vm2912_vm0, %v16073_v17, %v7314_v11  ;;  %v2934_v31 = vsel %vm2912_vm0, %v7314_v11, %v7315_v26 }
 0x412   :  { %v7318_v28 = vpop.permute.xlu0 %7317 }
 0x413   :  { %v7320_v6 = vunpack.i.h.bf16 %v7318_v28  ;;  %v7319_v36 = vunpack.i.l.bf16 %v7318_v28  ;;  %7392 = vrot.lane.b32.xlu1 %v7331_v37, %s7460_s26  ;;  %7387 = vrot.lane.b32.xlu0 %v13613_v38, %s7461_s3  ;;  %v16075_v38 = vpack.c.bf16 %v13610_v15, %v13608_v8  ;;  %v3128_v8 = vld [vmem:[%s15064_s5 + $0x8] sm:$0xff]  ;;  %v3130_v15 = vld [vmem:[%s15064_s5 + $0x18] sm:$0xff] }
 0x415   :  { %v2935_v19 = vsel %vm2912_vm0, %v16074_v20, %v7319_v36  ;;  %v2936_v43 = vsel %vm2912_vm0, %v7319_v36, %v7320_v6 }
 0x416   :  { %v6152_v27 = vpack.c.bf16 %v2935_v19, %v2933_v29  ;;  %v6150_v16 = vpack.c.bf16 %v2936_v43, %v2934_v31 }
 0x417   :  { %7402 = vrot.lane.b32.xlu1 %v7341_v21, %s7460_s26  ;;  %7397 = vrot.lane.b32.xlu0 %v7336_v4, %s7460_s26 }
 0x418   :  { %6151 = vmatprep.subr.bf16.mxu1 %v6150_v16 }
 0x419   :  { %6153 = vmatpush1.bf16.msra.mxu1 %v6152_v27 }
 0x41a   :  { %6155 = vmatprep.subr.bf16.mxu1 %v16075_v38 }
 0x41b   :  { %7407 = vrot.lane.b32.xlu1 %v7331_v37, %s7461_s3  ;;  %7412 = vrot.lane.b32.xlu0 %v7351_v34, %s7460_s26  ;;  %v13717_v37 = vpop.permute.xlu1 %7322 }
 0x41c   :  { %v7325_v35 = vunpack.i.h.bf16 %v13717_v37  ;;  %v7324_v11 = vunpack.i.l.bf16 %v13717_v37 }
 0x41d   :  { %6157 = vmatpush1.bf16.msra.mxu1 %v16076_v30 }
 0x41e   :  { %6159 = vmatprep.subr.bf16.mxu1 %v6158_v9  ;;  %v2995_v27 = vsel %vm2993_vm1, %v7324_v11, %v7325_v35 }
 0x41f   :  { %7422 = vrot.lane.b32.xlu1 %v7341_v21, %s7461_s3  ;;  %7417 = vrot.lane.b32.xlu0 %v7336_v4, %s7461_s3  ;;  %v7328_v4 = vpop.permute.xlu0 %7327 }
 0x420   :  { %v7330_v28 = vunpack.i.h.bf16 %v7328_v4  ;;  %v7329_v36 = vunpack.i.l.bf16 %v7328_v4 }
 0x421   :  { %6161 = vmatpush1.bf16.msra.mxu1 %v6160_v14 }
 0x422   :  { %v2997_v16 = vsel %vm2993_vm1, %v7329_v36, %v7330_v28 }
 0x423   :  { %7427 = vrot.lane.b32.xlu0 %v7351_v34, %s7461_s3  ;;  %3133 = vperm.xlu1 %7431, %v3127_v24  }
 0x427   :  { %3138 = vperm.xlu0 %7295, %v3128_v8   ;;  %3143 = vperm.xlu1 %7431, %v3129_v10  }
 0x42b   :  { %3148 = vperm.xlu0 %7295, %v3130_v15  }
 0x44e   :  { %v7333_v14 = vpop.permute.xlu1 %7332 }
 0x44f   :  { %v7335_v9 = vunpack.i.h.bf16 %v7333_v14  ;;  %v7334_v18 = vunpack.i.l.bf16 %v7333_v14 }
 0x451   :  { %v2953_v13 = vsel %vm2912_vm0, %v7315_v26, %v7334_v18  ;;  %v2954_v25 = vsel %vm2912_vm0, %v7334_v18, %v7335_v9 }
 0x452   :  { %v7338_v42 = vpop.permute.xlu0 %7337 }
 0x453   :  { %v7340_v12 = vunpack.i.h.bf16 %v7338_v42  ;;  %v7339_v23 = vunpack.i.l.bf16 %v7338_v42 }
 0x455   :  { %v2955_v22 = vsel %vm2912_vm0, %v7320_v6, %v7339_v23  ;;  %v2956_v39 = vsel %vm2912_vm0, %v7339_v23, %v7340_v12 }
 0x456   :  { %v6164_v21 = vpack.c.bf16 %v2955_v22, %v2953_v13  ;;  %v6162_v33 = vpack.c.bf16 %v2956_v39, %v2954_v25 }
 0x458   :  { %6163 = vmatprep.subr.bf16.mxu1 %v6162_v33 }
 0x459   :  { %6165 = vmatpush1.bf16.msra.mxu1 %v6164_v21 }
 0x471   :  { %v7343_v34 = vpop.permute.xlu1 %7342 }
 0x472   :  { %v7345_v17 = vunpack.i.h.bf16 %v7343_v34  ;;  %v7344_v29 = vunpack.i.l.bf16 %v7343_v34 }
 0x474   :  { %v2973_v38 = vsel %vm2912_vm0, %v7335_v9, %v7344_v29  ;;  %v2974_v30 = vsel %vm2912_vm0, %v7344_v29, %v7345_v17 }
 0x475   :  { %v7348_v26 = vpop.permute.xlu1 %7347  ;;  %v7353_v6 = vpop.permute.xlu0 %7352 }
 0x476   :  { %v7350_v20 = vunpack.i.h.bf16 %v7348_v26  ;;  %v7349_v19 = vunpack.i.l.bf16 %v7348_v26  ;;  %v7355_v31 = vunpack.i.h.bf16 %v7353_v6  ;;  %v7354_v43 = vunpack.i.l.bf16 %v7353_v6 }
 0x478   :  { %v2975_v32 = vsel %vm2912_vm0, %v7340_v12, %v7354_v43  ;;  %v2976_v8 = vsel %vm2912_vm0, %v7354_v43, %v7355_v31  ;;  %v2994_v15 = vsel %vm2993_vm1, %v7349_v19, %v7324_v11  ;;  %v2996_v24 = vsel %vm2993_vm1, %v7350_v20, %v7329_v36 }
 0x479   :  { %v6168_v10 = vpack.c.bf16 %v2975_v32, %v2973_v38  ;;  %v13733_v37 = vpop.permute.xlu1 %7362  ;;  %v7358_v4 = vpop.permute.xlu0 %7357  ;;  %v6166_v14 = vpack.c.bf16 %v2976_v8, %v2974_v30  ;;  %v6170_v12 = vpack.c.bf16 %v2997_v16, %v2995_v27  ;;  %v6172_v25 = vpack.c.bf16 %v2996_v24, %v2994_v15 }
 0x47a   :  { %v7365_v18 = vunpack.i.h.bf16 %v13733_v37  ;;  %v7364_v42 = vunpack.i.l.bf16 %v13733_v37  ;;  %v7360_v9 = vunpack.i.h.bf16 %v7358_v4  ;;  %v7359_v23 = vunpack.i.l.bf16 %v7358_v4 }
 0x47b   :  { %6167 = vmatprep.subr.bf16.mxu1 %v6166_v14 }
 0x47c   :  { %6169 = vmatpush1.bf16.msra.mxu1 %v6168_v10  ;;  %v3011_v13 = vsel %vm2993_vm1, %v7359_v23, %v7360_v9  ;;  %v3013_v22 = vsel %vm2993_vm1, %v7364_v42, %v7365_v18  ;;  %v3012_v17 = vsel %vm2993_vm1, %v7330_v28, %v7364_v42  ;;  %v3010_v29 = vsel %vm2993_vm1, %v7325_v35, %v7359_v23 }
 0x47d   :  { %v7373_v39 = vpop.permute.xlu1 %7372  ;;  %v7368_v21 = vpop.permute.xlu0 %7367  ;;  %6171 = vmatprep.subr.bf16.mxu1 %v6170_v12  ;;  %v6174_v26 = vpack.c.bf16 %v3013_v22, %v3011_v13  ;;  %v6176_v43 = vpack.c.bf16 %v3012_v17, %v3010_v29 }
 0x47e   :  { %v7375_v33 = vunpack.i.h.bf16 %v7373_v39  ;;  %v7374_v34 = vunpack.i.l.bf16 %v7373_v39  ;;  %v7370_v11 = vunpack.i.h.bf16 %v7368_v21  ;;  %v7369_v36 = vunpack.i.l.bf16 %v7368_v21 }
 0x480   :  { %6173 = vmatpush1.bf16.msra.mxu1 %v6172_v25  ;;  %v3032_v6 = vsel %vm3030_vm2, %v7369_v36, %v7370_v11  ;;  %v3034_v20 = vsel %vm3030_vm2, %v7374_v34, %v7375_v33 }
 0x481   :  { %v7383_v19 = vpop.permute.xlu1 %7382  ;;  %v7378_v31 = vpop.permute.xlu0 %7377  ;;  %6175 = vmatprep.subr.bf16.mxu1 %v6174_v26  ;;  %v6178_v38 = vpack.c.bf16 %v3034_v20, %v3032_v6 }
 0x482   :  { %v7380_v27 = vunpack.i.h.bf16 %v7378_v31  ;;  %v7379_v16 = vunpack.i.l.bf16 %v7378_v31  ;;  %v7385_v32 = vunpack.i.h.bf16 %v7383_v19  ;;  %v7384_v30 = vunpack.i.l.bf16 %v7383_v19 }
 0x484   :  { %v3033_v8 = vsel %vm3030_vm2, %v7380_v27, %v7374_v34  ;;  %v3031_v28 = vsel %vm3030_vm2, %v7379_v16, %v7369_v36  ;;  %6177 = vmatpush1.bf16.msra.mxu1 %v6176_v43  ;;  %v3047_v42 = vsel %vm3030_vm2, %v7370_v11, %v7384_v30  ;;  %v3048_v12 = vsel %vm3030_vm2, %v7384_v30, %v7385_v32 }
 0x485   :  { %v6180_v35 = vpack.c.bf16 %v3033_v8, %v3031_v28  ;;  %v7393_v15 = vpop.permute.xlu1 %7392  ;;  %v7388_v24 = vpop.permute.xlu0 %7387  ;;  %6179 = vmatprep.subr.bf16.mxu1 %v6178_v38 }
 0x486   :  { %v7390_v10 = vunpack.i.h.bf16 %v7388_v24  ;;  %v7389_v37 = vunpack.i.l.bf16 %v7388_v24  ;;  %v7395_v4 = vunpack.i.h.bf16 %v7393_v15  ;;  %v7394_v14 = vunpack.i.l.bf16 %v7393_v15 }
 0x488   :  { %v3049_v23 = vsel %vm3030_vm2, %v7375_v33, %v7389_v37  ;;  %6181 = vmatpush1.bf16.msra.mxu1 %v6180_v35  ;;  %v3050_v13 = vsel %vm3030_vm2, %v7389_v37, %v7390_v10  ;;  %v3063_v17 = vsel %vm2993_vm1, %v7360_v9, %v7394_v14  ;;  %v3064_v29 = vsel %vm2993_vm1, %v7394_v14, %v7395_v4 }
 0x489   :  { %v6184_v22 = vpack.c.bf16 %v3049_v23, %v3047_v42  ;;  %v7403_v25 = vpop.permute.xlu1 %7402  ;;  %v7398_v39 = vpop.permute.xlu0 %7397  ;;  %v6182_v21 = vpack.c.bf16 %v3050_v13, %v3048_v12 }
 0x48a   :  { %v7400_v34 = vunpack.i.h.bf16 %v7398_v39  ;;  %v7399_v36 = vunpack.i.l.bf16 %v7398_v39  ;;  %v7405_v26 = vunpack.i.h.bf16 %v7403_v25  ;;  %v7404_v11 = vunpack.i.l.bf16 %v7403_v25 }
 0x48b   :  { %6183 = vmatprep.subr.bf16.mxu1 %v6182_v21 }
 0x48c   :  { %v3065_v33 = vsel %vm2993_vm1, %v7365_v18, %v7399_v36  ;;  %6185 = vmatpush1.bf16.msra.mxu1 %v6184_v22  ;;  %v3066_v6 = vsel %vm2993_vm1, %v7399_v36, %v7400_v34  ;;  %v3079_v9 = vsel %vm2993_vm1, %v7395_v4, %v7404_v11  ;;  %v3080_v28 = vsel %vm2993_vm1, %v7404_v11, %v7405_v26 }
 0x48d   :  { %v6188_v20 = vpack.c.bf16 %v3065_v33, %v3063_v17  ;;  %v7408_v19 = vpop.permute.xlu1 %7407  ;;  %v7413_v31 = vpop.permute.xlu0 %7412  ;;  %v6186_v43 = vpack.c.bf16 %v3066_v6, %v3064_v29  ;;  %v3119_v6 = vld [vmem:[%s15063_s4] sm:$0xff] }
 0x48e   :  { %v7415_v27 = vunpack.i.h.bf16 %v7413_v31  ;;  %v7414_v16 = vunpack.i.l.bf16 %v7413_v31  ;;  %v7410_v38 = vunpack.i.h.bf16 %v7408_v19  ;;  %v7409_v30 = vunpack.i.l.bf16 %v7408_v19  ;;  %v3121_v19 = vld [vmem:[%s15063_s4 + $0x10] sm:$0xff]  ;;  %v3124_v31 = vld [vmem:[%s15063_s4 + $0x28] sm:$0xff] }
 0x48f   :  { %6187 = vmatprep.subr.bf16.mxu1 %v6186_v43  ;;  %v3123_v43 = vld [vmem:[%s15063_s4 + $0x20] sm:$0xff] }
 0x490   :  { %v3081_v8 = vsel %vm2993_vm1, %v7400_v34, %v7414_v16  ;;  %6189 = vmatpush1.bf16.msra.mxu1 %v6188_v20  ;;  %v3082_v18 = vsel %vm2993_vm1, %v7414_v16, %v7415_v27  ;;  %v3095_v23 = vsel %vm3030_vm2, %v7385_v32, %v7409_v30  ;;  %v3096_v12 = vsel %vm3030_vm2, %v7409_v30, %v7410_v38  ;;  %v3122_v20 = vld [vmem:[%s15063_s4 + $0x18] sm:$0xff]  ;;  %v3125_v16 = vld [vmem:[%s15063_s4 + $0x30] sm:$0xff] }
 0x491   :  { %v6192_v35 = vpack.c.bf16 %v3081_v8, %v3079_v9  ;;  %v7423_v15 = vpop.permute.xlu1 %7422  ;;  %v7418_v24 = vpop.permute.xlu0 %7417  ;;  %v6190_v37 = vpack.c.bf16 %v3082_v18, %v3080_v28  ;;  %v3126_v27 = vld [vmem:[%s15063_s4 + $0x38] sm:$0xff] }
 0x492   :  { %v7420_v14 = vunpack.i.h.bf16 %v7418_v24  ;;  %v7419_v42 = vunpack.i.l.bf16 %v7418_v24  ;;  %v7425_v13 = vunpack.i.h.bf16 %v7423_v15  ;;  %v7424_v4 = vunpack.i.l.bf16 %v7423_v15 }
 0x493   :  { %6191 = vmatprep.subr.bf16.mxu1 %v6190_v37 }
 0x494   :  { %v3097_v22 = vsel %vm3030_vm2, %v7390_v10, %v7419_v42  ;;  %6193 = vmatpush1.bf16.msra.mxu1 %v6192_v35  ;;  %v3098_v25 = vsel %vm3030_vm2, %v7419_v42, %v7420_v14  ;;  %v3111_v29 = vsel %vm3030_vm2, %v7410_v38, %v7424_v4  ;;  %v3112_v26 = vsel %vm3030_vm2, %v7424_v4, %v7425_v13 }
 0x495   :  { %v6196_v39 = vpack.c.bf16 %v3097_v22, %v3095_v23  ;;  %v7428_v21 = vpop.permute.xlu0 %7427  ;;  %v6194_v34 = vpack.c.bf16 %v3098_v25, %v3096_v12 }
 0x496   :  { %v7430_v36 = vunpack.i.h.bf16 %v7428_v21  ;;  %v7429_v17 = vunpack.i.l.bf16 %v7428_v21 }
 0x497   :  { %6195 = vmatprep.subr.bf16.mxu1 %v6194_v34 }
 0x498   :  { %v3113_v32 = vsel %vm3030_vm2, %v7420_v14, %v7429_v17  ;;  %6197 = vmatpush1.bf16.msra.mxu1 %v6196_v39  ;;  %v3114_v11 = vsel %vm3030_vm2, %v7429_v17, %v7430_v36 }
 0x499   :  { %v6200_v33 = vpack.c.bf16 %v3113_v32, %v3111_v29  ;;  %v6198_v10 = vpack.c.bf16 %v3114_v11, %v3112_v26 }
 0x49b   :  { %6199 = vmatprep.subr.bf16.mxu1 %v6198_v10 }
 0x49c   :  { %6201 = vmatpush1.bf16.msra.mxu1 %v6200_v33 }
 0x49f   :  { %3216 = vmatmul.mubr.f32.vlgmr.msra.gmra.mrb[20].mxu1 %v3119_v6 }
 0x4a0   :  { %3221 = vmatprep.mubr.f32.mxu1 %v3122_v20 }
 0x4a2   :  { %v3134_v38 = vpop.permute.xlu1 %3133 }
 0x4a3   :  { %3222 = vmatmul.mubr.f32.gmra.mrb[22].mxu1 %v3121_v19 }
 0x4a4   :  { %3227 = vmatprep.mubr.f32.mxu1 %v3124_v31 }
 0x4a6   :  { %v3139_v12 = vpop.permute.xlu0 %3138  ;;  %v3144_v11 = vpop.permute.xlu1 %3143 }
 0x4a7   :  { %3228 = vmatmul.mubr.f32.gmra.mrb[24].mxu1 %v3123_v43 }
 0x4a8   :  { %3233 = vmatprep.mubr.f32.mxu1 %v3126_v27 }
 0x4ab   :  { %3234 = vmatmul.mubr.f32.gmra.mrb[26].mxu1 %v3125_v16 }
 0x572   :  { %v3217_v30 = vpop.f32.mrb[20].mxu1 }
 0x573   :  { %v3218_v9 = vadd.f32 %v3217_v30, %v3134_v38  ;;  %v3219_v8 = vpop.f32.mrb[21].mxu1 }
 0x574   :  { %v3220_v28 = vadd.f32 %v3219_v8, %v3134_v38  ;;  %v3149_v8 = vpop.permute.xlu0 %3148 }
 0x575   :  { %v3240_v18 = vmax.f32 %v3218_v9, 0.0 }
 0x576   :  { %v3241_v35 = vmax.f32 %v3220_v28, 0.0  ;;  %v3223_v15 = vpop.f32.mrb[22].mxu1 }
 0x577   :  { %v3251_v24 = vrot.slane %v3240_v18, 2  ;;  %v3253_v37 = vrot.slane %v3240_v18, 3  ;;  %v3255_v14 = vrot.slane %v3240_v18, 4  ;;  %v3257_v42 = vrot.slane %v3240_v18, 5  ;;  %v3225_v23 = vpop.f32.mrb[23].mxu1 }
 0x578   :  { %v3259_v13 = vrot.slane %v3240_v18, 6  ;;  %v3261_v4 = vrot.slane %v3240_v18, 7  ;;  %v3249_v22 = vrot.slane %v3240_v18, 1  ;;  %v3315_v25 = vrot.slane %v3241_v35, 7 }
 0x579   :  { %v5752_v39 = vrot.slane %v3241_v35, 9  ;;  %v5753_v21 = vrot.slane %v3241_v35, 10  ;;  %v5754_v34 = vrot.slane %v3241_v35, 11  ;;  %v5755_v36 = vrot.slane %v3241_v35, 12 }
 0x57a   :  { %v5756_v17 = vrot.slane %v3241_v35, 13  ;;  %v3346_v29 = vrot.slane %v3315_v25, 7  ;;  %v13787_v32 = vsel %vm3400_vm3, %v3240_v18, %v3315_v25  ;;  %v13790_v26 = vsel %vm3400_vm3, %v3249_v22, %v3241_v35  ;;  %v3229_v33 = vpop.f32.mrb[24].mxu1 }
 0x57b   :  { %v13793_v10 = vsel %vm3400_vm3, %v3251_v24, %v5752_v39  ;;  %v13796_v6 = vsel %vm3400_vm3, %v3253_v37, %v5753_v21  ;;  %v13799_v20 = vsel %vm3400_vm3, %v3255_v14, %v5754_v34  ;;  %v13802_v19 = vsel %vm3400_vm3, %v3257_v42, %v5755_v36  ;;  %v3231_v31 = vpop.f32.mrb[25].mxu1 }
 0x57c   :  { %16077 = vst [vmem:[#allocation1006_spill] sm:$0xff] %v13799_v20  ;;  %v13805_v43 = vsel %vm3400_vm3, %v3259_v13, %v5756_v17  ;;  %v13808_v27 = vsel %vm3400_vm3, %v3261_v4, %v3346_v29  ;;  %v3224_v16 = vadd.f32 %v3223_v15, %v3139_v12  ;;  %v3226_v38 = vadd.f32 %v3225_v23, %v3139_v12 }
 0x57d   :  { %16078 = vst [vmem:[#allocation1007_spill] sm:$0xff] %v13805_v43  ;;  %16079 = vst [vmem:[#allocation1008_spill] sm:$0xff] %v13808_v27  ;;  %v3230_v30 = vadd.f32 %v3229_v33, %v3144_v11  ;;  %v3232_v9 = vadd.f32 %v3231_v31, %v3144_v11 }
 0x57e   :  { %v3242_v28 = vmax.f32 %v3224_v16, 0.0  ;;  %v3243_v18 = vmax.f32 %v3226_v38, 0.0  ;;  %v3235_v35 = vpop.f32.mrb[26].mxu1 }
 0x57f   :  { %v3244_v24 = vmax.f32 %v3230_v30, 0.0  ;;  %v3245_v37 = vmax.f32 %v3232_v9, 0.0  ;;  %v3236_v14 = vadd.f32 %v3235_v35, %v3149_v8  ;;  %v3237_v42 = vpop.f32.mrb[27].mxu1 }
 0x580   :  { %v3266_v22 = vrot.slane %v3242_v28, 2  ;;  %v3268_v25 = vrot.slane %v3242_v28, 3  ;;  %v3270_v39 = vrot.slane %v3242_v28, 4  ;;  %v3272_v13 = vrot.slane %v3242_v28, 5 }
 0x581   :  { %v3274_v21 = vrot.slane %v3242_v28, 6  ;;  %v3276_v34 = vrot.slane %v3242_v28, 7  ;;  %v3264_v4 = vrot.slane %v3242_v28, 1  ;;  %v3323_v36 = vrot.slane %v3243_v18, 7 }
 0x582   :  { %v5758_v15 = vrot.slane %v3243_v18, 9  ;;  %v5759_v23 = vrot.slane %v3243_v18, 10  ;;  %v5760_v12 = vrot.slane %v3243_v18, 11  ;;  %v5761_v17 = vrot.slane %v3243_v18, 12 }
 0x583   :  { %v5762_v29 = vrot.slane %v3243_v18, 13  ;;  %v3353_v11 = vrot.slane %v3323_v36, 7  ;;  %v13811_v33 = vsel %vm3400_vm3, %v3242_v28, %v3323_v36  ;;  %v13814_v31 = vsel %vm3400_vm3, %v3264_v4, %v3243_v18 }
 0x584   :  { %16080 = vst [vmem:[#allocation1009_spill] sm:$0xff] %v13811_v33  ;;  %16081 = vst [vmem:[#allocation1010_spill] sm:$0xff] %v13814_v31  ;;  %v13817_v16 = vsel %vm3400_vm3, %v3266_v22, %v5758_v15  ;;  %v3412_v38 = vsel %vm3400_vm3, %v3268_v25, %v5759_v23  ;;  %v13821_v30 = vsel %vm3400_vm3, %v3270_v39, %v5760_v12  ;;  %v3281_v36 = vrot.slane %v3244_v24, 2 }
 0x585   :  { %v13824_v9 = vsel %vm3400_vm3, %v3272_v13, %v5761_v17  ;;  %v13827_v35 = vsel %vm3400_vm3, %v3274_v21, %v5762_v29  ;;  %v13830_v28 = vsel %vm3400_vm3, %v3276_v34, %v3353_v11  ;;  %v3283_v18 = vrot.slane %v3244_v24, 3  ;;  %4892 = vmatprep.mubr.f32.mxu0 %v3412_v38 }
 0x586   :  { %16082 = vst [vmem:[#allocation1011_spill] sm:$0xff] %v13827_v35  ;;  %v3285_v4 = vrot.slane %v3244_v24, 4  ;;  %v3287_v33 = vrot.slane %v3244_v24, 5  ;;  %v3289_v22 = vrot.slane %v3244_v24, 6  ;;  %v3291_v15 = vrot.slane %v3244_v24, 7 }
 0x587   :  { %v3279_v31 = vrot.slane %v3244_v24, 1  ;;  %v3331_v25 = vrot.slane %v3245_v37, 7  ;;  %v5764_v23 = vrot.slane %v3245_v37, 9  ;;  %v5765_v39 = vrot.slane %v3245_v37, 10 }
 0x588   :  { %v5766_v12 = vrot.slane %v3245_v37, 11  ;;  %v5767_v43 = vrot.slane %v3245_v37, 12  ;;  %v5768_v13 = vrot.slane %v3245_v37, 13  ;;  %v3246_v17 = vmax.f32 %v3236_v14, 0.0 }
 0x589   :  { %v3360_v27 = vrot.slane %v3331_v25, 7  ;;  %v13833_v21 = vsel %vm3400_vm3, %v3244_v24, %v3331_v25  ;;  %v13836_v34 = vsel %vm3400_vm3, %v3279_v31, %v3245_v37  ;;  %v13839_v29 = vsel %vm3400_vm3, %v3281_v36, %v5764_v23 }
 0x58a   :  { %16083 = vst [vmem:[#allocation1012_spill] sm:$0xff] %v13839_v29  ;;  %v13842_v11 = vsel %vm3400_vm3, %v3283_v18, %v5765_v39  ;;  %v13845_v20 = vsel %vm3400_vm3, %v3285_v4, %v5766_v12  ;;  %v13848_v35 = vsel %vm3400_vm3, %v3287_v33, %v5767_v43  ;;  %v13851_v14 = vsel %vm3400_vm3, %v3289_v22, %v5768_v13 }
 0x58b   :  { %16084 = vst [vmem:[#allocation1013_spill] sm:$0xff] %v13842_v11  ;;  %16085 = vst [vmem:[#allocation1014_spill] sm:$0xff] %v13845_v20  ;;  %v13854_v24 = vsel %vm3400_vm3, %v3291_v15, %v3360_v27  ;;  %v3238_v37 = vadd.f32 %v3237_v42, %v3149_v8  ;;  %v3294_v31 = vrot.slane %v3246_v17, 1  ;;  %v3296_v25 = vrot.slane %v3246_v17, 2 }
 0x58c   :  { %16086 = vst [vmem:[#allocation1015_spill] sm:$0xff] %v13848_v35  ;;  %16087 = vst [vmem:[#allocation1016_spill] sm:$0xff] %v13851_v14  ;;  %v3298_v36 = vrot.slane %v3246_v17, 3  ;;  %v3300_v29 = vrot.slane %v3246_v17, 4  ;;  %v3302_v18 = vrot.slane %v3246_v17, 5  ;;  %v3304_v39 = vrot.slane %v3246_v17, 6 }
 0x58d   :  { %v3247_v23 = vmax.f32 %v3238_v37, 0.0  ;;  %v3306_v43 = vrot.slane %v3246_v17, 7 }
 0x58f   :  { %v3339_v11 = vrot.slane %v3247_v23, 7  ;;  %v5770_v4 = vrot.slane %v3247_v23, 9  ;;  %v5771_v12 = vrot.slane %v3247_v23, 10  ;;  %v5772_v20 = vrot.slane %v3247_v23, 11 }
 0x590   :  { %v5773_v33 = vrot.slane %v3247_v23, 12  ;;  %v5774_v35 = vrot.slane %v3247_v23, 13  ;;  %v13857_v22 = vsel %vm3400_vm3, %v3294_v31, %v3247_v23 }
 0x591   :  { %v3367_v27 = vrot.slane %v3339_v11, 7  ;;  %v13860_v8 = vsel %vm3400_vm3, %v3246_v17, %v3339_v11  ;;  %v13863_v42 = vsel %vm3400_vm3, %v3296_v25, %v5770_v4  ;;  %v13866_v15 = vsel %vm3400_vm3, %v3298_v36, %v5771_v12 }
 0x592   :  { %v13869_v13 = vsel %vm3400_vm3, %v3300_v29, %v5772_v20  ;;  %v13872_v37 = vsel %vm3400_vm3, %v3302_v18, %v5773_v33  ;;  %v13875_v14 = vsel %vm3400_vm3, %v3304_v39, %v5774_v35  ;;  %v6522_v17 = vpack.c.bf16 %v9136_v63, %v9126_v61 }
 0x593   :  { %v13878_v31 = vsel %vm3400_vm3, %v3306_v43, %v3367_v27  ;;  %v6524_v11 = vpack.c.bf16 %v9131_v62, %v9121_v60  ;;  %v6526_v25 = vpack.c.bf16 %v9156_v57, %v9146_v56 }
 0x594   :  { %7454 = dma.done.wait [#allocation3], 131072 }
 0x595   :  { %7455 = vsyncadd [#allocation3], 4294836224  ;;  %4537 = vmatprep.mubr.f32.mxu1 %v13790_v26  ;;  %6523 = vmatprep.subr.bf16.mxu0 %v6522_v17  ;;  %v6528_v20 = vpack.c.bf16 %v9151_v59, %v9141_v58  ;;  %v6530_v61 = vpack.c.bf16 %v9176_v53, %v9166_v52  ;;  %v6532_v60 = vpack.c.bf16 %v9171_v55, %v9161_v54  ;;  %v16098_v59 = vld [vmem:[#allocation11_spill] sm:$0xff]  ;;  %v16099_v62 = vld [vmem:[#allocation13_spill] sm:$0xff]  ;;  %s7462_s16 = smov [#allocation4]   ;;  %vm5720_vm4 = vcmask 25600  }
 0x596   :  { %6525 = vmatpush1.bf16.msra.mxu0 %v6524_v11  ;;  %v6534_v56 = vpack.c.bf16 %v9196_v49, %v9186_v48  ;;  %v6536_v57 = vpack.c.bf16 %v9191_v51, %v9181_v50  ;;  %v6538_v58 = vpack.c.bf16 %v9216_v45, %v9206_v44  ;;  %v6540_v52 = vpack.c.bf16 %v9211_v47, %v9201_v46  ;;  %v16088_v44 = vld [vmem:[#allocation323_spill] sm:$0xff]  ;;  %v16089_v45 = vld [vmem:[#allocation324_spill] sm:$0xff]  ;;  %v16090_v46 = vld [vmem:[#allocation9_spill] sm:$0xff]  ;;  %s5728_s5 = sshll.u32 %s7462_s16, 4  ;;  %s5729_s5 = int_to_ptr.vmem [resolvable:$true] %s5728_s5 }
 0x597   :  { %6527 = vmatprep.subr.bf16.mxu0 %v6526_v25  ;;  %v6542_v53 = vpack.c.bf16 %v9236_v41, %v9226_v40  ;;  %v6202_v54 = vpack.c.bf16 %v7536_v3, %v7526_v1  ;;  %v6204_v48 = vpack.c.bf16 %v7531_v2, %v7521_v0  ;;  %v6206_v49 = vpack.c.bf16 %v7556_v7, %v7546_v5  ;;  %v16091_v47 = vld [vmem:[#allocation10_spill] sm:$0xff]  ;;  %v16093_v41 = vld [vmem:[#allocation328_spill] sm:$0xff]  ;;  %v16096_v2 = vld [vmem:[#allocation325_spill] sm:$0xff]  ;;  %s7432_s17 = scalar_lea.vmem %s5729_s5, 32  ;;  %p7437_p1 = scmp.lt.s32.totalorder %s5729_s5, %s5729_s5 }
 0x598   :  { %v6544_v50 = vpack.c.bf16 %v16089_v45, %v16088_v44  ;;  %v6208_v51 = vpack.c.bf16 %v16091_v47, %v16090_v46  ;;  %v16092_v40 = vld [vmem:[#allocation326_spill] sm:$0xff]  ;;  %v16094_v1 = vld [vmem:[#allocation12_spill] sm:$0xff]  ;;  %v16097_v5 = vld [vmem:[#allocation327_spill] sm:$0xff]  ;;  %v6212_v63 = vpack.c.bf16 %v16099_v62, %v16098_v59  ;;  %p7433_p0 = scmp.ne.s32.totalorder %s5729_s5, %s7432_s17  ;;  %p7438_p2 = scmp.lt.s32.totalorder %s7432_s17, %s7432_s17 }
 0x599   :  { %6203 = vmatprep.subr.bf16.mxu1 %v6202_v54  ;;  %v6546_v55 = vpack.c.bf16 %v16093_v41, %v16092_v40  ;;  %v16095_v3 = vld [vmem:[#allocation14_spill] sm:$0xff]  ;;  %v6548_v7 = vpack.c.bf16 %v16097_v5, %v16096_v2  ;;  %v16101_v38 = vld [vmem:[#allocation332_spill] sm:$0xff]  ;;  %v16104_v18 = vld [vmem:[#allocation329_spill] sm:$0xff] }
 0x59a   :  { %6529 = vmatpush1.bf16.msra.mxu0 %v6528_v20  ;;  %6205 = vmatpush1.bf16.msra.mxu1 %v6204_v48  ;;  %v6210_v0 = vpack.c.bf16 %v16095_v3, %v16094_v1  ;;  %v16100_v26 = vld [vmem:[#allocation330_spill] sm:$0xff]  ;;  %v16102_v29 = vld [vmem:[#allocation16_spill] sm:$0xff]  ;;  %v16105_v39 = vld [vmem:[#allocation331_spill] sm:$0xff]  ;;  %p7439_p3 = por %p7438_p2, %p7437_p1 }
 0x59b   :  { %6531 = vmatprep.subr.bf16.mxu0 %v6530_v61  ;;  %6207 = vmatprep.subr.bf16.mxu1 %v6206_v49  ;;  %v6550_v35 = vpack.c.bf16 %v16101_v38, %v16100_v26  ;;  %v16103_v36 = vld [vmem:[#allocation18_spill] sm:$0xff]  ;;  %v6552_v4 = vpack.c.bf16 %v16105_v39, %v16104_v18  ;;  %v16106_v12 = vld [vmem:[#allocation15_spill] sm:$0xff]  ;;  %v16107_v43 = vld [vmem:[#allocation17_spill] sm:$0xff] }
 0x59c   :  { %v6214_v23 = vpack.c.bf16 %v16103_v36, %v16102_v29  ;;  %v6216_v33 = vpack.c.bf16 %v16107_v43, %v16106_v12  ;;  %v16108_v27 = vld [vmem:[#allocation334_spill] sm:$0xff]  ;;  %v16109_v17 = vld [vmem:[#allocation336_spill] sm:$0xff]  ;;  %v16120_v46 = vld [vmem:[#allocation337_spill] sm:$0xff]  ;;  %p7440_p4 = pnand %p7439_p3, %p7433_p0 }
 0x59d   :  { %v6554_v11 = vpack.c.bf16 %v16109_v17, %v16108_v27  ;;  %v16110_v25 = vld [vmem:[#allocation20_spill] sm:$0xff]  ;;  %v16111_v20 = vld [vmem:[#allocation22_spill] sm:$0xff]  ;;  %v16121_v47 = vld [vmem:[#allocation339_spill] sm:$0xff] }
 0x59e   :  { %6533 = vmatpush1.bf16.msra.mxu0 %v6532_v60  ;;  %6209 = vmatpush1.bf16.msra.mxu1 %v6208_v51  ;;  %v6218_v61 = vpack.c.bf16 %v16111_v20, %v16110_v25  ;;  %v16112_v60 = vld [vmem:[#allocation333_spill] sm:$0xff]  ;;  %v16116_v54 = vld [vmem:[#allocation338_spill] sm:$0xff]  ;;  %v16117_v48 = vld [vmem:[#allocation340_spill] sm:$0xff]  ;;  %v6560_v51 = vpack.c.bf16 %v16121_v47, %v16120_v46 }
 0x59f   :  { %6535 = vmatprep.subr.bf16.mxu0 %v6534_v56  ;;  %6211 = vmatprep.subr.bf16.mxu1 %v6210_v0  ;;  %v16113_v56 = vld [vmem:[#allocation335_spill] sm:$0xff]  ;;  %v6558_v49 = vpack.c.bf16 %v16117_v48, %v16116_v54  ;;  %v16118_v44 = vld [vmem:[#allocation24_spill] sm:$0xff]  ;;  %v16119_v45 = vld [vmem:[#allocation26_spill] sm:$0xff] }
 0x5a0   :  { %v16122_v40 = vld [vmem:[#allocation23_spill] sm:$0xff]  ;;  %v16123_v41 = vld [vmem:[#allocation25_spill] sm:$0xff]  ;;  %v16124_v1 = vld [vmem:[#allocation342_spill] sm:$0xff] }
 0x5a1   :  { %v16125_v3 = vld [vmem:[#allocation344_spill] sm:$0xff]  ;;  %v16127_v5 = vld [vmem:[#allocation30_spill] sm:$0xff]  ;;  %v16128_v59 = vld [vmem:[#allocation341_spill] sm:$0xff] }
 0x5a2   :  { %6537 = vmatpush1.bf16.msra.mxu0 %v6536_v57  ;;  %6213 = vmatpush1.bf16.msra.mxu1 %v6212_v63  ;;  %v6556_v57 = vpack.c.bf16 %v16113_v56, %v16112_v60  ;;  %v6562_v0 = vpack.c.bf16 %v16125_v3, %v16124_v1  ;;  %v16126_v2 = vld [vmem:[#allocation28_spill] sm:$0xff]  ;;  %v16129_v62 = vld [vmem:[#allocation343_spill] sm:$0xff]  ;;  %v16131_v38 = vld [vmem:[#allocation29_spill] sm:$0xff] }
 0x5a3   :  { %6539 = vmatprep.subr.bf16.mxu0 %v6538_v58  ;;  %6215 = vmatprep.subr.bf16.mxu1 %v6214_v23  ;;  %v16114_v58 = vld [vmem:[#allocation19_spill] sm:$0xff]  ;;  %v6564_v63 = vpack.c.bf16 %v16129_v62, %v16128_v59  ;;  %v16132_v29 = vld [vmem:[#allocation346_spill] sm:$0xff]  ;;  %v16133_v36 = vld [vmem:[#allocation348_spill] sm:$0xff] }
 0x5a4   :  { %v16130_v26 = vld [vmem:[#allocation27_spill] sm:$0xff]  ;;  %v6566_v23 = vpack.c.bf16 %v16133_v36, %v16132_v29  ;;  %v16134_v18 = vld [vmem:[#allocation32_spill] sm:$0xff]  ;;  %v16135_v39 = vld [vmem:[#allocation34_spill] sm:$0xff] }
 0x5a5   :  { %v16136_v12 = vld [vmem:[#allocation345_spill] sm:$0xff]  ;;  %v16137_v43 = vld [vmem:[#allocation347_spill] sm:$0xff]  ;;  %v16140_v25 = vld [vmem:[#allocation350_spill] sm:$0xff] }
 0x5a6   :  { %6541 = vmatpush1.bf16.msra.mxu0 %v6540_v52  ;;  %6217 = vmatpush1.bf16.msra.mxu1 %v6216_v33  ;;  %v16115_v52 = vld [vmem:[#allocation21_spill] sm:$0xff]  ;;  %v6568_v33 = vpack.c.bf16 %v16137_v43, %v16136_v12  ;;  %v16138_v27 = vld [vmem:[#allocation31_spill] sm:$0xff]  ;;  %v16141_v20 = vld [vmem:[#allocation352_spill] sm:$0xff] }
 0x5a7   :  { %6543 = vmatprep.subr.bf16.mxu0 %v6542_v53  ;;  %v6220_v53 = vpack.c.bf16 %v16115_v52, %v16114_v58  ;;  %6219 = vmatprep.subr.bf16.mxu1 %v6218_v61  ;;  %v16139_v17 = vld [vmem:[#allocation33_spill] sm:$0xff]  ;;  %v6570_v61 = vpack.c.bf16 %v16141_v20, %v16140_v25  ;;  %v16142_v60 = vld [vmem:[#allocation36_spill] sm:$0xff]  ;;  %v16143_v56 = vld [vmem:[#allocation38_spill] sm:$0xff] }
 0x5a8   :  { %v16144_v58 = vld [vmem:[#allocation349_spill] sm:$0xff]  ;;  %v16145_v52 = vld [vmem:[#allocation351_spill] sm:$0xff]  ;;  %v16150_v46 = vld [vmem:[#allocation40_spill] sm:$0xff] }
 0x5a9   :  { %v16146_v54 = vld [vmem:[#allocation35_spill] sm:$0xff]  ;;  %v16147_v48 = vld [vmem:[#allocation37_spill] sm:$0xff]  ;;  %v16151_v47 = vld [vmem:[#allocation42_spill] sm:$0xff] }
 0x5aa   :  { %6545 = vmatpush1.bf16.msra.mxu0 %v6544_v50  ;;  %v6222_v50 = vpack.c.bf16 %v16119_v45, %v16118_v44  ;;  %6221 = vmatpush1.bf16.msra.mxu1 %v6220_v53  ;;  %v6572_v53 = vpack.c.bf16 %v16145_v52, %v16144_v58  ;;  %v16148_v44 = vld [vmem:[#allocation354_spill] sm:$0xff]  ;;  %v16149_v45 = vld [vmem:[#allocation356_spill] sm:$0xff]  ;;  %v16154_v1 = vld [vmem:[#allocation39_spill] sm:$0xff] }
 0x5ab   :  { %6547 = vmatprep.subr.bf16.mxu0 %v6546_v55  ;;  %v6224_v55 = vpack.c.bf16 %v16123_v41, %v16122_v40  ;;  %v16152_v40 = vld [vmem:[#allocation353_spill] sm:$0xff]  ;;  %v16153_v41 = vld [vmem:[#allocation355_spill] sm:$0xff]  ;;  %v16158_v59 = vld [vmem:[#allocation44_spill] sm:$0xff] }
 0x5ac   :  { %6223 = vmatprep.subr.bf16.mxu1 %v6222_v50  ;;  %v6574_v50 = vpack.c.bf16 %v16149_v45, %v16148_v44  ;;  %v16155_v3 = vld [vmem:[#allocation41_spill] sm:$0xff]  ;;  %v16159_v62 = vld [vmem:[#allocation46_spill] sm:$0xff]  ;;  %v16162_v29 = vld [vmem:[#allocation43_spill] sm:$0xff] }
 0x5ad   :  { %v16163_v36 = vld [vmem:[#allocation45_spill] sm:$0xff]  ;;  %v16166_v12 = vld [vmem:[#allocation48_spill] sm:$0xff]  ;;  %v16167_v43 = vld [vmem:[#allocation50_spill] sm:$0xff] }
 0x5ae   :  { %6549 = vmatpush1.bf16.msra.mxu0 %v6548_v7  ;;  %v6226_v7 = vpack.c.bf16 %v16127_v5, %v16126_v2  ;;  %6225 = vmatpush1.bf16.msra.mxu1 %v6224_v55  ;;  %v6576_v55 = vpack.c.bf16 %v16153_v41, %v16152_v40  ;;  %v16156_v2 = vld [vmem:[#allocation358_spill] sm:$0xff]  ;;  %v16157_v5 = vld [vmem:[#allocation360_spill] sm:$0xff]  ;;  %v16170_v25 = vld [vmem:[#allocation47_spill] sm:$0xff] }
 0x5af   :  { %6551 = vmatprep.subr.bf16.mxu0 %v6550_v35  ;;  %v6228_v35 = vpack.c.bf16 %v16131_v38, %v16130_v26  ;;  %v16160_v26 = vld [vmem:[#allocation357_spill] sm:$0xff]  ;;  %v16161_v38 = vld [vmem:[#allocation359_spill] sm:$0xff]  ;;  %v16174_v58 = vld [vmem:[#allocation52_spill] sm:$0xff] }
 0x5b0   :  { %6227 = vmatprep.subr.bf16.mxu1 %v6226_v7  ;;  %v6578_v7 = vpack.c.bf16 %v16157_v5, %v16156_v2  ;;  %v16171_v20 = vld [vmem:[#allocation49_spill] sm:$0xff]  ;;  %v16175_v52 = vld [vmem:[#allocation54_spill] sm:$0xff]  ;;  %v16179_v45 = vld [vmem:[#allocation372_spill] sm:$0xff] }
 0x5b1   :  { %v16178_v44 = vld [vmem:[#allocation370_spill] sm:$0xff]  ;;  %v16182_v40 = vld [vmem:[#allocation56_spill] sm:$0xff] }
 0x5b2   :  { %6553 = vmatpush1.bf16.msra.mxu0 %v6552_v4  ;;  %v6230_v4 = vpack.c.bf16 %v16135_v39, %v16134_v18  ;;  %6229 = vmatpush1.bf16.msra.mxu1 %v6228_v35  ;;  %v6580_v35 = vpack.c.bf16 %v16161_v38, %v16160_v26  ;;  %v16164_v18 = vld [vmem:[#allocation362_spill] sm:$0xff]  ;;  %v16165_v39 = vld [vmem:[#allocation364_spill] sm:$0xff] }
 0x5b3   :  { %6555 = vmatprep.subr.bf16.mxu0 %v6554_v11  ;;  %v6232_v11 = vpack.c.bf16 %v16139_v17, %v16138_v27  ;;  %v16168_v27 = vld [vmem:[#allocation361_spill] sm:$0xff]  ;;  %v16169_v17 = vld [vmem:[#allocation363_spill] sm:$0xff]  ;;  %v16183_v41 = vld [vmem:[#allocation58_spill] sm:$0xff] }
 0x5b4   :  { %6231 = vmatprep.subr.bf16.mxu1 %v6230_v4  ;;  %v6582_v4 = vpack.c.bf16 %v16165_v39, %v16164_v18  ;;  %v16186_v2 = vld [vmem:[#allocation374_spill] sm:$0xff]  ;;  %v16187_v5 = vld [vmem:[#allocation376_spill] sm:$0xff]  ;;  %v16196_v39 = vld [vmem:[#allocation59_spill] sm:$0xff] }
 0x5b5   :  { %v16190_v26 = vld [vmem:[#allocation60_spill] sm:$0xff]  ;;  %v16191_v38 = vld [vmem:[#allocation62_spill] sm:$0xff] }
 0x5b6   :  { %6557 = vmatpush1.bf16.msra.mxu0 %v6556_v57  ;;  %v6234_v57 = vpack.c.bf16 %v16143_v56, %v16142_v60  ;;  %6233 = vmatpush1.bf16.msra.mxu1 %v6232_v11  ;;  %v6584_v11 = vpack.c.bf16 %v16169_v17, %v16168_v27  ;;  %v16172_v60 = vld [vmem:[#allocation366_spill] sm:$0xff]  ;;  %v16173_v56 = vld [vmem:[#allocation368_spill] sm:$0xff]  ;;  %v16200_v17 = vld [vmem:[#allocation377_spill] sm:$0xff] }
 0x5b7   :  { %6559 = vmatprep.subr.bf16.mxu0 %v6558_v49  ;;  %v6236_v49 = vpack.c.bf16 %v16147_v48, %v16146_v54  ;;  %v16176_v54 = vld [vmem:[#allocation365_spill] sm:$0xff]  ;;  %v16177_v48 = vld [vmem:[#allocation367_spill] sm:$0xff]  ;;  %v16195_v18 = vld [vmem:[#allocation380_spill] sm:$0xff] }
 0x5b8   :  { %6235 = vmatprep.subr.bf16.mxu1 %v6234_v57  ;;  %v6586_v57 = vpack.c.bf16 %v16173_v56, %v16172_v60  ;;  %v16204_v56 = vld [vmem:[#allocation63_spill] sm:$0xff] }
 0x5ba   :  { %6561 = vmatpush1.bf16.msra.mxu0 %v6560_v51  ;;  %v6238_v51 = vpack.c.bf16 %v16151_v47, %v16150_v46  ;;  %6237 = vmatpush1.bf16.msra.mxu1 %v6236_v49  ;;  %v6588_v49 = vpack.c.bf16 %v16177_v48, %v16176_v54  ;;  %v16180_v46 = vld [vmem:[#allocation51_spill] sm:$0xff]  ;;  %v16181_v47 = vld [vmem:[#allocation53_spill] sm:$0xff] }
 0x5bb   :  { %6563 = vmatprep.subr.bf16.mxu0 %v6562_v0  ;;  %v6240_v0 = vpack.c.bf16 %v16155_v3, %v16154_v1  ;;  %v16184_v1 = vld [vmem:[#allocation369_spill] sm:$0xff]  ;;  %v16185_v3 = vld [vmem:[#allocation371_spill] sm:$0xff] }
 0x5bc   :  { %6239 = vmatprep.subr.bf16.mxu1 %v6238_v51  ;;  %v6252_v51 = vpack.c.bf16 %v16181_v47, %v16180_v46  ;;  %v16208_v48 = vld [vmem:[#allocation381_spill] sm:$0xff]  ;;  %v16212_v47 = vld [vmem:[#allocation67_spill] sm:$0xff] }
 0x5be   :  { %6565 = vmatpush1.bf16.msra.mxu0 %v6564_v63  ;;  %v6242_v63 = vpack.c.bf16 %v16159_v62, %v16158_v59  ;;  %6241 = vmatpush1.bf16.msra.mxu1 %v6240_v0  ;;  %v6592_v0 = vpack.c.bf16 %v16185_v3, %v16184_v1  ;;  %v16188_v59 = vld [vmem:[#allocation55_spill] sm:$0xff]  ;;  %v16189_v62 = vld [vmem:[#allocation57_spill] sm:$0xff] }
 0x5bf   :  { %6567 = vmatprep.subr.bf16.mxu0 %v6566_v23  ;;  %v6244_v23 = vpack.c.bf16 %v16163_v36, %v16162_v29  ;;  %v16193_v29 = vld [vmem:[#allocation375_spill] sm:$0xff]  ;;  %v16216_v3 = vld [vmem:[#allocation385_spill] sm:$0xff] }
 0x5c0   :  { %6243 = vmatprep.subr.bf16.mxu1 %v6242_v63  ;;  %v6256_v63 = vpack.c.bf16 %v16189_v62, %v16188_v59  ;;  %v16220_v62 = vld [vmem:[#allocation71_spill] sm:$0xff] }
 0x5c2   :  { %6569 = vmatpush1.bf16.msra.mxu0 %v6568_v33  ;;  %v6246_v33 = vpack.c.bf16 %v16167_v43, %v16166_v12  ;;  %6245 = vmatpush1.bf16.msra.mxu1 %v6244_v23  ;;  %v16194_v23 = vld [vmem:[#allocation378_spill] sm:$0xff]  ;;  %v16198_v43 = vld [vmem:[#allocation64_spill] sm:$0xff] }
 0x5c3   :  { %6571 = vmatprep.subr.bf16.mxu0 %v6570_v61  ;;  %v6248_v61 = vpack.c.bf16 %v16171_v20, %v16170_v25  ;;  %v16202_v20 = vld [vmem:[#allocation382_spill] sm:$0xff] }
 0x5c4   :  { %6247 = vmatprep.subr.bf16.mxu1 %v6246_v33  ;;  %v16199_v33 = vld [vmem:[#allocation66_spill] sm:$0xff] }
 0x5c5   :  { %v6262_v27 = vpack.c.bf16 %v16199_v33, %v16198_v43  ;;  %v16230_v43 = vld [vmem:[#allocation80_spill] sm:$0xff]  ;;  %v16231_v33 = vld [vmem:[#allocation82_spill] sm:$0xff] }
 0x5c6   :  { %6573 = vmatpush1.bf16.msra.mxu0 %v6572_v53  ;;  %v6250_v53 = vpack.c.bf16 %v16175_v52, %v16174_v58  ;;  %6249 = vmatpush1.bf16.msra.mxu1 %v6248_v61  ;;  %v16203_v61 = vld [vmem:[#allocation384_spill] sm:$0xff] }
 0x5c7   :  { %6575 = vmatprep.subr.bf16.mxu0 %v6574_v50  ;;  %v6590_v50 = vpack.c.bf16 %v16179_v45, %v16178_v44  ;;  %v6602_v60 = vpack.c.bf16 %v16203_v61, %v16202_v20  ;;  %v16206_v52 = vld [vmem:[#allocation68_spill] sm:$0xff]  ;;  %v16210_v45 = vld [vmem:[#allocation386_spill] sm:$0xff] }
 0x5c8   :  { %6251 = vmatprep.subr.bf16.mxu1 %v6250_v53  ;;  %v16207_v53 = vld [vmem:[#allocation70_spill] sm:$0xff]  ;;  %v16235_v20 = vld [vmem:[#allocation400_spill] sm:$0xff] }
 0x5c9   :  { %v6266_v54 = vpack.c.bf16 %v16207_v53, %v16206_v52  ;;  %v16239_v52 = vld [vmem:[#allocation86_spill] sm:$0xff] }
 0x5ca   :  { %6577 = vmatpush1.bf16.msra.mxu0 %v6576_v55  ;;  %v6254_v55 = vpack.c.bf16 %v16183_v41, %v16182_v40  ;;  %6253 = vmatpush1.bf16.msra.mxu1 %v6252_v51  ;;  %v16213_v51 = vld [vmem:[#allocation69_spill] sm:$0xff]  ;;  %v16214_v41 = vld [vmem:[#allocation72_spill] sm:$0xff] }
 0x5cb   :  { %6579 = vmatprep.subr.bf16.mxu0 %v6578_v7  ;;  %v6594_v7 = vpack.c.bf16 %v16187_v5, %v16186_v2  ;;  %v6268_v40 = vpack.c.bf16 %v16213_v51, %v16212_v47  ;;  %v16218_v5 = vld [vmem:[#allocation390_spill] sm:$0xff]  ;;  %v16245_v47 = vld [vmem:[#allocation85_spill] sm:$0xff] }
 0x5cc   :  { %6255 = vmatprep.subr.bf16.mxu1 %v6254_v55  ;;  %v16215_v55 = vld [vmem:[#allocation74_spill] sm:$0xff] }
 0x5cd   :  { %v6270_v1 = vpack.c.bf16 %v16215_v55, %v16214_v41  ;;  %v16247_v41 = vld [vmem:[#allocation90_spill] sm:$0xff] }
 0x5ce   :  { %6581 = vmatpush1.bf16.msra.mxu0 %v6580_v35  ;;  %v6258_v35 = vpack.c.bf16 %v16191_v38, %v16190_v26  ;;  %6257 = vmatpush1.bf16.msra.mxu1 %v6256_v63  ;;  %v16221_v63 = vld [vmem:[#allocation73_spill] sm:$0xff]  ;;  %v16222_v38 = vld [vmem:[#allocation76_spill] sm:$0xff] }
 0x5cf   :  { %6583 = vmatprep.subr.bf16.mxu0 %v6582_v4  ;;  %v16197_v4 = vld [vmem:[#allocation61_spill] sm:$0xff]  ;;  %v6272_v26 = vpack.c.bf16 %v16221_v63, %v16220_v62 }
 0x5d0   :  { %v6260_v12 = vpack.c.bf16 %v16197_v4, %v16196_v39  ;;  %6259 = vmatprep.subr.bf16.mxu1 %v6258_v35  ;;  %v16223_v35 = vld [vmem:[#allocation78_spill] sm:$0xff]  ;;  %v16228_v39 = vld [vmem:[#allocation75_spill] sm:$0xff]  ;;  %v16229_v4 = vld [vmem:[#allocation77_spill] sm:$0xff] }
 0x5d1   :  { %v16253_v62 = vld [vmem:[#allocation89_spill] sm:$0xff] }
 0x5d2   :  { %6585 = vmatpush1.bf16.msra.mxu0 %v6584_v11  ;;  %v16201_v11 = vld [vmem:[#allocation379_spill] sm:$0xff]  ;;  %6261 = vmatpush1.bf16.msra.mxu1 %v6260_v12  ;;  %v6276_v12 = vpack.c.bf16 %v16229_v4, %v16228_v39  ;;  %v16261_v39 = vld [vmem:[#allocation93_spill] sm:$0xff] }
 0x5d3   :  { %6587 = vmatprep.subr.bf16.mxu0 %v6586_v57  ;;  %v6600_v25 = vpack.c.bf16 %v16201_v11, %v16200_v17  ;;  %v16205_v57 = vld [vmem:[#allocation65_spill] sm:$0xff]  ;;  %6263 = vmatprep.subr.bf16.mxu1 %v6262_v27  ;;  %v6278_v27 = vpack.c.bf16 %v16231_v33, %v16230_v43  ;;  %v16233_v11 = vld [vmem:[#allocation395_spill] sm:$0xff]  ;;  %v16263_v43 = vld [vmem:[#allocation98_spill] sm:$0xff] }
 0x5d4   :  { %v6264_v58 = vpack.c.bf16 %v16205_v57, %v16204_v56  ;;  %v16232_v17 = vld [vmem:[#allocation393_spill] sm:$0xff] }
 0x5d5   :  { %4893 = vmatmul.mubr.f32.vlgmr.msra.gmra.mrb[0].mxu0 %v13817_v16  ;;  %v16192_v16 = vld [vmem:[#allocation373_spill] sm:$0xff] }
 0x5d6   :  { %6589 = vmatpush1.bf16.msra.mxu0 %v6588_v49  ;;  %4963 = vmatprep.mubr.f32.mxu0 %v13824_v9  ;;  %v6596_v36 = vpack.c.bf16 %v16193_v29, %v16192_v16  ;;  %v6598_v9 = vpack.c.bf16 %v16195_v18, %v16194_v23  ;;  %v16209_v49 = vld [vmem:[#allocation383_spill] sm:$0xff]  ;;  %v6274_v16 = vpack.c.bf16 %v16223_v35, %v16222_v38  ;;  %v16224_v29 = vld [vmem:[#allocation389_spill] sm:$0xff]  ;;  %v16227_v18 = vld [vmem:[#allocation396_spill] sm:$0xff] }
 0x5d7   :  { %6591 = vmatprep.subr.bf16.mxu0 %v6590_v50  ;;  %v6604_v44 = vpack.c.bf16 %v16209_v49, %v16208_v48  ;;  %v16211_v50 = vld [vmem:[#allocation388_spill] sm:$0xff]  ;;  %6265 = vmatpush1.bf16.msra.mxu1 %v6264_v58  ;;  %v16237_v56 = vld [vmem:[#allocation81_spill] sm:$0xff]  ;;  %v16241_v48 = vld [vmem:[#allocation399_spill] sm:$0xff] }
 0x5d8   :  { %v6606_v46 = vpack.c.bf16 %v16211_v50, %v16210_v45  ;;  %6267 = vmatprep.subr.bf16.mxu1 %v6266_v54  ;;  %v16238_v58 = vld [vmem:[#allocation84_spill] sm:$0xff]  ;;  %v16240_v54 = vld [vmem:[#allocation397_spill] sm:$0xff]  ;;  %v16255_v38 = vld [vmem:[#allocation94_spill] sm:$0xff] }
 0x5d9   :  { %v6282_v53 = vpack.c.bf16 %v16239_v52, %v16238_v58  ;;  %v6620_v49 = vpack.c.bf16 %v16241_v48, %v16240_v54  ;;  %v16243_v45 = vld [vmem:[#allocation404_spill] sm:$0xff]  ;;  %v16271_v58 = vld [vmem:[#allocation102_spill] sm:$0xff]  ;;  %v16273_v54 = vld [vmem:[#allocation415_spill] sm:$0xff] }
 0x5da   :  { %6593 = vmatpush1.bf16.msra.mxu0 %v6592_v0  ;;  %v16217_v0 = vld [vmem:[#allocation387_spill] sm:$0xff]  ;;  %4538 = vmatmul.mubr.f32.vlgmr.msra.gmra.mrb[28].mxu1 %v13787_v32  ;;  %v16226_v32 = vld [vmem:[#allocation394_spill] sm:$0xff] }
 0x5db   :  { %6595 = vmatprep.subr.bf16.mxu0 %v6594_v7  ;;  %v6608_v2 = vpack.c.bf16 %v16217_v0, %v16216_v3  ;;  %v16219_v7 = vld [vmem:[#allocation392_spill] sm:$0xff]  ;;  %6269 = vmatpush1.bf16.msra.mxu1 %v6268_v40  ;;  %v16249_v3 = vld [vmem:[#allocation403_spill] sm:$0xff] }
 0x5dc   :  { %v6610_v59 = vpack.c.bf16 %v16219_v7, %v16218_v5  ;;  %6271 = vmatprep.subr.bf16.mxu1 %v6270_v1  ;;  %4608 = vmatprep.mubr.f32.mxu1 %v13796_v6  ;;  %v6616_v6 = vpack.c.bf16 %v16233_v11, %v16232_v17  ;;  %v16246_v40 = vld [vmem:[#allocation88_spill] sm:$0xff]  ;;  %v16248_v1 = vld [vmem:[#allocation401_spill] sm:$0xff]  ;;  %v16265_v17 = vld [vmem:[#allocation411_spill] sm:$0xff] }
 0x5dd   :  { %v6286_v55 = vpack.c.bf16 %v16247_v41, %v16246_v40  ;;  %v6624_v0 = vpack.c.bf16 %v16249_v3, %v16248_v1  ;;  %v16251_v5 = vld [vmem:[#allocation408_spill] sm:$0xff]  ;;  %v16279_v40 = vld [vmem:[#allocation106_spill] sm:$0xff]  ;;  %v16281_v1 = vld [vmem:[#allocation419_spill] sm:$0xff] }
 0x5de   :  { %6597 = vmatpush1.bf16.msra.mxu0 %v6596_v36  ;;  %v16225_v36 = vld [vmem:[#allocation391_spill] sm:$0xff] }
 0x5df   :  { %6599 = vmatprep.subr.bf16.mxu0 %v6598_v9  ;;  %v6612_v23 = vpack.c.bf16 %v16225_v36, %v16224_v29  ;;  %v6614_v9 = vpack.c.bf16 %v16227_v18, %v16226_v32  ;;  %6273 = vmatpush1.bf16.msra.mxu1 %v6272_v26  ;;  %v16254_v26 = vld [vmem:[#allocation92_spill] sm:$0xff]  ;;  %v16257_v29 = vld [vmem:[#allocation407_spill] sm:$0xff] }
 0x5e0   :  { %6275 = vmatprep.subr.bf16.mxu1 %v6274_v16  ;;  %v6290_v35 = vpack.c.bf16 %v16255_v38, %v16254_v26  ;;  %v16256_v16 = vld [vmem:[#allocation405_spill] sm:$0xff]  ;;  %v16259_v32 = vld [vmem:[#allocation412_spill] sm:$0xff]  ;;  %v16287_v26 = vld [vmem:[#allocation110_spill] sm:$0xff] }
 0x5e1   :  { %v6628_v36 = vpack.c.bf16 %v16257_v29, %v16256_v16  ;;  %v16289_v16 = vld [vmem:[#allocation423_spill] sm:$0xff] }
 0x5e2   :  { %6601 = vmatpush1.bf16.msra.mxu0 %v6600_v25  ;;  %v16234_v25 = vld [vmem:[#allocation398_spill] sm:$0xff] }
 0x5e3   :  { %6603 = vmatprep.subr.bf16.mxu0 %v6602_v60  ;;  %v6618_v61 = vpack.c.bf16 %v16235_v20, %v16234_v25  ;;  %6277 = vmatpush1.bf16.msra.mxu1 %v6276_v12  ;;  %v16236_v60 = vld [vmem:[#allocation79_spill] sm:$0xff]  ;;  %v16262_v12 = vld [vmem:[#allocation96_spill] sm:$0xff] }
 0x5e4   :  { %v6280_v57 = vpack.c.bf16 %v16237_v56, %v16236_v60  ;;  %6279 = vmatprep.subr.bf16.mxu1 %v6278_v27  ;;  %v6294_v33 = vpack.c.bf16 %v16263_v43, %v16262_v12  ;;  %v16264_v27 = vld [vmem:[#allocation409_spill] sm:$0xff]  ;;  %v16267_v25 = vld [vmem:[#allocation416_spill] sm:$0xff]  ;;  %v16295_v12 = vld [vmem:[#allocation114_spill] sm:$0xff] }
 0x5e5   :  { %v6632_v11 = vpack.c.bf16 %v16265_v17, %v16264_v27  ;;  %v16269_v60 = vld [vmem:[#allocation97_spill] sm:$0xff]  ;;  %v16297_v27 = vld [vmem:[#allocation427_spill] sm:$0xff] }
 0x5e6   :  { %6605 = vmatpush1.bf16.msra.mxu0 %v6604_v44  ;;  %v16242_v44 = vld [vmem:[#allocation402_spill] sm:$0xff] }
 0x5e7   :  { %6607 = vmatprep.subr.bf16.mxu0 %v6606_v46  ;;  %v6622_v50 = vpack.c.bf16 %v16243_v45, %v16242_v44  ;;  %6281 = vmatpush1.bf16.msra.mxu1 %v6280_v57  ;;  %v16244_v46 = vld [vmem:[#allocation83_spill] sm:$0xff]  ;;  %v16270_v57 = vld [vmem:[#allocation100_spill] sm:$0xff] }
 0x5e8   :  { %v6284_v51 = vpack.c.bf16 %v16245_v47, %v16244_v46  ;;  %6283 = vmatprep.subr.bf16.mxu1 %v6282_v53  ;;  %v6298_v52 = vpack.c.bf16 %v16271_v58, %v16270_v57  ;;  %v16272_v53 = vld [vmem:[#allocation413_spill] sm:$0xff]  ;;  %v16275_v44 = vld [vmem:[#allocation420_spill] sm:$0xff]  ;;  %v16303_v57 = vld [vmem:[#allocation118_spill] sm:$0xff] }
 0x5e9   :  { %v6636_v48 = vpack.c.bf16 %v16273_v54, %v16272_v53  ;;  %v16277_v46 = vld [vmem:[#allocation101_spill] sm:$0xff]  ;;  %v16305_v53 = vld [vmem:[#allocation431_spill] sm:$0xff] }
 0x5ea   :  { %6609 = vmatpush1.bf16.msra.mxu0 %v6608_v2  ;;  %v16250_v2 = vld [vmem:[#allocation406_spill] sm:$0xff] }
 0x5eb   :  { %6611 = vmatprep.subr.bf16.mxu0 %v6610_v59  ;;  %v6626_v7 = vpack.c.bf16 %v16251_v5, %v16250_v2  ;;  %6285 = vmatpush1.bf16.msra.mxu1 %v6284_v51  ;;  %v16252_v59 = vld [vmem:[#allocation87_spill] sm:$0xff]  ;;  %v16278_v51 = vld [vmem:[#allocation104_spill] sm:$0xff] }
 0x5ec   :  { %v6288_v63 = vpack.c.bf16 %v16253_v62, %v16252_v59  ;;  %6287 = vmatprep.subr.bf16.mxu1 %v6286_v55  ;;  %v6302_v41 = vpack.c.bf16 %v16279_v40, %v16278_v51  ;;  %v16280_v55 = vld [vmem:[#allocation417_spill] sm:$0xff]  ;;  %v16283_v2 = vld [vmem:[#allocation424_spill] sm:$0xff]  ;;  %v16311_v51 = vld [vmem:[#allocation122_spill] sm:$0xff] }
 0x5ed   :  { %v6640_v3 = vpack.c.bf16 %v16281_v1, %v16280_v55  ;;  %v16285_v59 = vld [vmem:[#allocation105_spill] sm:$0xff]  ;;  %v16313_v55 = vld [vmem:[#allocation435_spill] sm:$0xff] }
 0x5ee   :  { %6613 = vmatpush1.bf16.msra.mxu0 %v6612_v23  ;;  %v16258_v23 = vld [vmem:[#allocation410_spill] sm:$0xff] }
 0x5ef   :  { %6615 = vmatprep.subr.bf16.mxu0 %v6614_v9  ;;  %v6630_v18 = vpack.c.bf16 %v16259_v32, %v16258_v23  ;;  %6289 = vmatpush1.bf16.msra.mxu1 %v6288_v63  ;;  %v16260_v9 = vld [vmem:[#allocation91_spill] sm:$0xff]  ;;  %v16286_v63 = vld [vmem:[#allocation108_spill] sm:$0xff] }
 0x5f0   :  { %v6292_v4 = vpack.c.bf16 %v16261_v39, %v16260_v9  ;;  %6291 = vmatprep.subr.bf16.mxu1 %v6290_v35  ;;  %v6306_v38 = vpack.c.bf16 %v16287_v26, %v16286_v63  ;;  %v16288_v35 = vld [vmem:[#allocation421_spill] sm:$0xff]  ;;  %v16291_v23 = vld [vmem:[#allocation428_spill] sm:$0xff]  ;;  %v16319_v63 = vld [vmem:[#allocation126_spill] sm:$0xff] }
 0x5f1   :  { %v6644_v29 = vpack.c.bf16 %v16289_v16, %v16288_v35  ;;  %v16293_v9 = vld [vmem:[#allocation109_spill] sm:$0xff]  ;;  %v16322_v16 = vld [vmem:[#allocation442_spill] sm:$0xff] }
 0x5f2   :  { %6617 = vmatpush1.bf16.msra.mxu0 %v6616_v6  ;;  %v16266_v6 = vld [vmem:[#allocation414_spill] sm:$0xff] }
 0x5f3   :  { %6619 = vmatprep.subr.bf16.mxu0 %v6618_v61  ;;  %v6634_v20 = vpack.c.bf16 %v16267_v25, %v16266_v6  ;;  %6293 = vmatpush1.bf16.msra.mxu1 %v6292_v4  ;;  %v16268_v61 = vld [vmem:[#allocation95_spill] sm:$0xff]  ;;  %v16294_v4 = vld [vmem:[#allocation112_spill] sm:$0xff] }
 0x5f4   :  { %v6296_v56 = vpack.c.bf16 %v16269_v60, %v16268_v61  ;;  %6295 = vmatprep.subr.bf16.mxu1 %v6294_v33  ;;  %v6310_v43 = vpack.c.bf16 %v16295_v12, %v16294_v4  ;;  %v16296_v33 = vld [vmem:[#allocation425_spill] sm:$0xff]  ;;  %v16299_v6 = vld [vmem:[#allocation432_spill] sm:$0xff]  ;;  %v16329_v12 = vld [vmem:[#allocation443_spill] sm:$0xff] }
 0x5f5   :  { %v6648_v17 = vpack.c.bf16 %v16297_v27, %v16296_v33  ;;  %v16301_v61 = vld [vmem:[#allocation113_spill] sm:$0xff]  ;;  %v16330_v33 = vld [vmem:[#allocation446_spill] sm:$0xff]  ;;  %v16331_v27 = vld [vmem:[#allocation448_spill] sm:$0xff] }
 0x5f6   :  { %6621 = vmatpush1.bf16.msra.mxu0 %v6620_v49  ;;  %v16274_v49 = vld [vmem:[#allocation418_spill] sm:$0xff]  ;;  %v16328_v4 = vld [vmem:[#allocation441_spill] sm:$0xff] }
 0x5f7   :  { %6623 = vmatprep.subr.bf16.mxu0 %v6622_v50  ;;  %v6638_v45 = vpack.c.bf16 %v16275_v44, %v16274_v49  ;;  %6297 = vmatpush1.bf16.msra.mxu1 %v6296_v56  ;;  %v16276_v50 = vld [vmem:[#allocation99_spill] sm:$0xff]  ;;  %v16302_v56 = vld [vmem:[#allocation116_spill] sm:$0xff] }
 0x5f8   :  { %v6300_v47 = vpack.c.bf16 %v16277_v46, %v16276_v50  ;;  %6299 = vmatprep.subr.bf16.mxu1 %v6298_v52  ;;  %v6314_v58 = vpack.c.bf16 %v16303_v57, %v16302_v56  ;;  %v16304_v52 = vld [vmem:[#allocation429_spill] sm:$0xff]  ;;  %v16307_v49 = vld [vmem:[#allocation436_spill] sm:$0xff]  ;;  %v16337_v57 = vld [vmem:[#allocation447_spill] sm:$0xff] }
 0x5f9   :  { %v6652_v54 = vpack.c.bf16 %v16305_v53, %v16304_v52  ;;  %v16309_v50 = vld [vmem:[#allocation117_spill] sm:$0xff]  ;;  %v16338_v52 = vld [vmem:[#allocation450_spill] sm:$0xff]  ;;  %v16339_v53 = vld [vmem:[#allocation452_spill] sm:$0xff] }
 0x5fa   :  { %6625 = vmatpush1.bf16.msra.mxu0 %v6624_v0  ;;  %v16282_v0 = vld [vmem:[#allocation422_spill] sm:$0xff]  ;;  %v16336_v56 = vld [vmem:[#allocation445_spill] sm:$0xff] }
 0x5fb   :  { %6627 = vmatprep.subr.bf16.mxu0 %v6626_v7  ;;  %v6642_v5 = vpack.c.bf16 %v16283_v2, %v16282_v0  ;;  %6301 = vmatpush1.bf16.msra.mxu1 %v6300_v47  ;;  %v16284_v7 = vld [vmem:[#allocation103_spill] sm:$0xff]  ;;  %v16310_v47 = vld [vmem:[#allocation120_spill] sm:$0xff] }
 0x5fc   :  { %v6304_v62 = vpack.c.bf16 %v16285_v59, %v16284_v7  ;;  %6303 = vmatprep.subr.bf16.mxu1 %v6302_v41  ;;  %v6318_v40 = vpack.c.bf16 %v16311_v51, %v16310_v47  ;;  %v16312_v41 = vld [vmem:[#allocation433_spill] sm:$0xff]  ;;  %v16315_v0 = vld [vmem:[#allocation440_spill] sm:$0xff]  ;;  %v16345_v51 = vld [vmem:[#allocation451_spill] sm:$0xff] }
 0x5fd   :  { %v6656_v1 = vpack.c.bf16 %v16313_v55, %v16312_v41  ;;  %v16317_v7 = vld [vmem:[#allocation121_spill] sm:$0xff]  ;;  %v16346_v41 = vld [vmem:[#allocation454_spill] sm:$0xff]  ;;  %v16347_v55 = vld [vmem:[#allocation456_spill] sm:$0xff] }
 0x5fe   :  { %6629 = vmatpush1.bf16.msra.mxu0 %v6628_v36  ;;  %v16290_v36 = vld [vmem:[#allocation426_spill] sm:$0xff]  ;;  %v16344_v47 = vld [vmem:[#allocation449_spill] sm:$0xff] }
 0x5ff   :  { %6631 = vmatprep.subr.bf16.mxu0 %v6630_v18  ;;  %v6646_v32 = vpack.c.bf16 %v16291_v23, %v16290_v36  ;;  %6305 = vmatpush1.bf16.msra.mxu1 %v6304_v62  ;;  %v16292_v18 = vld [vmem:[#allocation107_spill] sm:$0xff]  ;;  %v16318_v62 = vld [vmem:[#allocation124_spill] sm:$0xff]  ;;  %v16325_v23 = vld [vmem:[#allocation125_spill] sm:$0xff] }
 0x600   :  { %v6308_v39 = vpack.c.bf16 %v16293_v9, %v16292_v18  ;;  %6307 = vmatprep.subr.bf16.mxu1 %v6306_v38  ;;  %v6322_v26 = vpack.c.bf16 %v16319_v63, %v16318_v62  ;;  %v16321_v38 = vld [vmem:[#allocation439_spill] sm:$0xff]  ;;  %v16326_v18 = vld [vmem:[#allocation128_spill] sm:$0xff]  ;;  %v16327_v9 = vld [vmem:[#allocation130_spill] sm:$0xff] }
 0x601   :  { %v16324_v36 = vld [vmem:[#allocation123_spill] sm:$0xff]  ;;  %v16352_v62 = vld [vmem:[#allocation453_spill] sm:$0xff] }
 0x602   :  { %6633 = vmatpush1.bf16.msra.mxu0 %v6632_v11  ;;  %v16298_v11 = vld [vmem:[#allocation430_spill] sm:$0xff]  ;;  %v16353_v63 = vld [vmem:[#allocation455_spill] sm:$0xff] }
 0x603   :  { %6635 = vmatprep.subr.bf16.mxu0 %v6634_v20  ;;  %v6650_v25 = vpack.c.bf16 %v16299_v6, %v16298_v11  ;;  %6309 = vmatpush1.bf16.msra.mxu1 %v6308_v39  ;;  %v16300_v20 = vld [vmem:[#allocation111_spill] sm:$0xff]  ;;  %v6326_v39 = vpack.c.bf16 %v16327_v9, %v16326_v18  ;;  %v16333_v6 = vld [vmem:[#allocation129_spill] sm:$0xff]  ;;  %v16362_v9 = vld [vmem:[#allocation462_spill] sm:$0xff] }
 0x604   :  { %v6312_v60 = vpack.c.bf16 %v16301_v61, %v16300_v20  ;;  %6311 = vmatprep.subr.bf16.mxu1 %v6310_v43  ;;  %v6664_v43 = vpack.c.bf16 %v16329_v12, %v16328_v4  ;;  %v16332_v11 = vld [vmem:[#allocation127_spill] sm:$0xff]  ;;  %v16334_v20 = vld [vmem:[#allocation132_spill] sm:$0xff]  ;;  %v16335_v61 = vld [vmem:[#allocation134_spill] sm:$0xff] }
 0x605   :  { %v16361_v18 = vld [vmem:[#allocation459_spill] sm:$0xff] }
 0x606   :  { %6637 = vmatpush1.bf16.msra.mxu0 %v6636_v48  ;;  %v16306_v48 = vld [vmem:[#allocation434_spill] sm:$0xff]  ;;  %v16364_v12 = vld [vmem:[#allocation143_spill] sm:$0xff] }
 0x607   :  { %6639 = vmatprep.subr.bf16.mxu0 %v6638_v45  ;;  %v6654_v44 = vpack.c.bf16 %v16307_v49, %v16306_v48  ;;  %6313 = vmatpush1.bf16.msra.mxu1 %v6312_v60  ;;  %v16308_v45 = vld [vmem:[#allocation115_spill] sm:$0xff]  ;;  %v6330_v60 = vpack.c.bf16 %v16335_v61, %v16334_v20  ;;  %v16341_v49 = vld [vmem:[#allocation133_spill] sm:$0xff]  ;;  %v16370_v61 = vld [vmem:[#allocation466_spill] sm:$0xff] }
 0x608   :  { %v6316_v46 = vpack.c.bf16 %v16309_v50, %v16308_v45  ;;  %6315 = vmatprep.subr.bf16.mxu1 %v6314_v58  ;;  %v6668_v58 = vpack.c.bf16 %v16337_v57, %v16336_v56  ;;  %v16340_v48 = vld [vmem:[#allocation131_spill] sm:$0xff]  ;;  %v16342_v45 = vld [vmem:[#allocation136_spill] sm:$0xff]  ;;  %v16343_v50 = vld [vmem:[#allocation138_spill] sm:$0xff] }
 0x609   :  { %v16372_v57 = vld [vmem:[#allocation147_spill] sm:$0xff] }
 0x60a   :  { %6641 = vmatpush1.bf16.msra.mxu0 %v6640_v3  ;;  %v16314_v3 = vld [vmem:[#allocation438_spill] sm:$0xff] }
 0x60b   :  { %6643 = vmatprep.subr.bf16.mxu0 %v6642_v5  ;;  %v6658_v2 = vpack.c.bf16 %v16315_v0, %v16314_v3  ;;  %6317 = vmatpush1.bf16.msra.mxu1 %v6316_v46  ;;  %v16316_v5 = vld [vmem:[#allocation119_spill] sm:$0xff]  ;;  %v6334_v46 = vpack.c.bf16 %v16343_v50, %v16342_v45  ;;  %v16349_v0 = vld [vmem:[#allocation137_spill] sm:$0xff]  ;;  %v16378_v50 = vld [vmem:[#allocation470_spill] sm:$0xff] }
 0x60c   :  { %v6320_v59 = vpack.c.bf16 %v16317_v7, %v16316_v5  ;;  %6319 = vmatprep.subr.bf16.mxu1 %v6318_v40  ;;  %v6672_v40 = vpack.c.bf16 %v16345_v51, %v16344_v47  ;;  %v16348_v3 = vld [vmem:[#allocation135_spill] sm:$0xff]  ;;  %v16350_v5 = vld [vmem:[#allocation140_spill] sm:$0xff]  ;;  %v16351_v7 = vld [vmem:[#allocation142_spill] sm:$0xff] }
 0x60d   :  { %v16380_v51 = vld [vmem:[#allocation151_spill] sm:$0xff] }
 0x60e   :  { %6645 = vmatpush1.bf16.msra.mxu0 %v6644_v29  ;;  %v16323_v29 = vld [vmem:[#allocation444_spill] sm:$0xff] }
 0x60f   :  { %6647 = vmatprep.subr.bf16.mxu0 %v6646_v32  ;;  %6321 = vmatpush1.bf16.msra.mxu1 %v6320_v59  ;;  %v6324_v32 = vpack.c.bf16 %v16325_v23, %v16324_v36  ;;  %v6338_v59 = vpack.c.bf16 %v16351_v7, %v16350_v5  ;;  %v16359_v36 = vld [vmem:[#allocation146_spill] sm:$0xff] }
 0x610   :  { %6323 = vmatprep.subr.bf16.mxu1 %v6322_v26  ;;  %v6676_v26 = vpack.c.bf16 %v16353_v63, %v16352_v62  ;;  %v16386_v7 = vld [vmem:[#allocation474_spill] sm:$0xff]  ;;  %v16388_v63 = vld [vmem:[#allocation155_spill] sm:$0xff] }
 0x612   :  { %6649 = vmatpush1.bf16.msra.mxu0 %v6648_v17  ;;  %v6666_v17 = vpack.c.bf16 %v16331_v27, %v16330_v33  ;;  %v16366_v27 = vld [vmem:[#allocation148_spill] sm:$0xff] }
 0x613   :  { %6651 = vmatprep.subr.bf16.mxu0 %v6650_v25  ;;  %6325 = vmatpush1.bf16.msra.mxu1 %v6324_v32  ;;  %v6328_v25 = vpack.c.bf16 %v16333_v6, %v16332_v11  ;;  %v16360_v32 = vld [vmem:[#allocation457_spill] sm:$0xff] }
 0x614   :  { %6327 = vmatprep.subr.bf16.mxu1 %v6326_v39  ;;  %v16363_v39 = vld [vmem:[#allocation464_spill] sm:$0xff]  ;;  %v16368_v6 = vld [vmem:[#allocation461_spill] sm:$0xff] }
 0x615   :  { %4964 = vmatmul.mubr.f32.vlgmr.msra.gmra.mrb[0].mxu0 %v13821_v30  ;;  %v16320_v30 = vld [vmem:[#allocation437_spill] sm:$0xff]  ;;  %v6682_v4 = vpack.c.bf16 %v16363_v39, %v16362_v9  ;;  %v16398_v39 = vld [vmem:[#allocation164_spill] sm:$0xff] }
 0x616   :  { %6653 = vmatpush1.bf16.msra.mxu0 %v6652_v54  ;;  %5034 = vmatprep.mubr.f32.mxu0 %v13830_v28  ;;  %v6660_v35 = vpack.c.bf16 %v16321_v38, %v16320_v30  ;;  %v6662_v28 = vpack.c.bf16 %v16323_v29, %v16322_v16  ;;  %v6670_v54 = vpack.c.bf16 %v16339_v53, %v16338_v52  ;;  %v16355_v30 = vld [vmem:[#allocation460_spill] sm:$0xff]  ;;  %v16357_v16 = vld [vmem:[#allocation141_spill] sm:$0xff] }
 0x617   :  { %6655 = vmatprep.subr.bf16.mxu0 %v6654_v44  ;;  %6329 = vmatpush1.bf16.msra.mxu1 %v6328_v25  ;;  %v6332_v44 = vpack.c.bf16 %v16341_v49, %v16340_v48  ;;  %v16369_v25 = vld [vmem:[#allocation463_spill] sm:$0xff]  ;;  %v16374_v53 = vld [vmem:[#allocation152_spill] sm:$0xff]  ;;  %v16376_v49 = vld [vmem:[#allocation465_spill] sm:$0xff] }
 0x618   :  { %6331 = vmatprep.subr.bf16.mxu1 %v6330_v60  ;;  %v6684_v20 = vpack.c.bf16 %v16369_v25, %v16368_v6  ;;  %v16371_v60 = vld [vmem:[#allocation468_spill] sm:$0xff]  ;;  %v16404_v25 = vld [vmem:[#allocation163_spill] sm:$0xff] }
 0x619   :  { %v6686_v56 = vpack.c.bf16 %v16371_v60, %v16370_v61  ;;  %v16406_v60 = vld [vmem:[#allocation168_spill] sm:$0xff] }
 0x61a   :  { %6657 = vmatpush1.bf16.msra.mxu0 %v6656_v1  ;;  %4609 = vmatmul.mubr.f32.vlgmr.msra.gmra.mrb[28].mxu1 %v13793_v10  ;;  %v6674_v1 = vpack.c.bf16 %v16347_v55, %v16346_v41  ;;  %v16354_v10 = vld [vmem:[#allocation458_spill] sm:$0xff]  ;;  %v16382_v55 = vld [vmem:[#allocation156_spill] sm:$0xff] }
 0x61b   :  { %6659 = vmatprep.subr.bf16.mxu0 %v6658_v2  ;;  %6333 = vmatpush1.bf16.msra.mxu1 %v6332_v44  ;;  %v6336_v2 = vpack.c.bf16 %v16349_v0, %v16348_v3  ;;  %v6678_v38 = vpack.c.bf16 %v16355_v30, %v16354_v10  ;;  %v16377_v44 = vld [vmem:[#allocation467_spill] sm:$0xff]  ;;  %v16384_v0 = vld [vmem:[#allocation469_spill] sm:$0xff]  ;;  %v16390_v30 = vld [vmem:[#allocation160_spill] sm:$0xff] }
 0x61c   :  { %6335 = vmatprep.subr.bf16.mxu1 %v6334_v46  ;;  %4679 = vmatprep.mubr.f32.mxu1 %v13802_v19  ;;  %v6680_v19 = vpack.c.bf16 %v16361_v18, %v16360_v32  ;;  %v6688_v45 = vpack.c.bf16 %v16377_v44, %v16376_v49  ;;  %v16379_v46 = vld [vmem:[#allocation472_spill] sm:$0xff]  ;;  %v16396_v18 = vld [vmem:[#allocation159_spill] sm:$0xff] }
 0x61d   :  { %v6690_v47 = vpack.c.bf16 %v16379_v46, %v16378_v50  ;;  %v16412_v44 = vld [vmem:[#allocation167_spill] sm:$0xff]  ;;  %v16414_v46 = vld [vmem:[#allocation172_spill] sm:$0xff] }
 0x61e   :  { %6661 = vmatpush1.bf16.msra.mxu0 %v6660_v35  ;;  %v16356_v35 = vld [vmem:[#allocation139_spill] sm:$0xff] }
 0x61f   :  { %6663 = vmatprep.subr.bf16.mxu0 %v6662_v28  ;;  %6337 = vmatpush1.bf16.msra.mxu1 %v6336_v2  ;;  %v6340_v29 = vpack.c.bf16 %v16357_v16, %v16356_v35  ;;  %v16358_v28 = vld [vmem:[#allocation144_spill] sm:$0xff]  ;;  %v16385_v2 = vld [vmem:[#allocation471_spill] sm:$0xff]  ;;  %v16392_v16 = vld [vmem:[#allocation473_spill] sm:$0xff] }
 0x620   :  { %6339 = vmatprep.subr.bf16.mxu1 %v6338_v59  ;;  %v6342_v23 = vpack.c.bf16 %v16359_v36, %v16358_v28  ;;  %v6692_v5 = vpack.c.bf16 %v16385_v2, %v16384_v0  ;;  %v16387_v59 = vld [vmem:[#allocation476_spill] sm:$0xff]  ;;  %v16394_v36 = vld [vmem:[#allocation478_spill] sm:$0xff]  ;;  %v16420_v2 = vld [vmem:[#allocation171_spill] sm:$0xff] }
 0x621   :  { %v6694_v62 = vpack.c.bf16 %v16387_v59, %v16386_v7  ;;  %v16422_v59 = vld [vmem:[#allocation176_spill] sm:$0xff] }
 0x622   :  { %6665 = vmatpush1.bf16.msra.mxu0 %v6664_v43  ;;  %v16365_v43 = vld [vmem:[#allocation145_spill] sm:$0xff] }
 0x623   :  { %6667 = vmatprep.subr.bf16.mxu0 %v6666_v17  ;;  %6341 = vmatpush1.bf16.msra.mxu1 %v6340_v29  ;;  %v6344_v33 = vpack.c.bf16 %v16365_v43, %v16364_v12  ;;  %v16367_v17 = vld [vmem:[#allocation150_spill] sm:$0xff]  ;;  %v16393_v29 = vld [vmem:[#allocation475_spill] sm:$0xff]  ;;  %v16400_v43 = vld [vmem:[#allocation477_spill] sm:$0xff] }
 0x624   :  { %6343 = vmatprep.subr.bf16.mxu1 %v6342_v23  ;;  %v6346_v11 = vpack.c.bf16 %v16367_v17, %v16366_v27  ;;  %v6696_v28 = vpack.c.bf16 %v16393_v29, %v16392_v16  ;;  %v16395_v23 = vld [vmem:[#allocation480_spill] sm:$0xff]  ;;  %v16402_v17 = vld [vmem:[#allocation482_spill] sm:$0xff]  ;;  %v16428_v29 = vld [vmem:[#allocation175_spill] sm:$0xff] }
 0x625   :  { %v6698_v32 = vpack.c.bf16 %v16395_v23, %v16394_v36  ;;  %v16430_v23 = vld [vmem:[#allocation180_spill] sm:$0xff] }
 0x626   :  { %6669 = vmatpush1.bf16.msra.mxu0 %v6668_v58  ;;  %v16373_v58 = vld [vmem:[#allocation149_spill] sm:$0xff] }
 0x627   :  { %6671 = vmatprep.subr.bf16.mxu0 %v6670_v54  ;;  %6345 = vmatpush1.bf16.msra.mxu1 %v6344_v33  ;;  %v6348_v52 = vpack.c.bf16 %v16373_v58, %v16372_v57  ;;  %v16375_v54 = vld [vmem:[#allocation154_spill] sm:$0xff]  ;;  %v16401_v33 = vld [vmem:[#allocation479_spill] sm:$0xff]  ;;  %v16408_v58 = vld [vmem:[#allocation481_spill] sm:$0xff] }
 0x628   :  { %6347 = vmatprep.subr.bf16.mxu1 %v6346_v11  ;;  %v6350_v48 = vpack.c.bf16 %v16375_v54, %v16374_v53  ;;  %v6700_v27 = vpack.c.bf16 %v16401_v33, %v16400_v43  ;;  %v16403_v11 = vld [vmem:[#allocation484_spill] sm:$0xff]  ;;  %v16410_v54 = vld [vmem:[#allocation486_spill] sm:$0xff]  ;;  %v16436_v33 = vld [vmem:[#allocation179_spill] sm:$0xff] }
 0x629   :  { %v6702_v6 = vpack.c.bf16 %v16403_v11, %v16402_v17  ;;  %v16438_v11 = vld [vmem:[#allocation184_spill] sm:$0xff] }
 0x62a   :  { %6673 = vmatpush1.bf16.msra.mxu0 %v6672_v40  ;;  %v16381_v40 = vld [vmem:[#allocation153_spill] sm:$0xff] }
 0x62b   :  { %6675 = vmatprep.subr.bf16.mxu0 %v6674_v1  ;;  %6349 = vmatpush1.bf16.msra.mxu1 %v6348_v52  ;;  %v6352_v41 = vpack.c.bf16 %v16381_v40, %v16380_v51  ;;  %v16383_v1 = vld [vmem:[#allocation158_spill] sm:$0xff]  ;;  %v16409_v52 = vld [vmem:[#allocation483_spill] sm:$0xff]  ;;  %v16416_v40 = vld [vmem:[#allocation485_spill] sm:$0xff] }
 0x62c   :  { %6351 = vmatprep.subr.bf16.mxu1 %v6350_v48  ;;  %v6354_v3 = vpack.c.bf16 %v16383_v1, %v16382_v55  ;;  %v6704_v53 = vpack.c.bf16 %v16409_v52, %v16408_v58  ;;  %v16411_v48 = vld [vmem:[#allocation488_spill] sm:$0xff]  ;;  %v16418_v1 = vld [vmem:[#allocation490_spill] sm:$0xff] }
 0x62d   :  { %v6706_v49 = vpack.c.bf16 %v16411_v48, %v16410_v54  ;;  %v16444_v58 = vld [vmem:[#allocation504_spill] sm:$0xff]  ;;  %v16446_v54 = vld [vmem:[#allocation185_spill] sm:$0xff] }
 0x62e   :  { %6677 = vmatpush1.bf16.msra.mxu0 %v6676_v26  ;;  %v16389_v26 = vld [vmem:[#allocation157_spill] sm:$0xff] }
 0x62f   :  { %6679 = vmatprep.subr.bf16.mxu0 %v6678_v38  ;;  %6353 = vmatpush1.bf16.msra.mxu1 %v6352_v41  ;;  %v6356_v10 = vpack.c.bf16 %v16389_v26, %v16388_v63  ;;  %v16391_v38 = vld [vmem:[#allocation162_spill] sm:$0xff]  ;;  %v16417_v41 = vld [vmem:[#allocation487_spill] sm:$0xff]  ;;  %v16424_v26 = vld [vmem:[#allocation489_spill] sm:$0xff] }
 0x630   :  { %6355 = vmatprep.subr.bf16.mxu1 %v6354_v3  ;;  %v6358_v35 = vpack.c.bf16 %v16391_v38, %v16390_v30  ;;  %v6708_v55 = vpack.c.bf16 %v16417_v41, %v16416_v40  ;;  %v16419_v3 = vld [vmem:[#allocation492_spill] sm:$0xff]  ;;  %v16426_v38 = vld [vmem:[#allocation494_spill] sm:$0xff]  ;;  %v16453_v41 = vld [vmem:[#allocation187_spill] sm:$0xff] }
 0x631   :  { %v6710_v0 = vpack.c.bf16 %v16419_v3, %v16418_v1  ;;  %v16452_v40 = vld [vmem:[#allocation508_spill] sm:$0xff] }
 0x632   :  { %6681 = vmatpush1.bf16.msra.mxu0 %v6680_v19  ;;  %v16397_v19 = vld [vmem:[#allocation161_spill] sm:$0xff]  ;;  %v16455_v3 = vld [vmem:[#allocation192_spill] sm:$0xff] }
 0x633   :  { %6683 = vmatprep.subr.bf16.mxu0 %v6682_v4  ;;  %6357 = vmatpush1.bf16.msra.mxu1 %v6356_v10  ;;  %v6360_v9 = vpack.c.bf16 %v16397_v19, %v16396_v18  ;;  %v16399_v4 = vld [vmem:[#allocation166_spill] sm:$0xff]  ;;  %v16425_v10 = vld [vmem:[#allocation491_spill] sm:$0xff]  ;;  %v16432_v19 = vld [vmem:[#allocation493_spill] sm:$0xff] }
 0x634   :  { %6359 = vmatprep.subr.bf16.mxu1 %v6358_v35  ;;  %v6362_v12 = vpack.c.bf16 %v16399_v4, %v16398_v39  ;;  %v6712_v30 = vpack.c.bf16 %v16425_v10, %v16424_v26  ;;  %v16427_v35 = vld [vmem:[#allocation496_spill] sm:$0xff]  ;;  %v16434_v4 = vld [vmem:[#allocation498_spill] sm:$0xff]  ;;  %v16461_v10 = vld [vmem:[#allocation191_spill] sm:$0xff] }
 0x635   :  { %v6714_v16 = vpack.c.bf16 %v16427_v35, %v16426_v38  ;;  %v16463_v35 = vld [vmem:[#allocation196_spill] sm:$0xff] }
 0x636   :  { %6685 = vmatpush1.bf16.msra.mxu0 %v6684_v20  ;;  %v16405_v20 = vld [vmem:[#allocation165_spill] sm:$0xff] }
 0x637   :  { %6687 = vmatprep.subr.bf16.mxu0 %v6686_v56  ;;  %6361 = vmatpush1.bf16.msra.mxu1 %v6360_v9  ;;  %v6364_v61 = vpack.c.bf16 %v16405_v20, %v16404_v25  ;;  %v16407_v56 = vld [vmem:[#allocation170_spill] sm:$0xff]  ;;  %v16433_v9 = vld [vmem:[#allocation495_spill] sm:$0xff] }
 0x638   :  { %6363 = vmatprep.subr.bf16.mxu1 %v6362_v12  ;;  %v6366_v57 = vpack.c.bf16 %v16407_v56, %v16406_v60  ;;  %v6716_v39 = vpack.c.bf16 %v16433_v9, %v16432_v19  ;;  %v16435_v12 = vld [vmem:[#allocation500_spill] sm:$0xff]  ;;  %v16440_v20 = vld [vmem:[#allocation1011_spill] sm:$0xff] }
 0x639   :  { %v6718_v43 = vpack.c.bf16 %v16435_v12, %v16434_v4  ;;  %v16442_v60 = vld [vmem:[#allocation499_spill] sm:$0xff]  ;;  %v16471_v12 = vld [vmem:[#allocation200_spill] sm:$0xff] }
 0x63a   :  { %6689 = vmatpush1.bf16.msra.mxu0 %v6688_v45  ;;  %v16413_v45 = vld [vmem:[#allocation169_spill] sm:$0xff]  ;;  %v16469_v9 = vld [vmem:[#allocation195_spill] sm:$0xff] }
 0x63b   :  { %6691 = vmatprep.subr.bf16.mxu0 %v6690_v47  ;;  %6365 = vmatpush1.bf16.msra.mxu1 %v6364_v61  ;;  %v6368_v50 = vpack.c.bf16 %v16413_v45, %v16412_v44  ;;  %v16415_v47 = vld [vmem:[#allocation174_spill] sm:$0xff]  ;;  %v16441_v61 = vld [vmem:[#allocation497_spill] sm:$0xff] }
 0x63c   :  { %6367 = vmatprep.subr.bf16.mxu1 %v6366_v57  ;;  %v6370_v51 = vpack.c.bf16 %v16415_v47, %v16414_v46  ;;  %v6720_v56 = vpack.c.bf16 %v16442_v60, %v16441_v61  ;;  %v16443_v57 = vld [vmem:[#allocation502_spill] sm:$0xff]  ;;  %v16450_v46 = vld [vmem:[#allocation503_spill] sm:$0xff] }
 0x63d   :  { %v6722_v52 = vpack.c.bf16 %v16444_v58, %v16443_v57  ;;  %v16448_v44 = vld [vmem:[#allocation190_spill] sm:$0xff]  ;;  %v16478_v60 = vld [vmem:[#allocation199_spill] sm:$0xff]  ;;  %v16480_v58 = vld [vmem:[#allocation204_spill] sm:$0xff] }
 0x63e   :  { %6693 = vmatpush1.bf16.msra.mxu0 %v6692_v5  ;;  %v16421_v5 = vld [vmem:[#allocation173_spill] sm:$0xff] }
 0x63f   :  { %6695 = vmatprep.subr.bf16.mxu0 %v6694_v62  ;;  %6369 = vmatpush1.bf16.msra.mxu1 %v6368_v50  ;;  %v6372_v7 = vpack.c.bf16 %v16421_v5, %v16420_v2  ;;  %v16423_v62 = vld [vmem:[#allocation178_spill] sm:$0xff]  ;;  %v16449_v50 = vld [vmem:[#allocation501_spill] sm:$0xff] }
 0x640   :  { %6371 = vmatprep.subr.bf16.mxu1 %v6370_v51  ;;  %v6374_v63 = vpack.c.bf16 %v16423_v62, %v16422_v59  ;;  %v6724_v47 = vpack.c.bf16 %v16450_v46, %v16449_v50  ;;  %v16451_v51 = vld [vmem:[#allocation506_spill] sm:$0xff]  ;;  %v16457_v5 = vld [vmem:[#allocation505_spill] sm:$0xff]  ;;  %v16486_v50 = vld [vmem:[#allocation524_spill] sm:$0xff] }
 0x641   :  { %v16459_v62 = vld [vmem:[#allocation510_spill] sm:$0xff] }
 0x642   :  { %6697 = vmatpush1.bf16.msra.mxu0 %v6696_v28  ;;  %v16429_v28 = vld [vmem:[#allocation177_spill] sm:$0xff] }
 0x643   :  { %6699 = vmatprep.subr.bf16.mxu0 %v6698_v32  ;;  %6373 = vmatpush1.bf16.msra.mxu1 %v6372_v7  ;;  %v6376_v36 = vpack.c.bf16 %v16429_v28, %v16428_v29  ;;  %v16431_v32 = vld [vmem:[#allocation182_spill] sm:$0xff]  ;;  %v16458_v7 = vld [vmem:[#allocation507_spill] sm:$0xff]  ;;  %v16465_v28 = vld [vmem:[#allocation509_spill] sm:$0xff] }
 0x644   :  { %6375 = vmatprep.subr.bf16.mxu1 %v6374_v63  ;;  %v6378_v18 = vpack.c.bf16 %v16431_v32, %v16430_v23  ;;  %v6728_v59 = vpack.c.bf16 %v16458_v7, %v16457_v5  ;;  %v16460_v63 = vld [vmem:[#allocation512_spill] sm:$0xff]  ;;  %v16467_v32 = vld [vmem:[#allocation514_spill] sm:$0xff] }
 0x645   :  { %v6730_v26 = vpack.c.bf16 %v16460_v63, %v16459_v62  ;;  %v16494_v5 = vld [vmem:[#allocation528_spill] sm:$0xff]  ;;  %v16496_v62 = vld [vmem:[#allocation209_spill] sm:$0xff] }
 0x646   :  { %6701 = vmatpush1.bf16.msra.mxu0 %v6700_v27  ;;  %v16437_v27 = vld [vmem:[#allocation181_spill] sm:$0xff] }
 0x647   :  { %6703 = vmatprep.subr.bf16.mxu0 %v6702_v6  ;;  %6377 = vmatpush1.bf16.msra.mxu1 %v6376_v36  ;;  %v6380_v17 = vpack.c.bf16 %v16437_v27, %v16436_v33  ;;  %v16439_v6 = vld [vmem:[#allocation186_spill] sm:$0xff]  ;;  %v16466_v36 = vld [vmem:[#allocation511_spill] sm:$0xff]  ;;  %v16473_v27 = vld [vmem:[#allocation513_spill] sm:$0xff] }
 0x648   :  { %6379 = vmatprep.subr.bf16.mxu1 %v6378_v18  ;;  %v6382_v25 = vpack.c.bf16 %v16439_v6, %v16438_v11  ;;  %v6732_v23 = vpack.c.bf16 %v16466_v36, %v16465_v28  ;;  %v16468_v18 = vld [vmem:[#allocation516_spill] sm:$0xff]  ;;  %v16475_v6 = vld [vmem:[#allocation1006_spill] sm:$0xff] }
 0x649   :  { %v6734_v19 = vpack.c.bf16 %v16468_v18, %v16467_v32  ;;  %v16502_v28 = vld [vmem:[#allocation532_spill] sm:$0xff]  ;;  %v16504_v32 = vld [vmem:[#allocation213_spill] sm:$0xff] }
 0x64a   :  { %6705 = vmatpush1.bf16.msra.mxu0 %v6704_v53  ;;  %v16445_v53 = vld [vmem:[#allocation183_spill] sm:$0xff] }
 0x64b   :  { %6707 = vmatprep.subr.bf16.mxu0 %v6706_v49  ;;  %6381 = vmatpush1.bf16.msra.mxu1 %v6380_v17  ;;  %v6384_v48 = vpack.c.bf16 %v16446_v54, %v16445_v53  ;;  %v16447_v49 = vld [vmem:[#allocation188_spill] sm:$0xff]  ;;  %v16474_v17 = vld [vmem:[#allocation515_spill] sm:$0xff] }
 0x64c   :  { %6383 = vmatprep.subr.bf16.mxu1 %v6382_v25  ;;  %v6386_v45 = vpack.c.bf16 %v16448_v44, %v16447_v49  ;;  %v6736_v11 = vpack.c.bf16 %v16474_v17, %v16473_v27  ;;  %v16476_v25 = vld [vmem:[#allocation518_spill] sm:$0xff]  ;;  %v16482_v54 = vld [vmem:[#allocation1008_spill] sm:$0xff]  ;;  %v16484_v49 = vld [vmem:[#allocation519_spill] sm:$0xff] }
 0x64d   :  { %v16510_v27 = vld [vmem:[#allocation536_spill] sm:$0xff] }
 0x64e   :  { %6709 = vmatpush1.bf16.msra.mxu0 %v6708_v55  ;;  %v16454_v55 = vld [vmem:[#allocation189_spill] sm:$0xff] }
 0x64f   :  { %6711 = vmatprep.subr.bf16.mxu0 %v6710_v0  ;;  %6385 = vmatpush1.bf16.msra.mxu1 %v6384_v48  ;;  %v6388_v1 = vpack.c.bf16 %v16454_v55, %v16453_v41  ;;  %v16456_v0 = vld [vmem:[#allocation194_spill] sm:$0xff]  ;;  %v16483_v48 = vld [vmem:[#allocation517_spill] sm:$0xff] }
 0x650   :  { %6387 = vmatprep.subr.bf16.mxu1 %v6386_v45  ;;  %v6390_v2 = vpack.c.bf16 %v16456_v0, %v16455_v3  ;;  %v6740_v44 = vpack.c.bf16 %v16484_v49, %v16483_v48  ;;  %v16485_v45 = vld [vmem:[#allocation522_spill] sm:$0xff]  ;;  %v16492_v3 = vld [vmem:[#allocation523_spill] sm:$0xff]  ;;  %v16520_v49 = vld [vmem:[#allocation221_spill] sm:$0xff] }
 0x651   :  { %v6742_v46 = vpack.c.bf16 %v16486_v50, %v16485_v45  ;;  %v16490_v41 = vld [vmem:[#allocation210_spill] sm:$0xff]  ;;  %v16519_v48 = vld [vmem:[#allocation219_spill] sm:$0xff]  ;;  %v16521_v45 = vld [vmem:[#allocation224_spill] sm:$0xff] }
 0x652   :  { %6713 = vmatpush1.bf16.msra.mxu0 %v6712_v30  ;;  %v16462_v30 = vld [vmem:[#allocation193_spill] sm:$0xff]  ;;  %v16522_v50 = vld [vmem:[#allocation226_spill] sm:$0xff] }
 0x653   :  { %6715 = vmatprep.subr.bf16.mxu0 %v6714_v16  ;;  %6389 = vmatpush1.bf16.msra.mxu1 %v6388_v1  ;;  %v6392_v38 = vpack.c.bf16 %v16462_v30, %v16461_v10  ;;  %v16464_v16 = vld [vmem:[#allocation198_spill] sm:$0xff]  ;;  %v16491_v1 = vld [vmem:[#allocation521_spill] sm:$0xff] }
 0x654   :  { %6391 = vmatprep.subr.bf16.mxu1 %v6390_v2  ;;  %v6394_v29 = vpack.c.bf16 %v16464_v16, %v16463_v35  ;;  %v6744_v0 = vpack.c.bf16 %v16492_v3, %v16491_v1  ;;  %v16493_v2 = vld [vmem:[#allocation526_spill] sm:$0xff]  ;;  %v16500_v35 = vld [vmem:[#allocation527_spill] sm:$0xff]  ;;  %v16528_v3 = vld [vmem:[#allocation225_spill] sm:$0xff] }
 0x655   :  { %5035 = vmatmul.mubr.f32.vlgmr.msra.gmra.mrb[0].mxu0 %v16440_v20  ;;  %v16477_v20 = vld [vmem:[#allocation520_spill] sm:$0xff]  ;;  %v6746_v7 = vpack.c.bf16 %v16494_v5, %v16493_v2  ;;  %v16498_v10 = vld [vmem:[#allocation214_spill] sm:$0xff]  ;;  %v16527_v1 = vld [vmem:[#allocation223_spill] sm:$0xff] }
 0x656   :  { %6717 = vmatpush1.bf16.msra.mxu0 %v6716_v39  ;;  %5105 = vmatprep.mubr.f32.mxu0 %v13836_v34  ;;  %v6726_v34 = vpack.c.bf16 %v16452_v40, %v16451_v51  ;;  %v16470_v39 = vld [vmem:[#allocation197_spill] sm:$0xff]  ;;  %v6738_v61 = vpack.c.bf16 %v16477_v20, %v16476_v25  ;;  %v16513_v20 = vld [vmem:[#allocation220_spill] sm:$0xff]  ;;  %v16530_v5 = vld [vmem:[#allocation230_spill] sm:$0xff] }
 0x657   :  { %6719 = vmatprep.subr.bf16.mxu0 %v6718_v43  ;;  %6393 = vmatpush1.bf16.msra.mxu1 %v6392_v38  ;;  %v6396_v4 = vpack.c.bf16 %v16470_v39, %v16469_v9  ;;  %v16472_v43 = vld [vmem:[#allocation202_spill] sm:$0xff]  ;;  %v16488_v51 = vld [vmem:[#allocation205_spill] sm:$0xff]  ;;  %v16529_v2 = vld [vmem:[#allocation228_spill] sm:$0xff] }
 0x658   :  { %6395 = vmatprep.subr.bf16.mxu1 %v6394_v29  ;;  %v6398_v33 = vpack.c.bf16 %v16472_v43, %v16471_v12  ;;  %v16499_v38 = vld [vmem:[#allocation525_spill] sm:$0xff]  ;;  %v16501_v29 = vld [vmem:[#allocation530_spill] sm:$0xff]  ;;  %v16508_v12 = vld [vmem:[#allocation531_spill] sm:$0xff] }
 0x659   :  { %v6748_v16 = vpack.c.bf16 %v16500_v35, %v16499_v38  ;;  %v6750_v36 = vpack.c.bf16 %v16502_v28, %v16501_v29  ;;  %v16506_v9 = vld [vmem:[#allocation218_spill] sm:$0xff]  ;;  %v16535_v38 = vld [vmem:[#allocation227_spill] sm:$0xff]  ;;  %v16536_v35 = vld [vmem:[#allocation229_spill] sm:$0xff] }
 0x65a   :  { %6721 = vmatpush1.bf16.msra.mxu0 %v6720_v56  ;;  %4680 = vmatmul.mubr.f32.vlgmr.msra.gmra.mrb[28].mxu1 %v16475_v6  ;;  %v16479_v56 = vld [vmem:[#allocation201_spill] sm:$0xff]  ;;  %v16537_v29 = vld [vmem:[#allocation232_spill] sm:$0xff]  ;;  %v16538_v28 = vld [vmem:[#allocation234_spill] sm:$0xff] }
 0x65b   :  { %6723 = vmatprep.subr.bf16.mxu0 %v6722_v52  ;;  %6397 = vmatpush1.bf16.msra.mxu1 %v6396_v4  ;;  %v6400_v57 = vpack.c.bf16 %v16479_v56, %v16478_v60  ;;  %v16481_v52 = vld [vmem:[#allocation206_spill] sm:$0xff]  ;;  %v16507_v4 = vld [vmem:[#allocation529_spill] sm:$0xff] }
 0x65c   :  { %6399 = vmatprep.subr.bf16.mxu1 %v6398_v33  ;;  %v6402_v53 = vpack.c.bf16 %v16481_v52, %v16480_v58  ;;  %4750 = vmatprep.mubr.f32.mxu1 %v16482_v54  ;;  %v6752_v43 = vpack.c.bf16 %v16508_v12, %v16507_v4  ;;  %v16509_v33 = vld [vmem:[#allocation534_spill] sm:$0xff]  ;;  %v16512_v6 = vld [vmem:[#allocation217_spill] sm:$0xff]  ;;  %v16543_v4 = vld [vmem:[#allocation231_spill] sm:$0xff] }
 0x65d   :  { %v6754_v17 = vpack.c.bf16 %v16510_v27, %v16509_v33  ;;  %v16515_v56 = vld [vmem:[#allocation533_spill] sm:$0xff]  ;;  %v16517_v52 = vld [vmem:[#allocation538_spill] sm:$0xff]  ;;  %v16545_v33 = vld [vmem:[#allocation236_spill] sm:$0xff] }
 0x65e   :  { %6725 = vmatpush1.bf16.msra.mxu0 %v6724_v47  ;;  %v16487_v47 = vld [vmem:[#allocation203_spill] sm:$0xff]  ;;  %v16544_v12 = vld [vmem:[#allocation233_spill] sm:$0xff]  ;;  %v16546_v27 = vld [vmem:[#allocation238_spill] sm:$0xff] }
 0x65f   :  { %6727 = vmatprep.subr.bf16.mxu0 %v6726_v34  ;;  %6401 = vmatpush1.bf16.msra.mxu1 %v6400_v57  ;;  %v6404_v40 = vpack.c.bf16 %v16488_v51, %v16487_v47  ;;  %v16489_v34 = vld [vmem:[#allocation208_spill] sm:$0xff]  ;;  %v16516_v57 = vld [vmem:[#allocation535_spill] sm:$0xff]  ;;  %v16523_v47 = vld [vmem:[#allocation537_spill] sm:$0xff] }
 0x660   :  { %6403 = vmatprep.subr.bf16.mxu1 %v6402_v53  ;;  %v6406_v55 = vpack.c.bf16 %v16490_v41, %v16489_v34  ;;  %v6756_v58 = vpack.c.bf16 %v16516_v57, %v16515_v56  ;;  %v16518_v53 = vld [vmem:[#allocation540_spill] sm:$0xff]  ;;  %v16524_v51 = vld [vmem:[#allocation539_spill] sm:$0xff]  ;;  %v16525_v34 = vld [vmem:[#allocation542_spill] sm:$0xff] }
 0x661   :  { %v6758_v54 = vpack.c.bf16 %v16518_v53, %v16517_v52  ;;  %v16526_v41 = vld [vmem:[#allocation544_spill] sm:$0xff]  ;;  %v16551_v56 = vld [vmem:[#allocation235_spill] sm:$0xff]  ;;  %v16552_v57 = vld [vmem:[#allocation237_spill] sm:$0xff] }
 0x662   :  { %6729 = vmatpush1.bf16.msra.mxu0 %v6728_v59  ;;  %v16495_v59 = vld [vmem:[#allocation207_spill] sm:$0xff]  ;;  %v16553_v52 = vld [vmem:[#allocation240_spill] sm:$0xff]  ;;  %v16554_v53 = vld [vmem:[#allocation242_spill] sm:$0xff] }
 0x663   :  { %6731 = vmatprep.subr.bf16.mxu0 %v6730_v26  ;;  %6405 = vmatpush1.bf16.msra.mxu1 %v6404_v40  ;;  %v6408_v63 = vpack.c.bf16 %v16496_v62, %v16495_v59  ;;  %v16497_v26 = vld [vmem:[#allocation212_spill] sm:$0xff]  ;;  %v6760_v40 = vpack.c.bf16 %v16524_v51, %v16523_v47  ;;  %v16531_v59 = vld [vmem:[#allocation541_spill] sm:$0xff]  ;;  %v16532_v62 = vld [vmem:[#allocation543_spill] sm:$0xff] }
 0x664   :  { %6407 = vmatprep.subr.bf16.mxu1 %v6406_v55  ;;  %v6410_v30 = vpack.c.bf16 %v16498_v10, %v16497_v26  ;;  %v6762_v55 = vpack.c.bf16 %v16526_v41, %v16525_v34  ;;  %v16533_v26 = vld [vmem:[#allocation546_spill] sm:$0xff]  ;;  %v16534_v10 = vld [vmem:[#allocation548_spill] sm:$0xff]  ;;  %v16559_v47 = vld [vmem:[#allocation239_spill] sm:$0xff] }
 0x665   :  { %v16560_v51 = vld [vmem:[#allocation241_spill] sm:$0xff]  ;;  %v16561_v34 = vld [vmem:[#allocation244_spill] sm:$0xff]  ;;  %v16562_v41 = vld [vmem:[#allocation246_spill] sm:$0xff] }
 0x666   :  { %6733 = vmatpush1.bf16.msra.mxu0 %v6732_v23  ;;  %v16503_v23 = vld [vmem:[#allocation211_spill] sm:$0xff] }
 0x667   :  { %6735 = vmatprep.subr.bf16.mxu0 %v6734_v19  ;;  %6409 = vmatpush1.bf16.msra.mxu1 %v6408_v63  ;;  %v6412_v18 = vpack.c.bf16 %v16504_v32, %v16503_v23  ;;  %v16505_v19 = vld [vmem:[#allocation216_spill] sm:$0xff]  ;;  %v6764_v63 = vpack.c.bf16 %v16532_v62, %v16531_v59  ;;  %v16539_v23 = vld [vmem:[#allocation545_spill] sm:$0xff]  ;;  %v16540_v32 = vld [vmem:[#allocation547_spill] sm:$0xff] }
 0x668   :  { %6411 = vmatprep.subr.bf16.mxu1 %v6410_v30  ;;  %v6414_v39 = vpack.c.bf16 %v16506_v9, %v16505_v19  ;;  %v6766_v30 = vpack.c.bf16 %v16534_v10, %v16533_v26  ;;  %v16541_v19 = vld [vmem:[#allocation550_spill] sm:$0xff]  ;;  %v16542_v9 = vld [vmem:[#allocation552_spill] sm:$0xff]  ;;  %v16567_v59 = vld [vmem:[#allocation243_spill] sm:$0xff] }
 0x669   :  { %v16568_v62 = vld [vmem:[#allocation245_spill] sm:$0xff]  ;;  %v16569_v26 = vld [vmem:[#allocation248_spill] sm:$0xff]  ;;  %v16570_v10 = vld [vmem:[#allocation250_spill] sm:$0xff] }
 0x66a   :  { %6737 = vmatpush1.bf16.msra.mxu0 %v6736_v11  ;;  %v16511_v11 = vld [vmem:[#allocation215_spill] sm:$0xff] }
 0x66b   :  { %6739 = vmatprep.subr.bf16.mxu0 %v6738_v61  ;;  %6413 = vmatpush1.bf16.msra.mxu1 %v6412_v18  ;;  %v6416_v25 = vpack.c.bf16 %v16512_v6, %v16511_v11  ;;  %v16514_v61 = vld [vmem:[#allocation222_spill] sm:$0xff]  ;;  %v6768_v18 = vpack.c.bf16 %v16540_v32, %v16539_v23  ;;  %v16547_v11 = vld [vmem:[#allocation549_spill] sm:$0xff]  ;;  %v16548_v6 = vld [vmem:[#allocation551_spill] sm:$0xff] }
 0x66c   :  { %6415 = vmatprep.subr.bf16.mxu1 %v6414_v39  ;;  %v6418_v60 = vpack.c.bf16 %v16514_v61, %v16513_v20  ;;  %v6770_v39 = vpack.c.bf16 %v16542_v9, %v16541_v19  ;;  %v16549_v20 = vld [vmem:[#allocation554_spill] sm:$0xff]  ;;  %v16550_v61 = vld [vmem:[#allocation556_spill] sm:$0xff]  ;;  %v16576_v32 = vld [vmem:[#allocation247_spill] sm:$0xff] }
 0x66d   :  { %v16578_v9 = vld [vmem:[#allocation252_spill] sm:$0xff] }
 0x66e   :  { %6741 = vmatpush1.bf16.msra.mxu0 %v6740_v44  ;;  %v6420_v44 = vpack.c.bf16 %v16520_v49, %v16519_v48  ;;  %v16555_v48 = vld [vmem:[#allocation553_spill] sm:$0xff]  ;;  %v16556_v49 = vld [vmem:[#allocation555_spill] sm:$0xff] }
 0x66f   :  { %6743 = vmatprep.subr.bf16.mxu0 %v6742_v46  ;;  %6417 = vmatpush1.bf16.msra.mxu1 %v6416_v25  ;;  %v6422_v46 = vpack.c.bf16 %v16522_v50, %v16521_v45  ;;  %v6772_v25 = vpack.c.bf16 %v16548_v6, %v16547_v11  ;;  %v16557_v45 = vld [vmem:[#allocation558_spill] sm:$0xff]  ;;  %v16558_v50 = vld [vmem:[#allocation560_spill] sm:$0xff]  ;;  %v16584_v11 = vld [vmem:[#allocation251_spill] sm:$0xff] }
 0x670   :  { %6419 = vmatprep.subr.bf16.mxu1 %v6418_v60  ;;  %v6774_v60 = vpack.c.bf16 %v16550_v61, %v16549_v20  ;;  %v16585_v6 = vld [vmem:[#allocation253_spill] sm:$0xff]  ;;  %v16586_v20 = vld [vmem:[#allocation256_spill] sm:$0xff]  ;;  %v16587_v61 = vld [vmem:[#allocation258_spill] sm:$0xff] }
 0x672   :  { %6745 = vmatpush1.bf16.msra.mxu0 %v6744_v0  ;;  %v6424_v0 = vpack.c.bf16 %v16528_v3, %v16527_v1  ;;  %v16563_v1 = vld [vmem:[#allocation557_spill] sm:$0xff]  ;;  %v16564_v3 = vld [vmem:[#allocation559_spill] sm:$0xff] }
 0x673   :  { %6747 = vmatprep.subr.bf16.mxu0 %v6746_v7  ;;  %6421 = vmatpush1.bf16.msra.mxu1 %v6420_v44  ;;  %v6426_v7 = vpack.c.bf16 %v16530_v5, %v16529_v2  ;;  %v6776_v44 = vpack.c.bf16 %v16556_v49, %v16555_v48  ;;  %v16565_v2 = vld [vmem:[#allocation562_spill] sm:$0xff]  ;;  %v16566_v5 = vld [vmem:[#allocation564_spill] sm:$0xff]  ;;  %v16592_v48 = vld [vmem:[#allocation255_spill] sm:$0xff] }
 0x674   :  { %6423 = vmatprep.subr.bf16.mxu1 %v6422_v46  ;;  %v6778_v46 = vpack.c.bf16 %v16558_v50, %v16557_v45  ;;  %v16593_v49 = vld [vmem:[#allocation257_spill] sm:$0xff]  ;;  %v16594_v45 = vld [vmem:[#allocation260_spill] sm:$0xff]  ;;  %v16595_v50 = vld [vmem:[#allocation262_spill] sm:$0xff] }
 0x676   :  { %6749 = vmatpush1.bf16.msra.mxu0 %v6748_v16  ;;  %v6428_v16 = vpack.c.bf16 %v16536_v35, %v16535_v38  ;;  %v16571_v38 = vld [vmem:[#allocation561_spill] sm:$0xff]  ;;  %v16572_v35 = vld [vmem:[#allocation563_spill] sm:$0xff] }
 0x677   :  { %6751 = vmatprep.subr.bf16.mxu0 %v6750_v36  ;;  %6425 = vmatpush1.bf16.msra.mxu1 %v6424_v0  ;;  %v6430_v36 = vpack.c.bf16 %v16538_v28, %v16537_v29  ;;  %v6780_v0 = vpack.c.bf16 %v16564_v3, %v16563_v1  ;;  %v16573_v29 = vld [vmem:[#allocation1013_spill] sm:$0xff]  ;;  %v16574_v28 = vld [vmem:[#allocation566_spill] sm:$0xff]  ;;  %v16600_v1 = vld [vmem:[#allocation259_spill] sm:$0xff] }
 0x678   :  { %6427 = vmatprep.subr.bf16.mxu1 %v6426_v7  ;;  %v6782_v7 = vpack.c.bf16 %v16566_v5, %v16565_v2  ;;  %v16601_v3 = vld [vmem:[#allocation261_spill] sm:$0xff]  ;;  %v16602_v2 = vld [vmem:[#allocation264_spill] sm:$0xff]  ;;  %v16603_v5 = vld [vmem:[#allocation266_spill] sm:$0xff] }
 0x67a   :  { %6753 = vmatpush1.bf16.msra.mxu0 %v6752_v43  ;;  %v6432_v43 = vpack.c.bf16 %v16544_v12, %v16543_v4  ;;  %v16581_v12 = vld [vmem:[#allocation567_spill] sm:$0xff] }
 0x67b   :  { %6755 = vmatprep.subr.bf16.mxu0 %v6754_v17  ;;  %6429 = vmatpush1.bf16.msra.mxu1 %v6428_v16  ;;  %v6434_v17 = vpack.c.bf16 %v16546_v27, %v16545_v33  ;;  %v6784_v16 = vpack.c.bf16 %v16572_v35, %v16571_v38  ;;  %v16582_v33 = vld [vmem:[#allocation570_spill] sm:$0xff]  ;;  %v16583_v27 = vld [vmem:[#allocation572_spill] sm:$0xff]  ;;  %v16609_v35 = vld [vmem:[#allocation263_spill] sm:$0xff] }
 0x67c   :  { %6431 = vmatprep.subr.bf16.mxu1 %v6430_v36  ;;  %v16575_v36 = vld [vmem:[#allocation568_spill] sm:$0xff] }
 0x67d   :  { %v6786_v23 = vpack.c.bf16 %v16575_v36, %v16574_v28  ;;  %v16611_v28 = vld [vmem:[#allocation268_spill] sm:$0xff]  ;;  %v16612_v36 = vld [vmem:[#allocation270_spill] sm:$0xff] }
 0x67e   :  { %6757 = vmatpush1.bf16.msra.mxu0 %v6756_v58  ;;  %v6436_v58 = vpack.c.bf16 %v16552_v57, %v16551_v56  ;;  %v16588_v56 = vld [vmem:[#allocation569_spill] sm:$0xff]  ;;  %v16589_v57 = vld [vmem:[#allocation571_spill] sm:$0xff] }
 0x67f   :  { %6759 = vmatprep.subr.bf16.mxu0 %v6758_v54  ;;  %6433 = vmatpush1.bf16.msra.mxu1 %v6432_v43  ;;  %v6438_v54 = vpack.c.bf16 %v16554_v53, %v16553_v52  ;;  %v16590_v52 = vld [vmem:[#allocation574_spill] sm:$0xff]  ;;  %v16591_v53 = vld [vmem:[#allocation576_spill] sm:$0xff] }
 0x680   :  { %6435 = vmatprep.subr.bf16.mxu1 %v6434_v17  ;;  %v6790_v17 = vpack.c.bf16 %v16583_v27, %v16582_v33  ;;  %v16620_v27 = vld [vmem:[#allocation272_spill] sm:$0xff] }
 0x682   :  { %6761 = vmatpush1.bf16.msra.mxu0 %v6760_v40  ;;  %v6440_v40 = vpack.c.bf16 %v16560_v51, %v16559_v47  ;;  %v16596_v47 = vld [vmem:[#allocation573_spill] sm:$0xff]  ;;  %v16597_v51 = vld [vmem:[#allocation575_spill] sm:$0xff] }
 0x683   :  { %6763 = vmatprep.subr.bf16.mxu0 %v6762_v55  ;;  %6437 = vmatpush1.bf16.msra.mxu1 %v6436_v58  ;;  %v6442_v55 = vpack.c.bf16 %v16562_v41, %v16561_v34  ;;  %v6792_v58 = vpack.c.bf16 %v16589_v57, %v16588_v56  ;;  %v16598_v34 = vld [vmem:[#allocation578_spill] sm:$0xff]  ;;  %v16599_v41 = vld [vmem:[#allocation580_spill] sm:$0xff]  ;;  %v16626_v57 = vld [vmem:[#allocation271_spill] sm:$0xff] }
 0x684   :  { %6439 = vmatprep.subr.bf16.mxu1 %v6438_v54  ;;  %v6794_v54 = vpack.c.bf16 %v16591_v53, %v16590_v52  ;;  %v16628_v53 = vld [vmem:[#allocation276_spill] sm:$0xff] }
 0x686   :  { %6765 = vmatpush1.bf16.msra.mxu0 %v6764_v63  ;;  %v6444_v63 = vpack.c.bf16 %v16568_v62, %v16567_v59  ;;  %v16604_v59 = vld [vmem:[#allocation577_spill] sm:$0xff]  ;;  %v16605_v62 = vld [vmem:[#allocation579_spill] sm:$0xff] }
 0x687   :  { %6767 = vmatprep.subr.bf16.mxu0 %v6766_v30  ;;  %6441 = vmatpush1.bf16.msra.mxu1 %v6440_v40  ;;  %v6446_v30 = vpack.c.bf16 %v16570_v10, %v16569_v26  ;;  %v6796_v40 = vpack.c.bf16 %v16597_v51, %v16596_v47  ;;  %v16606_v26 = vld [vmem:[#allocation1007_spill] sm:$0xff]  ;;  %v16607_v10 = vld [vmem:[#allocation582_spill] sm:$0xff] }
 0x688   :  { %6443 = vmatprep.subr.bf16.mxu1 %v6442_v55  ;;  %v6798_v55 = vpack.c.bf16 %v16599_v41, %v16598_v34  ;;  %v16634_v51 = vld [vmem:[#allocation275_spill] sm:$0xff]  ;;  %v16636_v41 = vld [vmem:[#allocation280_spill] sm:$0xff] }
 0x68a   :  { %6769 = vmatpush1.bf16.msra.mxu0 %v6768_v18  ;;  %v16577_v18 = vld [vmem:[#allocation249_spill] sm:$0xff] }
 0x68b   :  { %6771 = vmatprep.subr.bf16.mxu0 %v6770_v39  ;;  %6445 = vmatpush1.bf16.msra.mxu1 %v6444_v63  ;;  %v6448_v19 = vpack.c.bf16 %v16577_v18, %v16576_v32  ;;  %v16579_v39 = vld [vmem:[#allocation254_spill] sm:$0xff]  ;;  %v6800_v63 = vpack.c.bf16 %v16605_v62, %v16604_v59  ;;  %v16614_v18 = vld [vmem:[#allocation581_spill] sm:$0xff]  ;;  %v16642_v62 = vld [vmem:[#allocation279_spill] sm:$0xff] }
 0x68c   :  { %6447 = vmatprep.subr.bf16.mxu1 %v6446_v30  ;;  %v6450_v4 = vpack.c.bf16 %v16579_v39, %v16578_v9  ;;  %v16608_v30 = vld [vmem:[#allocation584_spill] sm:$0xff]  ;;  %v16613_v32 = vld [vmem:[#allocation1010_spill] sm:$0xff] }
 0x68d   :  { %v6802_v38 = vpack.c.bf16 %v16608_v30, %v16607_v10  ;;  %v16616_v39 = vld [vmem:[#allocation586_spill] sm:$0xff]  ;;  %v16644_v10 = vld [vmem:[#allocation284_spill] sm:$0xff] }
 0x68e   :  { %6773 = vmatpush1.bf16.msra.mxu0 %v6772_v25  ;;  %v6452_v25 = vpack.c.bf16 %v16585_v6, %v16584_v11  ;;  %v16622_v6 = vld [vmem:[#allocation585_spill] sm:$0xff]  ;;  %v16645_v30 = vld [vmem:[#allocation286_spill] sm:$0xff] }
 0x68f   :  { %6775 = vmatprep.subr.bf16.mxu0 %v6774_v60  ;;  %6449 = vmatpush1.bf16.msra.mxu1 %v6448_v19  ;;  %v6454_v60 = vpack.c.bf16 %v16587_v61, %v16586_v20  ;;  %v16615_v19 = vld [vmem:[#allocation583_spill] sm:$0xff]  ;;  %v16624_v61 = vld [vmem:[#allocation590_spill] sm:$0xff] }
 0x690   :  { %6451 = vmatprep.subr.bf16.mxu1 %v6450_v4  ;;  %v6804_v9 = vpack.c.bf16 %v16615_v19, %v16614_v18  ;;  %v16617_v4 = vld [vmem:[#allocation588_spill] sm:$0xff]  ;;  %v16651_v18 = vld [vmem:[#allocation285_spill] sm:$0xff] }
 0x692   :  { %6777 = vmatpush1.bf16.msra.mxu0 %v6776_v44  ;;  %v6456_v44 = vpack.c.bf16 %v16593_v49, %v16592_v48  ;;  %v16630_v49 = vld [vmem:[#allocation589_spill] sm:$0xff] }
 0x693   :  { %6779 = vmatprep.subr.bf16.mxu0 %v6778_v46  ;;  %6453 = vmatpush1.bf16.msra.mxu1 %v6452_v25  ;;  %v6458_v46 = vpack.c.bf16 %v16595_v50, %v16594_v45  ;;  %v16623_v25 = vld [vmem:[#allocation587_spill] sm:$0xff]  ;;  %v16632_v50 = vld [vmem:[#allocation594_spill] sm:$0xff] }
 0x694   :  { %6455 = vmatprep.subr.bf16.mxu1 %v6454_v60  ;;  %v6808_v20 = vpack.c.bf16 %v16623_v25, %v16622_v6  ;;  %v16625_v60 = vld [vmem:[#allocation592_spill] sm:$0xff]  ;;  %v16659_v6 = vld [vmem:[#allocation289_spill] sm:$0xff] }
 0x695   :  { %5106 = vmatmul.mubr.f32.vlgmr.msra.gmra.mrb[0].mxu0 %v13833_v21  ;;  %v16580_v21 = vld [vmem:[#allocation565_spill] sm:$0xff]  ;;  %v6810_v56 = vpack.c.bf16 %v16625_v60, %v16624_v61  ;;  %v16661_v61 = vld [vmem:[#allocation294_spill] sm:$0xff] }
 0x696   :  { %6781 = vmatpush1.bf16.msra.mxu0 %v6780_v0  ;;  %5176 = vmatprep.mubr.f32.mxu0 %v16573_v29  ;;  %v6788_v43 = vpack.c.bf16 %v16581_v12, %v16580_v21  ;;  %v6460_v0 = vpack.c.bf16 %v16601_v3, %v16600_v1  ;;  %v6806_v21 = vpack.c.bf16 %v16617_v4, %v16616_v39  ;;  %v16618_v12 = vld [vmem:[#allocation267_spill] sm:$0xff]  ;;  %v16638_v3 = vld [vmem:[#allocation593_spill] sm:$0xff]  ;;  %v16653_v39 = vld [vmem:[#allocation290_spill] sm:$0xff] }
 0x697   :  { %6783 = vmatprep.subr.bf16.mxu0 %v6782_v7  ;;  %6457 = vmatpush1.bf16.msra.mxu1 %v6456_v44  ;;  %v6462_v7 = vpack.c.bf16 %v16603_v5, %v16602_v2  ;;  %v16631_v44 = vld [vmem:[#allocation591_spill] sm:$0xff]  ;;  %v16640_v5 = vld [vmem:[#allocation598_spill] sm:$0xff] }
 0x698   :  { %6459 = vmatprep.subr.bf16.mxu1 %v6458_v46  ;;  %v6812_v45 = vpack.c.bf16 %v16631_v44, %v16630_v49  ;;  %v16633_v46 = vld [vmem:[#allocation596_spill] sm:$0xff]  ;;  %v16667_v49 = vld [vmem:[#allocation293_spill] sm:$0xff] }
 0x699   :  { %v6814_v47 = vpack.c.bf16 %v16633_v46, %v16632_v50  ;;  %v16669_v50 = vld [vmem:[#allocation298_spill] sm:$0xff] }
 0x69a   :  { %6785 = vmatpush1.bf16.msra.mxu0 %v6784_v16  ;;  %4751 = vmatmul.mubr.f32.vlgmr.msra.gmra.mrb[28].mxu1 %v16606_v26  ;;  %v16610_v16 = vld [vmem:[#allocation265_spill] sm:$0xff] }
 0x69b   :  { %6787 = vmatprep.subr.bf16.mxu0 %v6786_v23  ;;  %6461 = vmatpush1.bf16.msra.mxu1 %v6460_v0  ;;  %v6464_v29 = vpack.c.bf16 %v16610_v16, %v16609_v35  ;;  %v6466_v23 = vpack.c.bf16 %v16612_v36, %v16611_v28  ;;  %v16639_v0 = vld [vmem:[#allocation595_spill] sm:$0xff]  ;;  %v16646_v35 = vld [vmem:[#allocation597_spill] sm:$0xff]  ;;  %v16648_v28 = vld [vmem:[#allocation602_spill] sm:$0xff] }
 0x69c   :  { %6463 = vmatprep.subr.bf16.mxu1 %v6462_v7  ;;  %4821 = vmatprep.mubr.f32.mxu1 %v16613_v32  ;;  %v6816_v2 = vpack.c.bf16 %v16639_v0, %v16638_v3  ;;  %v16641_v7 = vld [vmem:[#allocation600_spill] sm:$0xff]  ;;  %v16647_v16 = vld [vmem:[#allocation599_spill] sm:$0xff]  ;;  %v16675_v3 = vld [vmem:[#allocation297_spill] sm:$0xff] }
 0x69d   :  { %v6818_v59 = vpack.c.bf16 %v16641_v7, %v16640_v5  ;;  %v16649_v36 = vld [vmem:[#allocation604_spill] sm:$0xff]  ;;  %v16650_v32 = vld [vmem:[#allocation283_spill] sm:$0xff]  ;;  %v16677_v5 = vld [vmem:[#allocation302_spill] sm:$0xff] }
 0x69e   :  { %6789 = vmatpush1.bf16.msra.mxu0 %v6788_v43  ;;  %v16619_v43 = vld [vmem:[#allocation269_spill] sm:$0xff]  ;;  %v6484_v19 = vpack.c.bf16 %v16651_v18, %v16650_v32  ;;  %v16687_v32 = vld [vmem:[#allocation619_spill] sm:$0xff] }
 0x69f   :  { %6791 = vmatprep.subr.bf16.mxu0 %v6790_v17  ;;  %6465 = vmatpush1.bf16.msra.mxu1 %v6464_v29  ;;  %v6468_v33 = vpack.c.bf16 %v16619_v43, %v16618_v12  ;;  %v16621_v17 = vld [vmem:[#allocation274_spill] sm:$0xff]  ;;  %v6820_v29 = vpack.c.bf16 %v16647_v16, %v16646_v35  ;;  %v16655_v12 = vld [vmem:[#allocation603_spill] sm:$0xff]  ;;  %v16683_v35 = vld [vmem:[#allocation301_spill] sm:$0xff] }
 0x6a0   :  { %6467 = vmatprep.subr.bf16.mxu1 %v6466_v23  ;;  %v6470_v11 = vpack.c.bf16 %v16621_v17, %v16620_v27  ;;  %v6822_v23 = vpack.c.bf16 %v16649_v36, %v16648_v28  ;;  %v16657_v27 = vld [vmem:[#allocation608_spill] sm:$0xff]  ;;  %v16685_v28 = vld [vmem:[#allocation306_spill] sm:$0xff] }
 0x6a2   :  { %6793 = vmatpush1.bf16.msra.mxu0 %v6792_v58  ;;  %v16627_v58 = vld [vmem:[#allocation273_spill] sm:$0xff] }
 0x6a3   :  { %6795 = vmatprep.subr.bf16.mxu0 %v6794_v54  ;;  %6469 = vmatpush1.bf16.msra.mxu1 %v6468_v33  ;;  %v6472_v52 = vpack.c.bf16 %v16627_v58, %v16626_v57  ;;  %v16629_v54 = vld [vmem:[#allocation278_spill] sm:$0xff]  ;;  %v16663_v57 = vld [vmem:[#allocation607_spill] sm:$0xff] }
 0x6a4   :  { %6471 = vmatprep.subr.bf16.mxu1 %v6470_v11  ;;  %v6474_v48 = vpack.c.bf16 %v16629_v54, %v16628_v53  ;;  %v16656_v33 = vld [vmem:[#allocation606_spill] sm:$0xff]  ;;  %v16658_v11 = vld [vmem:[#allocation287_spill] sm:$0xff]  ;;  %v16665_v53 = vld [vmem:[#allocation612_spill] sm:$0xff] }
 0x6a5   :  { %v6826_v17 = vpack.c.bf16 %v16657_v27, %v16656_v33  ;;  %v6488_v25 = vpack.c.bf16 %v16659_v6, %v16658_v11  ;;  %v16693_v33 = vld [vmem:[#allocation310_spill] sm:$0xff]  ;;  %v16695_v11 = vld [vmem:[#allocation623_spill] sm:$0xff] }
 0x6a6   :  { %6797 = vmatpush1.bf16.msra.mxu0 %v6796_v40  ;;  %v16635_v40 = vld [vmem:[#allocation277_spill] sm:$0xff] }
 0x6a7   :  { %6799 = vmatprep.subr.bf16.mxu0 %v6798_v55  ;;  %6473 = vmatpush1.bf16.msra.mxu1 %v6472_v52  ;;  %v6476_v34 = vpack.c.bf16 %v16635_v40, %v16634_v51  ;;  %v16637_v55 = vld [vmem:[#allocation282_spill] sm:$0xff]  ;;  %v16671_v51 = vld [vmem:[#allocation611_spill] sm:$0xff] }
 0x6a8   :  { %6475 = vmatprep.subr.bf16.mxu1 %v6474_v48  ;;  %v6478_v1 = vpack.c.bf16 %v16637_v55, %v16636_v41  ;;  %v16664_v52 = vld [vmem:[#allocation610_spill] sm:$0xff]  ;;  %v16666_v48 = vld [vmem:[#allocation291_spill] sm:$0xff]  ;;  %v16673_v41 = vld [vmem:[#allocation616_spill] sm:$0xff] }
 0x6a9   :  { %v6830_v54 = vpack.c.bf16 %v16665_v53, %v16664_v52  ;;  %v6492_v44 = vpack.c.bf16 %v16667_v49, %v16666_v48  ;;  %v16701_v52 = vld [vmem:[#allocation314_spill] sm:$0xff]  ;;  %v16703_v48 = vld [vmem:[#allocation625_spill] sm:$0xff]  ;;  %v16704_v49 = vld [vmem:[#allocation627_spill] sm:$0xff] }
 0x6aa   :  { %6801 = vmatpush1.bf16.msra.mxu0 %v6800_v63  ;;  %v16643_v63 = vld [vmem:[#allocation281_spill] sm:$0xff] }
 0x6ab   :  { %6803 = vmatprep.subr.bf16.mxu0 %v6802_v38  ;;  %6477 = vmatpush1.bf16.msra.mxu1 %v6476_v34  ;;  %v6480_v26 = vpack.c.bf16 %v16643_v63, %v16642_v62  ;;  %v6482_v38 = vpack.c.bf16 %v16645_v30, %v16644_v10  ;;  %v16672_v34 = vld [vmem:[#allocation614_spill] sm:$0xff]  ;;  %v16679_v62 = vld [vmem:[#allocation615_spill] sm:$0xff]  ;;  %v16681_v10 = vld [vmem:[#allocation620_spill] sm:$0xff] }
 0x6ac   :  { %6479 = vmatprep.subr.bf16.mxu1 %v6478_v1  ;;  %v6834_v55 = vpack.c.bf16 %v16673_v41, %v16672_v34  ;;  %v16674_v1 = vld [vmem:[#allocation295_spill] sm:$0xff]  ;;  %v16710_v41 = vld [vmem:[#allocation316_spill] sm:$0xff] }
 0x6ad   :  { %v6496_v0 = vpack.c.bf16 %v16675_v3, %v16674_v1  ;;  %v16712_v3 = vld [vmem:[#allocation629_spill] sm:$0xff] }
 0x6ae   :  { %6805 = vmatpush1.bf16.msra.mxu0 %v6804_v9  ;;  %v16652_v9 = vld [vmem:[#allocation288_spill] sm:$0xff] }
 0x6af   :  { %6807 = vmatprep.subr.bf16.mxu0 %v6806_v21  ;;  %6481 = vmatpush1.bf16.msra.mxu1 %v6480_v26  ;;  %v6486_v4 = vpack.c.bf16 %v16653_v39, %v16652_v9  ;;  %v16654_v21 = vld [vmem:[#allocation601_spill] sm:$0xff]  ;;  %v16680_v26 = vld [vmem:[#allocation618_spill] sm:$0xff]  ;;  %v16689_v9 = vld [vmem:[#allocation624_spill] sm:$0xff] }
 0x6b0   :  { %6483 = vmatprep.subr.bf16.mxu1 %v6482_v38  ;;  %v6824_v43 = vpack.c.bf16 %v16655_v12, %v16654_v21  ;;  %v6838_v30 = vpack.c.bf16 %v16681_v10, %v16680_v26  ;;  %v16682_v38 = vld [vmem:[#allocation299_spill] sm:$0xff]  ;;  %v16691_v21 = vld [vmem:[#allocation305_spill] sm:$0xff]  ;;  %v16718_v10 = vld [vmem:[#allocation320_spill] sm:$0xff] }
 0x6b1   :  { %v6500_v16 = vpack.c.bf16 %v16683_v35, %v16682_v38  ;;  %v16720_v35 = vld [vmem:[#allocation633_spill] sm:$0xff] }
 0x6b2   :  { %6809 = vmatpush1.bf16.msra.mxu0 %v6808_v20  ;;  %v16660_v20 = vld [vmem:[#allocation292_spill] sm:$0xff] }
 0x6b3   :  { %6811 = vmatprep.subr.bf16.mxu0 %v6810_v56  ;;  %6485 = vmatpush1.bf16.msra.mxu1 %v6484_v19  ;;  %v6490_v60 = vpack.c.bf16 %v16661_v61, %v16660_v20  ;;  %v16662_v56 = vld [vmem:[#allocation605_spill] sm:$0xff]  ;;  %v16688_v19 = vld [vmem:[#allocation622_spill] sm:$0xff]  ;;  %v16697_v20 = vld [vmem:[#allocation628_spill] sm:$0xff] }
 0x6b4   :  { %6487 = vmatprep.subr.bf16.mxu1 %v6486_v4  ;;  %v6828_v58 = vpack.c.bf16 %v16663_v57, %v16662_v56  ;;  %v6842_v39 = vpack.c.bf16 %v16689_v9, %v16688_v19  ;;  %v16690_v4 = vld [vmem:[#allocation303_spill] sm:$0xff]  ;;  %v16699_v56 = vld [vmem:[#allocation309_spill] sm:$0xff] }
 0x6b5   :  { %v6504_v12 = vpack.c.bf16 %v16691_v21, %v16690_v4  ;;  %v16726_v9 = vld [vmem:[#allocation637_spill] sm:$0xff]  ;;  %v16728_v21 = vld [vmem:[#allocation642_spill] sm:$0xff] }
 0x6b6   :  { %6813 = vmatpush1.bf16.msra.mxu0 %v6812_v45  ;;  %v16668_v45 = vld [vmem:[#allocation296_spill] sm:$0xff] }
 0x6b7   :  { %6815 = vmatprep.subr.bf16.mxu0 %v6814_v47  ;;  %6489 = vmatpush1.bf16.msra.mxu1 %v6488_v25  ;;  %v6494_v46 = vpack.c.bf16 %v16669_v50, %v16668_v45  ;;  %v16670_v47 = vld [vmem:[#allocation609_spill] sm:$0xff]  ;;  %v16696_v25 = vld [vmem:[#allocation626_spill] sm:$0xff]  ;;  %v16705_v45 = vld [vmem:[#allocation1015_spill] sm:$0xff] }
 0x6b8   :  { %6491 = vmatprep.subr.bf16.mxu1 %v6490_v60  ;;  %v6832_v40 = vpack.c.bf16 %v16671_v51, %v16670_v47  ;;  %v6846_v61 = vpack.c.bf16 %v16697_v20, %v16696_v25  ;;  %v16698_v60 = vld [vmem:[#allocation307_spill] sm:$0xff]  ;;  %v16706_v50 = vld [vmem:[#allocation630_spill] sm:$0xff]  ;;  %v16734_v25 = vld [vmem:[#allocation648_spill] sm:$0xff] }
 0x6b9   :  { %v6508_v57 = vpack.c.bf16 %v16699_v56, %v16698_v60  ;;  %v16708_v51 = vld [vmem:[#allocation311_spill] sm:$0xff] }
 0x6ba   :  { %6817 = vmatpush1.bf16.msra.mxu0 %v6816_v2  ;;  %v16676_v2 = vld [vmem:[#allocation300_spill] sm:$0xff]  ;;  %v16736_v60 = vld [vmem:[#allocation647_spill] sm:$0xff] }
 0x6bb   :  { %6819 = vmatprep.subr.bf16.mxu0 %v6818_v59  ;;  %6493 = vmatpush1.bf16.msra.mxu1 %v6492_v44  ;;  %v6498_v7 = vpack.c.bf16 %v16677_v5, %v16676_v2  ;;  %v16678_v59 = vld [vmem:[#allocation613_spill] sm:$0xff]  ;;  %v6848_v44 = vpack.c.bf16 %v16704_v49, %v16703_v48  ;;  %v16714_v5 = vld [vmem:[#allocation634_spill] sm:$0xff] }
 0x6bc   :  { %6495 = vmatprep.subr.bf16.mxu1 %v6494_v46  ;;  %v6836_v63 = vpack.c.bf16 %v16679_v62, %v16678_v59  ;;  %v16707_v46 = vld [vmem:[#allocation632_spill] sm:$0xff]  ;;  %v16716_v62 = vld [vmem:[#allocation315_spill] sm:$0xff]  ;;  %v16741_v49 = vld [vmem:[#allocation654_spill] sm:$0xff] }
 0x6bd   :  { %v6850_v47 = vpack.c.bf16 %v16707_v46, %v16706_v50  ;;  %v16743_v50 = vld [vmem:[#allocation653_spill] sm:$0xff]  ;;  %v16744_v46 = vld [vmem:[#allocation655_spill] sm:$0xff] }
 0x6be   :  { %6821 = vmatpush1.bf16.msra.mxu0 %v6820_v29  ;;  %v16684_v29 = vld [vmem:[#allocation304_spill] sm:$0xff] }
 0x6bf   :  { %6823 = vmatprep.subr.bf16.mxu0 %v6822_v23  ;;  %6497 = vmatpush1.bf16.msra.mxu1 %v6496_v0  ;;  %v6502_v36 = vpack.c.bf16 %v16685_v28, %v16684_v29  ;;  %v16686_v23 = vld [vmem:[#allocation617_spill] sm:$0xff]  ;;  %v16713_v0 = vld [vmem:[#allocation631_spill] sm:$0xff]  ;;  %v16722_v28 = vld [vmem:[#allocation638_spill] sm:$0xff] }
 0x6c0   :  { %6499 = vmatprep.subr.bf16.mxu1 %v6498_v7  ;;  %v6840_v18 = vpack.c.bf16 %v16687_v32, %v16686_v23  ;;  %v6852_v2 = vpack.c.bf16 %v16713_v0, %v16712_v3  ;;  %v16715_v7 = vld [vmem:[#allocation636_spill] sm:$0xff]  ;;  %v16724_v32 = vld [vmem:[#allocation319_spill] sm:$0xff]  ;;  %v16749_v3 = vld [vmem:[#allocation662_spill] sm:$0xff] }
 0x6c1   :  { %v6854_v59 = vpack.c.bf16 %v16715_v7, %v16714_v5  ;;  %v16750_v0 = vld [vmem:[#allocation664_spill] sm:$0xff]  ;;  %v16751_v5 = vld [vmem:[#allocation661_spill] sm:$0xff]  ;;  %v16752_v7 = vld [vmem:[#allocation663_spill] sm:$0xff] }
 0x6c2   :  { %6825 = vmatpush1.bf16.msra.mxu0 %v6824_v43  ;;  %v16692_v43 = vld [vmem:[#allocation308_spill] sm:$0xff] }
 0x6c3   :  { %6827 = vmatprep.subr.bf16.mxu0 %v6826_v17  ;;  %6501 = vmatpush1.bf16.msra.mxu1 %v6500_v16  ;;  %v6506_v27 = vpack.c.bf16 %v16693_v33, %v16692_v43  ;;  %v16694_v17 = vld [vmem:[#allocation621_spill] sm:$0xff]  ;;  %v16721_v16 = vld [vmem:[#allocation635_spill] sm:$0xff] }
 0x6c4   :  { %6503 = vmatprep.subr.bf16.mxu1 %v6502_v36  ;;  %v6844_v6 = vpack.c.bf16 %v16695_v11, %v16694_v17  ;;  %v6856_v29 = vpack.c.bf16 %v16721_v16, %v16720_v35  ;;  %v16723_v36 = vld [vmem:[#allocation640_spill] sm:$0xff]  ;;  %v16730_v33 = vld [vmem:[#allocation641_spill] sm:$0xff]  ;;  %v16757_v35 = vld [vmem:[#allocation670_spill] sm:$0xff] }
 0x6c5   :  { %v6858_v23 = vpack.c.bf16 %v16723_v36, %v16722_v28  ;;  %v16732_v11 = vld [vmem:[#allocation1009_spill] sm:$0xff]  ;;  %v16758_v16 = vld [vmem:[#allocation672_spill] sm:$0xff]  ;;  %v16760_v36 = vld [vmem:[#allocation671_spill] sm:$0xff] }
 0x6c6   :  { %6829 = vmatpush1.bf16.msra.mxu0 %v6828_v58  ;;  %v16700_v58 = vld [vmem:[#allocation312_spill] sm:$0xff]  ;;  %v16759_v28 = vld [vmem:[#allocation669_spill] sm:$0xff] }
 0x6c7   :  { %6831 = vmatprep.subr.bf16.mxu0 %v6830_v54  ;;  %6505 = vmatpush1.bf16.msra.mxu1 %v6504_v12  ;;  %v6510_v53 = vpack.c.bf16 %v16701_v52, %v16700_v58  ;;  %v16702_v54 = vld [vmem:[#allocation1012_spill] sm:$0xff] }
 0x6c8   :  { %6507 = vmatprep.subr.bf16.mxu1 %v6506_v27  ;;  %v16729_v12 = vld [vmem:[#allocation644_spill] sm:$0xff]  ;;  %v16731_v27 = vld [vmem:[#allocation643_spill] sm:$0xff] }
 0x6c9   :  { %v6862_v43 = vpack.c.bf16 %v16729_v12, %v16728_v21  ;;  %v6864_v17 = vpack.c.bf16 %v16731_v27, %v16730_v33  ;;  %v16738_v58 = vld [vmem:[#allocation652_spill] sm:$0xff]  ;;  %v16765_v21 = vld [vmem:[#allocation678_spill] sm:$0xff]  ;;  %v16767_v33 = vld [vmem:[#allocation677_spill] sm:$0xff] }
 0x6ca   :  { %6833 = vmatpush1.bf16.msra.mxu0 %v6832_v40  ;;  %v16709_v40 = vld [vmem:[#allocation313_spill] sm:$0xff]  ;;  %v16766_v12 = vld [vmem:[#allocation680_spill] sm:$0xff]  ;;  %v16768_v27 = vld [vmem:[#allocation679_spill] sm:$0xff] }
 0x6cb   :  { %6835 = vmatprep.subr.bf16.mxu0 %v6834_v55  ;;  %6509 = vmatpush1.bf16.msra.mxu1 %v6508_v57  ;;  %v6512_v34 = vpack.c.bf16 %v16709_v40, %v16708_v51  ;;  %v16711_v55 = vld [vmem:[#allocation318_spill] sm:$0xff]  ;;  %v16746_v40 = vld [vmem:[#allocation660_spill] sm:$0xff] }
 0x6cc   :  { %6511 = vmatprep.subr.bf16.mxu1 %v6510_v53  ;;  %v6514_v1 = vpack.c.bf16 %v16711_v55, %v16710_v41  ;;  %v16737_v57 = vld [vmem:[#allocation650_spill] sm:$0xff]  ;;  %v16739_v53 = vld [vmem:[#allocation649_spill] sm:$0xff]  ;;  %v16748_v55 = vld [vmem:[#allocation659_spill] sm:$0xff] }
 0x6cd   :  { %v6870_v52 = vpack.c.bf16 %v16738_v58, %v16737_v57  ;;  %v16745_v51 = vld [vmem:[#allocation658_spill] sm:$0xff]  ;;  %v16747_v41 = vld [vmem:[#allocation657_spill] sm:$0xff]  ;;  %v16774_v57 = vld [vmem:[#allocation688_spill] sm:$0xff] }
 0x6ce   :  { %6837 = vmatpush1.bf16.msra.mxu0 %v6836_v63  ;;  %v16717_v63 = vld [vmem:[#allocation317_spill] sm:$0xff] }
 0x6cf   :  { %6839 = vmatprep.subr.bf16.mxu0 %v6838_v30  ;;  %6513 = vmatpush1.bf16.msra.mxu1 %v6512_v34  ;;  %v6516_v26 = vpack.c.bf16 %v16717_v63, %v16716_v62  ;;  %v16719_v30 = vld [vmem:[#allocation322_spill] sm:$0xff]  ;;  %v6878_v34 = vpack.c.bf16 %v16746_v40, %v16745_v51  ;;  %v16754_v63 = vld [vmem:[#allocation668_spill] sm:$0xff] }
 0x6d0   :  { %6515 = vmatprep.subr.bf16.mxu1 %v6514_v1  ;;  %v6518_v38 = vpack.c.bf16 %v16719_v30, %v16718_v10  ;;  %v6880_v1 = vpack.c.bf16 %v16748_v55, %v16747_v41  ;;  %v16753_v62 = vld [vmem:[#allocation666_spill] sm:$0xff]  ;;  %v16755_v10 = vld [vmem:[#allocation665_spill] sm:$0xff]  ;;  %v16756_v30 = vld [vmem:[#allocation667_spill] sm:$0xff] }
 0x6d1   :  { %v16782_v51 = vld [vmem:[#allocation694_spill] sm:$0xff]  ;;  %v16783_v40 = vld [vmem:[#allocation696_spill] sm:$0xff]  ;;  %v16784_v41 = vld [vmem:[#allocation693_spill] sm:$0xff] }
 0x6d2   :  { %6841 = vmatpush1.bf16.msra.mxu0 %v6840_v18  ;;  %v16725_v18 = vld [vmem:[#allocation321_spill] sm:$0xff]  ;;  %v16785_v55 = vld [vmem:[#allocation695_spill] sm:$0xff] }
 0x6d3   :  { %6843 = vmatprep.subr.bf16.mxu0 %v6842_v39  ;;  %6517 = vmatpush1.bf16.msra.mxu1 %v6516_v26  ;;  %v6520_v19 = vpack.c.bf16 %v16725_v18, %v16724_v32  ;;  %v16727_v39 = vld [vmem:[#allocation639_spill] sm:$0xff]  ;;  %v6886_v26 = vpack.c.bf16 %v16754_v63, %v16753_v62  ;;  %v16761_v32 = vld [vmem:[#allocation674_spill] sm:$0xff]  ;;  %v16762_v18 = vld [vmem:[#allocation676_spill] sm:$0xff] }
 0x6d4   :  { %6519 = vmatprep.subr.bf16.mxu1 %v6518_v38  ;;  %v6860_v4 = vpack.c.bf16 %v16727_v39, %v16726_v9  ;;  %v6888_v38 = vpack.c.bf16 %v16756_v30, %v16755_v10  ;;  %v16763_v9 = vld [vmem:[#allocation673_spill] sm:$0xff]  ;;  %v16764_v39 = vld [vmem:[#allocation675_spill] sm:$0xff]  ;;  %v16790_v62 = vld [vmem:[#allocation702_spill] sm:$0xff] }
 0x6d5   :  { %5177 = vmatmul.mubr.f32.vlgmr.msra.gmra.mrb[0].mxu0 %v16702_v54  ;;  %v16740_v54 = vld [vmem:[#allocation651_spill] sm:$0xff]  ;;  %v16791_v63 = vld [vmem:[#allocation704_spill] sm:$0xff] }
 0x6d6   :  { %6845 = vmatpush1.bf16.msra.mxu0 %v6844_v6  ;;  %5247 = vmatprep.mubr.f32.mxu0 %v16705_v45  ;;  %v16733_v6 = vld [vmem:[#allocation646_spill] sm:$0xff]  ;;  %v6872_v48 = vpack.c.bf16 %v16740_v54, %v16739_v53  ;;  %v16776_v53 = vld [vmem:[#allocation687_spill] sm:$0xff] }
 0x6d7   :  { %6847 = vmatprep.subr.bf16.mxu0 %v6846_v61  ;;  %6521 = vmatpush1.bf16.msra.mxu1 %v6520_v19  ;;  %v6866_v20 = vpack.c.bf16 %v16734_v25, %v16733_v6  ;;  %v16735_v61 = vld [vmem:[#allocation645_spill] sm:$0xff]  ;;  %v6894_v19 = vpack.c.bf16 %v16762_v18, %v16761_v32  ;;  %v16770_v6 = vld [vmem:[#allocation684_spill] sm:$0xff]  ;;  %v16793_v10 = vld [vmem:[#allocation703_spill] sm:$0xff] }
 0x6d8   :  { %v6868_v56 = vpack.c.bf16 %v16736_v60, %v16735_v61  ;;  %v16772_v61 = vld [vmem:[#allocation683_spill] sm:$0xff]  ;;  %v16799_v32 = vld [vmem:[#allocation712_spill] sm:$0xff] }
 0x6da   :  { %6849 = vmatpush1.bf16.msra.mxu0 %v6848_v44  ;;  %4822 = vmatmul.mubr.f32.vlgmr.msra.gmra.mrb[28].mxu1 %v16732_v11  ;;  %v16742_v44 = vld [vmem:[#allocation656_spill] sm:$0xff]  ;;  %v16769_v11 = vld [vmem:[#allocation682_spill] sm:$0xff] }
 0x6db   :  { %6851 = vmatprep.subr.bf16.mxu0 %v6850_v47  ;;  %v6874_v45 = vpack.c.bf16 %v16742_v44, %v16741_v49  ;;  %v6876_v47 = vpack.c.bf16 %v16744_v46, %v16743_v50  ;;  %v6902_v25 = vpack.c.bf16 %v16770_v6, %v16769_v11  ;;  %v16778_v49 = vld [vmem:[#allocation692_spill] sm:$0xff]  ;;  %v16780_v50 = vld [vmem:[#allocation689_spill] sm:$0xff]  ;;  %v16781_v46 = vld [vmem:[#allocation691_spill] sm:$0xff] }
 0x6dc   :  { %v16807_v11 = vld [vmem:[#allocation720_spill] sm:$0xff] }
 0x6de   :  { %6853 = vmatpush1.bf16.msra.mxu0 %v6852_v2  ;;  %v6882_v2 = vpack.c.bf16 %v16750_v0, %v16749_v3  ;;  %v16786_v3 = vld [vmem:[#allocation698_spill] sm:$0xff]  ;;  %v16787_v0 = vld [vmem:[#allocation700_spill] sm:$0xff] }
 0x6df   :  { %6855 = vmatprep.subr.bf16.mxu0 %v6854_v59  ;;  %v6884_v59 = vpack.c.bf16 %v16752_v7, %v16751_v5  ;;  %v16788_v5 = vld [vmem:[#allocation697_spill] sm:$0xff]  ;;  %v16789_v7 = vld [vmem:[#allocation699_spill] sm:$0xff] }
 0x6e2   :  { %6857 = vmatpush1.bf16.msra.mxu0 %v6856_v29  ;;  %v6890_v29 = vpack.c.bf16 %v16758_v16, %v16757_v35  ;;  %v16795_v35 = vld [vmem:[#allocation708_spill] sm:$0xff] }
 0x6e3   :  { %6859 = vmatprep.subr.bf16.mxu0 %v6858_v23  ;;  %v6892_v23 = vpack.c.bf16 %v16760_v36, %v16759_v28  ;;  %v16797_v28 = vld [vmem:[#allocation707_spill] sm:$0xff] }
 0x6e6   :  { %6861 = vmatpush1.bf16.msra.mxu0 %v6860_v4  ;;  %v6896_v4 = vpack.c.bf16 %v16764_v39, %v16763_v9  ;;  %v16801_v9 = vld [vmem:[#allocation711_spill] sm:$0xff] }
 0x6e7   :  { %6863 = vmatprep.subr.bf16.mxu0 %v6862_v43  ;;  %v6898_v43 = vpack.c.bf16 %v16766_v12, %v16765_v21  ;;  %v16803_v21 = vld [vmem:[#allocation716_spill] sm:$0xff] }
 0x6ea   :  { %6865 = vmatpush1.bf16.msra.mxu0 %v6864_v17  ;;  %v6900_v17 = vpack.c.bf16 %v16768_v27, %v16767_v33  ;;  %v16805_v33 = vld [vmem:[#allocation715_spill] sm:$0xff] }
 0x6eb   :  { %6867 = vmatprep.subr.bf16.mxu0 %v6866_v20  ;;  %v16771_v20 = vld [vmem:[#allocation681_spill] sm:$0xff] }
 0x6ec   :  { %v6904_v60 = vpack.c.bf16 %v16772_v61, %v16771_v20  ;;  %v16809_v20 = vld [vmem:[#allocation719_spill] sm:$0xff] }
 0x6ee   :  { %6869 = vmatpush1.bf16.msra.mxu0 %v6868_v56  ;;  %v16773_v56 = vld [vmem:[#allocation686_spill] sm:$0xff] }
 0x6ef   :  { %6871 = vmatprep.subr.bf16.mxu0 %v6870_v52  ;;  %v6906_v58 = vpack.c.bf16 %v16774_v57, %v16773_v56  ;;  %v16775_v52 = vld [vmem:[#allocation685_spill] sm:$0xff]  ;;  %v16811_v56 = vld [vmem:[#allocation724_spill] sm:$0xff] }
 0x6f0   :  { %v6908_v54 = vpack.c.bf16 %v16776_v53, %v16775_v52  ;;  %v16813_v52 = vld [vmem:[#allocation723_spill] sm:$0xff] }
 0x6f2   :  { %6873 = vmatpush1.bf16.msra.mxu0 %v6872_v48  ;;  %v16777_v48 = vld [vmem:[#allocation690_spill] sm:$0xff] }
 0x6f3   :  { %6875 = vmatprep.subr.bf16.mxu0 %v6874_v45  ;;  %v6910_v44 = vpack.c.bf16 %v16778_v49, %v16777_v48  ;;  %v16779_v45 = vld [vmem:[#allocation1014_spill] sm:$0xff]  ;;  %v16815_v48 = vld [vmem:[#allocation728_spill] sm:$0xff] }
 0x6f6   :  { %6877 = vmatpush1.bf16.msra.mxu0 %v6876_v47  ;;  %v6912_v47 = vpack.c.bf16 %v16781_v46, %v16780_v50  ;;  %v16818_v46 = vld [vmem:[#allocation730_spill] sm:$0xff] }
 0x6f7   :  { %6879 = vmatprep.subr.bf16.mxu0 %v6878_v34  ;;  %v6914_v34 = vpack.c.bf16 %v16783_v40, %v16782_v51  ;;  %v16820_v40 = vld [vmem:[#allocation729_spill] sm:$0xff] }
 0x6fa   :  { %6881 = vmatpush1.bf16.msra.mxu0 %v6880_v1  ;;  %v6916_v1 = vpack.c.bf16 %v16785_v55, %v16784_v41  ;;  %v16822_v55 = vld [vmem:[#allocation734_spill] sm:$0xff] }
 0x6fb   :  { %6883 = vmatprep.subr.bf16.mxu0 %v6882_v2  ;;  %v6918_v2 = vpack.c.bf16 %v16787_v0, %v16786_v3  ;;  %v16824_v0 = vld [vmem:[#allocation733_spill] sm:$0xff] }
 0x6fe   :  { %6885 = vmatpush1.bf16.msra.mxu0 %v6884_v59  ;;  %v6920_v59 = vpack.c.bf16 %v16789_v7, %v16788_v5  ;;  %v16826_v7 = vld [vmem:[#allocation738_spill] sm:$0xff] }
 0x6ff   :  { %6887 = vmatprep.subr.bf16.mxu0 %v6886_v26  ;;  %v16792_v26 = vld [vmem:[#allocation701_spill] sm:$0xff] }
 0x700   :  { %v6924_v30 = vpack.c.bf16 %v16793_v10, %v16792_v26  ;;  %v16830_v10 = vld [vmem:[#allocation742_spill] sm:$0xff] }
 0x702   :  { %6889 = vmatpush1.bf16.msra.mxu0 %v6888_v38  ;;  %v16794_v38 = vld [vmem:[#allocation706_spill] sm:$0xff] }
 0x703   :  { %6891 = vmatprep.subr.bf16.mxu0 %v6890_v29  ;;  %v6926_v16 = vpack.c.bf16 %v16795_v35, %v16794_v38  ;;  %v16796_v29 = vld [vmem:[#allocation705_spill] sm:$0xff] }
 0x704   :  { %v6928_v36 = vpack.c.bf16 %v16797_v28, %v16796_v29  ;;  %v16832_v35 = vld [vmem:[#allocation741_spill] sm:$0xff]  ;;  %v16834_v28 = vld [vmem:[#allocation746_spill] sm:$0xff] }
 0x706   :  { %6893 = vmatpush1.bf16.msra.mxu0 %v6892_v23  ;;  %v16798_v23 = vld [vmem:[#allocation710_spill] sm:$0xff] }
 0x707   :  { %6895 = vmatprep.subr.bf16.mxu0 %v6894_v19  ;;  %v6930_v18 = vpack.c.bf16 %v16799_v32, %v16798_v23  ;;  %v16800_v19 = vld [vmem:[#allocation709_spill] sm:$0xff] }
 0x708   :  { %v6932_v39 = vpack.c.bf16 %v16801_v9, %v16800_v19  ;;  %v16836_v32 = vld [vmem:[#allocation745_spill] sm:$0xff]  ;;  %v16838_v9 = vld [vmem:[#allocation750_spill] sm:$0xff] }
 0x70a   :  { %6897 = vmatpush1.bf16.msra.mxu0 %v6896_v4  ;;  %v16802_v4 = vld [vmem:[#allocation714_spill] sm:$0xff] }
 0x70b   :  { %6899 = vmatprep.subr.bf16.mxu0 %v6898_v43  ;;  %v6934_v12 = vpack.c.bf16 %v16803_v21, %v16802_v4  ;;  %v16804_v43 = vld [vmem:[#allocation713_spill] sm:$0xff] }
 0x70c   :  { %v6936_v27 = vpack.c.bf16 %v16805_v33, %v16804_v43  ;;  %v16840_v21 = vld [vmem:[#allocation749_spill] sm:$0xff]  ;;  %v16842_v33 = vld [vmem:[#allocation754_spill] sm:$0xff] }
 0x70e   :  { %6901 = vmatpush1.bf16.msra.mxu0 %v6900_v17  ;;  %v16806_v17 = vld [vmem:[#allocation718_spill] sm:$0xff] }
 0x70f   :  { %6903 = vmatprep.subr.bf16.mxu0 %v6902_v25  ;;  %v6938_v6 = vpack.c.bf16 %v16807_v11, %v16806_v17  ;;  %v16808_v25 = vld [vmem:[#allocation717_spill] sm:$0xff]  ;;  %v16844_v11 = vld [vmem:[#allocation1016_spill] sm:$0xff] }
 0x710   :  { %v6940_v61 = vpack.c.bf16 %v16809_v20, %v16808_v25  ;;  %v16846_v25 = vld [vmem:[#allocation755_spill] sm:$0xff] }
 0x712   :  { %6905 = vmatpush1.bf16.msra.mxu0 %v6904_v60  ;;  %v16810_v60 = vld [vmem:[#allocation722_spill] sm:$0xff] }
 0x713   :  { %6907 = vmatprep.subr.bf16.mxu0 %v6906_v58  ;;  %v6942_v57 = vpack.c.bf16 %v16811_v56, %v16810_v60  ;;  %v16812_v58 = vld [vmem:[#allocation721_spill] sm:$0xff]  ;;  %v16848_v60 = vld [vmem:[#allocation760_spill] sm:$0xff] }
 0x714   :  { %v6944_v53 = vpack.c.bf16 %v16813_v52, %v16812_v58  ;;  %v16850_v58 = vld [vmem:[#allocation759_spill] sm:$0xff] }
 0x715   :  { %5248 = vmatmul.mubr.f32.vlgmr.msra.gmra.mrb[0].mxu0 %v16779_v45  ;;  %v16817_v45 = vld [vmem:[#allocation727_spill] sm:$0xff] }
 0x716   :  { %6909 = vmatpush1.bf16.msra.mxu0 %v6908_v54  ;;  %5318 = vmatprep.mubr.f32.mxu0 %v13854_v24  ;;  %v6922_v24 = vpack.c.bf16 %v16791_v63, %v16790_v62  ;;  %v16814_v54 = vld [vmem:[#allocation726_spill] sm:$0xff]  ;;  %v16828_v63 = vld [vmem:[#allocation737_spill] sm:$0xff] }
 0x717   :  { %6911 = vmatprep.subr.bf16.mxu0 %v6910_v44  ;;  %v6946_v49 = vpack.c.bf16 %v16815_v48, %v16814_v54  ;;  %v16816_v44 = vld [vmem:[#allocation725_spill] sm:$0xff]  ;;  %v16852_v54 = vld [vmem:[#allocation764_spill] sm:$0xff] }
 0x718   :  { %v6948_v50 = vpack.c.bf16 %v16817_v45, %v16816_v44  ;;  %v16854_v44 = vld [vmem:[#allocation763_spill] sm:$0xff] }
 0x71a   :  { %6913 = vmatpush1.bf16.msra.mxu0 %v6912_v47  ;;  %v16819_v47 = vld [vmem:[#allocation732_spill] sm:$0xff] }
 0x71b   :  { %6915 = vmatprep.subr.bf16.mxu0 %v6914_v34  ;;  %v6950_v51 = vpack.c.bf16 %v16819_v47, %v16818_v46  ;;  %v16821_v34 = vld [vmem:[#allocation731_spill] sm:$0xff]  ;;  %v16856_v46 = vld [vmem:[#allocation768_spill] sm:$0xff]  ;;  %v16857_v47 = vld [vmem:[#allocation765_spill] sm:$0xff] }
 0x71c   :  { %v6952_v41 = vpack.c.bf16 %v16821_v34, %v16820_v40  ;;  %v16859_v34 = vld [vmem:[#allocation770_spill] sm:$0xff] }
 0x71e   :  { %6917 = vmatpush1.bf16.msra.mxu0 %v6916_v1  ;;  %v16823_v1 = vld [vmem:[#allocation736_spill] sm:$0xff] }
 0x71f   :  { %6919 = vmatprep.subr.bf16.mxu0 %v6918_v2  ;;  %v6954_v3 = vpack.c.bf16 %v16823_v1, %v16822_v55  ;;  %v16825_v2 = vld [vmem:[#allocation735_spill] sm:$0xff]  ;;  %v16861_v1 = vld [vmem:[#allocation769_spill] sm:$0xff] }
 0x720   :  { %v6956_v5 = vpack.c.bf16 %v16825_v2, %v16824_v0  ;;  %v16863_v2 = vld [vmem:[#allocation774_spill] sm:$0xff] }
 0x722   :  { %6921 = vmatpush1.bf16.msra.mxu0 %v6920_v59  ;;  %v16827_v59 = vld [vmem:[#allocation740_spill] sm:$0xff] }
 0x723   :  { %6923 = vmatprep.subr.bf16.mxu0 %v6922_v24  ;;  %v6958_v62 = vpack.c.bf16 %v16827_v59, %v16826_v7  ;;  %v16829_v24 = vld [vmem:[#allocation739_spill] sm:$0xff]  ;;  %v16865_v59 = vld [vmem:[#allocation773_spill] sm:$0xff] }
 0x724   :  { %v6960_v26 = vpack.c.bf16 %v16829_v24, %v16828_v63  ;;  %v16867_v24 = vld [vmem:[#allocation778_spill] sm:$0xff] }
 0x726   :  { %6925 = vmatpush1.bf16.msra.mxu0 %v6924_v30  ;;  %v16831_v30 = vld [vmem:[#allocation744_spill] sm:$0xff] }
 0x727   :  { %6927 = vmatprep.subr.bf16.mxu0 %v6926_v16  ;;  %v6962_v38 = vpack.c.bf16 %v16831_v30, %v16830_v10  ;;  %v16833_v16 = vld [vmem:[#allocation743_spill] sm:$0xff]  ;;  %v16869_v30 = vld [vmem:[#allocation777_spill] sm:$0xff] }
 0x728   :  { %v6964_v29 = vpack.c.bf16 %v16833_v16, %v16832_v35  ;;  %v16871_v16 = vld [vmem:[#allocation782_spill] sm:$0xff] }
 0x72a   :  { %6929 = vmatpush1.bf16.msra.mxu0 %v6928_v36  ;;  %v16835_v36 = vld [vmem:[#allocation748_spill] sm:$0xff] }
 0x72b   :  { %6931 = vmatprep.subr.bf16.mxu0 %v6930_v18  ;;  %v6966_v23 = vpack.c.bf16 %v16835_v36, %v16834_v28  ;;  %v16837_v18 = vld [vmem:[#allocation747_spill] sm:$0xff]  ;;  %v16873_v36 = vld [vmem:[#allocation781_spill] sm:$0xff] }
 0x72c   :  { %v6968_v19 = vpack.c.bf16 %v16837_v18, %v16836_v32  ;;  %v16875_v18 = vld [vmem:[#allocation786_spill] sm:$0xff] }
 0x72e   :  { %6933 = vmatpush1.bf16.msra.mxu0 %v6932_v39  ;;  %v16839_v39 = vld [vmem:[#allocation752_spill] sm:$0xff] }
 0x72f   :  { %6935 = vmatprep.subr.bf16.mxu0 %v6934_v12  ;;  %v6970_v4 = vpack.c.bf16 %v16839_v39, %v16838_v9  ;;  %v16841_v12 = vld [vmem:[#allocation751_spill] sm:$0xff]  ;;  %v16877_v39 = vld [vmem:[#allocation785_spill] sm:$0xff] }
 0x730   :  { %v6972_v43 = vpack.c.bf16 %v16841_v12, %v16840_v21  ;;  %v16879_v12 = vld [vmem:[#allocation790_spill] sm:$0xff] }
 0x732   :  { %6937 = vmatpush1.bf16.msra.mxu0 %v6936_v27  ;;  %v16843_v27 = vld [vmem:[#allocation756_spill] sm:$0xff] }
 0x733   :  { %6939 = vmatprep.subr.bf16.mxu0 %v6938_v6  ;;  %v6974_v17 = vpack.c.bf16 %v16843_v27, %v16842_v33  ;;  %v16845_v6 = vld [vmem:[#allocation753_spill] sm:$0xff] }
 0x734   :  { %v6976_v20 = vpack.c.bf16 %v16846_v25, %v16845_v6  ;;  %v16881_v27 = vld [vmem:[#allocation789_spill] sm:$0xff]  ;;  %v16883_v6 = vld [vmem:[#allocation794_spill] sm:$0xff]  ;;  %v16884_v25 = vld [vmem:[#allocation796_spill] sm:$0xff] }
 0x736   :  { %6941 = vmatpush1.bf16.msra.mxu0 %v6940_v61  ;;  %v16847_v61 = vld [vmem:[#allocation758_spill] sm:$0xff] }
 0x737   :  { %6943 = vmatprep.subr.bf16.mxu0 %v6942_v57  ;;  %v6978_v56 = vpack.c.bf16 %v16848_v60, %v16847_v61  ;;  %v16849_v57 = vld [vmem:[#allocation757_spill] sm:$0xff]  ;;  %v16886_v60 = vld [vmem:[#allocation795_spill] sm:$0xff] }
 0x738   :  { %v6980_v52 = vpack.c.bf16 %v16850_v58, %v16849_v57  ;;  %v16885_v61 = vld [vmem:[#allocation793_spill] sm:$0xff]  ;;  %v16887_v57 = vld [vmem:[#allocation798_spill] sm:$0xff]  ;;  %v16888_v58 = vld [vmem:[#allocation800_spill] sm:$0xff] }
 0x73a   :  { %6945 = vmatpush1.bf16.msra.mxu0 %v6944_v53  ;;  %v16851_v53 = vld [vmem:[#allocation762_spill] sm:$0xff] }
 0x73b   :  { %6947 = vmatprep.subr.bf16.mxu0 %v6946_v49  ;;  %v6982_v48 = vpack.c.bf16 %v16852_v54, %v16851_v53  ;;  %v16853_v49 = vld [vmem:[#allocation761_spill] sm:$0xff]  ;;  %v16890_v54 = vld [vmem:[#allocation799_spill] sm:$0xff] }
 0x73c   :  { %v6984_v45 = vpack.c.bf16 %v16854_v44, %v16853_v49  ;;  %v16889_v53 = vld [vmem:[#allocation797_spill] sm:$0xff]  ;;  %v16891_v49 = vld [vmem:[#allocation802_spill] sm:$0xff]  ;;  %v16892_v44 = vld [vmem:[#allocation804_spill] sm:$0xff] }
 0x73e   :  { %6949 = vmatpush1.bf16.msra.mxu0 %v6948_v50  ;;  %v16855_v50 = vld [vmem:[#allocation766_spill] sm:$0xff] }
 0x73f   :  { %6951 = vmatprep.subr.bf16.mxu0 %v6950_v51  ;;  %v16858_v51 = vld [vmem:[#allocation767_spill] sm:$0xff] }
 0x740   :  { %v6988_v40 = vpack.c.bf16 %v16858_v51, %v16857_v47  ;;  %v16895_v47 = vld [vmem:[#allocation806_spill] sm:$0xff]  ;;  %v16896_v51 = vld [vmem:[#allocation808_spill] sm:$0xff] }
 0x742   :  { %6953 = vmatpush1.bf16.msra.mxu0 %v6952_v41  ;;  %v16860_v41 = vld [vmem:[#allocation772_spill] sm:$0xff] }
 0x743   :  { %6955 = vmatprep.subr.bf16.mxu0 %v6954_v3  ;;  %v6990_v55 = vpack.c.bf16 %v16860_v41, %v16859_v34  ;;  %v16862_v3 = vld [vmem:[#allocation771_spill] sm:$0xff]  ;;  %v16897_v34 = vld [vmem:[#allocation805_spill] sm:$0xff] }
 0x744   :  { %v6992_v0 = vpack.c.bf16 %v16862_v3, %v16861_v1  ;;  %v16898_v41 = vld [vmem:[#allocation807_spill] sm:$0xff]  ;;  %v16899_v1 = vld [vmem:[#allocation810_spill] sm:$0xff]  ;;  %v16900_v3 = vld [vmem:[#allocation812_spill] sm:$0xff] }
 0x746   :  { %6957 = vmatpush1.bf16.msra.mxu0 %v6956_v5  ;;  %v16864_v5 = vld [vmem:[#allocation776_spill] sm:$0xff] }
 0x747   :  { %6959 = vmatprep.subr.bf16.mxu0 %v6958_v62  ;;  %v6994_v7 = vpack.c.bf16 %v16864_v5, %v16863_v2  ;;  %v16866_v62 = vld [vmem:[#allocation775_spill] sm:$0xff]  ;;  %v16901_v2 = vld [vmem:[#allocation809_spill] sm:$0xff] }
 0x748   :  { %v6996_v63 = vpack.c.bf16 %v16866_v62, %v16865_v59  ;;  %v16902_v5 = vld [vmem:[#allocation811_spill] sm:$0xff]  ;;  %v16903_v59 = vld [vmem:[#allocation814_spill] sm:$0xff]  ;;  %v16904_v62 = vld [vmem:[#allocation816_spill] sm:$0xff] }
 0x74a   :  { %6961 = vmatpush1.bf16.msra.mxu0 %v6960_v26  ;;  %v16868_v26 = vld [vmem:[#allocation780_spill] sm:$0xff] }
 0x74b   :  { %6963 = vmatprep.subr.bf16.mxu0 %v6962_v38  ;;  %v6998_v10 = vpack.c.bf16 %v16868_v26, %v16867_v24  ;;  %v16870_v38 = vld [vmem:[#allocation779_spill] sm:$0xff]  ;;  %v16905_v24 = vld [vmem:[#allocation813_spill] sm:$0xff] }
 0x74c   :  { %v7000_v35 = vpack.c.bf16 %v16870_v38, %v16869_v30  ;;  %v16906_v26 = vld [vmem:[#allocation815_spill] sm:$0xff]  ;;  %v16907_v30 = vld [vmem:[#allocation818_spill] sm:$0xff]  ;;  %v16908_v38 = vld [vmem:[#allocation820_spill] sm:$0xff] }
 0x74e   :  { %6965 = vmatpush1.bf16.msra.mxu0 %v6964_v29  ;;  %v16872_v29 = vld [vmem:[#allocation784_spill] sm:$0xff] }
 0x74f   :  { %6967 = vmatprep.subr.bf16.mxu0 %v6966_v23  ;;  %v7002_v28 = vpack.c.bf16 %v16872_v29, %v16871_v16  ;;  %v16874_v23 = vld [vmem:[#allocation783_spill] sm:$0xff]  ;;  %v16909_v16 = vld [vmem:[#allocation817_spill] sm:$0xff] }
 0x750   :  { %v7004_v32 = vpack.c.bf16 %v16874_v23, %v16873_v36  ;;  %v16910_v29 = vld [vmem:[#allocation819_spill] sm:$0xff]  ;;  %v16911_v36 = vld [vmem:[#allocation822_spill] sm:$0xff]  ;;  %v16912_v23 = vld [vmem:[#allocation824_spill] sm:$0xff] }
 0x752   :  { %6969 = vmatpush1.bf16.msra.mxu0 %v6968_v19  ;;  %v16876_v19 = vld [vmem:[#allocation788_spill] sm:$0xff] }
 0x753   :  { %6971 = vmatprep.subr.bf16.mxu0 %v6970_v4  ;;  %v7006_v9 = vpack.c.bf16 %v16876_v19, %v16875_v18  ;;  %v16878_v4 = vld [vmem:[#allocation787_spill] sm:$0xff]  ;;  %v16913_v18 = vld [vmem:[#allocation821_spill] sm:$0xff] }
 0x754   :  { %v7008_v21 = vpack.c.bf16 %v16878_v4, %v16877_v39  ;;  %v16914_v19 = vld [vmem:[#allocation823_spill] sm:$0xff]  ;;  %v16915_v39 = vld [vmem:[#allocation826_spill] sm:$0xff]  ;;  %v16916_v4 = vld [vmem:[#allocation828_spill] sm:$0xff] }
 0x755   :  { %5319 = vmatmul.mubr.f32.vlgmr.msra.gmra.mrb[0].mxu0 %v16844_v11 }
 0x756   :  { %6973 = vmatpush1.bf16.msra.mxu0 %v6972_v43  ;;  %5389 = vmatprep.mubr.f32.mxu0 %v13857_v22  ;;  %v6986_v22 = vpack.c.bf16 %v16856_v46, %v16855_v50  ;;  %v16880_v43 = vld [vmem:[#allocation792_spill] sm:$0xff]  ;;  %v16893_v50 = vld [vmem:[#allocation801_spill] sm:$0xff]  ;;  %v16894_v46 = vld [vmem:[#allocation803_spill] sm:$0xff] }
 0x757   :  { %6975 = vmatprep.subr.bf16.mxu0 %v6974_v17  ;;  %v7010_v33 = vpack.c.bf16 %v16880_v43, %v16879_v12  ;;  %v16882_v17 = vld [vmem:[#allocation791_spill] sm:$0xff] }
 0x758   :  { %v7012_v11 = vpack.c.bf16 %v16882_v17, %v16881_v27  ;;  %v16918_v12 = vld [vmem:[#allocation827_spill] sm:$0xff]  ;;  %v16920_v27 = vld [vmem:[#allocation832_spill] sm:$0xff]  ;;  %v16921_v17 = vld [vmem:[#allocation829_spill] sm:$0xff] }
 0x75a   :  { %6977 = vmatpush1.bf16.msra.mxu0 %v6976_v20  ;;  %v7014_v20 = vpack.c.bf16 %v16884_v25, %v16883_v6  ;;  %v16923_v25 = vld [vmem:[#allocation834_spill] sm:$0xff] }
 0x75b   :  { %6979 = vmatprep.subr.bf16.mxu0 %v6978_v56  ;;  %v7016_v56 = vpack.c.bf16 %v16886_v60, %v16885_v61  ;;  %v16925_v60 = vld [vmem:[#allocation833_spill] sm:$0xff] }
 0x75e   :  { %6981 = vmatpush1.bf16.msra.mxu0 %v6980_v52  ;;  %v7018_v52 = vpack.c.bf16 %v16888_v58, %v16887_v57  ;;  %v16927_v58 = vld [vmem:[#allocation838_spill] sm:$0xff] }
 0x75f   :  { %6983 = vmatprep.subr.bf16.mxu0 %v6982_v48  ;;  %v7020_v48 = vpack.c.bf16 %v16890_v54, %v16889_v53  ;;  %v16929_v54 = vld [vmem:[#allocation837_spill] sm:$0xff] }
 0x762   :  { %6985 = vmatpush1.bf16.msra.mxu0 %v6984_v45  ;;  %v7022_v45 = vpack.c.bf16 %v16892_v44, %v16891_v49  ;;  %v16931_v44 = vld [vmem:[#allocation842_spill] sm:$0xff] }
 0x763   :  { %6987 = vmatprep.subr.bf16.mxu0 %v6986_v22  ;;  %v7024_v22 = vpack.c.bf16 %v16894_v46, %v16893_v50  ;;  %v16933_v46 = vld [vmem:[#allocation841_spill] sm:$0xff] }
 0x766   :  { %6989 = vmatpush1.bf16.msra.mxu0 %v6988_v40  ;;  %v7026_v40 = vpack.c.bf16 %v16896_v51, %v16895_v47  ;;  %v16935_v51 = vld [vmem:[#allocation846_spill] sm:$0xff] }
 0x767   :  { %6991 = vmatprep.subr.bf16.mxu0 %v6990_v55  ;;  %v7028_v55 = vpack.c.bf16 %v16898_v41, %v16897_v34  ;;  %v16937_v41 = vld [vmem:[#allocation845_spill] sm:$0xff] }
 0x76a   :  { %6993 = vmatpush1.bf16.msra.mxu0 %v6992_v0  ;;  %v7030_v0 = vpack.c.bf16 %v16900_v3, %v16899_v1  ;;  %v16939_v3 = vld [vmem:[#allocation850_spill] sm:$0xff] }
 0x76b   :  { %6995 = vmatprep.subr.bf16.mxu0 %v6994_v7  ;;  %v7032_v7 = vpack.c.bf16 %v16902_v5, %v16901_v2  ;;  %v16941_v5 = vld [vmem:[#allocation849_spill] sm:$0xff] }
 0x76e   :  { %6997 = vmatpush1.bf16.msra.mxu0 %v6996_v63  ;;  %v7034_v63 = vpack.c.bf16 %v16904_v62, %v16903_v59  ;;  %v16943_v62 = vld [vmem:[#allocation854_spill] sm:$0xff] }
 0x76f   :  { %6999 = vmatprep.subr.bf16.mxu0 %v6998_v10  ;;  %v7036_v10 = vpack.c.bf16 %v16906_v26, %v16905_v24 }
 0x772   :  { %7001 = vmatpush1.bf16.msra.mxu0 %v7000_v35  ;;  %v7038_v35 = vpack.c.bf16 %v16908_v38, %v16907_v30  ;;  %v16946_v30 = vld [vmem:[#allocation855_spill] sm:$0xff] }
 0x773   :  { %7003 = vmatprep.subr.bf16.mxu0 %v7002_v28  ;;  %v7040_v28 = vpack.c.bf16 %v16910_v29, %v16909_v16  ;;  %v16947_v16 = vld [vmem:[#allocation858_spill] sm:$0xff]  ;;  %v16948_v29 = vld [vmem:[#allocation860_spill] sm:$0xff] }
 0x776   :  { %7005 = vmatpush1.bf16.msra.mxu0 %v7004_v32  ;;  %v7042_v32 = vpack.c.bf16 %v16912_v23, %v16911_v36  ;;  %v16949_v36 = vld [vmem:[#allocation857_spill] sm:$0xff]  ;;  %v16950_v23 = vld [vmem:[#allocation859_spill] sm:$0xff] }
 0x777   :  { %7007 = vmatprep.subr.bf16.mxu0 %v7006_v9  ;;  %v7044_v9 = vpack.c.bf16 %v16914_v19, %v16913_v18  ;;  %v16951_v18 = vld [vmem:[#allocation862_spill] sm:$0xff]  ;;  %v16952_v19 = vld [vmem:[#allocation864_spill] sm:$0xff] }
 0x77a   :  { %7009 = vmatpush1.bf16.msra.mxu0 %v7008_v21  ;;  %v7046_v21 = vpack.c.bf16 %v16916_v4, %v16915_v39  ;;  %v16953_v39 = vld [vmem:[#allocation861_spill] sm:$0xff]  ;;  %v16954_v4 = vld [vmem:[#allocation863_spill] sm:$0xff] }
 0x77b   :  { %7011 = vmatprep.subr.bf16.mxu0 %v7010_v33  ;;  %v16919_v33 = vld [vmem:[#allocation830_spill] sm:$0xff] }
 0x77e   :  { %7013 = vmatpush1.bf16.msra.mxu0 %v7012_v11  ;;  %v16922_v11 = vld [vmem:[#allocation831_spill] sm:$0xff] }
 0x77f   :  { %7015 = vmatprep.subr.bf16.mxu0 %v7014_v20  ;;  %v7052_v6 = vpack.c.bf16 %v16922_v11, %v16921_v17  ;;  %v16924_v20 = vld [vmem:[#allocation836_spill] sm:$0xff]  ;;  %v16959_v17 = vld [vmem:[#allocation870_spill] sm:$0xff] }
 0x780   :  { %v7054_v61 = vpack.c.bf16 %v16924_v20, %v16923_v25  ;;  %v16960_v11 = vld [vmem:[#allocation872_spill] sm:$0xff]  ;;  %v16961_v25 = vld [vmem:[#allocation869_spill] sm:$0xff]  ;;  %v16962_v20 = vld [vmem:[#allocation871_spill] sm:$0xff] }
 0x782   :  { %7017 = vmatpush1.bf16.msra.mxu0 %v7016_v56  ;;  %v16926_v56 = vld [vmem:[#allocation835_spill] sm:$0xff] }
 0x783   :  { %7019 = vmatprep.subr.bf16.mxu0 %v7018_v52  ;;  %v7056_v57 = vpack.c.bf16 %v16926_v56, %v16925_v60  ;;  %v16928_v52 = vld [vmem:[#allocation840_spill] sm:$0xff]  ;;  %v16963_v60 = vld [vmem:[#allocation874_spill] sm:$0xff] }
 0x784   :  { %v7058_v53 = vpack.c.bf16 %v16928_v52, %v16927_v58  ;;  %v16964_v56 = vld [vmem:[#allocation876_spill] sm:$0xff]  ;;  %v16965_v58 = vld [vmem:[#allocation873_spill] sm:$0xff]  ;;  %v16966_v52 = vld [vmem:[#allocation875_spill] sm:$0xff] }
 0x786   :  { %7021 = vmatpush1.bf16.msra.mxu0 %v7020_v48  ;;  %v16930_v48 = vld [vmem:[#allocation839_spill] sm:$0xff] }
 0x787   :  { %7023 = vmatprep.subr.bf16.mxu0 %v7022_v45  ;;  %v7060_v49 = vpack.c.bf16 %v16930_v48, %v16929_v54  ;;  %v16932_v45 = vld [vmem:[#allocation844_spill] sm:$0xff]  ;;  %v16967_v54 = vld [vmem:[#allocation878_spill] sm:$0xff] }
 0x788   :  { %v7062_v50 = vpack.c.bf16 %v16932_v45, %v16931_v44  ;;  %v16968_v48 = vld [vmem:[#allocation880_spill] sm:$0xff]  ;;  %v16969_v44 = vld [vmem:[#allocation877_spill] sm:$0xff]  ;;  %v16970_v45 = vld [vmem:[#allocation879_spill] sm:$0xff] }
 0x78a   :  { %7025 = vmatpush1.bf16.msra.mxu0 %v7024_v22  ;;  %v16934_v22 = vld [vmem:[#allocation843_spill] sm:$0xff] }
 0x78b   :  { %7027 = vmatprep.subr.bf16.mxu0 %v7026_v40  ;;  %v7064_v47 = vpack.c.bf16 %v16934_v22, %v16933_v46  ;;  %v16936_v40 = vld [vmem:[#allocation848_spill] sm:$0xff]  ;;  %v16971_v46 = vld [vmem:[#allocation882_spill] sm:$0xff] }
 0x78c   :  { %v7066_v34 = vpack.c.bf16 %v16936_v40, %v16935_v51  ;;  %v16972_v22 = vld [vmem:[#allocation884_spill] sm:$0xff]  ;;  %v5628_v40 = vld [vmem:[%s15067_s8 + $0x88] sm:$0xff] }
 0x78d   :  { %v5627_v51 = vld [vmem:[%s15067_s8 + $0x80] sm:$0xff] }
 0x78e   :  { %7029 = vmatpush1.bf16.msra.mxu0 %v7028_v55  ;;  %v16938_v55 = vld [vmem:[#allocation847_spill] sm:$0xff] }
 0x78f   :  { %7031 = vmatprep.subr.bf16.mxu0 %v7030_v0  ;;  %v7068_v1 = vpack.c.bf16 %v16938_v55, %v16937_v41  ;;  %v16940_v0 = vld [vmem:[#allocation852_spill] sm:$0xff]  ;;  %v16973_v41 = vld [vmem:[#allocation881_spill] sm:$0xff]  ;;  %v16974_v55 = vld [vmem:[#allocation883_spill] sm:$0xff] }
 0x790   :  { %v7070_v2 = vpack.c.bf16 %v16940_v0, %v16939_v3  ;;  %v7226_v3 = vpack.c.bf16 %v5628_v40, %v5627_v51  ;;  %v5629_v0 = vld [vmem:[%s15067_s8 + $0x90] sm:$0xff] }
 0x791   :  { %v5621_v40 = vld [vmem:[%s15067_s8 + $0x50] sm:$0xff] }
 0x792   :  { %7033 = vmatpush1.bf16.msra.mxu0 %v7032_v7  ;;  %v16942_v7 = vld [vmem:[#allocation851_spill] sm:$0xff]  ;;  %7227 = vmatprep.subr.bf16.mxu1 %v7226_v3  ;;  %v5639_v3 = vld [vmem:[%s15067_s8 + $0xe0] sm:$0xff] }
 0x793   :  { %7035 = vmatprep.subr.bf16.mxu0 %v7034_v63  ;;  %v7072_v59 = vpack.c.bf16 %v16942_v7, %v16941_v5  ;;  %v16944_v63 = vld [vmem:[#allocation856_spill] sm:$0xff]  ;;  %v16975_v5 = vld [vmem:[#allocation886_spill] sm:$0xff] }
 0x794   :  { %v7074_v24 = vpack.c.bf16 %v16944_v63, %v16943_v62  ;;  %v16976_v7 = vld [vmem:[#allocation888_spill] sm:$0xff] }
 0x795   :  { %5390 = vmatmul.mubr.f32.vlgmr.msra.gmra.mrb[0].mxu0 %v13860_v8  ;;  %v16917_v8 = vld [vmem:[#allocation825_spill] sm:$0xff] }
 0x796   :  { %7037 = vmatpush1.bf16.msra.mxu0 %v7036_v10  ;;  %5460 = vmatprep.mubr.f32.mxu0 %v13866_v15  ;;  %v7048_v43 = vpack.c.bf16 %v16918_v12, %v16917_v8  ;;  %v7050_v15 = vpack.c.bf16 %v16920_v27, %v16919_v33  ;;  %v16945_v10 = vld [vmem:[#allocation853_spill] sm:$0xff]  ;;  %v16955_v8 = vld [vmem:[#allocation866_spill] sm:$0xff]  ;;  %v16956_v12 = vld [vmem:[#allocation868_spill] sm:$0xff] }
 0x797   :  { %7039 = vmatprep.subr.bf16.mxu0 %v7038_v35  ;;  %v7076_v38 = vpack.c.bf16 %v16946_v30, %v16945_v10  ;;  %v16957_v33 = vld [vmem:[#allocation865_spill] sm:$0xff]  ;;  %v16958_v27 = vld [vmem:[#allocation867_spill] sm:$0xff] }
 0x798   :  { %v5631_v10 = vld [vmem:[%s15067_s8 + $0xa0] sm:$0xff]  ;;  %v5632_v30 = vld [vmem:[%s15067_s8 + $0xa8] sm:$0xff] }
 0x79a   :  { %7041 = vmatpush1.bf16.msra.mxu0 %v7040_v28  ;;  %v7078_v28 = vpack.c.bf16 %v16948_v29, %v16947_v16  ;;  %v16977_v16 = vld [vmem:[#allocation885_spill] sm:$0xff]  ;;  %v16978_v29 = vld [vmem:[#allocation887_spill] sm:$0xff] }
 0x79b   :  { %7043 = vmatprep.subr.bf16.mxu0 %v7042_v32  ;;  %v7080_v32 = vpack.c.bf16 %v16950_v23, %v16949_v36  ;;  %v7234_v36 = vpack.c.bf16 %v5632_v30, %v5631_v10  ;;  %v5615_v23 = vld [vmem:[%s15067_s8 + $0x20] sm:$0xff]  ;;  %v16998_v10 = vld [vmem:[#allocation907_spill] sm:$0xff] }
 0x79e   :  { %7045 = vmatpush1.bf16.msra.mxu0 %v7044_v9  ;;  %v7082_v9 = vpack.c.bf16 %v16952_v19, %v16951_v18  ;;  %v16979_v18 = vld [vmem:[#allocation890_spill] sm:$0xff]  ;;  %v16980_v19 = vld [vmem:[#allocation892_spill] sm:$0xff] }
 0x79f   :  { %7047 = vmatprep.subr.bf16.mxu0 %v7046_v21  ;;  %v7084_v21 = vpack.c.bf16 %v16954_v4, %v16953_v39  ;;  %v5633_v39 = vld [vmem:[%s15067_s8 + $0xb0] sm:$0xff]  ;;  %v5634_v4 = vld [vmem:[%s15067_s8 + $0xb8] sm:$0xff] }
 0x7a2   :  { %7049 = vmatpush1.bf16.msra.mxu0 %v7048_v43  ;;  %v7086_v43 = vpack.c.bf16 %v16956_v12, %v16955_v8  ;;  %v16981_v8 = vld [vmem:[#allocation889_spill] sm:$0xff]  ;;  %v16982_v12 = vld [vmem:[#allocation891_spill] sm:$0xff] }
 0x7a3   :  { %7051 = vmatprep.subr.bf16.mxu0 %v7050_v15  ;;  %v7088_v15 = vpack.c.bf16 %v16958_v27, %v16957_v33  ;;  %v7238_v33 = vpack.c.bf16 %v5634_v4, %v5633_v39  ;;  %v5617_v27 = vld [vmem:[%s15067_s8 + $0x30] sm:$0xff] }
 0x7a4   :  { %v17006_v39 = vld [vmem:[#allocation915_spill] sm:$0xff] }
 0x7a6   :  { %7053 = vmatpush1.bf16.msra.mxu0 %v7052_v6  ;;  %v7090_v6 = vpack.c.bf16 %v16960_v11, %v16959_v17  ;;  %v16983_v17 = vld [vmem:[#allocation894_spill] sm:$0xff]  ;;  %v16984_v11 = vld [vmem:[#allocation896_spill] sm:$0xff] }
 0x7a7   :  { %7055 = vmatprep.subr.bf16.mxu0 %v7054_v61  ;;  %v7092_v61 = vpack.c.bf16 %v16962_v20, %v16961_v25  ;;  %v5635_v25 = vld [vmem:[%s15067_s8 + $0xc0] sm:$0xff]  ;;  %v5636_v20 = vld [vmem:[%s15067_s8 + $0xc8] sm:$0xff] }
 0x7aa   :  { %7057 = vmatpush1.bf16.msra.mxu0 %v7056_v57  ;;  %v7094_v57 = vpack.c.bf16 %v16964_v56, %v16963_v60  ;;  %v16985_v60 = vld [vmem:[#allocation893_spill] sm:$0xff]  ;;  %v16986_v56 = vld [vmem:[#allocation895_spill] sm:$0xff] }
 0x7ab   :  { %7059 = vmatprep.subr.bf16.mxu0 %v7058_v53  ;;  %v7096_v53 = vpack.c.bf16 %v16966_v52, %v16965_v58  ;;  %v7242_v58 = vpack.c.bf16 %v5636_v20, %v5635_v25  ;;  %v5619_v52 = vld [vmem:[%s15067_s8 + $0x40] sm:$0xff]  ;;  %v17014_v25 = vld [vmem:[#allocation923_spill] sm:$0xff] }
 0x7ad   :  { %v14780_v26 = vpop.f32.mrb[28].mxu1 }
 0x7ae   :  { %7061 = vmatpush1.bf16.msra.mxu0 %v7060_v49  ;;  %v14784_v35 = vpop.f32.mrb[29].mxu1  ;;  %v7098_v49 = vpack.c.bf16 %v16968_v48, %v16967_v54  ;;  %v16987_v54 = vld [vmem:[#allocation898_spill] sm:$0xff]  ;;  %v16988_v48 = vld [vmem:[#allocation900_spill] sm:$0xff] }
 0x7af   :  { %7063 = vmatprep.subr.bf16.mxu0 %v7062_v50  ;;  %v7100_v50 = vpack.c.bf16 %v16970_v45, %v16969_v44  ;;  %v5637_v44 = vld [vmem:[%s15067_s8 + $0xd0] sm:$0xff]  ;;  %v5638_v45 = vld [vmem:[%s15067_s8 + $0xd8] sm:$0xff] }
 0x7b0   :  { %v7246_v51 = vpack.c.bf16 %v5638_v45, %v5637_v44  ;;  %v17022_v44 = vld [vmem:[#allocation931_spill] sm:$0xff] }
 0x7b2   :  { %7065 = vmatpush1.bf16.msra.mxu0 %v7064_v47  ;;  %v7102_v47 = vpack.c.bf16 %v16972_v22, %v16971_v46  ;;  %v16989_v46 = vld [vmem:[#allocation897_spill] sm:$0xff]  ;;  %v16990_v22 = vld [vmem:[#allocation899_spill] sm:$0xff] }
 0x7b3   :  { %7067 = vmatprep.subr.bf16.mxu0 %v7066_v34  ;;  %v5611_v34 = vld [vmem:[%s15067_s8] sm:$0xff] }
 0x7b6   :  { %7069 = vmatpush1.bf16.msra.mxu0 %v7068_v1  ;;  %v7104_v1 = vpack.c.bf16 %v16974_v55, %v16973_v41  ;;  %v16991_v41 = vld [vmem:[#allocation902_spill] sm:$0xff]  ;;  %v16992_v55 = vld [vmem:[#allocation904_spill] sm:$0xff] }
 0x7b7   :  { %7071 = vmatprep.subr.bf16.mxu0 %v7070_v2  ;;  %v5630_v2 = vld [vmem:[%s15067_s8 + $0x98] sm:$0xff] }
 0x7b8   :  { %v7230_v63 = vpack.c.bf16 %v5630_v2, %v5629_v0  ;;  %v16993_v2 = vld [vmem:[#allocation901_spill] sm:$0xff] }
 0x7ba   :  { %7073 = vmatpush1.bf16.msra.mxu0 %v7072_v59  ;;  %v7106_v59 = vpack.c.bf16 %v16976_v7, %v16975_v5  ;;  %v16994_v5 = vld [vmem:[#allocation903_spill] sm:$0xff] }
 0x7bb   :  { %7075 = vmatprep.subr.bf16.mxu0 %v7074_v24  ;;  %v5614_v24 = vld [vmem:[%s15067_s8 + $0x18] sm:$0xff]  ;;  %v7124_v7 = vpack.c.bf16 %v16994_v5, %v16993_v2 }
 0x7bc   :  { %v17032_v2 = vld [vmem:[#allocation944_spill] sm:$0xff] }
 0x7be   :  { %7077 = vmatpush1.bf16.msra.mxu0 %v7076_v38 }
 0x7bf   :  { %7079 = vmatprep.subr.bf16.mxu0 %v7078_v28  ;;  %v7108_v28 = vpack.c.bf16 %v16978_v29, %v16977_v16  ;;  %v17000_v16 = vld [vmem:[#allocation912_spill] sm:$0xff] }
 0x7c2   :  { %7081 = vmatpush1.bf16.msra.mxu0 %v7080_v32  ;;  %v5616_v32 = vld [vmem:[%s15067_s8 + $0x28] sm:$0xff] }
 0x7c3   :  { %7083 = vmatprep.subr.bf16.mxu0 %v7082_v9  ;;  %v7110_v9 = vpack.c.bf16 %v16980_v19, %v16979_v18  ;;  %v17004_v18 = vld [vmem:[#allocation916_spill] sm:$0xff] }
 0x7c6   :  { %7085 = vmatpush1.bf16.msra.mxu0 %v7084_v21  ;;  %v7236_v21 = vpack.c.bf16 %v5616_v32, %v5615_v23  ;;  %v17003_v32 = vld [vmem:[#allocation914_spill] sm:$0xff] }
 0x7c7   :  { %7087 = vmatprep.subr.bf16.mxu0 %v7086_v43  ;;  %v7112_v43 = vpack.c.bf16 %v16982_v12, %v16981_v8  ;;  %v7134_v19 = vpack.c.bf16 %v17004_v18, %v17003_v32  ;;  %v17008_v8 = vld [vmem:[#allocation920_spill] sm:$0xff]  ;;  %v17043_v18 = vld [vmem:[#allocation954_spill] sm:$0xff] }
 0x7ca   :  { %7089 = vmatpush1.bf16.msra.mxu0 %v7088_v15  ;;  %v5618_v15 = vld [vmem:[%s15067_s8 + $0x38] sm:$0xff] }
 0x7cb   :  { %7091 = vmatprep.subr.bf16.mxu0 %v7090_v6  ;;  %v7114_v6 = vpack.c.bf16 %v16984_v11, %v16983_v17  ;;  %v17012_v17 = vld [vmem:[#allocation924_spill] sm:$0xff] }
 0x7ce   :  { %7093 = vmatpush1.bf16.msra.mxu0 %v7092_v61  ;;  %v7240_v61 = vpack.c.bf16 %v5618_v15, %v5617_v27  ;;  %v17011_v15 = vld [vmem:[#allocation922_spill] sm:$0xff] }
 0x7cf   :  { %7095 = vmatprep.subr.bf16.mxu0 %v7094_v57  ;;  %v7116_v57 = vpack.c.bf16 %v16986_v56, %v16985_v60  ;;  %v7142_v11 = vpack.c.bf16 %v17012_v17, %v17011_v15  ;;  %v17016_v60 = vld [vmem:[#allocation928_spill] sm:$0xff] }
 0x7d0   :  { %v17052_v15 = vld [vmem:[#allocation964_spill] sm:$0xff] }
 0x7d2   :  { %7097 = vmatpush1.bf16.msra.mxu0 %v7096_v53  ;;  %v5620_v53 = vld [vmem:[%s15067_s8 + $0x48] sm:$0xff] }
 0x7d3   :  { %7099 = vmatprep.subr.bf16.mxu0 %v7098_v49  ;;  %v7118_v49 = vpack.c.bf16 %v16988_v48, %v16987_v54  ;;  %v17020_v54 = vld [vmem:[#allocation932_spill] sm:$0xff] }
 0x7d5   :  { %5461 = vmatmul.mubr.f32.vlgmr.msra.gmra.mrb[0].mxu0 %v13863_v42  ;;  %v5612_v42 = vld [vmem:[%s15067_s8 + $0x8] sm:$0xff] }
 0x7d6   :  { %7101 = vmatpush1.bf16.msra.mxu0 %v7100_v50  ;;  %5531 = vmatprep.mubr.f32.mxu0 %v13872_v37  ;;  %v7228_v62 = vpack.c.bf16 %v5612_v42, %v5611_v34  ;;  %v5613_v37 = vld [vmem:[%s15067_s8 + $0x10] sm:$0xff]  ;;  %v7244_v50 = vpack.c.bf16 %v5620_v53, %v5619_v52  ;;  %v5622_v34 = vld [vmem:[%s15067_s8 + $0x58] sm:$0xff]  ;;  %v5640_v42 = vld [vmem:[%s15067_s8 + $0xe8] sm:$0xff] }
 0x7d7   :  { %7103 = vmatprep.subr.bf16.mxu0 %v7102_v47  ;;  %v7232_v38 = vpack.c.bf16 %v5614_v24, %v5613_v37  ;;  %v7120_v47 = vpack.c.bf16 %v16990_v22, %v16989_v46  ;;  %v7248_v0 = vpack.c.bf16 %v5622_v34, %v5621_v40  ;;  %v16997_v24 = vld [vmem:[#allocation905_spill] sm:$0xff]  ;;  %v17019_v53 = vld [vmem:[#allocation930_spill] sm:$0xff]  ;;  %v17024_v46 = vld [vmem:[#allocation936_spill] sm:$0xff] }
 0x7d8   :  { %7229 = vmatpush3.bf16.msra.mxu1 %v7228_v62  ;;  %v16995_v62 = vld [vmem:[#allocation906_spill] sm:$0xff]  ;;  %v7128_v30 = vpack.c.bf16 %v16998_v10, %v16997_v24  ;;  %v7150_v48 = vpack.c.bf16 %v17020_v54, %v17019_v53  ;;  %v17037_v10 = vld [vmem:[#allocation945_spill] sm:$0xff]  ;;  %v17060_v53 = vld [vmem:[#allocation972_spill] sm:$0xff] }
 0x7d9   :  { %7231 = vmatprep.subr.bf16.mxu1 %v7230_v63  ;;  %v16996_v63 = vld [vmem:[#allocation908_spill] sm:$0xff]  ;;  %v17027_v34 = vld [vmem:[#allocation938_spill] sm:$0xff] }
 0x7da   :  { %7105 = vmatpush1.bf16.msra.mxu0 %v7104_v1  ;;  %v7122_v1 = vpack.c.bf16 %v16992_v55, %v16991_v41  ;;  %v7126_v37 = vpack.c.bf16 %v16996_v63, %v16995_v62  ;;  %v17028_v41 = vld [vmem:[#allocation940_spill] sm:$0xff]  ;;  %v17035_v63 = vld [vmem:[#allocation946_spill] sm:$0xff] }
 0x7db   :  { %7107 = vmatprep.subr.bf16.mxu0 %v7106_v59  ;;  %v7250_v59 = vpack.c.bf16 %v5640_v42, %v5639_v3  ;;  %v7158_v55 = vpack.c.bf16 %v17028_v41, %v17027_v34  ;;  %v17030_v3 = vld [vmem:[#allocation939_spill] sm:$0xff]  ;;  %v17068_v34 = vld [vmem:[#allocation980_spill] sm:$0xff] }
 0x7dc   :  { %7233 = vmatpush3.bf16.msra.mxu1 %v7232_v38  ;;  %v16999_v38 = vld [vmem:[#allocation910_spill] sm:$0xff] }
 0x7dd   :  { %7235 = vmatprep.subr.bf16.mxu1 %v7234_v36  ;;  %v7130_v29 = vpack.c.bf16 %v17000_v16, %v16999_v38  ;;  %v17002_v36 = vld [vmem:[#allocation911_spill] sm:$0xff]  ;;  %v17039_v16 = vld [vmem:[#allocation950_spill] sm:$0xff] }
 0x7de   :  { %7109 = vmatpush1.bf16.msra.mxu0 %v7108_v28  ;;  %v17001_v28 = vld [vmem:[#allocation909_spill] sm:$0xff] }
 0x7df   :  { %7111 = vmatprep.subr.bf16.mxu0 %v7110_v9  ;;  %v7132_v23 = vpack.c.bf16 %v17002_v36, %v17001_v28  ;;  %v17005_v9 = vld [vmem:[#allocation913_spill] sm:$0xff] }
 0x7e0   :  { %7237 = vmatpush3.bf16.msra.mxu1 %v7236_v21  ;;  %v7136_v4 = vpack.c.bf16 %v17006_v39, %v17005_v9  ;;  %v17007_v21 = vld [vmem:[#allocation918_spill] sm:$0xff]  ;;  %v17041_v36 = vld [vmem:[#allocation949_spill] sm:$0xff]  ;;  %v17046_v39 = vld [vmem:[#allocation955_spill] sm:$0xff] }
 0x7e1   :  { %7239 = vmatprep.subr.bf16.mxu1 %v7238_v33  ;;  %v7138_v12 = vpack.c.bf16 %v17008_v8, %v17007_v21  ;;  %v17010_v33 = vld [vmem:[#allocation919_spill] sm:$0xff]  ;;  %v17047_v21 = vld [vmem:[#allocation958_spill] sm:$0xff]  ;;  %v17048_v8 = vld [vmem:[#allocation960_spill] sm:$0xff] }
 0x7e2   :  { %7113 = vmatpush1.bf16.msra.mxu0 %v7112_v43  ;;  %v17009_v43 = vld [vmem:[#allocation917_spill] sm:$0xff] }
 0x7e3   :  { %7115 = vmatprep.subr.bf16.mxu0 %v7114_v6  ;;  %v7140_v27 = vpack.c.bf16 %v17010_v33, %v17009_v43  ;;  %v17013_v6 = vld [vmem:[#allocation921_spill] sm:$0xff]  ;;  %v17050_v43 = vld [vmem:[#allocation959_spill] sm:$0xff] }
 0x7e4   :  { %7241 = vmatpush3.bf16.msra.mxu1 %v7240_v61  ;;  %v7144_v20 = vpack.c.bf16 %v17014_v25, %v17013_v6  ;;  %v17015_v61 = vld [vmem:[#allocation926_spill] sm:$0xff]  ;;  %v17054_v6 = vld [vmem:[#allocation963_spill] sm:$0xff] }
 0x7e5   :  { %7243 = vmatprep.subr.bf16.mxu1 %v7242_v58  ;;  %v7146_v56 = vpack.c.bf16 %v17016_v60, %v17015_v61  ;;  %v17018_v58 = vld [vmem:[#allocation927_spill] sm:$0xff]  ;;  %v17056_v61 = vld [vmem:[#allocation968_spill] sm:$0xff] }
 0x7e6   :  { %7117 = vmatpush1.bf16.msra.mxu0 %v7116_v57  ;;  %v17017_v57 = vld [vmem:[#allocation925_spill] sm:$0xff] }
 0x7e7   :  { %7119 = vmatprep.subr.bf16.mxu0 %v7118_v49  ;;  %v7148_v52 = vpack.c.bf16 %v17018_v58, %v17017_v57  ;;  %v17021_v49 = vld [vmem:[#allocation929_spill] sm:$0xff]  ;;  %v17058_v57 = vld [vmem:[#allocation967_spill] sm:$0xff] }
 0x7e8   :  { %7245 = vmatpush3.bf16.msra.mxu1 %v7244_v50  ;;  %v7152_v45 = vpack.c.bf16 %v17022_v44, %v17021_v49  ;;  %v17023_v50 = vld [vmem:[#allocation934_spill] sm:$0xff]  ;;  %v17062_v49 = vld [vmem:[#allocation971_spill] sm:$0xff] }
 0x7e9   :  { %7247 = vmatprep.subr.bf16.mxu1 %v7246_v51  ;;  %v7154_v22 = vpack.c.bf16 %v17024_v46, %v17023_v50  ;;  %v17026_v51 = vld [vmem:[#allocation935_spill] sm:$0xff]  ;;  %v17064_v50 = vld [vmem:[#allocation976_spill] sm:$0xff] }
 0x7ea   :  { %7121 = vmatpush1.bf16.msra.mxu0 %v7120_v47  ;;  %v17025_v47 = vld [vmem:[#allocation933_spill] sm:$0xff] }
 0x7eb   :  { %7123 = vmatprep.subr.bf16.mxu0 %v7122_v1  ;;  %v7156_v40 = vpack.c.bf16 %v17026_v51, %v17025_v47  ;;  %v17029_v1 = vld [vmem:[#allocation937_spill] sm:$0xff]  ;;  %v17066_v47 = vld [vmem:[#allocation975_spill] sm:$0xff] }
 0x7ec   :  { %7249 = vmatpush3.bf16.msra.mxu1 %v7248_v0  ;;  %v7160_v42 = vpack.c.bf16 %v17030_v3, %v17029_v1  ;;  %v17031_v0 = vld [vmem:[#allocation942_spill] sm:$0xff]  ;;  %v17070_v1 = vld [vmem:[#allocation979_spill] sm:$0xff] }
 0x7ed   :  { %7251 = vmatprep.subr.bf16.mxu1 %v7250_v59  ;;  %v7162_v5 = vpack.c.bf16 %v17032_v2, %v17031_v0  ;;  %v17034_v59 = vld [vmem:[#allocation943_spill] sm:$0xff]  ;;  %v17072_v0 = vld [vmem:[#allocation984_spill] sm:$0xff] }
 0x7ee   :  { %7125 = vmatpush1.bf16.msra.mxu0 %v7124_v7  ;;  %v17033_v7 = vld [vmem:[#allocation941_spill] sm:$0xff] }
 0x7ef   :  { %7127 = vmatprep.subr.bf16.mxu0 %v7126_v37  ;;  %v7164_v62 = vpack.c.bf16 %v17034_v59, %v17033_v7  ;;  %v17036_v37 = vld [vmem:[#allocation948_spill] sm:$0xff]  ;;  %v17074_v7 = vld [vmem:[#allocation983_spill] sm:$0xff] }
 0x7f0   :  { %v7166_v24 = vpack.c.bf16 %v17036_v37, %v17035_v63  ;;  %v17076_v63 = vld [vmem:[#allocation988_spill] sm:$0xff] }
 0x7f2   :  { %7129 = vmatpush1.bf16.msra.mxu0 %v7128_v30  ;;  %v17038_v30 = vld [vmem:[#allocation947_spill] sm:$0xff] }
 0x7f3   :  { %7131 = vmatprep.subr.bf16.mxu0 %v7130_v29  ;;  %v7168_v38 = vpack.c.bf16 %v17038_v30, %v17037_v10  ;;  %v17040_v29 = vld [vmem:[#allocation952_spill] sm:$0xff]  ;;  %v17078_v10 = vld [vmem:[#allocation987_spill] sm:$0xff] }
 0x7f4   :  { %v7170_v28 = vpack.c.bf16 %v17040_v29, %v17039_v16  ;;  %v17080_v16 = vld [vmem:[#allocation992_spill] sm:$0xff] }
 0x7f6   :  { %7133 = vmatpush1.bf16.msra.mxu0 %v7132_v23  ;;  %v17042_v23 = vld [vmem:[#allocation951_spill] sm:$0xff] }
 0x7f7   :  { %7135 = vmatprep.subr.bf16.mxu0 %v7134_v19  ;;  %v7172_v32 = vpack.c.bf16 %v17042_v23, %v17041_v36  ;;  %v17044_v19 = vld [vmem:[#allocation956_spill] sm:$0xff]  ;;  %v17082_v36 = vld [vmem:[#allocation991_spill] sm:$0xff] }
 0x7f8   :  { %v7174_v9 = vpack.c.bf16 %v17044_v19, %v17043_v18  ;;  %v17084_v18 = vld [vmem:[#allocation996_spill] sm:$0xff] }
 0x7fa   :  { %7137 = vmatpush1.bf16.msra.mxu0 %v7136_v4 }
 0x7fb   :  { %7139 = vmatprep.subr.bf16.mxu0 %v7138_v12  ;;  %v17049_v12 = vld [vmem:[#allocation957_spill] sm:$0xff] }
 0x7fc   :  { %v7180_v33 = vpack.c.bf16 %v17050_v43, %v17049_v12  ;;  %v17090_v12 = vld [vmem:[#allocation999_spill] sm:$0xff] }
 0x7fe   :  { %7141 = vmatpush1.bf16.msra.mxu0 %v7140_v27  ;;  %v17051_v27 = vld [vmem:[#allocation962_spill] sm:$0xff] }
 0x7ff   :  { %7143 = vmatprep.subr.bf16.mxu0 %v7142_v11  ;;  %v7182_v17 = vpack.c.bf16 %v17052_v15, %v17051_v27  ;;  %v17053_v11 = vld [vmem:[#allocation961_spill] sm:$0xff]  ;;  %v17092_v27 = vld [vmem:[#allocation1004_spill] sm:$0xff] }
 0x800   :  { %v7184_v25 = vpack.c.bf16 %v17054_v6, %v17053_v11  ;;  %v17094_v11 = vld [vmem:[#allocation1003_spill] sm:$0xff] }
 0x802   :  { %7145 = vmatpush1.bf16.msra.mxu0 %v7144_v20  ;;  %v17055_v20 = vld [vmem:[#allocation966_spill] sm:$0xff] }
 0x803   :  { %7147 = vmatprep.subr.bf16.mxu0 %v7146_v56  ;;  %v7186_v60 = vpack.c.bf16 %v17056_v61, %v17055_v20  ;;  %v17057_v56 = vld [vmem:[#allocation965_spill] sm:$0xff] }
 0x804   :  { %v7188_v58 = vpack.c.bf16 %v17058_v57, %v17057_v56  ;;  %v5624_v20 = vld [vmem:[%s15067_s8 + $0x68] sm:$0xff]  ;;  %v5642_v56 = vld [vmem:[%s15067_s8 + $0xf8] sm:$0xff] }
 0x806   :  { %7149 = vmatpush1.bf16.msra.mxu0 %v7148_v52  ;;  %v17059_v52 = vld [vmem:[#allocation970_spill] sm:$0xff] }
 0x807   :  { %7151 = vmatprep.subr.bf16.mxu0 %v7150_v48  ;;  %v7190_v54 = vpack.c.bf16 %v17060_v53, %v17059_v52  ;;  %v17061_v48 = vld [vmem:[#allocation969_spill] sm:$0xff]  ;;  %v4461_v53 = vld [vmem:[%s15066_s7] sm:$0x3] }
 0x808   :  { %v7192_v44 = vpack.c.bf16 %v17062_v49, %v17061_v48 }
 0x80a   :  { %7153 = vmatpush1.bf16.msra.mxu0 %v7152_v45  ;;  %v17063_v45 = vld [vmem:[#allocation974_spill] sm:$0xff] }
 0x80b   :  { %7155 = vmatprep.subr.bf16.mxu0 %v7154_v22  ;;  %v7194_v46 = vpack.c.bf16 %v17064_v50, %v17063_v45  ;;  %v17065_v22 = vld [vmem:[#allocation973_spill] sm:$0xff] }
 0x80c   :  { %v7196_v51 = vpack.c.bf16 %v17066_v47, %v17065_v22 }
 0x80e   :  { %7157 = vmatpush1.bf16.msra.mxu0 %v7156_v40  ;;  %v17067_v40 = vld [vmem:[#allocation978_spill] sm:$0xff] }
 0x80f   :  { %7159 = vmatprep.subr.bf16.mxu0 %v7158_v55  ;;  %v7198_v41 = vpack.c.bf16 %v17068_v34, %v17067_v40  ;;  %v17069_v55 = vld [vmem:[#allocation977_spill] sm:$0xff] }
 0x810   :  { %v7200_v3 = vpack.c.bf16 %v17070_v1, %v17069_v55  ;;  %v5775_v1 = vld [vmem:[%s15068_s9] ss:$0 sm:$0xff] }
 0x812   :  { %7161 = vmatpush1.bf16.msra.mxu0 %v7160_v42  ;;  %v17071_v42 = vld [vmem:[#allocation982_spill] sm:$0xff] }
 0x813   :  { %7163 = vmatprep.subr.bf16.mxu0 %v7162_v5  ;;  %v7202_v2 = vpack.c.bf16 %v17072_v0, %v17071_v42  ;;  %v17073_v5 = vld [vmem:[#allocation981_spill] sm:$0xff] }
 0x814   :  { %v7204_v59 = vpack.c.bf16 %v17074_v7, %v17073_v5 }
 0x815   :  { %5532 = vmatmul.mubr.f32.vlgmr.msra.gmra.mrb[0].mxu0 %v13869_v13  ;;  %v17045_v13 = vld [vmem:[#allocation953_spill] sm:$0xff] }
 0x816   :  { %7165 = vmatpush1.bf16.msra.mxu0 %v7164_v62  ;;  %5602 = vmatprep.mubr.f32.mxu0 %v13878_v31  ;;  %v7176_v4 = vpack.c.bf16 %v17046_v39, %v17045_v13  ;;  %v7178_v31 = vpack.c.bf16 %v17048_v8, %v17047_v21  ;;  %v17075_v62 = vld [vmem:[#allocation986_spill] sm:$0xff]  ;;  %v17086_v13 = vld [vmem:[#allocation995_spill] sm:$0xff]  ;;  %v17088_v21 = vld [vmem:[#allocation1000_spill] sm:$0xff] }
 0x817   :  { %7167 = vmatprep.subr.bf16.mxu0 %v7166_v24  ;;  %v7206_v37 = vpack.c.bf16 %v17076_v63, %v17075_v62  ;;  %v17077_v24 = vld [vmem:[#allocation985_spill] sm:$0xff] }
 0x818   :  { %v7208_v30 = vpack.c.bf16 %v17078_v10, %v17077_v24 }
 0x81a   :  { %7169 = vmatpush1.bf16.msra.mxu0 %v7168_v38  ;;  %v17079_v38 = vld [vmem:[#allocation990_spill] sm:$0xff] }
 0x81b   :  { %7171 = vmatprep.subr.bf16.mxu0 %v7170_v28  ;;  %v7210_v29 = vpack.c.bf16 %v17080_v16, %v17079_v38  ;;  %v17081_v28 = vld [vmem:[#allocation989_spill] sm:$0xff] }
 0x81c   :  { %v7212_v23 = vpack.c.bf16 %v17082_v36, %v17081_v28 }
 0x81e   :  { %7173 = vmatpush1.bf16.msra.mxu0 %v7172_v32  ;;  %v17083_v32 = vld [vmem:[#allocation994_spill] sm:$0xff] }
 0x81f   :  { %7175 = vmatprep.subr.bf16.mxu0 %v7174_v9  ;;  %v7214_v19 = vpack.c.bf16 %v17084_v18, %v17083_v32  ;;  %v17085_v9 = vld [vmem:[#allocation993_spill] sm:$0xff] }
 0x820   :  { %v7216_v39 = vpack.c.bf16 %v17086_v13, %v17085_v9 }
 0x822   :  { %7177 = vmatpush1.bf16.msra.mxu0 %v7176_v4  ;;  %v17087_v4 = vld [vmem:[#allocation998_spill] sm:$0xff] }
 0x823   :  { %7179 = vmatprep.subr.bf16.mxu0 %v7178_v31  ;;  %v7218_v8 = vpack.c.bf16 %v17088_v21, %v17087_v4  ;;  %v17089_v31 = vld [vmem:[#allocation997_spill] sm:$0xff] }
 0x824   :  { %v7220_v43 = vpack.c.bf16 %v17090_v12, %v17089_v31 }
 0x826   :  { %7181 = vmatpush1.bf16.msra.mxu0 %v7180_v33  ;;  %v17091_v33 = vld [vmem:[#allocation1002_spill] sm:$0xff] }
 0x827   :  { %7183 = vmatprep.subr.bf16.mxu0 %v7182_v17  ;;  %v7222_v15 = vpack.c.bf16 %v17092_v27, %v17091_v33  ;;  %v17093_v17 = vld [vmem:[#allocation1001_spill] sm:$0xff] }
 0x828   :  { %v7224_v6 = vpack.c.bf16 %v17094_v11, %v17093_v17 }
 0x82a   :  { %7185 = vmatpush1.bf16.msra.mxu0 %v7184_v25  ;;  %v5623_v25 = vld [vmem:[%s15067_s8 + $0x60] sm:$0xff] }
 0x82b   :  { %7187 = vmatprep.subr.bf16.mxu0 %v7186_v60  ;;  %v7252_v61 = vpack.c.bf16 %v5624_v20, %v5623_v25  ;;  %v5641_v60 = vld [vmem:[%s15067_s8 + $0xf0] sm:$0xff] }
 0x82c   :  { %v7254_v57 = vpack.c.bf16 %v5642_v56, %v5641_v60 }
 0x82d   :  { %7253 = vmatpush3.bf16.msra.mxu1 %v7252_v61 }
 0x82e   :  { %7189 = vmatpush1.bf16.msra.mxu0 %v7188_v58  ;;  %v5626_v58 = vld [vmem:[%s15067_s8 + $0x78] sm:$0xff]  ;;  %7255 = vmatprep.subr.bf16.mxu1 %v7254_v57 }
 0x82f   :  { %7191 = vmatprep.subr.bf16.mxu0 %v7190_v54  ;;  %v17095_v54 = vld [vmem:[#allocation1005_spill] sm:$0xff] }
 0x830   :  { %v17096_v48 = vsub.s32 0, %v17095_v54 }
 0x832   :  { %7193 = vmatpush1.bf16.msra.mxu0 %v7192_v44  ;;  %v4466_v49 = vrot.slane %v4461_v53, %v17096_v48  ;;  %v17097_v44 = vsub.s32 1, %v17095_v54 }
 0x833   :  { %7195 = vmatprep.subr.bf16.mxu0 %v7194_v46 }
 0x834   :  { %v4470_v45 = vrot.slane %v4461_v53, %v17097_v44  ;;  %v7258_v50 = vadd.f32 %v14780_v26, %v4466_v49 }
 0x836   :  { %7197 = vmatpush1.bf16.msra.mxu0 %v7196_v51  ;;  %v7260_v46 = vadd.f32 %v14784_v35, %v4470_v45 }
 0x837   :  { %7199 = vmatprep.subr.bf16.mxu0 %v7198_v41 }
 0x83a   :  { %7201 = vmatpush1.bf16.msra.mxu0 %v7200_v3 }
 0x83b   :  { %7203 = vmatprep.subr.bf16.mxu0 %v7202_v2 }
 0x83e   :  { %7205 = vmatpush1.bf16.msra.mxu0 %v7204_v59 }
 0x83f   :  { %7207 = vmatprep.subr.bf16.mxu0 %v7206_v37 }
 0x842   :  { %7209 = vmatpush1.bf16.msra.mxu0 %v7208_v30 }
 0x843   :  { %7211 = vmatprep.subr.bf16.mxu0 %v7210_v29 }
 0x846   :  { %7213 = vmatpush1.bf16.msra.mxu0 %v7212_v23 }
 0x847   :  { %7215 = vmatprep.subr.bf16.mxu0 %v7214_v19 }
 0x84a   :  { %7217 = vmatpush1.bf16.msra.mxu0 %v7216_v39 }
 0x84b   :  { %7219 = vmatprep.subr.bf16.mxu0 %v7218_v8 }
 0x84e   :  { %7221 = vmatpush1.bf16.msra.mxu0 %v7220_v43 }
 0x84f   :  { %7223 = vmatprep.subr.bf16.mxu0 %v7222_v15 }
 0x852   :  { %7225 = vmatpush1.bf16.msra.mxu0 %v7224_v6 }
 0x855   :  { %5603 = vmatmul.mubr.f32.vlgmr.msra.gmra.mrb[0].mxu0 %v13875_v14  ;;  %v5625_v14 = vld [vmem:[%s15067_s8 + $0x70] sm:$0xff] }
 0x856   :  { %v7256_v52 = vpack.c.bf16 %v5626_v58, %v5625_v14 }
 0x858   :  { %7257 = vmatpush3.bf16.msra.mxu1 %v7256_v52 }
 0x928   :  { %v5604_v22 = vpop.f32.mrb[0].mxu0 }
 0x929   :  { %v7259_v47 = vadd.f32 %v7258_v50, %v5604_v22  ;;  %v5606_v51 = vpop.f32.mrb[1].mxu0 }
 0x92a   :  { %v7261_v40 = vadd.f32 %v7260_v46, %v5606_v51 }
 0x92b   :  { %v5609_v41 = vmax.f32 %v7259_v47, 0.0 }
 0x92c   :  { %v5610_v34 = vmax.f32 %v7261_v40, 0.0 }
 0x92e   :  { %5714 = vmatprep.mubr.f32.mxu1 %v5610_v34 }
 0x92f   :  { %5715 = vmatmul.mubr.f32.vlgmr.msra.gmra.mrb[30].mxu1 %v5609_v41 }
 0xa02   :  { %v5847_v55 = vpop.f32.mrb[30].mxu1 }
 0xa03   :  { %v5848_v3 = vpop.f32.mrb[31].mxu1 }
 0xa04   :  { %v5849_v42 = vadd.f32 %v5848_v3, %v5847_v55 }
 0xa06   :  { %v5717_v26 = vadd.f32 %v5849_v42, %v5775_v1 }
 0xa08   :  { %5721 = vst.msk [vmem:[#allocation4] sm:$0x3] %vm5720_vm4, %v5717_v26 }
 0xa09   :  { %7443 = shalt.err (!%p7440_p4)
}
 0xa0a   :  { %s7444_s19 = scalar_lea.hbm %s15069_s10, 32 }
 0xa0b   :  { %p7445_p5 = scmp.ne.s32.totalorder %s15069_s10, %s7444_s19  ;;  %p7448_p6 = scmp.lt.u32.totalorder %s7444_s19, %s15069_s10 }
 0xa0d   :  { %p7450_p7 = pnand %p7448_p6, %p7445_p5 }
 0xa0f   :  { %7453 = shalt.err (!%p7450_p7)
}
 0xa10   :  { %5731 = dma.vmem_to_hbm [thread:$0]  %s5729_s5, 32, %s15069_s10, [#allocation5]  }
 0xa11   :  { %7456 = dma.done.wait [#allocation5], 32  }
 0xa12   :  { %7457 = vsyncadd [#allocation5], 4294967264 }
 0xa13   :  { %5735 = vsyncpa [#allocation5], 1 }
 0xa14   :  { %5736 = vsyncmov [#allocation3] }
 0xa17   :  { %s5737_s25 = vpop.sfrf %5736 }
 0xa18   :  { %p5776_p8 = scmp.ne.s32.totalorder %s5737_s25, 0 }
 0xa1a   :  { %5741 = shalt.err (%p5776_p8)  }

</bundles_post_ra>
